<compile_context>
chip_gen: v6e
topology: v6e:2x2x1
jax: 0.10.0
libtpu: 0.0.40
codegen_flags: <defaults>
</compile_context>

<pallas_src>
import functools

import jax
import jax.numpy as jnp
from jax.experimental import pallas as pl
from jax.experimental.pallas import tpu as pltpu

EPS = 0.1                       # BatchNorm eps from the module
BETA = 0.6                      # mixing coefficient
CONV_CHANNELS = 128
KERNEL_HEIGHTS = (4, 8, 16)     # cnn1 / cnn2 / cnn3
AA_DIM = 20                     # one-hot amino-acid width == conv kernel width
NUM_BRANCHES = len(KERNEL_HEIGHTS)
INPUT_FEATURE = NUM_BRANCHES * CONV_CHANNELS   # 384, hardcoded in the PyTorch module
KH_MAX = max(KERNEL_HEIGHTS)
PACK = 8                        # shifted copies packed along lanes (8*20 = 160)
PACK_DIM = PACK * AA_DIM


def _round_up(x, m):
    return (x + m - 1) // m * m


def _pick_batch_tile(B, max_tile):
    """Batch tile: multiple of 8, <= max_tile; prefer >=2 grid tiles along the
    'parallel' axis so v7x's second TensorCore gets work.  Tiny batches stay a
    single tile so v5e/v6e (one TC) never pay for padded rows."""
    b8 = _round_up(B, 8)
    bt = min(b8, max_tile)
    if bt == b8 and b8 >= 16 and b8 % 16 == 0:
        bt = b8 // 2
    return bt


def _sigmoid(x):
    # numerically-stable sigmoid via tanh (EUP slot); identical to torch.sigmoid
    return 0.5 * (jnp.tanh(0.5 * x) + 1.0)


# --------------------------- fused CNN feature extractor ---------------------------

def _fused_conv_kernel(x_ref, w12_ref, w3a_ref, w3b_ref, lim_ref,
                       b_ref, sc_ref, sh_ref, o_ref, acc_ref, *,
                       seq_len, pos_tile):
    """One (batch_tile, position_tile) step of the fused 3-branch CNN stage."""
    t = pl.program_id(1)
    bt, n_out = acc_ref.shape

    @pl.when(t == 0)
    def _init():
        acc_ref[...] = jnp.full(acc_ref.shape, -jnp.inf, acc_ref.dtype)

    # Two sublane-aligned window reads of the 8-way packed sequence:
    #   xa[p, g*20 + a] = x_seq[p + g, a]      for g in 0..7
    #   xb[p, g*20 + a] = x_seq[p + 8 + g, a]  (only the kh=16 branch needs it)
    start = pl.multiple_of(t * pos_tile, pos_tile)
    start8 = pl.multiple_of(t * pos_tile + PACK, PACK)
    xa = x_ref[:, pl.ds(start, pos_tile), :].reshape(bt * pos_tile, PACK_DIM)
    xb = x_ref[:, pl.ds(start8, pos_tile), :].reshape(bt * pos_tile, PACK_DIM)

    # Raw conv scores (no bias yet).  branch1 (kh=4) + branch2 (kh=8) share one
    # K=160 weight slab (branch1 rows 80..159 are zero); branch3 (kh=16) is two
    # K=160 slabs.  bf16 operands, f32 accumulation.
    s12 = jnp.dot(xa, w12_ref[...], preferred_element_type=jnp.float32)
    s3 = (jnp.dot(xa, w3a_ref[...], preferred_element_type=jnp.float32)
          + jnp.dot(xb, w3b_ref[...], preferred_element_type=jnp.float32))
    s = jnp.concatenate([s12, s3], axis=-1).reshape(bt, pos_tile, n_out)

    # Running MaxPool2d over the full conv height.  Positions invalid for a
    # branch (p >= L - kh + 1, which includes the zero padding) are masked to
    # -inf, but only tiles touching the boundary pay the mask pass.
    boundary = seq_len - KH_MAX + 1      # first position invalid for some branch
    tile_end = (t + 1) * pos_tile

    @pl.when(tile_end <= boundary)
    def _all_valid():
        acc_ref[...] = jnp.maximum(acc_ref[...], jnp.max(s, axis=1))

    @pl.when(tile_end > boundary)
    def _boundary_tile():
        pos = (jax.lax.broadcasted_iota(jnp.int32, (pos_tile, n_out), 0)
               + t * pos_tile)
        valid = pos < lim_ref[...]       # per-channel limit L - kh + 1
        sm = jnp.where(valid[None], s, -jnp.inf)
        acc_ref[...] = jnp.maximum(acc_ref[...], jnp.max(sm, axis=1))

    @pl.when(t == pl.num_programs(1) - 1)
    def _finalize():
        # Hoisted epilogue: relu(max_p(score) + b) == max_p(relu(score + b));
        # then eval-mode BatchNorm1d folded to scale/shift; Dropout -> identity.
        m = acc_ref[...]
        o_ref[...] = jnp.maximum(m + b_ref[...], 0.0) * sc_ref[...] + sh_ref[...]


def fused_conv_features(x, conv_params, *, max_pos_tile=512, max_batch_tile=8,
                        conv_dtype=jnp.bfloat16):
    """All three CNN branches -> (B, 384) input_feature in one pallas_call."""
    B = x.shape[0]
    L = x.shape[2]
    assert x.shape[1] == 1 and x.shape[3] == AA_DIM and L >= KH_MAX
    n_out = NUM_BRANCHES * CONV_CHANNELS

    p_total = L - min(KERNEL_HEIGHTS) + 1          # positions of the widest branch
    pos_tile = min(_round_up(p_total, 8), max_pos_tile)
    num_pt = -(-p_total // pos_tile)
    l_pack = num_pt * pos_tile + PACK              # window reads at start and start+8
    l_raw = l_pack + PACK - 1

    bt = _pick_batch_tile(B, max_batch_tile)
    b_pad = _round_up(B, bt)

    x_seq = jnp.pad(x[:, 0, :, :], ((0, b_pad - B), (0, l_raw - L), (0, 0)))
    # 8 shifted copies packed along the lane axis (exact in bf16 for one-hot input):
    #   x_pack[b, p, g*20:(g+1)*20] = x_seq[b, p+g, :]
    x_pack = jnp.concatenate([x_seq[:, g:g + l_pack, :] for g in range(PACK)],
                             axis=-1).astype(conv_dtype)           # (b_pad, l_pack, 160)

    limit = jnp.concatenate(
        [jnp.full((1, CONV_CHANNELS), L - kh + 1, jnp.int32) for kh in KERNEL_HEIGHTS],
        axis=1)                                                    # (1, 384)

    kernel = functools.partial(_fused_conv_kernel, seq_len=L, pos_tile=pos_tile)
    out = pl.pallas_call(
        kernel,
        grid=(b_pad // bt, num_pt),
        in_specs=[
            pl.BlockSpec((bt, l_pack, PACK_DIM), lambda b, t: (b, 0, 0)),
            pl.BlockSpec((PACK_DIM, 2 * CONV_CHANNELS), lambda b, t: (0, 0)),
            pl.BlockSpec((PACK_DIM, CONV_CHANNELS), lambda b, t: (0, 0)),
            pl.BlockSpec((PACK_DIM, CONV_CHANNELS), lambda b, t: (0, 0)),
            pl.BlockSpec((1, n_out), lambda b, t: (0, 0)),
            pl.BlockSpec((1, n_out), lambda b, t: (0, 0)),
            pl.BlockSpec((1, n_out), lambda b, t: (0, 0)),
            pl.BlockSpec((1, n_out), lambda b, t: (0, 0)),
        ],
        out_specs=pl.BlockSpec((bt, n_out), lambda b, t: (b, 0)),
        out_shape=jax.ShapeDtypeStruct((b_pad, n_out), jnp.float32),
        scratch_shapes=[pltpu.VMEM((bt, n_out), jnp.float32)],
        compiler_params=pltpu.CompilerParams(
            dimension_semantics=("parallel", "arbitrary"),
            # explicit scoped-VMEM budget (v5e default 16 MiB / v6e-v7x 32 MiB are
            # too tight for the largest tiles); actual usage stays well below this.
            vmem_limit_bytes=64 * 1024 * 1024),
    )(x_pack,
      conv_params["w12"].astype(conv_dtype),
      conv_params["w3a"].astype(conv_dtype),
      conv_params["w3b"].astype(conv_dtype),
      limit, conv_params["b"], conv_params["scale"], conv_params["shift"])
    return out[:B]


# --------------------------- fused hierarchical dense head ---------------------------

def _fused_dense_kernel(*refs, treedef, n_param_leaves, n_levels):
    feat_ref = refs[0]
    param_refs = refs[1:1 + n_param_leaves]
    out_refs = refs[1 + n_param_leaves:]
    g_out_ref = out_refs[0]
    local_out_refs = out_refs[1:]
    p = jax.tree_util.tree_unflatten(treedef, list(param_refs))

    feat = feat_ref[...]                               # (Bt, 384)

    def dot(a, w_ref):
        return jnp.dot(a, w_ref[...], preferred_element_type=jnp.float32)

    # global hidden chain (torch.cat feeds replaced by weight-slab splits)
    g_hidden = []
    prev = None
    for i in range(n_levels):
        layer = p["global_hidden"][i]
        h = dot(feat, layer["wf"])
        if i > 0:
            h = h + dot(prev, layer["wg"])
        h = jnp.maximum(h + layer["b"][...], 0.0)                     # ReLU
        prev = h * layer["scale"][...] + layer["shift"][...]          # BN eval (+Dropout=id)
        g_hidden.append(prev)

    go = p["global_out"]
    g_out_ref[...] = _sigmoid(dot(feat, go["wf"]) + dot(prev, go["wg"]) + go["b"][...])

    # local hierarchical branches
    prev_lo = None
    for i in range(n_levels):
        layer = p["local_hidden"][i]
        h = dot(feat, layer["wf"]) + dot(g_hidden[i], layer["wg"])
        if i > 0:
            h = h + dot(prev_lo, layer["wp"])   # padded lanes of prev_lo hit zero rows
        h = jnp.maximum(h + layer["b"][...], 0.0)
        lh = h * layer["scale"][...] + layer["shift"][...]
        head = p["local_out"][i]
        prev_lo = _sigmoid(dot(lh, head["w"]) + head["b"][...])
        local_out_refs[i][...] = prev_lo


def _pad_cols(a, n):
    return a if a.shape[1] == n else jnp.pad(a, ((0, 0), (0, n - a.shape[1])))


def _pad_rows(a, n):
    return a if a.shape[0] == n else jnp.pad(a, ((0, n - a.shape[0]), (0, 0)))


def fused_dense_head(feat, dense_params, out_sizes, beta, *, max_batch_tile=128):
    """Whole hierarchical head in one pallas_call (weights VMEM-resident)."""
    B, F = feat.shape
    n_levels = len(out_sizes)
    gout = sum(out_sizes)
    goutp = _round_up(gout, 128)                     # lane-dense sigmoid heads
    outp = [_round_up(o, 128) for o in out_sizes]

    bt = _pick_batch_tile(B, max_batch_tile)
    b_pad = _round_up(B, bt)
    feat_p = jnp.pad(feat, ((0, b_pad - B), (0, 0)))

    dp = dense_params
    kp = {
        "global_hidden": dp["global_hidden"],
        "global_out": {"wf": _pad_cols(dp["global_out"]["wf"], goutp),
                       "wg": _pad_cols(dp["global_out"]["wg"], goutp),
                       "b": _pad_cols(dp["global_out"]["b"], goutp)},
        "local_hidden": [],
        "local_out": [],
    }
    for i in range(n_levels):
        lh = dict(dp["local_hidden"][i])
        if i > 0:
            lh["wp"] = _pad_rows(lh["wp"], outp[i - 1])   # zero rows -> math unchanged
        kp["local_hidden"].append(lh)
        lo = dp["local_out"][i]
        kp["local_out"].append({"w": _pad_cols(lo["w"], outp[i]),
                                "b": _pad_cols(lo["b"], outp[i])})

    leaves, treedef = jax.tree_util.tree_flatten(kp)
    kernel = functools.partial(_fused_dense_kernel, treedef=treedef,
                               n_param_leaves=len(leaves), n_levels=n_levels)

    in_specs = [pl.BlockSpec((bt, F), lambda b: (b, 0))]
    for leaf in leaves:
        assert leaf.ndim == 2
        in_specs.append(pl.BlockSpec(leaf.shape, lambda b: (0, 0)))
    out_specs = [pl.BlockSpec((bt, goutp), lambda b: (b, 0))]
    out_shape = [jax.ShapeDtypeStruct((b_pad, goutp), jnp.float32)]
    for i in range(n_levels):
        out_specs.append(pl.BlockSpec((bt, outp[i]), lambda b: (b, 0)))
        out_shape.append(jax.ShapeDtypeStruct((b_pad, outp[i]), jnp.float32))

    outs = pl.pallas_call(
        kernel,
        grid=(b_pad // bt,),
        in_specs=in_specs,
        out_specs=out_specs,
        out_shape=out_shape,
        compiler_params=pltpu.CompilerParams(
            dimension_semantics=("parallel",),
            # double-buffered weight slabs alone can exceed v5e's 16 MiB default
            # scoped VMEM at relu_size=384; raise the limit explicitly.
            vmem_limit_bytes=64 * 1024 * 1024),
    )(feat_p, *leaves)

    global_output = outs[0][:B, :gout]
    local_output = jnp.concatenate(
        [outs[1 + i][:B, :out_sizes[i]] for i in range(n_levels)], axis=1)
    final_all = beta * global_output + (1.0 - beta) * local_output
    return global_output, local_output, final_all


# --------------------------- parameters & forward ---------------------------

def _bn_affine(key, c):
    k1, k2, k3, k4 = jax.random.split(key, 4)
    gamma = 1.0 + 0.1 * jax.random.normal(k1, (c,), jnp.float32)
    beta = 0.1 * jax.random.normal(k2, (c,), jnp.float32)
    mean = 0.1 * jax.random.normal(k3, (c,), jnp.float32)
    var = 1.0 + 0.1 * jax.random.uniform(k4, (c,), jnp.float32)
    scale = gamma / jnp.sqrt(var + EPS)
    shift = beta - mean * scale
    return scale[None, :], shift[None, :]


def init_params(key, out_sizes, relu_size):
    keys = iter(jax.random.split(key, 128))

    def lin(din, dout):
        w = 0.05 * jax.random.normal(next(keys), (din, dout), jnp.float32)
        b = 0.05 * jax.random.normal(next(keys), (1, dout), jnp.float32)
        return w, b

    # Per-branch conv weights packed as K=160 slabs.  A PyTorch Conv2d weight
    # (128, 1, kh, 20) maps here via transpose to (kh, 20, 128); flattening rows
    # as g*20 + a matches the lane-packed input x_pack[p, g*20+a] = x[p+g, a].
    #   w12: (160, 256) = [branch1 (kh=4, rows 80..159 zero) | branch2 (kh=8)]
    #   w3a / w3b: (160, 128) = branch3 (kh=16) rows 0..7 / rows 8..15
    w_branch, b_parts, sc_parts, sh_parts = [], [], [], []
    for kh in KERNEL_HEIGHTS:
        w = 0.05 * jax.random.normal(next(keys), (kh, AA_DIM, CONV_CHANNELS), jnp.float32)
        w_branch.append(w)
        b_parts.append(0.05 * jax.random.normal(next(keys), (1, CONV_CHANNELS), jnp.float32))
        s, sh = _bn_affine(next(keys), CONV_CHANNELS)
        sc_parts.append(s)
        sh_parts.append(sh)
    w1 = jnp.pad(w_branch[0], ((0, PACK - KERNEL_HEIGHTS[0]), (0, 0), (0, 0)))
    w12 = jnp.concatenate([w1.reshape(PACK_DIM, CONV_CHANNELS),
                           w_branch[1].reshape(PACK_DIM, CONV_CHANNELS)], axis=1)
    w3a = w_branch[2][:PACK].reshape(PACK_DIM, CONV_CHANNELS)
    w3b = w_branch[2][PACK:].reshape(PACK_DIM, CONV_CHANNELS)
    conv = {"w12": w12, "w3a": w3a, "w3b": w3b,
            "b": jnp.concatenate(b_parts, axis=1),
            "scale": jnp.concatenate(sc_parts, axis=1),
            "shift": jnp.concatenate(sh_parts, axis=1)}

    # dense hierarchical head, stored as concat-free weight slabs
    n_levels = len(out_sizes)
    F, R = INPUT_FEATURE, relu_size

    global_hidden = []
    for i in range(n_levels):
        din = F if i == 0 else F + R
        w, b = lin(din, R)
        s, sh = _bn_affine(next(keys), R)
        layer = {"wf": w[:F], "b": b, "scale": s, "shift": sh}
        if i > 0:
            layer["wg"] = w[F:]
        global_hidden.append(layer)

    gw, gb = lin(F + R, sum(out_sizes))
    global_out = {"wf": gw[:F], "wg": gw[F:], "b": gb}

    local_hidden, local_out = [], []
    for i in range(n_levels):
        din = F + R if i == 0 else F + R + out_sizes[i - 1]
        w, b = lin(din, R)
        s, sh = _bn_affine(next(keys), R)
        layer = {"wf": w[:F], "wg": w[F:F + R], "b": b, "scale": s, "shift": sh}
        if i > 0:
            layer["wp"] = w[F + R:]
        local_hidden.append(layer)
        ow, ob = lin(R, out_sizes[i])
        local_out.append({"w": ow, "b": ob})

    dense = {"global_hidden": global_hidden, "global_out": global_out,
             "local_hidden": local_hidden, "local_out": local_out}
    return {"conv": conv, "dense": dense}


def ecpick_forward(x, params, out_sizes, beta=BETA):
    input_feature = fused_conv_features(x, params["conv"])            # (B, 384)
    global_output, local_output, final_all = fused_dense_head(
        input_feature, params["dense"], out_sizes, beta)
    start = sum(out_sizes[:-1])
    end = sum(out_sizes)
    return {
        "local_output": local_output,
        "global_output": global_output,
        "final_output": final_all[:, start:end],
        "final_output_all": final_all,
    }


# --------------------------- demo ---------------------------

if __name__ == "__main__":
    B, L = 8, 64                        # scaled-down sequence length (original L=1000)
    out_sizes = (8, 16, 24)             # hierarchical output_classes sizes
    relu_size = 384                     # module default

    key = jax.random.PRNGKey(0)
    kx, kp = jax.random.split(key)
    # one-hot amino-acid encoding, as in ECPICK (exact under the bf16 cast)
    aa = jax.random.randint(kx, (B, L), 0, AA_DIM)
    x = jax.nn.one_hot(aa, AA_DIM, dtype=jnp.float32).reshape(B, 1, L, AA_DIM)
    params = init_params(kp, out_sizes, relu_size)

    fwd = jax.jit(functools.partial(ecpick_forward, out_sizes=out_sizes, beta=BETA))
    out = fwd(x, params)
    out = jax.tree_util.tree_map(jax.block_until_ready, out)

    assert out["global_output"].shape == (B, sum(out_sizes))
    assert out["local_output"].shape == (B, sum(out_sizes))
    assert out["final_output_all"].shape == (B, sum(out_sizes))
    assert out["final_output"].shape == (B, out_sizes[-1])
    assert all(bool(jnp.all(jnp.isfinite(v))) for v in out.values())
    print("KERNEL_OK")
</pallas_src>

<mosaic_0001>
module attributes {stable_mosaic.version = 11 : i64} {
  func.func @_fused_conv_kernel(%arg0: i32, %arg1: i32, %arg2: memref<8x72x160xbf16, #tpu.memory_space<vmem>>, %arg3: memref<160x256xbf16, #tpu.memory_space<vmem>>, %arg4: memref<160x128xbf16, #tpu.memory_space<vmem>>, %arg5: memref<160x128xbf16, #tpu.memory_space<vmem>>, %arg6: memref<1x384xi32, #tpu.memory_space<vmem>>, %arg7: memref<1x384xf32, #tpu.memory_space<vmem>>, %arg8: memref<1x384xf32, #tpu.memory_space<vmem>>, %arg9: memref<1x384xf32, #tpu.memory_space<vmem>>, %arg10: memref<8x384xf32, #tpu.memory_space<vmem>>, %arg11: memref<8x384xf32, #tpu.memory_space<vmem>>) attributes {dimension_semantics = [#tpu.dimension_semantics<parallel>, #tpu.dimension_semantics<arbitrary>], iteration_bounds = array<i64: 1, 1>, scalar_prefetch = 0 : i64, scratch_operands = 1 : i64, tpu.core_type = #tpu.core_type<tc>, window_params = [{transform_indices = @transform_0, window_bounds = array<i64: 8, 72, 160>}, {pipeline_mode = #tpu.pipeline_mode<synchronous>, transform_indices = @transform_1, window_bounds = array<i64: 160, 256>}, {pipeline_mode = #tpu.pipeline_mode<synchronous>, transform_indices = @transform_2, window_bounds = array<i64: 160, 128>}, {pipeline_mode = #tpu.pipeline_mode<synchronous>, transform_indices = @transform_3, window_bounds = array<i64: 160, 128>}, {pipeline_mode = #tpu.pipeline_mode<synchronous>, transform_indices = @transform_4, window_bounds = array<i64: 1, 384>}, {pipeline_mode = #tpu.pipeline_mode<synchronous>, transform_indices = @transform_5, window_bounds = array<i64: 1, 384>}, {pipeline_mode = #tpu.pipeline_mode<synchronous>, transform_indices = @transform_6, window_bounds = array<i64: 1, 384>}, {pipeline_mode = #tpu.pipeline_mode<synchronous>, transform_indices = @transform_7, window_bounds = array<i64: 1, 384>}, {transform_indices = @transform_8, window_bounds = array<i64: 8, 384>}]} {
    %c0_i32 = arith.constant 0 : i32
    %0 = arith.cmpi eq, %arg1, %c0_i32 : i32
    %1 = arith.extui %0 : i1 to i32
    %c0_i32_0 = arith.constant 0 : i32
    %2 = arith.cmpi ne, %1, %c0_i32_0 : i32
    scf.if %2 {
      %cst_19 = arith.constant 0xFF800000 : f32
      %34 = vector.broadcast %cst_19 : f32 to vector<8x384xf32>
      %c0_20 = arith.constant 0 : index
      %c0_21 = arith.constant 0 : index
      %35 = vector.load %arg11[%c0_20, %c0_21] : memref<8x384xf32, #tpu.memory_space<vmem>>, vector<8x384xf32>
      tpu.vector_store %arg11[%c0_20, %c0_21], %34 {strides = array<i32>} : memref<8x384xf32, #tpu.memory_space<vmem>>, vector<8x384xf32>,
    } else {
    }
    %c64_i32 = arith.constant 64 : i32
    %3 = arith.muli %arg1, %c64_i32 : i32
    %4 = tpu.assume_multiple %3, 64 : i32
    %c64_i32_1 = arith.constant 64 : i32
    %5 = arith.muli %arg1, %c64_i32_1 : i32
    %c8_i32 = arith.constant 8 : i32
    %6 = arith.addi %5, %c8_i32 : i32
    %7 = tpu.assume_multiple %6, 8 : i32
    %c0 = arith.constant 0 : index
    %8 = arith.index_cast %4 : i32 to index
    %c0_2 = arith.constant 0 : index
    %9 = vector.load %arg2[%c0, %8, %c0_2] : memref<8x72x160xbf16, #tpu.memory_space<vmem>>, vector<8x64x160xbf16>
    %10 = vector.shape_cast %9 : vector<8x64x160xbf16> to vector<512x160xbf16>
    %c0_3 = arith.constant 0 : index
    %11 = arith.index_cast %7 : i32 to index
    %c0_4 = arith.constant 0 : index
    %12 = vector.load %arg2[%c0_3, %11, %c0_4] : memref<8x72x160xbf16, #tpu.memory_space<vmem>>, vector<8x64x160xbf16>
    %13 = vector.shape_cast %12 : vector<8x64x160xbf16> to vector<512x160xbf16>
    %c0_5 = arith.constant 0 : index
    %c0_6 = arith.constant 0 : index
    %14 = vector.load %arg3[%c0_5, %c0_6] : memref<160x256xbf16, #tpu.memory_space<vmem>>, vector<160x256xbf16>
    %cst = arith.constant dense<0.000000e+00> : vector<512x256xf32>
    %15 = tpu.matmul %10, %14, %cst {dimension_numbers = #tpu.dot_dimension_numbers<[1], [0], [0], [1], [0, 0, 1, 1], [], []>} : vector<512x160xbf16>, vector<160x256xbf16>, vector<512x256xf32> -> vector<512x256xf32>
    %c0_7 = arith.constant 0 : index
    %c0_8 = arith.constant 0 : index
    %16 = vector.load %arg4[%c0_7, %c0_8] : memref<160x128xbf16, #tpu.memory_space<vmem>>, vector<160x128xbf16>
    %cst_9 = arith.constant dense<0.000000e+00> : vector<512x128xf32>
    %17 = tpu.matmul %10, %16, %cst_9 {dimension_numbers = #tpu.dot_dimension_numbers<[1], [0], [0], [1], [0, 0, 1, 1], [], []>} : vector<512x160xbf16>, vector<160x128xbf16>, vector<512x128xf32> -> vector<512x128xf32>
    %c0_10 = arith.constant 0 : index
    %c0_11 = arith.constant 0 : index
    %18 = vector.load %arg5[%c0_10, %c0_11] : memref<160x128xbf16, #tpu.memory_space<vmem>>, vector<160x128xbf16>
    %cst_12 = arith.constant dense<0.000000e+00> : vector<512x128xf32>
    %19 = tpu.matmul %13, %18, %cst_12 {dimension_numbers = #tpu.dot_dimension_numbers<[1], [0], [0], [1], [0, 0, 1, 1], [], []>} : vector<512x160xbf16>, vector<160x128xbf16>, vector<512x128xf32> -> vector<512x128xf32>
    %20 = arith.addf %17, %19 : vector<512x128xf32>
    %21 = tpu.concatenate %15, %20 in 1 : vector<512x256xf32>, vector<512x128xf32> -> vector<512x384xf32>
    %22 = vector.shape_cast %21 : vector<512x384xf32> to vector<8x64x384xf32>
    %c1_i32 = arith.constant 1 : i32
    %23 = arith.addi %arg1, %c1_i32 : i32
    %c64_i32_13 = arith.constant 64 : i32
    %24 = arith.muli %23, %c64_i32_13 : i32
    %c49_i32 = arith.constant 49 : i32
    %25 = arith.cmpi sle, %24, %c49_i32 : i32
    %26 = arith.extui %25 : i1 to i32
    %c0_i32_14 = arith.constant 0 : i32
    %27 = arith.cmpi ne, %26, %c0_i32_14 : i32
    scf.if %27 {
      %c0_19 = arith.constant 0 : index
      %c0_20 = arith.constant 0 : index
      %34 = vector.load %arg11[%c0_19, %c0_20] : memref<8x384xf32, #tpu.memory_space<vmem>>, vector<8x384xf32>
      %cst_21 = arith.constant dense<0xFF800000> : vector<8x384xf32>
      %35 = vector.multi_reduction <maximumf>, %22, %cst_21 [1] : vector<8x64x384xf32> to vector<8x384xf32>
      %36 = arith.maximumf %34, %35 : vector<8x384xf32>
      %c0_22 = arith.constant 0 : index
      %c0_23 = arith.constant 0 : index
      %37 = vector.load %arg11[%c0_22, %c0_23] : memref<8x384xf32, #tpu.memory_space<vmem>>, vector<8x384xf32>
      tpu.vector_store %arg11[%c0_22, %c0_23], %36 {strides = array<i32>} : memref<8x384xf32, #tpu.memory_space<vmem>>, vector<8x384xf32>,
    } else {
    }
    %c49_i32_15 = arith.constant 49 : i32
    %28 = arith.cmpi sgt, %24, %c49_i32_15 : i32
    %29 = arith.extui %28 : i1 to i32
    %c0_i32_16 = arith.constant 0 : i32
    %30 = arith.cmpi ne, %29, %c0_i32_16 : i32
    scf.if %30 {
      %34 = tpu.iota {dimensions = array<i32: 0>} : vector<64x384xi32>
      %c64_i32_19 = arith.constant 64 : i32
      %35 = arith.muli %arg1, %c64_i32_19 : i32
      %36 = vector.broadcast %35 : i32 to vector<64x384xi32>
      %37 = arith.addi %34, %36 : vector<64x384xi32>
      %c0_20 = arith.constant 0 : index
      %c0_21 = arith.constant 0 : index
      %38 = vector.load %arg6[%c0_20, %c0_21] : memref<1x384xi32, #tpu.memory_space<vmem>>, vector<1x384xi32>
      %39 = vector.broadcast %38 : vector<1x384xi32> to vector<64x384xi32>
      %40 = arith.cmpi slt, %37, %39 : vector<64x384xi32>
      %41 = vector.shape_cast %40 : vector<64x384xi1> to vector<1x64x384xi1>
      %cst_22 = arith.constant 0xFF800000 : f32
      %42 = vector.shape_cast %41 : vector<1x64x384xi1> to vector<1x64x384xi1>
      %43 = vector.broadcast %42 : vector<1x64x384xi1> to vector<8x64x384xi1>
      %44 = vector.broadcast %cst_22 : f32 to vector<8x64x384xf32>
      %45 = arith.select %43, %22, %44 : vector<8x64x384xi1>, vector<8x64x384xf32>
      %c0_23 = arith.constant 0 : index
      %c0_24 = arith.constant 0 : index
      %46 = vector.load %arg11[%c0_23, %c0_24] : memref<8x384xf32, #tpu.memory_space<vmem>>, vector<8x384xf32>
      %cst_25 = arith.constant dense<0xFF800000> : vector<8x384xf32>
      %47 = vector.multi_reduction <maximumf>, %45, %cst_25 [1] : vector<8x64x384xf32> to vector<8x384xf32>
      %48 = arith.maximumf %46, %47 : vector<8x384xf32>
      %c0_26 = arith.constant 0 : index
      %c0_27 = arith.constant 0 : index
      %49 = vector.load %arg11[%c0_26, %c0_27] : memref<8x384xf32, #tpu.memory_space<vmem>>, vector<8x384xf32>
      tpu.vector_store %arg11[%c0_26, %c0_27], %48 {strides = array<i32>} : memref<8x384xf32, #tpu.memory_space<vmem>>, vector<8x384xf32>,
    } else {
    }
    %c0_i32_17 = arith.constant 0 : i32
    %31 = arith.cmpi eq, %arg1, %c0_i32_17 : i32
    %32 = arith.extui %31 : i1 to i32
    %c0_i32_18 = arith.constant 0 : i32
    %33 = arith.cmpi ne, %32, %c0_i32_18 : i32
    scf.if %33 {
      %c0_19 = arith.constant 0 : index
      %c0_20 = arith.constant 0 : index
      %34 = vector.load %arg11[%c0_19, %c0_20] : memref<8x384xf32, #tpu.memory_space<vmem>>, vector<8x384xf32>
      %c0_21 = arith.constant 0 : index
      %c0_22 = arith.constant 0 : index
      %35 = vector.load %arg7[%c0_21, %c0_22] : memref<1x384xf32, #tpu.memory_space<vmem>>, vector<1x384xf32>
      %36 = vector.broadcast %35 : vector<1x384xf32> to vector<8x384xf32>
      %37 = arith.addf %34, %36 : vector<8x384xf32>
      %cst_23 = arith.constant 0.000000e+00 : f32
      %38 = vector.broadcast %cst_23 : f32 to vector<8x384xf32>
      %39 = arith.maximumf %37, %38 : vector<8x384xf32>
      %c0_24 = arith.constant 0 : index
      %c0_25 = arith.constant 0 : index
      %40 = vector.load %arg8[%c0_24, %c0_25] : memref<1x384xf32, #tpu.memory_space<vmem>>, vector<1x384xf32>
      %41 = vector.broadcast %40 : vector<1x384xf32> to vector<8x384xf32>
      %42 = arith.mulf %39, %41 : vector<8x384xf32>
      %c0_26 = arith.constant 0 : index
      %c0_27 = arith.constant 0 : index
      %43 = vector.load %arg9[%c0_26, %c0_27] : memref<1x384xf32, #tpu.memory_space<vmem>>, vector<1x384xf32>
      %44 = vector.broadcast %43 : vector<1x384xf32> to vector<8x384xf32>
      %45 = arith.addf %42, %44 : vector<8x384xf32>
      %c0_28 = arith.constant 0 : index
      %c0_29 = arith.constant 0 : index
      %46 = vector.load %arg10[%c0_28, %c0_29] : memref<8x384xf32, #tpu.memory_space<vmem>>, vector<8x384xf32>
      tpu.vector_store %arg10[%c0_28, %c0_29], %45 {strides = array<i32>} : memref<8x384xf32, #tpu.memory_space<vmem>>, vector<8x384xf32>,
    } else {
    }
    return
  }
  func.func @transform_0(%arg0: i32, %arg1: i32) -> (i32, i32, i32) {
    %c0_i32 = arith.constant 0 : i32
    %c0_i32_0 = arith.constant 0 : i32
    %c0_i32_1 = arith.constant 0 : i32
    return %arg0, %c0_i32, %c0_i32_0 : i32, i32, i32
  }
  func.func @transform_1(%arg0: i32, %arg1: i32) -> (i32, i32) {
    %c0_i32 = arith.constant 0 : i32
    %c0_i32_0 = arith.constant 0 : i32
    %c0_i32_1 = arith.constant 0 : i32
    return %c0_i32, %c0_i32_0 : i32, i32
  }
  func.func @transform_2(%arg0: i32, %arg1: i32) -> (i32, i32) {
    %c0_i32 = arith.constant 0 : i32
    %c0_i32_0 = arith.constant 0 : i32
    %c0_i32_1 = arith.constant 0 : i32
    return %c0_i32, %c0_i32_0 : i32, i32
  }
  func.func @transform_3(%arg0: i32, %arg1: i32) -> (i32, i32) {
    %c0_i32 = arith.constant 0 : i32
    %c0_i32_0 = arith.constant 0 : i32
    %c0_i32_1 = arith.constant 0 : i32
    return %c0_i32, %c0_i32_0 : i32, i32
  }
  func.func @transform_4(%arg0: i32, %arg1: i32) -> (i32, i32) {
    %c0_i32 = arith.constant 0 : i32
    %c0_i32_0 = arith.constant 0 : i32
    %c0_i32_1 = arith.constant 0 : i32
    return %c0_i32, %c0_i32_0 : i32, i32
  }
  func.func @transform_5(%arg0: i32, %arg1: i32) -> (i32, i32) {
    %c0_i32 = arith.constant 0 : i32
    %c0_i32_0 = arith.constant 0 : i32
    %c0_i32_1 = arith.constant 0 : i32
    return %c0_i32, %c0_i32_0 : i32, i32
  }
  func.func @transform_6(%arg0: i32, %arg1: i32) -> (i32, i32) {
    %c0_i32 = arith.constant 0 : i32
    %c0_i32_0 = arith.constant 0 : i32
    %c0_i32_1 = arith.constant 0 : i32
    return %c0_i32, %c0_i32_0 : i32, i32
  }
  func.func @transform_7(%arg0: i32, %arg1: i32) -> (i32, i32) {
    %c0_i32 = arith.constant 0 : i32
    %c0_i32_0 = arith.constant 0 : i32
    %c0_i32_1 = arith.constant 0 : i32
    return %c0_i32, %c0_i32_0 : i32, i32
  }
  func.func @transform_8(%arg0: i32, %arg1: i32) -> (i32, i32) {
    %c0_i32 = arith.constant 0 : i32
    %c0_i32_0 = arith.constant 0 : i32
    return %arg0, %c0_i32 : i32, i32
  }
}

module attributes {stable_mosaic.version = 11 : i64} {
  func.func @_fused_dense_kernel(%arg0: i32, %arg1: memref<8x384xf32, #tpu.memory_space<vmem>>, %arg2: memref<1x384xf32, #tpu.memory_space<vmem>>, %arg3: memref<1x384xf32, #tpu.memory_space<vmem>>, %arg4: memref<1x384xf32, #tpu.memory_space<vmem>>, %arg5: memref<384x384xf32, #tpu.memory_space<vmem>>, %arg6: memref<1x384xf32, #tpu.memory_space<vmem>>, %arg7: memref<1x384xf32, #tpu.memory_space<vmem>>, %arg8: memref<1x384xf32, #tpu.memory_space<vmem>>, %arg9: memref<384x384xf32, #tpu.memory_space<vmem>>, %arg10: memref<384x384xf32, #tpu.memory_space<vmem>>, %arg11: memref<1x384xf32, #tpu.memory_space<vmem>>, %arg12: memref<1x384xf32, #tpu.memory_space<vmem>>, %arg13: memref<1x384xf32, #tpu.memory_space<vmem>>, %arg14: memref<384x384xf32, #tpu.memory_space<vmem>>, %arg15: memref<384x384xf32, #tpu.memory_space<vmem>>, %arg16: memref<1x128xf32, #tpu.memory_space<vmem>>, %arg17: memref<384x128xf32, #tpu.memory_space<vmem>>, %arg18: memref<384x128xf32, #tpu.memory_space<vmem>>, %arg19: memref<1x384xf32, #tpu.memory_space<vmem>>, %arg20: memref<1x384xf32, #tpu.memory_space<vmem>>, %arg21: memref<1x384xf32, #tpu.memory_space<vmem>>, %arg22: memref<384x384xf32, #tpu.memory_space<vmem>>, %arg23: memref<384x384xf32, #tpu.memory_space<vmem>>, %arg24: memref<1x384xf32, #tpu.memory_space<vmem>>, %arg25: memref<1x384xf32, #tpu.memory_space<vmem>>, %arg26: memref<1x384xf32, #tpu.memory_space<vmem>>, %arg27: memref<384x384xf32, #tpu.memory_space<vmem>>, %arg28: memref<384x384xf32, #tpu.memory_space<vmem>>, %arg29: memref<128x384xf32, #tpu.memory_space<vmem>>, %arg30: memref<1x384xf32, #tpu.memory_space<vmem>>, %arg31: memref<1x384xf32, #tpu.memory_space<vmem>>, %arg32: memref<1x384xf32, #tpu.memory_space<vmem>>, %arg33: memref<384x384xf32, #tpu.memory_space<vmem>>, %arg34: memref<384x384xf32, #tpu.memory_space<vmem>>, %arg35: memref<128x384xf32, #tpu.memory_space<vmem>>, %arg36: memref<1x128xf32, #tpu.memory_space<vmem>>, %arg37: memref<384x128xf32, #tpu.memory_space<vmem>>, %arg38: memref<1x128xf32, #tpu.memory_space<vmem>>, %arg39: memref<384x128xf32, #tpu.memory_space<vmem>>, %arg40: memref<1x128xf32, #tpu.memory_space<vmem>>, %arg41: memref<384x128xf32, #tpu.memory_space<vmem>>, %arg42: memref<8x128xf32, #tpu.memory_space<vmem>>, %arg43: memref<8x128xf32, #tpu.memory_space<vmem>>, %arg44: memref<8x128xf32, #tpu.memory_space<vmem>>, %arg45: memref<8x128xf32, #tpu.memory_space<vmem>>) attributes {dimension_semantics = [#tpu.dimension_semantics<parallel>], iteration_bounds = array<i64: 1>, scalar_prefetch = 0 : i64, scratch_operands = 0 : i64, tpu.core_type = #tpu.core_type<tc>, window_params = [{transform_indices = @transform_0, window_bounds = array<i64: 8, 384>}, {pipeline_mode = #tpu.pipeline_mode<synchronous>, transform_indices = @transform_1, window_bounds = array<i64: 1, 384>}, {pipeline_mode = #tpu.pipeline_mode<synchronous>, transform_indices = @transform_2, window_bounds = array<i64: 1, 384>}, {pipeline_mode = #tpu.pipeline_mode<synchronous>, transform_indices = @transform_3, window_bounds = array<i64: 1, 384>}, {pipeline_mode = #tpu.pipeline_mode<synchronous>, transform_indices = @transform_4, window_bounds = array<i64: 384, 384>}, {pipeline_mode = #tpu.pipeline_mode<synchronous>, transform_indices = @transform_5, window_bounds = array<i64: 1, 384>}, {pipeline_mode = #tpu.pipeline_mode<synchronous>, transform_indices = @transform_6, window_bounds = array<i64: 1, 384>}, {pipeline_mode = #tpu.pipeline_mode<synchronous>, transform_indices = @transform_7, window_bounds = array<i64: 1, 384>}, {pipeline_mode = #tpu.pipeline_mode<synchronous>, transform_indices = @transform_8, window_bounds = array<i64: 384, 384>}, {pipeline_mode = #tpu.pipeline_mode<synchronous>, transform_indices = @transform_9, window_bounds = array<i64: 384, 384>}, {pipeline_mode = #tpu.pipeline_mode<synchronous>, transform_indices = @transform_10, window_bounds = array<i64: 1, 384>}, {pipeline_mode = #tpu.pipeline_mode<synchronous>, transform_indices = @transform_11, window_bounds = array<i64: 1, 384>}, {pipeline_mode = #tpu.pipeline_mode<synchronous>, transform_indices = @transform_12, window_bounds = array<i64: 1, 384>}, {pipeline_mode = #tpu.pipeline_mode<synchronous>, transform_indices = @transform_13, window_bounds = array<i64: 384, 384>}, {pipeline_mode = #tpu.pipeline_mode<synchronous>, transform_indices = @transform_14, window_bounds = array<i64: 384, 384>}, {pipeline_mode = #tpu.pipeline_mode<synchronous>, transform_indices = @transform_15, window_bounds = array<i64: 1, 128>}, {pipeline_mode = #tpu.pipeline_mode<synchronous>, transform_indices = @transform_16, window_bounds = array<i64: 384, 128>}, {pipeline_mode = #tpu.pipeline_mode<synchronous>, transform_indices = @transform_17, window_bounds = array<i64: 384, 128>}, {pipeline_mode = #tpu.pipeline_mode<synchronous>, transform_indices = @transform_18, window_bounds = array<i64: 1, 384>}, {pipeline_mode = #tpu.pipeline_mode<synchronous>, transform_indices = @transform_19, window_bounds = array<i64: 1, 384>}, {pipeline_mode = #tpu.pipeline_mode<synchronous>, transform_indices = @transform_20, window_bounds = array<i64: 1, 384>}, {pipeline_mode = #tpu.pipeline_mode<synchronous>, transform_indices = @transform_21, window_bounds = array<i64: 384, 384>}, {pipeline_mode = #tpu.pipeline_mode<synchronous>, transform_indices = @transform_22, window_bounds = array<i64: 384, 384>}, {pipeline_mode = #tpu.pipeline_mode<synchronous>, transform_indices = @transform_23, window_bounds = array<i64: 1, 384>}, {pipeline_mode = #tpu.pipeline_mode<synchronous>, transform_indices = @transform_24, window_bounds = array<i64: 1, 384>}, {pipeline_mode = #tpu.pipeline_mode<synchronous>, transform_indices = @transform_25, window_bounds = array<i64: 1, 384>}, {pipeline_mode = #tpu.pipeline_mode<synchronous>, transform_indices = @transform_26, window_bounds = array<i64: 384, 384>}, {pipeline_mode = #tpu.pipeline_mode<synchronous>, transform_indices = @transform_27, window_bounds = array<i64: 384, 384>}, {pipeline_mode = #tpu.pipeline_mode<synchronous>, transform_indices = @transform_28, window_bounds = array<i64: 128, 384>}, {pipeline_mode = #tpu.pipeline_mode<synchronous>, transform_indices = @transform_29, window_bounds = array<i64: 1, 384>}, {pipeline_mode = #tpu.pipeline_mode<synchronous>, transform_indices = @transform_30, window_bounds = array<i64: 1, 384>}, {pipeline_mode = #tpu.pipeline_mode<synchronous>, transform_indices = @transform_31, window_bounds = array<i64: 1, 384>}, {pipeline_mode = #tpu.pipeline_mode<synchronous>, transform_indices = @transform_32, window_bounds = array<i64: 384, 384>}, {pipeline_mode = #tpu.pipeline_mode<synchronous>, transform_indices = @transform_33, window_bounds = array<i64: 384, 384>}, {pipeline_mode = #tpu.pipeline_mode<synchronous>, transform_indices = @transform_34, window_bounds = array<i64: 128, 384>}, {pipeline_mode = #tpu.pipeline_mode<synchronous>, transform_indices = @transform_35, window_bounds = array<i64: 1, 128>}, {pipeline_mode = #tpu.pipeline_mode<synchronous>, transform_indices = @transform_36, window_bounds = array<i64: 384, 128>}, {pipeline_mode = #tpu.pipeline_mode<synchronous>, transform_indices = @transform_37, window_bounds = array<i64: 1, 128>}, {pipeline_mode = #tpu.pipeline_mode<synchronous>, transform_indices = @transform_38, window_bounds = array<i64: 384, 128>}, {pipeline_mode = #tpu.pipeline_mode<synchronous>, transform_indices = @transform_39, window_bounds = array<i64: 1, 128>}, {pipeline_mode = #tpu.pipeline_mode<synchronous>, transform_indices = @transform_40, window_bounds = array<i64: 384, 128>}, {transform_indices = @transform_41, window_bounds = array<i64: 8, 128>}, {transform_indices = @transform_42, window_bounds = array<i64: 8, 128>}, {transform_indices = @transform_43, window_bounds = array<i64: 8, 128>}, {transform_indices = @transform_44, window_bounds = array<i64: 8, 128>}]} {
    %c0 = arith.constant 0 : index
    %c0_0 = arith.constant 0 : index
    %0 = vector.load %arg1[%c0, %c0_0] : memref<8x384xf32, #tpu.memory_space<vmem>>, vector<8x384xf32>
    %c0_1 = arith.constant 0 : index
    %c0_2 = arith.constant 0 : index
    %1 = vector.load %arg5[%c0_1, %c0_2] : memref<384x384xf32, #tpu.memory_space<vmem>>, vector<384x384xf32>
    %cst = arith.constant dense<0.000000e+00> : vector<8x384xf32>
    %2 = tpu.matmul %0, %1, %cst {dimension_numbers = #tpu.dot_dimension_numbers<[1], [0], [0], [1], [0, 0, 1, 1], [], []>} : vector<8x384xf32>, vector<384x384xf32>, vector<8x384xf32> -> vector<8x384xf32>
    %c0_3 = arith.constant 0 : index
    %c0_4 = arith.constant 0 : index
    %3 = vector.load %arg2[%c0_3, %c0_4] : memref<1x384xf32, #tpu.memory_space<vmem>>, vector<1x384xf32>
    %4 = vector.broadcast %3 : vector<1x384xf32> to vector<8x384xf32>
    %5 = arith.addf %2, %4 : vector<8x384xf32>
    %cst_5 = arith.constant 0.000000e+00 : f32
    %6 = vector.broadcast %cst_5 : f32 to vector<8x384xf32>
    %7 = arith.maximumf %5, %6 : vector<8x384xf32>
    %c0_6 = arith.constant 0 : index
    %c0_7 = arith.constant 0 : index
    %8 = vector.load %arg3[%c0_6, %c0_7] : memref<1x384xf32, #tpu.memory_space<vmem>>, vector<1x384xf32>
    %9 = vector.broadcast %8 : vector<1x384xf32> to vector<8x384xf32>
    %10 = arith.mulf %7, %9 : vector<8x384xf32>
    %c0_8 = arith.constant 0 : index
    %c0_9 = arith.constant 0 : index
    %11 = vector.load %arg4[%c0_8, %c0_9] : memref<1x384xf32, #tpu.memory_space<vmem>>, vector<1x384xf32>
    %12 = vector.broadcast %11 : vector<1x384xf32> to vector<8x384xf32>
    %13 = arith.addf %10, %12 : vector<8x384xf32>
    %c0_10 = arith.constant 0 : index
    %c0_11 = arith.constant 0 : index
    %14 = vector.load %arg9[%c0_10, %c0_11] : memref<384x384xf32, #tpu.memory_space<vmem>>, vector<384x384xf32>
    %cst_12 = arith.constant dense<0.000000e+00> : vector<8x384xf32>
    %15 = tpu.matmul %0, %14, %cst_12 {dimension_numbers = #tpu.dot_dimension_numbers<[1], [0], [0], [1], [0, 0, 1, 1], [], []>} : vector<8x384xf32>, vector<384x384xf32>, vector<8x384xf32> -> vector<8x384xf32>
    %c0_13 = arith.constant 0 : index
    %c0_14 = arith.constant 0 : index
    %16 = vector.load %arg10[%c0_13, %c0_14] : memref<384x384xf32, #tpu.memory_space<vmem>>, vector<384x384xf32>
    %cst_15 = arith.constant dense<0.000000e+00> : vector<8x384xf32>
    %17 = tpu.matmul %13, %16, %cst_15 {dimension_numbers = #tpu.dot_dimension_numbers<[1], [0], [0], [1], [0, 0, 1, 1], [], []>} : vector<8x384xf32>, vector<384x384xf32>, vector<8x384xf32> -> vector<8x384xf32>
    %18 = arith.addf %15, %17 : vector<8x384xf32>
    %c0_16 = arith.constant 0 : index
    %c0_17 = arith.constant 0 : index
    %19 = vector.load %arg6[%c0_16, %c0_17] : memref<1x384xf32, #tpu.memory_space<vmem>>, vector<1x384xf32>
    %20 = vector.broadcast %19 : vector<1x384xf32> to vector<8x384xf32>
    %21 = arith.addf %18, %20 : vector<8x384xf32>
    %cst_18 = arith.constant 0.000000e+00 : f32
    %22 = vector.broadcast %cst_18 : f32 to vector<8x384xf32>
    %23 = arith.maximumf %21, %22 : vector<8x384xf32>
    %c0_19 = arith.constant 0 : index
    %c0_20 = arith.constant 0 : index
    %24 = vector.load %arg7[%c0_19, %c0_20] : memref<1x384xf32, #tpu.memory_space<vmem>>, vector<1x384xf32>
    %25 = vector.broadcast %24 : vector<1x384xf32> to vector<8x384xf32>
    %26 = arith.mulf %23, %25 : vector<8x384xf32>
    %c0_21 = arith.constant 0 : index
    %c0_22 = arith.constant 0 : index
    %27 = vector.load %arg8[%c0_21, %c0_22] : memref<1x384xf32, #tpu.memory_space<vmem>>, vector<1x384xf32>
    %28 = vector.broadcast %27 : vector<1x384xf32> to vector<8x384xf32>
    %29 = arith.addf %26, %28 : vector<8x384xf32>
    %c0_23 = arith.constant 0 : index
    %c0_24 = arith.constant 0 : index
    %30 = vector.load %arg14[%c0_23, %c0_24] : memref<384x384xf32, #tpu.memory_space<vmem>>, vector<384x384xf32>
    %cst_25 = arith.constant dense<0.000000e+00> : vector<8x384xf32>
    %31 = tpu.matmul %0, %30, %cst_25 {dimension_numbers = #tpu.dot_dimension_numbers<[1], [0], [0], [1], [0, 0, 1, 1], [], []>} : vector<8x384xf32>, vector<384x384xf32>, vector<8x384xf32> -> vector<8x384xf32>
    %c0_26 = arith.constant 0 : index
    %c0_27 = arith.constant 0 : index
    %32 = vector.load %arg15[%c0_26, %c0_27] : memref<384x384xf32, #tpu.memory_space<vmem>>, vector<384x384xf32>
    %cst_28 = arith.constant dense<0.000000e+00> : vector<8x384xf32>
    %33 = tpu.matmul %29, %32, %cst_28 {dimension_numbers = #tpu.dot_dimension_numbers<[1], [0], [0], [1], [0, 0, 1, 1], [], []>} : vector<8x384xf32>, vector<384x384xf32>, vector<8x384xf32> -> vector<8x384xf32>
    %34 = arith.addf %31, %33 : vector<8x384xf32>
    %c0_29 = arith.constant 0 : index
    %c0_30 = arith.constant 0 : index
    %35 = vector.load %arg11[%c0_29, %c0_30] : memref<1x384xf32, #tpu.memory_space<vmem>>, vector<1x384xf32>
    %36 = vector.broadcast %35 : vector<1x384xf32> to vector<8x384xf32>
    %37 = arith.addf %34, %36 : vector<8x384xf32>
    %cst_31 = arith.constant 0.000000e+00 : f32
    %38 = vector.broadcast %cst_31 : f32 to vector<8x384xf32>
    %39 = arith.maximumf %37, %38 : vector<8x384xf32>
    %c0_32 = arith.constant 0 : index
    %c0_33 = arith.constant 0 : index
    %40 = vector.load %arg12[%c0_32, %c0_33] : memref<1x384xf32, #tpu.memory_space<vmem>>, vector<1x384xf32>
    %41 = vector.broadcast %40 : vector<1x384xf32> to vector<8x384xf32>
    %42 = arith.mulf %39, %41 : vector<8x384xf32>
    %c0_34 = arith.constant 0 : index
    %c0_35 = arith.constant 0 : index
    %43 = vector.load %arg13[%c0_34, %c0_35] : memref<1x384xf32, #tpu.memory_space<vmem>>, vector<1x384xf32>
    %44 = vector.broadcast %43 : vector<1x384xf32> to vector<8x384xf32>
    %45 = arith.addf %42, %44 : vector<8x384xf32>
    %c0_36 = arith.constant 0 : index
    %c0_37 = arith.constant 0 : index
    %46 = vector.load %arg17[%c0_36, %c0_37] : memref<384x128xf32, #tpu.memory_space<vmem>>, vector<384x128xf32>
    %cst_38 = arith.constant dense<0.000000e+00> : vector<8x128xf32>
    %47 = tpu.matmul %0, %46, %cst_38 {dimension_numbers = #tpu.dot_dimension_numbers<[1], [0], [0], [1], [0, 0, 1, 1], [], []>} : vector<8x384xf32>, vector<384x128xf32>, vector<8x128xf32> -> vector<8x128xf32>
    %c0_39 = arith.constant 0 : index
    %c0_40 = arith.constant 0 : index
    %48 = vector.load %arg18[%c0_39, %c0_40] : memref<384x128xf32, #tpu.memory_space<vmem>>, vector<384x128xf32>
    %cst_41 = arith.constant dense<0.000000e+00> : vector<8x128xf32>
    %49 = tpu.matmul %45, %48, %cst_41 {dimension_numbers = #tpu.dot_dimension_numbers<[1], [0], [0], [1], [0, 0, 1, 1], [], []>} : vector<8x384xf32>, vector<384x128xf32>, vector<8x128xf32> -> vector<8x128xf32>
    %50 = arith.addf %47, %49 : vector<8x128xf32>
    %c0_42 = arith.constant 0 : index
    %c0_43 = arith.constant 0 : index
    %51 = vector.load %arg16[%c0_42, %c0_43] : memref<1x128xf32, #tpu.memory_space<vmem>>, vector<1x128xf32>
    %52 = vector.broadcast %51 : vector<1x128xf32> to vector<8x128xf32>
    %53 = arith.addf %50, %52 : vector<8x128xf32>
    %cst_44 = arith.constant 5.000000e-01 : f32
    %54 = vector.broadcast %cst_44 : f32 to vector<8x128xf32>
    %55 = arith.mulf %54, %53 : vector<8x128xf32>
    %56 = math.tanh %55 : vector<8x128xf32>
    %cst_45 = arith.constant 1.000000e+00 : f32
    %57 = vector.broadcast %cst_45 : f32 to vector<8x128xf32>
    %58 = arith.addf %56, %57 : vector<8x128xf32>
    %cst_46 = arith.constant 5.000000e-01 : f32
    %59 = vector.broadcast %cst_46 : f32 to vector<8x128xf32>
    %60 = arith.mulf %59, %58 : vector<8x128xf32>
    %c0_47 = arith.constant 0 : index
    %c0_48 = arith.constant 0 : index
    %61 = vector.load %arg42[%c0_47, %c0_48] : memref<8x128xf32, #tpu.memory_space<vmem>>, vector<8x128xf32>
    tpu.vector_store %arg42[%c0_47, %c0_48], %60 {strides = array<i32>} : memref<8x128xf32, #tpu.memory_space<vmem>>, vector<8x128xf32>,
    %c0_49 = arith.constant 0 : index
    %c0_50 = arith.constant 0 : index
    %62 = vector.load %arg22[%c0_49, %c0_50] : memref<384x384xf32, #tpu.memory_space<vmem>>, vector<384x384xf32>
    %cst_51 = arith.constant dense<0.000000e+00> : vector<8x384xf32>
    %63 = tpu.matmul %0, %62, %cst_51 {dimension_numbers = #tpu.dot_dimension_numbers<[1], [0], [0], [1], [0, 0, 1, 1], [], []>} : vector<8x384xf32>, vector<384x384xf32>, vector<8x384xf32> -> vector<8x384xf32>
    %c0_52 = arith.constant 0 : index
    %c0_53 = arith.constant 0 : index
    %64 = vector.load %arg23[%c0_52, %c0_53] : memref<384x384xf32, #tpu.memory_space<vmem>>, vector<384x384xf32>
    %cst_54 = arith.constant dense<0.000000e+00> : vector<8x384xf32>
    %65 = tpu.matmul %13, %64, %cst_54 {dimension_numbers = #tpu.dot_dimension_numbers<[1], [0], [0], [1], [0, 0, 1, 1], [], []>} : vector<8x384xf32>, vector<384x384xf32>, vector<8x384xf32> -> vector<8x384xf32>
    %66 = arith.addf %63, %65 : vector<8x384xf32>
    %c0_55 = arith.constant 0 : index
    %c0_56 = arith.constant 0 : index
    %67 = vector.load %arg19[%c0_55, %c0_56] : memref<1x384xf32, #tpu.memory_space<vmem>>, vector<1x384xf32>
    %68 = vector.broadcast %67 : vector<1x384xf32> to vector<8x384xf32>
    %69 = arith.addf %66, %68 : vector<8x384xf32>
    %cst_57 = arith.constant 0.000000e+00 : f32
    %70 = vector.broadcast %cst_57 : f32 to vector<8x384xf32>
    %71 = arith.maximumf %69, %70 : vector<8x384xf32>
    %c0_58 = arith.constant 0 : index
    %c0_59 = arith.constant 0 : index
    %72 = vector.load %arg20[%c0_58, %c0_59] : memref<1x384xf32, #tpu.memory_space<vmem>>, vector<1x384xf32>
    %73 = vector.broadcast %72 : vector<1x384xf32> to vector<8x384xf32>
    %74 = arith.mulf %71, %73 : vector<8x384xf32>
    %c0_60 = arith.constant 0 : index
    %c0_61 = arith.constant 0 : index
    %75 = vector.load %arg21[%c0_60, %c0_61] : memref<1x384xf32, #tpu.memory_space<vmem>>, vector<1x384xf32>
    %76 = vector.broadcast %75 : vector<1x384xf32> to vector<8x384xf32>
    %77 = arith.addf %74, %76 : vector<8x384xf32>
    %c0_62 = arith.constant 0 : index
    %c0_63 = arith.constant 0 : index
    %78 = vector.load %arg37[%c0_62, %c0_63] : memref<384x128xf32, #tpu.memory_space<vmem>>, vector<384x128xf32>
    %cst_64 = arith.constant dense<0.000000e+00> : vector<8x128xf32>
    %79 = tpu.matmul %77, %78, %cst_64 {dimension_numbers = #tpu.dot_dimension_numbers<[1], [0], [0], [1], [0, 0, 1, 1], [], []>} : vector<8x384xf32>, vector<384x128xf32>, vector<8x128xf32> -> vector<8x128xf32>
    %c0_65 = arith.constant 0 : index
    %c0_66 = arith.constant 0 : index
    %80 = vector.load %arg36[%c0_65, %c0_66] : memref<1x128xf32, #tpu.memory_space<vmem>>, vector<1x128xf32>
    %81 = vector.broadcast %80 : vector<1x128xf32> to vector<8x128xf32>
    %82 = arith.addf %79, %81 : vector<8x128xf32>
    %cst_67 = arith.constant 5.000000e-01 : f32
    %83 = vector.broadcast %cst_67 : f32 to vector<8x128xf32>
    %84 = arith.mulf %83, %82 : vector<8x128xf32>
    %85 = math.tanh %84 : vector<8x128xf32>
    %cst_68 = arith.constant 1.000000e+00 : f32
    %86 = vector.broadcast %cst_68 : f32 to vector<8x128xf32>
    %87 = arith.addf %85, %86 : vector<8x128xf32>
    %cst_69 = arith.constant 5.000000e-01 : f32
    %88 = vector.broadcast %cst_69 : f32 to vector<8x128xf32>
    %89 = arith.mulf %88, %87 : vector<8x128xf32>
    %c0_70 = arith.constant 0 : index
    %c0_71 = arith.constant 0 : index
    %90 = vector.load %arg43[%c0_70, %c0_71] : memref<8x128xf32, #tpu.memory_space<vmem>>, vector<8x128xf32>
    tpu.vector_store %arg43[%c0_70, %c0_71], %89 {strides = array<i32>} : memref<8x128xf32, #tpu.memory_space<vmem>>, vector<8x128xf32>,
    %c0_72 = arith.constant 0 : index
    %c0_73 = arith.constant 0 : index
    %91 = vector.load %arg27[%c0_72, %c0_73] : memref<384x384xf32, #tpu.memory_space<vmem>>, vector<384x384xf32>
    %cst_74 = arith.constant dense<0.000000e+00> : vector<8x384xf32>
    %92 = tpu.matmul %0, %91, %cst_74 {dimension_numbers = #tpu.dot_dimension_numbers<[1], [0], [0], [1], [0, 0, 1, 1], [], []>} : vector<8x384xf32>, vector<384x384xf32>, vector<8x384xf32> -> vector<8x384xf32>
    %c0_75 = arith.constant 0 : index
    %c0_76 = arith.constant 0 : index
    %93 = vector.load %arg28[%c0_75, %c0_76] : memref<384x384xf32, #tpu.memory_space<vmem>>, vector<384x384xf32>
    %cst_77 = arith.constant dense<0.000000e+00> : vector<8x384xf32>
    %94 = tpu.matmul %29, %93, %cst_77 {dimension_numbers = #tpu.dot_dimension_numbers<[1], [0], [0], [1], [0, 0, 1, 1], [], []>} : vector<8x384xf32>, vector<384x384xf32>, vector<8x384xf32> -> vector<8x384xf32>
    %95 = arith.addf %92, %94 : vector<8x384xf32>
    %c0_78 = arith.constant 0 : index
    %c0_79 = arith.constant 0 : index
    %96 = vector.load %arg29[%c0_78, %c0_79] : memref<128x384xf32, #tpu.memory_space<vmem>>, vector<128x384xf32>
    %cst_80 = arith.constant dense<0.000000e+00> : vector<8x384xf32>
    %97 = tpu.matmul %89, %96, %cst_80 {dimension_numbers = #tpu.dot_dimension_numbers<[1], [0], [0], [1], [0, 0, 1, 1], [], []>} : vector<8x128xf32>, vector<128x384xf32>, vector<8x384xf32> -> vector<8x384xf32>
    %98 = arith.addf %95, %97 : vector<8x384xf32>
    %c0_81 = arith.constant 0 : index
    %c0_82 = arith.constant 0 : index
    %99 = vector.load %arg24[%c0_81, %c0_82] : memref<1x384xf32, #tpu.memory_space<vmem>>, vector<1x384xf32>
    %100 = vector.broadcast %99 : vector<1x384xf32> to vector<8x384xf32>
    %101 = arith.addf %98, %100 : vector<8x384xf32>
    %cst_83 = arith.constant 0.000000e+00 : f32
    %102 = vector.broadcast %cst_83 : f32 to vector<8x384xf32>
    %103 = arith.maximumf %101, %102 : vector<8x384xf32>
    %c0_84 = arith.constant 0 : index
    %c0_85 = arith.constant 0 : index
    %104 = vector.load %arg25[%c0_84, %c0_85] : memref<1x384xf32, #tpu.memory_space<vmem>>, vector<1x384xf32>
    %105 = vector.broadcast %104 : vector<1x384xf32> to vector<8x384xf32>
    %106 = arith.mulf %103, %105 : vector<8x384xf32>
    %c0_86 = arith.constant 0 : index
    %c0_87 = arith.constant 0 : index
    %107 = vector.load %arg26[%c0_86, %c0_87] : memref<1x384xf32, #tpu.memory_space<vmem>>, vector<1x384xf32>
    %108 = vector.broadcast %107 : vector<1x384xf32> to vector<8x384xf32>
    %109 = arith.addf %106, %108 : vector<8x384xf32>
    %c0_88 = arith.constant 0 : index
    %c0_89 = arith.constant 0 : index
    %110 = vector.load %arg39[%c0_88, %c0_89] : memref<384x128xf32, #tpu.memory_space<vmem>>, vector<384x128xf32>
    %cst_90 = arith.constant dense<0.000000e+00> : vector<8x128xf32>
    %111 = tpu.matmul %109, %110, %cst_90 {dimension_numbers = #tpu.dot_dimension_numbers<[1], [0], [0], [1], [0, 0, 1, 1], [], []>} : vector<8x384xf32>, vector<384x128xf32>, vector<8x128xf32> -> vector<8x128xf32>
    %c0_91 = arith.constant 0 : index
    %c0_92 = arith.constant 0 : index
    %112 = vector.load %arg38[%c0_91, %c0_92] : memref<1x128xf32, #tpu.memory_space<vmem>>, vector<1x128xf32>
    %113 = vector.broadcast %112 : vector<1x128xf32> to vector<8x128xf32>
    %114 = arith.addf %111, %113 : vector<8x128xf32>
    %cst_93 = arith.constant 5.000000e-01 : f32
    %115 = vector.broadcast %cst_93 : f32 to vector<8x128xf32>
    %116 = arith.mulf %115, %114 : vector<8x128xf32>
    %117 = math.tanh %116 : vector<8x128xf32>
    %cst_94 = arith.constant 1.000000e+00 : f32
    %118 = vector.broadcast %cst_94 : f32 to vector<8x128xf32>
    %119 = arith.addf %117, %118 : vector<8x128xf32>
    %cst_95 = arith.constant 5.000000e-01 : f32
    %120 = vector.broadcast %cst_95 : f32 to vector<8x128xf32>
    %121 = arith.mulf %120, %119 : vector<8x128xf32>
    %c0_96 = arith.constant 0 : index
    %c0_97 = arith.constant 0 : index
    %122 = vector.load %arg44[%c0_96, %c0_97] : memref<8x128xf32, #tpu.memory_space<vmem>>, vector<8x128xf32>
    tpu.vector_store %arg44[%c0_96, %c0_97], %121 {strides = array<i32>} : memref<8x128xf32, #tpu.memory_space<vmem>>, vector<8x128xf32>,
    %c0_98 = arith.constant 0 : index
    %c0_99 = arith.constant 0 : index
    %123 = vector.load %arg33[%c0_98, %c0_99] : memref<384x384xf32, #tpu.memory_space<vmem>>, vector<384x384xf32>
    %cst_100 = arith.constant dense<0.000000e+00> : vector<8x384xf32>
    %124 = tpu.matmul %0, %123, %cst_100 {dimension_numbers = #tpu.dot_dimension_numbers<[1], [0], [0], [1], [0, 0, 1, 1], [], []>} : vector<8x384xf32>, vector<384x384xf32>, vector<8x384xf32> -> vector<8x384xf32>
    %c0_101 = arith.constant 0 : index
    %c0_102 = arith.constant 0 : index
    %125 = vector.load %arg34[%c0_101, %c0_102] : memref<384x384xf32, #tpu.memory_space<vmem>>, vector<384x384xf32>
    %cst_103 = arith.constant dense<0.000000e+00> : vector<8x384xf32>
    %126 = tpu.matmul %45, %125, %cst_103 {dimension_numbers = #tpu.dot_dimension_numbers<[1], [0], [0], [1], [0, 0, 1, 1], [], []>} : vector<8x384xf32>, vector<384x384xf32>, vector<8x384xf32> -> vector<8x384xf32>
    %127 = arith.addf %124, %126 : vector<8x384xf32>
    %c0_104 = arith.constant 0 : index
    %c0_105 = arith.constant 0 : index
    %128 = vector.load %arg35[%c0_104, %c0_105] : memref<128x384xf32, #tpu.memory_space<vmem>>, vector<128x384xf32>
    %cst_106 = arith.constant dense<0.000000e+00> : vector<8x384xf32>
    %129 = tpu.matmul %121, %128, %cst_106 {dimension_numbers = #tpu.dot_dimension_numbers<[1], [0], [0], [1], [0, 0, 1, 1], [], []>} : vector<8x128xf32>, vector<128x384xf32>, vector<8x384xf32> -> vector<8x384xf32>
    %130 = arith.addf %127, %129 : vector<8x384xf32>
    %c0_107 = arith.constant 0 : index
    %c0_108 = arith.constant 0 : index
    %131 = vector.load %arg30[%c0_107, %c0_108] : memref<1x384xf32, #tpu.memory_space<vmem>>, vector<1x384xf32>
    %132 = vector.broadcast %131 : vector<1x384xf32> to vector<8x384xf32>
    %133 = arith.addf %130, %132 : vector<8x384xf32>
    %cst_109 = arith.constant 0.000000e+00 : f32
    %134 = vector.broadcast %cst_109 : f32 to vector<8x384xf32>
    %135 = arith.maximumf %133, %134 : vector<8x384xf32>
    %c0_110 = arith.constant 0 : index
    %c0_111 = arith.constant 0 : index
    %136 = vector.load %arg31[%c0_110, %c0_111] : memref<1x384xf32, #tpu.memory_space<vmem>>, vector<1x384xf32>
    %137 = vector.broadcast %136 : vector<1x384xf32> to vector<8x384xf32>
    %138 = arith.mulf %135, %137 : vector<8x384xf32>
    %c0_112 = arith.constant 0 : index
    %c0_113 = arith.constant 0 : index
    %139 = vector.load %arg32[%c0_112, %c0_113] : memref<1x384xf32, #tpu.memory_space<vmem>>, vector<1x384xf32>
    %140 = vector.broadcast %139 : vector<1x384xf32> to vector<8x384xf32>
    %141 = arith.addf %138, %140 : vector<8x384xf32>
    %c0_114 = arith.constant 0 : index
    %c0_115 = arith.constant 0 : index
    %142 = vector.load %arg41[%c0_114, %c0_115] : memref<384x128xf32, #tpu.memory_space<vmem>>, vector<384x128xf32>
    %cst_116 = arith.constant dense<0.000000e+00> : vector<8x128xf32>
    %143 = tpu.matmul %141, %142, %cst_116 {dimension_numbers = #tpu.dot_dimension_numbers<[1], [0], [0], [1], [0, 0, 1, 1], [], []>} : vector<8x384xf32>, vector<384x128xf32>, vector<8x128xf32> -> vector<8x128xf32>
    %c0_117 = arith.constant 0 : index
    %c0_118 = arith.constant 0 : index
    %144 = vector.load %arg40[%c0_117, %c0_118] : memref<1x128xf32, #tpu.memory_space<vmem>>, vector<1x128xf32>
    %145 = vector.broadcast %144 : vector<1x128xf32> to vector<8x128xf32>
    %146 = arith.addf %143, %145 : vector<8x128xf32>
    %cst_119 = arith.constant 5.000000e-01 : f32
    %147 = vector.broadcast %cst_119 : f32 to vector<8x128xf32>
    %148 = arith.mulf %147, %146 : vector<8x128xf32>
    %149 = math.tanh %148 : vector<8x128xf32>
    %cst_120 = arith.constant 1.000000e+00 : f32
    %150 = vector.broadcast %cst_120 : f32 to vector<8x128xf32>
    %151 = arith.addf %149, %150 : vector<8x128xf32>
    %cst_121 = arith.constant 5.000000e-01 : f32
    %152 = vector.broadcast %cst_121 : f32 to vector<8x128xf32>
    %153 = arith.mulf %152, %151 : vector<8x128xf32>
    %c0_122 = arith.constant 0 : index
    %c0_123 = arith.constant 0 : index
    %154 = vector.load %arg45[%c0_122, %c0_123] : memref<8x128xf32, #tpu.memory_space<vmem>>, vector<8x128xf32>
    tpu.vector_store %arg45[%c0_122, %c0_123], %153 {strides = array<i32>} : memref<8x128xf32, #tpu.memory_space<vmem>>, vector<8x128xf32>,
    return
  }
  func.func @transform_0(%arg0: i32) -> (i32, i32) {
    %c0_i32 = arith.constant 0 : i32
    %c0_i32_0 = arith.constant 0 : i32
    return %arg0, %c0_i32 : i32, i32
  }
  func.func @transform_1(%arg0: i32) -> (i32, i32) {
    %c0_i32 = arith.constant 0 : i32
    %c0_i32_0 = arith.constant 0 : i32
    %c0_i32_1 = arith.constant 0 : i32
    return %c0_i32, %c0_i32_0 : i32, i32
  }
  func.func @transform_2(%arg0: i32) -> (i32, i32) {
    %c0_i32 = arith.constant 0 : i32
    %c0_i32_0 = arith.constant 0 : i32
    %c0_i32_1 = arith.constant 0 : i32
    return %c0_i32, %c0_i32_0 : i32, i32
  }
  func.func @transform_3(%arg0: i32) -> (i32, i32) {
    %c0_i32 = arith.constant 0 : i32
    %c0_i32_0 = arith.constant 0 : i32
    %c0_i32_1 = arith.constant 0 : i32
    return %c0_i32, %c0_i32_0 : i32, i32
  }
  func.func @transform_4(%arg0: i32) -> (i32, i32) {
    %c0_i32 = arith.constant 0 : i32
    %c0_i32_0 = arith.constant 0 : i32
    %c0_i32_1 = arith.constant 0 : i32
    return %c0_i32, %c0_i32_0 : i32, i32
  }
  func.func @transform_5(%arg0: i32) -> (i32, i32) {
    %c0_i32 = arith.constant 0 : i32
    %c0_i32_0 = arith.constant 0 : i32
    %c0_i32_1 = arith.constant 0 : i32
    return %c0_i32, %c0_i32_0 : i32, i32
  }
  func.func @transform_6(%arg0: i32) -> (i32, i32) {
    %c0_i32 = arith.constant 0 : i32
    %c0_i32_0 = arith.constant 0 : i32
    %c0_i32_1 = arith.constant 0 : i32
    return %c0_i32, %c0_i32_0 : i32, i32
  }
  func.func @transform_7(%arg0: i32) -> (i32, i32) {
    %c0_i32 = arith.constant 0 : i32
    %c0_i32_0 = arith.constant 0 : i32
    %c0_i32_1 = arith.constant 0 : i32
    return %c0_i32, %c0_i32_0 : i32, i32
  }
  func.func @transform_8(%arg0: i32) -> (i32, i32) {
    %c0_i32 = arith.constant 0 : i32
    %c0_i32_0 = arith.constant 0 : i32
    %c0_i32_1 = arith.constant 0 : i32
    return %c0_i32, %c0_i32_0 : i32, i32
  }
  func.func @transform_9(%arg0: i32) -> (i32, i32) {
    %c0_i32 = arith.constant 0 : i32
    %c0_i32_0 = arith.constant 0 : i32
    %c0_i32_1 = arith.constant 0 : i32
    return %c0_i32, %c0_i32_0 : i32, i32
  }
  func.func @transform_10(%arg0: i32) -> (i32, i32) {
    %c0_i32 = arith.constant 0 : i32
    %c0_i32_0 = arith.constant 0 : i32
    %c0_i32_1 = arith.constant 0 : i32
    return %c0_i32, %c0_i32_0 : i32, i32
  }
  func.func @transform_11(%arg0: i32) -> (i32, i32) {
    %c0_i32 = arith.constant 0 : i32
    %c0_i32_0 = arith.constant 0 : i32
    %c0_i32_1 = arith.constant 0 : i32
    return %c0_i32, %c0_i32_0 : i32, i32
  }
  func.func @transform_12(%arg0: i32) -> (i32, i32) {
    %c0_i32 = arith.constant 0 : i32
    %c0_i32_0 = arith.constant 0 : i32
    %c0_i32_1 = arith.constant 0 : i32
    return %c0_i32, %c0_i32_0 : i32, i32
  }
  func.func @transform_13(%arg0: i32) -> (i32, i32) {
    %c0_i32 = arith.constant 0 : i32
    %c0_i32_0 = arith.constant 0 : i32
    %c0_i32_1 = arith.constant 0 : i32
    return %c0_i32, %c0_i32_0 : i32, i32
  }
  func.func @transform_14(%arg0: i32) -> (i32, i32) {
    %c0_i32 = arith.constant 0 : i32
    %c0_i32_0 = arith.constant 0 : i32
    %c0_i32_1 = arith.constant 0 : i32
    return %c0_i32, %c0_i32_0 : i32, i32
  }
  func.func @transform_15(%arg0: i32) -> (i32, i32) {
    %c0_i32 = arith.constant 0 : i32
    %c0_i32_0 = arith.constant 0 : i32
    %c0_i32_1 = arith.constant 0 : i32
    return %c0_i32, %c0_i32_0 : i32, i32
  }
  func.func @transform_16(%arg0: i32) -> (i32, i32) {
    %c0_i32 = arith.constant 0 : i32
    %c0_i32_0 = arith.constant 0 : i32
    %c0_i32_1 = arith.constant 0 : i32
    return %c0_i32, %c0_i32_0 : i32, i32
  }
  func.func @transform_17(%arg0: i32) -> (i32, i32) {
    %c0_i32 = arith.constant 0 : i32
    %c0_i32_0 = arith.constant 0 : i32
    %c0_i32_1 = arith.constant 0 : i32
    return %c0_i32, %c0_i32_0 : i32, i32
  }
  func.func @transform_18(%arg0: i32) -> (i32, i32) {
    %c0_i32 = arith.constant 0 : i32
    %c0_i32_0 = arith.constant 0 : i32
    %c0_i32_1 = arith.constant 0 : i32
    return %c0_i32, %c0_i32_0 : i32, i32
  }
  func.func @transform_19(%arg0: i32) -> (i32, i32) {
    %c0_i32 = arith.constant 0 : i32
    %c0_i32_0 = arith.constant 0 : i32
    %c0_i32_1 = arith.constant 0 : i32
    return %c0_i32, %c0_i32_0 : i32, i32
  }
  func.func @transform_20(%arg0: i32) -> (i32, i32) {
    %c0_i32 = arith.constant 0 : i32
    %c0_i32_0 = arith.constant 0 : i32
    %c0_i32_1 = arith.constant 0 : i32
    return %c0_i32, %c0_i32_0 : i32, i32
  }
  func.func @transform_21(%arg0: i32) -> (i32, i32) {
    %c0_i32 = arith.constant 0 : i32
    %c0_i32_0 = arith.constant 0 : i32
    %c0_i32_1 = arith.constant 0 : i32
    return %c0_i32, %c0_i32_0 : i32, i32
  }
  func.func @transform_22(%arg0: i32) -> (i32, i32) {
    %c0_i32 = arith.constant 0 : i32
    %c0_i32_0 = arith.constant 0 : i32
    %c0_i32_1 = arith.constant 0 : i32
    return %c0_i32, %c0_i32_0 : i32, i32
  }
  func.func @transform_23(%arg0: i32) -> (i32, i32) {
    %c0_i32 = arith.constant 0 : i32
    %c0_i32_0 = arith.constant 0 : i32
    %c0_i32_1 = arith.constant 0 : i32
    return %c0_i32, %c0_i32_0 : i32, i32
  }
  func.func @transform_24(%arg0: i32) -> (i32, i32) {
    %c0_i32 = arith.constant 0 : i32
    %c0_i32_0 = arith.constant 0 : i32
    %c0_i32_1 = arith.constant 0 : i32
    return %c0_i32, %c0_i32_0 : i32, i32
  }
  func.func @transform_25(%arg0: i32) -> (i32, i32) {
    %c0_i32 = arith.constant 0 : i32
    %c0_i32_0 = arith.constant 0 : i32
    %c0_i32_1 = arith.constant 0 : i32
    return %c0_i32, %c0_i32_0 : i32, i32
  }
  func.func @transform_26(%arg0: i32) -> (i32, i32) {
    %c0_i32 = arith.constant 0 : i32
    %c0_i32_0 = arith.constant 0 : i32
    %c0_i32_1 = arith.constant 0 : i32
    return %c0_i32, %c0_i32_0 : i32, i32
  }
  func.func @transform_27(%arg0: i32) -> (i32, i32) {
    %c0_i32 = arith.constant 0 : i32
    %c0_i32_0 = arith.constant 0 : i32
    %c0_i32_1 = arith.constant 0 : i32
    return %c0_i32, %c0_i32_0 : i32, i32
  }
  func.func @transform_28(%arg0: i32) -> (i32, i32) {
    %c0_i32 = arith.constant 0 : i32
    %c0_i32_0 = arith.constant 0 : i32
    %c0_i32_1 = arith.constant 0 : i32
    return %c0_i32, %c0_i32_0 : i32, i32
  }
  func.func @transform_29(%arg0: i32) -> (i32, i32) {
    %c0_i32 = arith.constant 0 : i32
    %c0_i32_0 = arith.constant 0 : i32
    %c0_i32_1 = arith.constant 0 : i32
    return %c0_i32, %c0_i32_0 : i32, i32
  }
  func.func @transform_30(%arg0: i32) -> (i32, i32) {
    %c0_i32 = arith.constant 0 : i32
    %c0_i32_0 = arith.constant 0 : i32
    %c0_i32_1 = arith.constant 0 : i32
    return %c0_i32, %c0_i32_0 : i32, i32
  }
  func.func @transform_31(%arg0: i32) -> (i32, i32) {
    %c0_i32 = arith.constant 0 : i32
    %c0_i32_0 = arith.constant 0 : i32
    %c0_i32_1 = arith.constant 0 : i32
    return %c0_i32, %c0_i32_0 : i32, i32
  }
  func.func @transform_32(%arg0: i32) -> (i32, i32) {
    %c0_i32 = arith.constant 0 : i32
    %c0_i32_0 = arith.constant 0 : i32
    %c0_i32_1 = arith.constant 0 : i32
    return %c0_i32, %c0_i32_0 : i32, i32
  }
  func.func @transform_33(%arg0: i32) -> (i32, i32) {
    %c0_i32 = arith.constant 0 : i32
    %c0_i32_0 = arith.constant 0 : i32
    %c0_i32_1 = arith.constant 0 : i32
    return %c0_i32, %c0_i32_0 : i32, i32
  }
  func.func @transform_34(%arg0: i32) -> (i32, i32) {
    %c0_i32 = arith.constant 0 : i32
    %c0_i32_0 = arith.constant 0 : i32
    %c0_i32_1 = arith.constant 0 : i32
    return %c0_i32, %c0_i32_0 : i32, i32
  }
  func.func @transform_35(%arg0: i32) -> (i32, i32) {
    %c0_i32 = arith.constant 0 : i32
    %c0_i32_0 = arith.constant 0 : i32
    %c0_i32_1 = arith.constant 0 : i32
    return %c0_i32, %c0_i32_0 : i32, i32
  }
  func.func @transform_36(%arg0: i32) -> (i32, i32) {
    %c0_i32 = arith.constant 0 : i32
    %c0_i32_0 = arith.constant 0 : i32
    %c0_i32_1 = arith.constant 0 : i32
    return %c0_i32, %c0_i32_0 : i32, i32
  }
  func.func @transform_37(%arg0: i32) -> (i32, i32) {
    %c0_i32 = arith.constant 0 : i32
    %c0_i32_0 = arith.constant 0 : i32
    %c0_i32_1 = arith.constant 0 : i32
    return %c0_i32, %c0_i32_0 : i32, i32
  }
  func.func @transform_38(%arg0: i32) -> (i32, i32) {
    %c0_i32 = arith.constant 0 : i32
    %c0_i32_0 = arith.constant 0 : i32
    %c0_i32_1 = arith.constant 0 : i32
    return %c0_i32, %c0_i32_0 : i32, i32
  }
  func.func @transform_39(%arg0: i32) -> (i32, i32) {
    %c0_i32 = arith.constant 0 : i32
    %c0_i32_0 = arith.constant 0 : i32
    %c0_i32_1 = arith.constant 0 : i32
    return %c0_i32, %c0_i32_0 : i32, i32
  }
  func.func @transform_40(%arg0: i32) -> (i32, i32) {
    %c0_i32 = arith.constant 0 : i32
    %c0_i32_0 = arith.constant 0 : i32
    %c0_i32_1 = arith.constant 0 : i32
    return %c0_i32, %c0_i32_0 : i32, i32
  }
  func.func @transform_41(%arg0: i32) -> (i32, i32) {
    %c0_i32 = arith.constant 0 : i32
    %c0_i32_0 = arith.constant 0 : i32
    return %arg0, %c0_i32 : i32, i32
  }
  func.func @transform_42(%arg0: i32) -> (i32, i32) {
    %c0_i32 = arith.constant 0 : i32
    %c0_i32_0 = arith.constant 0 : i32
    return %arg0, %c0_i32 : i32, i32
  }
  func.func @transform_43(%arg0: i32) -> (i32, i32) {
    %c0_i32 = arith.constant 0 : i32
    %c0_i32_0 = arith.constant 0 : i32
    return %arg0, %c0_i32 : i32, i32
  }
  func.func @transform_44(%arg0: i32) -> (i32, i32) {
    %c0_i32 = arith.constant 0 : i32
    %c0_i32_0 = arith.constant 0 : i32
    return %arg0, %c0_i32 : i32, i32
  }
}

</mosaic_0001>

<bundles_post_ra>
// kernel: ecpick_forward.2
= control target key start
LH: loop header
LB: loop body
LE: loop exit
PB: predicated region body
PF: predicated region fallthrough
CT: control target
= control target key end

     0   :  { %vm5795_vm0 = vcmask 261120   ;;  %v3888_v32 = vmov 0   ;;  %s5786_s1 = inlined_call_operand.vmem [shape: bf16[160,256], index: 1, kind: input, shape index: {}]   ;;  %s5787_s0 = inlined_call_operand.vmem [shape: bf16[8,72,160], index: 0, kind: input, shape index: {}]   ;;  %s5788_s3 = inlined_call_operand.vmem [shape: bf16[160,128], index: 3, kind: input, shape index: {}]   ;;  %s5789_s2 = inlined_call_operand.vmem [shape: bf16[160,128], index: 2, kind: input, shape index: {}]   ;;  %s5790_s4 = inlined_call_operand.vmem [shape: s32[1,384], index: 4, kind: input, shape index: {}]   ;;  %s5791_s5 = inlined_call_operand.vmem [shape: f32[1,384], index: 5, kind: input, shape index: {}]   ;;  %s5792_s6 = inlined_call_operand.vmem [shape: f32[1,384], index: 6, kind: input, shape index: {}]   ;;  %s5793_s7 = inlined_call_operand.vmem [shape: f32[1,384], index: 7, kind: input, shape index: {}]   ;;  %s5794_s8 = inlined_call_operand.vmem [shape: f32[8,384], index: 8, kind: output, shape index: {}]  }
   0x1   :  { %v3643_v0 = vld [vmem:[%s5786_s1 + $0x74] ss:$8 sps:$4 sm:$0xff]   ;;  %v3645_v1 = vld [vmem:[%s5786_s1 + $0x70] ss:$8 sps:$4 sm:$0xff]   ;;  %v3646_v2 = vld [vmem:[%s5786_s1 + $0x64] ss:$8 sps:$4 sm:$0xff]  }
   0x2   :  { %682 = vmatprep.subr.bf16.mxu0 %v3643_v0  ;;  %3622 = vmatprep.subr.bf16.mxu1 %v3643_v0  ;;  %v3648_v3 = vld [vmem:[%s5786_s1 + $0x60] ss:$8 sps:$4 sm:$0xff]   ;;  %v3649_v4 = vld [vmem:[%s5786_s1 + $0x54] ss:$8 sps:$4 sm:$0xff]   ;;  %v3651_v5 = vld [vmem:[%s5786_s1 + $0x50] ss:$8 sps:$4 sm:$0xff]  }
   0x3   :  { %683 = vmatpush1.bf16.msra.mxu0 %v3645_v1  ;;  %3632 = vmatpush1.bf16.msra.mxu1 %v3645_v1  ;;  %v3652_v6 = vld [vmem:[%s5786_s1 + $0x44] ss:$8 sps:$4 sm:$0xff]   ;;  %v3654_v7 = vld [vmem:[%s5786_s1 + $0x40] ss:$8 sps:$4 sm:$0xff]   ;;  %v3655_v8 = vld [vmem:[%s5786_s1 + $0x34] ss:$8 sps:$4 sm:$0xff]  }
   0x4   :  { %684 = vmatprep.subr.bf16.mxu0 %v3646_v2  ;;  %3623 = vmatprep.subr.bf16.mxu1 %v3646_v2  ;;  %v44_v9 = vld [vmem:[%s5787_s0] sm:$0xff]  ;;  %v3967_v10 = vld [vmem:[%s5787_s0 + $0x8] sm:$0xff]  ;;  %v3657_v11 = vld [vmem:[%s5786_s1 + $0x30] ss:$8 sps:$4 sm:$0xff]  }
   0x5   :  { %v3973_v12 = vcombine.high %v44_v9, %v3967_v10  ;;  %v3677_v13 = vld [vmem:[%s5787_s0 + $0x124] ss:$8 sps:$4 sm:$0xff]   ;;  %v3660_v15 = vld [vmem:[%s5786_s1 + $0x20] ss:$8 sps:$4 sm:$0xff]   ;;  %v3661_v16 = vld [vmem:[%s5786_s1 + $0x14] ss:$8 sps:$4 sm:$0xff]   ;;  %v4026_v28 = vcombine.low %v44_v9, %v3967_v10 }
   0x6   :  { %v3658_v14 = vld [vmem:[%s5786_s1 + $0x24] ss:$8 sps:$4 sm:$0xff]   ;;  %3458 = vmatprep.mubr.msk.bf16.mxu1 %vm5795_vm0, %v3677_v13  ;;  %v3663_v17 = vld [vmem:[%s5786_s1 + $0x10] ss:$8 sps:$4 sm:$0xff]   ;;  %v3666_v19 = vld [vmem:[%s5786_s1] ss:$8 sps:$4 sm:$0xff]  }
   0x7   :  { %685 = vmatpush1.bf16.msra.mxu0 %v3648_v3  ;;  %3633 = vmatpush1.bf16.msra.mxu1 %v3648_v3  ;;  %v3664_v18 = vld [vmem:[%s5786_s1 + $0x4] ss:$8 sps:$4 sm:$0xff]   ;;  %v3667_v20 = vld [vmem:[%s5786_s1 + $0x94] ss:$8 sps:$4 sm:$0xff]   ;;  %v3669_v21 = vld [vmem:[%s5786_s1 + $0x90] ss:$8 sps:$4 sm:$0xff]  }
   0x8   :  { %686 = vmatprep.subr.bf16.mxu0 %v3649_v4  ;;  %3624 = vmatprep.subr.bf16.mxu1 %v3649_v4  ;;  %v3670_v22 = vld [vmem:[%s5786_s1 + $0x84] ss:$8 sps:$4 sm:$0xff]   ;;  %v4011_v23 = vld [vmem:[%s5787_s0 + $0x10] sm:$0xff]  ;;  %v3672_v26 = vld [vmem:[%s5786_s1 + $0x80] ss:$8 sps:$4 sm:$0xff]  }
   0x9   :  { %3442 = vmatprep.mubr.msk.bf16.mxu0 %vm5795_vm0, %v3973_v12  ;;  %v3475_v25 = vcombine.high %v3967_v10, %v4011_v23  ;;  %v4023_v27 = vld [vmem:[%s5787_s0 + $0x18] sm:$0xff]  ;;  %v3675_v29 = vld [vmem:[%s5787_s0 + $0x120] ss:$8 sps:$4 sm:$0xff]   ;;  %v3685_v37 = vld [vmem:[%s5788_s3 + $0x30] sm:$0xff]  }
   0xa   :  { %v3678_v30 = vld [vmem:[%s5788_s3 + $0x38] sm:$0xff]   ;;  %v4041_v33 = vcombine.high %v4011_v23, %v4023_v27  ;;  %v4049_v35 = vld [vmem:[%s5787_s0 + $0x20] sm:$0xff]  ;;  %v3686_v38 = vld [vmem:[%s5789_s2 + $0x30] sm:$0xff]   ;;  %v4074_v41 = vcombine.low %v4011_v23, %v4023_v27 }
   0xb   :  { %687 = vmatpush1.bf16.msra.mxu0 %v3651_v5  ;;  %3634 = vmatpush1.bf16.msra.mxu1 %v3651_v5  ;;  %v3679_v31 = vld [vmem:[%s5789_s2 + $0x38] sm:$0xff]   ;;  %v4068_v40 = vld [vmem:[%s5787_s0 + $0x28] sm:$0xff]  ;;  %v4097_v47 = vld [vmem:[%s5787_s0 + $0x30] sm:$0xff] }
   0xc   :  { %688 = vmatprep.subr.bf16.mxu0 %v3652_v6  ;;  %3625 = vmatprep.subr.bf16.mxu1 %v3652_v6  ;;  %v3681_v34 = vld [vmem:[%s5787_s0 + $0x134] ss:$8 sps:$4 sm:$0xff]   ;;  %v3684_v42 = vld [vmem:[%s5787_s0 + $0x130] ss:$8 sps:$4 sm:$0xff]   ;;  %v4081_v43 = vcombine.high %v4049_v35, %v4068_v40  ;;  %v3688_v44 = vld [vmem:[%s5787_s0 + $0x144] ss:$8 sps:$4 sm:$0xff]   ;;  %v4122_v53 = vcombine.low %v4049_v35, %v4068_v40 }
   0xd   :  { %v3697_v45 = vld [vmem:[%s5788_s3 + $0x28] sm:$0xff]   ;;  %v4103_v48 = vld [vmem:[%s5787_s0 + $0x38] sm:$0xff]  ;;  %v3709_v50 = vld [vmem:[%s5788_s3 + $0x20] sm:$0xff]  }
   0xe   :  { %v3698_v46 = vld [vmem:[%s5789_s2 + $0x28] sm:$0xff]   ;;  %v3710_v52 = vld [vmem:[%s5789_s2 + $0x20] sm:$0xff]   ;;  %v4129_v55 = vcombine.high %v4097_v47, %v4103_v48  ;;  %v3693_v56 = vld [vmem:[%s5787_s0 + $0x154] ss:$8 sps:$4 sm:$0xff]   ;;  %v4164_v63 = vcombine.low %v4097_v47, %v4103_v48 }
   0xf   :  { %689 = vmatpush1.bf16.msra.mxu0 %v3654_v7  ;;  %3635 = vmatpush1.bf16.msra.mxu1 %v3654_v7  ;;  %v3691_v54 = vld [vmem:[%s5787_s0 + $0x140] ss:$8 sps:$4 sm:$0xff]   ;;  %v3716_v57 = vld [vmem:[%s5788_s3 + $0x18] sm:$0xff]   ;;  %v4152_v60 = vld [vmem:[%s5787_s0 + $0x50] sm:$0xff] }
  0x10   :  { %690 = vmatprep.subr.bf16.mxu0 %v3655_v8  ;;  %3626 = vmatprep.subr.bf16.mxu1 %v3655_v8  ;;  %v3717_v58 = vld [vmem:[%s5789_s2 + $0x18] sm:$0xff]   ;;  %v52_v59 = vld [vmem:[%s5787_s0 + $0x48] sm:$0xff]  ;;  %v3728_v61 = vld [vmem:[%s5788_s3 + $0x10] sm:$0xff]  }
  0x11   :  { %v3729_v62 = vld [vmem:[%s5789_s2 + $0x10] sm:$0xff]   ;;  %v4170_v1 = vcombine.high %v52_v59, %v4152_v60  ;;  %v3735_v3 = vld [vmem:[%s5788_s3 + $0x8] sm:$0xff]   ;;  %v4184_v5 = vld [vmem:[%s5787_s0 + $0x58] sm:$0xff] }
  0x12   :  { %v3696_v0 = vld [vmem:[%s5787_s0 + $0x150] ss:$8 sps:$4 sm:$0xff]   ;;  %v3700_v2 = vld [vmem:[%s5787_s0 + $0x16c] ss:$8 sps:$4 sm:$0xff]   ;;  %v4192_v6 = vld [vmem:[%s5787_s0 + $0x60] sm:$0xff] }
  0x13   :  { %691 = vmatpush1.bf16.msra.mxu0 %v3657_v11  ;;  %3636 = vmatpush1.bf16.msra.mxu1 %v3657_v11  ;;  %v3736_v4 = vld [vmem:[%s5789_s2 + $0x8] sm:$0xff]   ;;  %v3747_v7 = vld [vmem:[%s5788_s3] sm:$0xff]   ;;  %v4506_v51 = vld [vmem:[%s5787_s0 + $0x110] sm:$0xff] }
  0x14   :  { %692 = vmatprep.subr.bf16.mxu0 %v3658_v14  ;;  %3627 = vmatprep.subr.bf16.mxu1 %v3658_v14  ;;  %v3748_v8 = vld [vmem:[%s5789_s2] sm:$0xff]   ;;  %v3703_v13 = vld [vmem:[%s5787_s0 + $0x168] ss:$8 sps:$4 sm:$0xff]   ;;  %v3769_v39 = vld [vmem:[%s5787_s0 + $0x22c] ss:$8 sps:$4 sm:$0xff]  }
  0x15   :  { %v3705_v14 = vld [vmem:[%s5787_s0 + $0x17c] ss:$8 sps:$4 sm:$0xff]   ;;  %v4501_v9 = vld [vmem:[%s5787_s0 + $0x108] sm:$0xff] }
  0x16   :  { %v3762_v11 = vld [vmem:[%s5787_s0 + $0x21c] ss:$8 sps:$4 sm:$0xff]   ;;  %v4528_v36 = vcombine.low %v4501_v9, %v4506_v51  ;;  %v3772_v24 = vld [vmem:[%s5787_s0 + $0x228] ss:$8 sps:$4 sm:$0xff]  }
  0x17   :  { %693 = vmatpush1.bf16.msra.mxu0 %v3660_v15  ;;  %3637 = vmatpush1.bf16.msra.mxu1 %v3660_v15  ;;  %v4216_v15 = vcombine.low %v52_v59, %v4152_v60 }
  0x18   :  { %694 = vmatprep.subr.bf16.mxu0 %v3661_v16  ;;  %3628 = vmatprep.subr.bf16.mxu1 %v3661_v16  ;;  %v3759_v16 = vld [vmem:[%s5788_s3 + $0x48] sm:$0xff]  }
  0x1b   :  { %695 = vmatpush1.bf16.msra.mxu0 %v3663_v17  ;;  %3638 = vmatpush1.bf16.msra.mxu1 %v3663_v17  ;;  %v3760_v17 = vld [vmem:[%s5789_s2 + $0x48] sm:$0xff]  }
  0x1c   :  { %696 = vmatprep.subr.bf16.mxu0 %v3664_v18  ;;  %3629 = vmatprep.subr.bf16.mxu1 %v3664_v18  ;;  %v4226_v18 = vcombine.high %v4184_v5, %v4192_v6 }
  0x1f   :  { %697 = vmatpush1.bf16.msra.mxu0 %v3666_v19  ;;  %3639 = vmatpush1.bf16.msra.mxu1 %v3666_v19  ;;  %v4231_v19 = vld [vmem:[%s5787_s0 + $0x68] sm:$0xff] }
  0x20   :  { %710 = vmatprep.subr.bf16.mxu0 %v3667_v20  ;;  %3630 = vmatprep.subr.bf16.mxu1 %v3667_v20  ;;  %v4239_v20 = vld [vmem:[%s5787_s0 + $0x70] sm:$0xff] }
  0x23   :  { %711 = vmatpush2.bf16.msra.mxu0 %v3669_v21  ;;  %3640 = vmatpush2.bf16.msra.mxu1 %v3669_v21 }
  0x24   :  { %712 = vmatprep.subr.bf16.mxu0 %v3670_v22  ;;  %3631 = vmatprep.subr.bf16.mxu1 %v3670_v22  ;;  %v4478_v22 = vld [vmem:[%s5787_s0 + $0x100] sm:$0xff] }
  0x27   :  { %713 = vmatpush2.bf16.msra.mxu0 %v3672_v26  ;;  %3641 = vmatpush2.bf16.msra.mxu1 %v3672_v26  ;;  %v3766_v26 = vld [vmem:[%s5788_s3 + $0x40] sm:$0xff]  }
  0x28   :  { %1519 = vmatprep.subr.bf16.mxu1 %v3888_v32  ;;  %1868 = vmatprep.subr.bf16.mxu0 %v3888_v32 }
  0x2a   :  { %715 = vmatmul.mubr.bf16.vlgmr.msra.gmra.mxu0 %v4026_v28  ;;  %875 = vmatmul.mubr.bf16.vlgmr.msra.gmra.mxu1 %v3675_v29  ;;  %v3767_v29 = vld [vmem:[%s5789_s2 + $0x40] sm:$0xff]  }
  0x2b   :  { %1520 = vmatpush1.bf16.msra.mxu1 %v3678_v30  ;;  %1869 = vmatpush1.bf16.msra.mxu0 %v3679_v31  ;;  %v4258_v30 = vcombine.low %v4184_v5, %v4192_v6  ;;  %v3708_v31 = vld [vmem:[%s5787_s0 + $0x178] ss:$8 sps:$4 sm:$0xff]  }
  0x2c   :  { %3443 = vmatprep.mubr.msk.bf16.mxu0 %vm5795_vm0, %v4041_v33  ;;  %3459 = vmatprep.mubr.msk.bf16.mxu1 %vm5795_vm0, %v3681_v34  ;;  %v4265_v34 = vcombine.high %v4231_v19, %v4239_v20 }
  0x2d   :  { %1521 = vmatprep.subr.bf16.mxu1 %v3888_v32  ;;  %1870 = vmatprep.subr.bf16.mxu0 %v3888_v32 }
  0x2f   :  { %1522 = vmatpush1.bf16.msra.mxu1 %v3685_v37  ;;  %1871 = vmatpush1.bf16.msra.mxu0 %v3686_v38  ;;  %v3712_v37 = vld [vmem:[%s5787_s0 + $0x18c] ss:$8 sps:$4 sm:$0xff]  }
  0x30   :  { %1523 = vmatprep.subr.bf16.mxu1 %v3888_v32  ;;  %1872 = vmatprep.subr.bf16.mxu0 %v3888_v32  ;;  %v3755_v38 = vld [vmem:[%s5787_s0 + $0x20c] ss:$8 sps:$4 sm:$0xff]  }
  0x32   :  { %725 = vmatmul.mubr.bf16.gmra.mxu0 %v4074_v41  ;;  %885 = vmatmul.mubr.bf16.gmra.mxu1 %v3684_v42 }
  0x33   :  { %3444 = vmatprep.mubr.msk.bf16.mxu0 %vm5795_vm0, %v4081_v43  ;;  %3460 = vmatprep.mubr.msk.bf16.mxu1 %vm5795_vm0, %v3688_v44  ;;  %v4286_v44 = vld [vmem:[%s5787_s0 + $0x80] sm:$0xff] }
  0x34   :  { %1524 = vmatpush1.bf16.msra.mxu1 %v3697_v45  ;;  %1873 = vmatpush1.bf16.msra.mxu0 %v3698_v46  ;;  %v4290_v45 = vcombine.low %v4231_v19, %v4239_v20  ;;  %v3715_v46 = vld [vmem:[%s5787_s0 + $0x188] ss:$8 sps:$4 sm:$0xff]  }
  0x35   :  { %1525 = vmatprep.subr.bf16.mxu1 %v3888_v32  ;;  %1874 = vmatprep.subr.bf16.mxu0 %v3888_v32 }
  0x38   :  { %1526 = vmatpush1.bf16.msra.mxu1 %v3709_v50  ;;  %1875 = vmatpush1.bf16.msra.mxu0 %v3710_v52  ;;  %v3719_v52 = vld [vmem:[%s5787_s0 + $0x19c] ss:$8 sps:$4 sm:$0xff]  }
  0x39   :  { %1527 = vmatprep.subr.bf16.mxu1 %v3888_v32  ;;  %1876 = vmatprep.subr.bf16.mxu0 %v3888_v32 }
  0x3a   :  { %735 = vmatmul.mubr.bf16.gmra.mxu0 %v4122_v53  ;;  %895 = vmatmul.mubr.bf16.gmra.mxu1 %v3691_v54  ;;  %v60_v54 = vld [vmem:[%s5787_s0 + $0x90] sm:$0xff] }
  0x3b   :  { %3445 = vmatprep.mubr.msk.bf16.mxu0 %vm5795_vm0, %v4129_v55  ;;  %3461 = vmatprep.mubr.msk.bf16.mxu1 %vm5795_vm0, %v3693_v56  ;;  %v4312_v56 = vld [vmem:[%s5787_s0 + $0x98] sm:$0xff] }
  0x3c   :  { %1528 = vmatpush1.bf16.msra.mxu1 %v3716_v57  ;;  %1877 = vmatpush1.bf16.msra.mxu0 %v3717_v58  ;;  %v3722_v58 = vld [vmem:[%s5787_s0 + $0x198] ss:$8 sps:$4 sm:$0xff]   ;;  %v4322_v59 = vcombine.high %v60_v54, %v4312_v56 }
  0x3d   :  { %1529 = vmatprep.subr.bf16.mxu1 %v3888_v32  ;;  %1878 = vmatprep.subr.bf16.mxu0 %v3888_v32 }
  0x40   :  { %1530 = vmatpush1.bf16.msra.mxu1 %v3728_v61  ;;  %1879 = vmatpush1.bf16.msra.mxu0 %v3729_v62  ;;  %v3724_v61 = vld [vmem:[%s5787_s0 + $0x1b4] ss:$8 sps:$4 sm:$0xff]   ;;  %v4330_v62 = vld [vmem:[%s5787_s0 + $0xa0] sm:$0xff] }
  0x41   :  { %1531 = vmatprep.subr.bf16.mxu1 %v3888_v32  ;;  %1880 = vmatprep.subr.bf16.mxu0 %v3888_v32 }
  0x42   :  { %745 = vmatmul.mubr.bf16.gmra.mxu0 %v4164_v63  ;;  %905 = vmatmul.mubr.bf16.gmra.mxu1 %v3696_v0  ;;  %v4451_v0 = vld [vmem:[%s5787_s0 + $0xf0] sm:$0xff] }
  0x43   :  { %3446 = vmatprep.mubr.msk.bf16.mxu0 %vm5795_vm0, %v4170_v1  ;;  %3462 = vmatprep.mubr.msk.bf16.mxu1 %vm5795_vm0, %v3700_v2  ;;  %v4341_v2 = vld [vmem:[%s5787_s0 + $0xa8] sm:$0xff] }
  0x44   :  { %1532 = vmatpush1.bf16.msra.mxu1 %v3735_v3  ;;  %1881 = vmatpush1.bf16.msra.mxu0 %v3736_v4  ;;  %v4344_v3 = vcombine.low %v60_v54, %v4312_v56  ;;  %v3727_v4 = vld [vmem:[%s5787_s0 + $0x1b0] ss:$8 sps:$4 sm:$0xff]  }
  0x45   :  { %1533 = vmatprep.subr.bf16.mxu1 %v3888_v32  ;;  %1882 = vmatprep.subr.bf16.mxu0 %v3888_v32  ;;  %v3741_v54 = vld [vmem:[%s5787_s0 + $0x1d0] ss:$8 sps:$4 sm:$0xff]  }
  0x48   :  { %1534 = vmatpush1.bf16.msra.mxu1 %v3747_v7  ;;  %1883 = vmatpush1.bf16.msra.mxu0 %v3748_v8  ;;  %v4351_v7 = vcombine.high %v4330_v62, %v4341_v2  ;;  %v3731_v8 = vld [vmem:[%s5787_s0 + $0x1c4] ss:$8 sps:$4 sm:$0xff]  }
  0x49   :  { %1547 = vmatprep.subr.bf16.mxu1 %v3888_v32  ;;  %1896 = vmatprep.subr.bf16.mxu0 %v3888_v32 }
  0x4a   :  { %755 = vmatmul.mubr.bf16.gmra.mxu0 %v4216_v15  ;;  %915 = vmatmul.mubr.bf16.gmra.mxu1 %v3703_v13  ;;  %v4446_v13 = vld [vmem:[%s5787_s0 + $0xe8] sm:$0xff] }
  0x4b   :  { %3447 = vmatprep.mubr.msk.bf16.mxu0 %vm5795_vm0, %v4226_v18  ;;  %3463 = vmatprep.mubr.msk.bf16.mxu1 %vm5795_vm0, %v3705_v14  ;;  %v4365_v14 = vld [vmem:[%s5787_s0 + $0xb0] sm:$0xff]  ;;  %v4482_v21 = vcombine.low %v4446_v13, %v4451_v0 }
  0x4c   :  { %1548 = vmatpush2.bf16.msra.mxu1 %v3759_v16  ;;  %1897 = vmatpush2.bf16.msra.mxu0 %v3760_v17  ;;  %v4370_v16 = vld [vmem:[%s5787_s0 + $0xb8] sm:$0xff]  ;;  %v4374_v17 = vcombine.low %v4330_v62, %v4341_v2 }
  0x4d   :  { %1549 = vmatprep.subr.bf16.mxu1 %v3888_v32  ;;  %1898 = vmatprep.subr.bf16.mxu0 %v3888_v32  ;;  %v4273_v32 = vld [vmem:[%s5787_s0 + $0x78] sm:$0xff] }
  0x4e   :  { %v4297_v50 = vcombine.high %v4273_v32, %v4286_v44  ;;  %v4316_v57 = vcombine.low %v4273_v32, %v4286_v44 }
  0x50   :  { %1550 = vmatpush2.bf16.msra.mxu1 %v3766_v26  ;;  %1899 = vmatpush2.bf16.msra.mxu0 %v3767_v29  ;;  %v3734_v26 = vld [vmem:[%s5787_s0 + $0x1c0] ss:$8 sps:$4 sm:$0xff]   ;;  %v4381_v29 = vcombine.high %v4365_v14, %v4370_v16 }
  0x52   :  { %765 = vmatmul.mubr.bf16.gmra.mxu0 %v4258_v30  ;;  %925 = vmatmul.mubr.bf16.gmra.mxu1 %v3708_v31  ;;  %v3738_v31 = vld [vmem:[%s5787_s0 + $0x1d4] ss:$8 sps:$4 sm:$0xff]  }
  0x53   :  { %3448 = vmatprep.mubr.msk.bf16.mxu0 %vm5795_vm0, %v4265_v34  ;;  %3464 = vmatprep.mubr.msk.bf16.mxu1 %vm5795_vm0, %v3712_v37  ;;  %v4393_v37 = vld [vmem:[%s5787_s0 + $0xc0] sm:$0xff] }
  0x5a   :  { %775 = vmatmul.mubr.bf16.gmra.mxu0 %v4290_v45  ;;  %935 = vmatmul.mubr.bf16.gmra.mxu1 %v3715_v46  ;;  %v4398_v46 = vld [vmem:[%s5787_s0 + $0xc8] sm:$0xff] }
  0x5b   :  { %3449 = vmatprep.mubr.msk.bf16.mxu0 %vm5795_vm0, %v4297_v50  ;;  %3465 = vmatprep.mubr.msk.bf16.mxu1 %vm5795_vm0, %v3719_v52  ;;  %v4402_v52 = vcombine.low %v4365_v14, %v4370_v16 }
  0x62   :  { %785 = vmatmul.mubr.bf16.gmra.mxu0 %v4316_v57  ;;  %945 = vmatmul.mubr.bf16.gmra.mxu1 %v3722_v58  ;;  %v4409_v58 = vcombine.high %v4393_v37, %v4398_v46 }
  0x63   :  { %3450 = vmatprep.mubr.msk.bf16.mxu0 %vm5795_vm0, %v4322_v59  ;;  %3466 = vmatprep.mubr.msk.bf16.mxu1 %vm5795_vm0, %v3724_v61  ;;  %v3743_v61 = vld [vmem:[%s5787_s0 + $0x1e4] ss:$8 sps:$4 sm:$0xff]  }
  0x6a   :  { %795 = vmatmul.mubr.bf16.gmra.mxu0 %v4344_v3  ;;  %955 = vmatmul.mubr.bf16.gmra.mxu1 %v3727_v4  ;;  %v68_v4 = vld [vmem:[%s5787_s0 + $0xd8] sm:$0xff] }
  0x6b   :  { %3451 = vmatprep.mubr.msk.bf16.mxu0 %vm5795_vm0, %v4351_v7  ;;  %3467 = vmatprep.mubr.msk.bf16.mxu1 %vm5795_vm0, %v3731_v8  ;;  %v4424_v8 = vld [vmem:[%s5787_s0 + $0xe0] sm:$0xff] }
  0x6c   :  { %v4454_v42 = vcombine.low %v68_v4, %v4424_v8 }
  0x72   :  { %805 = vmatmul.mubr.bf16.gmra.mxu0 %v4374_v17  ;;  %965 = vmatmul.mubr.bf16.gmra.mxu1 %v3734_v26  ;;  %v4428_v26 = vcombine.low %v4393_v37, %v4398_v46 }
  0x73   :  { %3452 = vmatprep.mubr.msk.bf16.mxu0 %vm5795_vm0, %v4381_v29  ;;  %3468 = vmatprep.mubr.msk.bf16.mxu1 %vm5795_vm0, %v3738_v31  ;;  %v3746_v31 = vld [vmem:[%s5787_s0 + $0x1e0] ss:$8 sps:$4 sm:$0xff]  }
  0x7a   :  { %815 = vmatmul.mubr.bf16.gmra.mxu0 %v4402_v52  ;;  %975 = vmatmul.mubr.bf16.gmra.mxu1 %v3741_v54  ;;  %v4434_v54 = vcombine.high %v68_v4, %v4424_v8  ;;  %v4473_v4 = vld [vmem:[%s5787_s0 + $0xf8] sm:$0xff] }
  0x7b   :  { %3453 = vmatprep.mubr.msk.bf16.mxu0 %vm5795_vm0, %v4409_v58  ;;  %3469 = vmatprep.mubr.msk.bf16.mxu1 %vm5795_vm0, %v3743_v61  ;;  %v3750_v61 = vld [vmem:[%s5787_s0 + $0x1fc] ss:$8 sps:$4 sm:$0xff]   ;;  %v4510_v49 = vcombine.low %v4473_v4, %v4478_v22 }
  0x82   :  { %825 = vmatmul.mubr.bf16.gmra.mxu0 %v4428_v26  ;;  %985 = vmatmul.mubr.bf16.gmra.mxu1 %v3746_v31  ;;  %v3753_v31 = vld [vmem:[%s5787_s0 + $0x1f8] ss:$8 sps:$4 sm:$0xff]  }
  0x83   :  { %3454 = vmatprep.mubr.msk.bf16.mxu0 %vm5795_vm0, %v4434_v54  ;;  %3470 = vmatprep.mubr.msk.bf16.mxu1 %vm5795_vm0, %v3750_v61  ;;  %v4461_v61 = vcombine.high %v4446_v13, %v4451_v0 }
  0x8a   :  { %835 = vmatmul.mubr.bf16.gmra.mxu0 %v4454_v42  ;;  %995 = vmatmul.mubr.bf16.gmra.mxu1 %v3753_v31  ;;  %v3758_v31 = vld [vmem:[%s5787_s0 + $0x208] ss:$8 sps:$4 sm:$0xff]  }
  0x8b   :  { %3455 = vmatprep.mubr.msk.bf16.mxu0 %vm5795_vm0, %v4461_v61  ;;  %3471 = vmatprep.mubr.msk.bf16.mxu1 %vm5795_vm0, %v3755_v38  ;;  %v4489_v38 = vcombine.high %v4473_v4, %v4478_v22 }
  0x92   :  { %845 = vmatmul.mubr.bf16.gmra.mxu0 %v4482_v21  ;;  %1005 = vmatmul.mubr.bf16.gmra.mxu1 %v3758_v31  ;;  %v3765_v31 = vld [vmem:[%s5787_s0 + $0x218] ss:$8 sps:$4 sm:$0xff]  }
  0x93   :  { %3456 = vmatprep.mubr.msk.bf16.mxu0 %vm5795_vm0, %v4489_v38  ;;  %3472 = vmatprep.mubr.msk.bf16.mxu1 %vm5795_vm0, %v3762_v11  ;;  %v4517_v11 = vcombine.high %v4501_v9, %v4506_v51 }
  0x9a   :  { %855 = vmatmul.mubr.bf16.gmra.mxu0 %v4510_v49  ;;  %1015 = vmatmul.mubr.bf16.gmra.mxu1 %v3765_v31  ;;  %v5817_v31 = vcombine.high %v4023_v27, %v4049_v35 }
  0x9b   :  { %3457 = vmatprep.mubr.msk.bf16.mxu0 %vm5795_vm0, %v4517_v11  ;;  %3473 = vmatprep.mubr.msk.bf16.mxu1 %vm5795_vm0, %v3769_v39  ;;  %v5816_v39 = vcombine.low %v3967_v10, %v4011_v23  ;;  %v5819_v10 = vcombine.high %v4068_v40, %v4097_v47 }
  0xa2   :  { %865 = vmatmul.mubr.bf16.gmra.mxu0 %v4528_v36  ;;  %1025 = vmatmul.mubr.bf16.gmra.mxu1 %v3772_v24  ;;  %v5818_v24 = vcombine.low %v4023_v27, %v4049_v35  ;;  %v5823_v35 = vcombine.high %v4192_v6, %v4231_v19 }
  0xa3   :  { %3548 = vmatprep.mubr.msk.bf16.mxu1 %vm5795_vm0, %v3475_v25  ;;  %3590 = vmatprep.mubr.msk.bf16.mxu0 %vm5795_vm0, %v3973_v12  ;;  %v3301_v12 = vld [vmem:[%s5787_s0 + $0x40] sm:$0xff]  ;;  %v5820_v25 = vcombine.low %v4068_v40, %v4097_v47  ;;  %v5824_v40 = vcombine.low %v4192_v6, %v4231_v19 }
  0xa4   :  { %v3481_v23 = vcombine.high %v4103_v48, %v3301_v12  ;;  %v3480_v27 = vcombine.low %v4103_v48, %v3301_v12  ;;  %v5826_v48 = vcombine.low %v4239_v20, %v4273_v32 }
  0xaa   :  { %1552 = vmatmul.mubr.bf16.vlgmr.msra.gmra.mxu1 %v5816_v39  ;;  %1901 = vmatmul.mubr.bf16.vlgmr.msra.gmra.mxu0 %v4026_v28  ;;  %v5821_v28 = vcombine.high %v4152_v60, %v4184_v5  ;;  %v3492_v39 = vcombine.low %v4341_v2, %v4365_v14 }
  0xab   :  { %3549 = vmatprep.mubr.msk.bf16.mxu1 %vm5795_vm0, %v5817_v31  ;;  %3591 = vmatprep.mubr.msk.bf16.mxu0 %vm5795_vm0, %v4041_v33  ;;  %v5822_v33 = vcombine.low %v4152_v60, %v4184_v5  ;;  %v4626_v5 = vld [vmem:[%s5790_s4] sm:$0x7]  ;;  %v3495_v31 = vcombine.high %v4370_v16, %v4393_v37 }
  0xb2   :  { %1560 = vmatmul.mubr.bf16.gmra.mxu1 %v5818_v24  ;;  %1909 = vmatmul.mubr.bf16.gmra.mxu0 %v4074_v41  ;;  %v5825_v41 = vcombine.high %v4239_v20, %v4273_v32 }
  0xb3   :  { %3550 = vmatprep.mubr.msk.bf16.mxu1 %vm5795_vm0, %v5819_v10  ;;  %3592 = vmatprep.mubr.msk.bf16.mxu0 %vm5795_vm0, %v4081_v43  ;;  %v3309_v43 = vld [vmem:[%s5787_s0 + $0x88] sm:$0xff] }
  0xb4   :  { %v3489_v47 = vcombine.high %v4286_v44, %v3309_v43 }
  0xba   :  { %1568 = vmatmul.mubr.bf16.gmra.mxu1 %v5820_v25  ;;  %1917 = vmatmul.mubr.bf16.gmra.mxu0 %v4122_v53  ;;  %v2543_v53 = vlaneseq }
  0xbb   :  { %3551 = vmatprep.mubr.msk.bf16.mxu1 %vm5795_vm0, %v3481_v23  ;;  %3593 = vmatprep.mubr.msk.bf16.mxu0 %vm5795_vm0, %v4129_v55  ;;  %v3488_v55 = vcombine.low %v4286_v44, %v3309_v43 }
  0xbc   :  { %v4611_v60 = vshrl.u32 %v2543_v53, 7 }
  0xbe   :  { %v4629_v6 = vsub.s32 1, %v4611_v60  ;;  %v4638_v19 = vadd.s32 8, %v4611_v60 }
  0xc0   :  { %5828 = vst [vmem:[#allocation3_spill] sm:$0xff] %v4638_v19  ;;  %v4646_v32 = vrot.slane %v4626_v5, %v4629_v6 }
  0xc2   :  { %1576 = vmatmul.mubr.bf16.gmra.mxu1 %v3480_v27  ;;  %1925 = vmatmul.mubr.bf16.gmra.mxu0 %v4164_v63  ;;  %v5827_v63 = vcombine.high %v4312_v56, %v4330_v62  ;;  %vm4668_vm3 = vcmp.lt.s32.totalorder %v4611_v60, %v4646_v32  ;;  %vm4674_vm4 = vcmp.lt.s32.totalorder %v4638_v19, %v4646_v32 }
  0xc3   :  { %3552 = vmatprep.mubr.msk.bf16.mxu1 %vm5795_vm0, %v5821_v28  ;;  %3594 = vmatprep.mubr.msk.bf16.mxu0 %vm5795_vm0, %v4170_v1  ;;  %v4621_v1 = vsub.s32 0, %v4611_v60 }
  0xca   :  { %1584 = vmatmul.mubr.bf16.gmra.mxu1 %v5822_v33  ;;  %1933 = vmatmul.mubr.bf16.gmra.mxu0 %v4216_v15  ;;  %v3493_v15 = vcombine.high %v4341_v2, %v4365_v14  ;;  %v4697_v14 = vadd.s32 24, %v4611_v60 }
  0xcb   :  { %3553 = vmatprep.mubr.msk.bf16.mxu1 %vm5795_vm0, %v5823_v35  ;;  %3595 = vmatprep.mubr.msk.bf16.mxu0 %vm5795_vm0, %v4226_v18  ;;  %v4635_v18 = vrot.slane %v4626_v5, %v4621_v1 }
  0xcc   :  { %5841 = vst [vmem:[#allocation5_spill] sm:$0xff] %v4697_v14  ;;  %vm4739_vm8 = vcmp.lt.s32.totalorder %v4697_v14, %v4646_v32 }
  0xcd   :  { %vm4653_vm1 = vcmp.lt.s32.totalorder %v4611_v60, %v4635_v18  ;;  %vm4659_vm2 = vcmp.lt.s32.totalorder %v4638_v19, %v4635_v18  ;;  %vm4723_vm7 = vcmp.lt.s32.totalorder %v4697_v14, %v4635_v18 }
  0xd2   :  { %1592 = vmatmul.mubr.bf16.gmra.mxu1 %v5824_v40  ;;  %1941 = vmatmul.mubr.bf16.gmra.mxu0 %v4258_v30 }
  0xd3   :  { %3554 = vmatprep.mubr.msk.bf16.mxu1 %vm5795_vm0, %v5825_v41  ;;  %3596 = vmatprep.mubr.msk.bf16.mxu0 %vm5795_vm0, %v4265_v34  ;;  %v5829_v34 = vcombine.low %v4312_v56, %v4330_v62  ;;  %v3866_v56 = vld [vmem:[%s5787_s0 + $0x188] ss:$8 sps:$4 sm:$0xff]  }
  0xda   :  { %1600 = vmatmul.mubr.bf16.gmra.mxu1 %v5826_v48  ;;  %1949 = vmatmul.mubr.bf16.gmra.mxu0 %v4290_v45 }
  0xdb   :  { %3555 = vmatprep.mubr.msk.bf16.mxu1 %vm5795_vm0, %v3489_v47  ;;  %3597 = vmatprep.mubr.msk.bf16.mxu0 %vm5795_vm0, %v4297_v50 }
  0xe2   :  { %1608 = vmatmul.mubr.bf16.gmra.mxu1 %v3488_v55  ;;  %1957 = vmatmul.mubr.bf16.gmra.mxu0 %v4316_v57  ;;  %v4664_v57 = vadd.s32 16, %v4611_v60 }
  0xe3   :  { %3556 = vmatprep.mubr.msk.bf16.mxu1 %vm5795_vm0, %v5827_v63  ;;  %3598 = vmatprep.mubr.msk.bf16.mxu0 %vm5795_vm0, %v4322_v59  ;;  %v3828_v63 = vld [vmem:[%s5787_s0 + $0x1a0] ss:$8 sps:$4 sm:$0xff]  }
  0xe4   :  { %5834 = vst [vmem:[#allocation4_spill] sm:$0xff] %v4664_v57  ;;  %vm4692_vm5 = vcmp.lt.s32.totalorder %v4664_v57, %v4635_v18  ;;  %vm4710_vm6 = vcmp.lt.s32.totalorder %v4664_v57, %v4646_v32 }
  0xea   :  { %v716_v20 = vpop.f32.mrf.mxu0  ;;  %v876_v30 = vpop.f32.mrf.mxu1  ;;  %1616 = vmatmul.mubr.bf16.gmra.mxu1 %v5829_v34  ;;  %1965 = vmatmul.mubr.bf16.gmra.mxu0 %v4344_v3 }
  0xeb   :  { %3557 = vmatprep.mubr.msk.bf16.mxu1 %vm5795_vm0, %v3493_v15  ;;  %3599 = vmatprep.mubr.msk.bf16.mxu0 %vm5795_vm0, %v4351_v7  ;;  %v2646_v24 = vsel %vm4653_vm1, %v716_v20, -inf  ;;  %v2742_v10 = vsel %vm4653_vm1, %v876_v30, -inf }
  0xec   :  { %v718_v45 = vpop.f32.mrf.mxu0  ;;  %v878_v50 = vpop.f32.mrf.mxu1 }
  0xed   :  { %v2647_v35 = vsel %vm4668_vm3, %v718_v45, -inf  ;;  %v2743_v40 = vsel %vm4668_vm3, %v878_v50, -inf }
  0xee   :  { %v720_v62 = vpop.f32.mrf.mxu0  ;;  %v880_v3 = vpop.f32.mrf.mxu1 }
  0xef   :  { %v2649_v12 = vsel %vm4659_vm2, %v720_v62, -inf  ;;  %v2745_v23 = vsel %vm4659_vm2, %v880_v3, -inf  ;;  %v4728_v62 = vadd.s32 32, %v4611_v60  ;;  %v3317_v3 = vld [vmem:[%s5787_s0 + $0xd0] sm:$0xff] }
  0xf0   :  { %v2841_v25 = vmax.f32 %v2646_v24, %v2649_v12  ;;  %v2997_v27 = vmax.f32 %v2742_v10, %v2745_v23  ;;  %v722_v28 = vpop.f32.mrf.mxu0  ;;  %v882_v33 = vpop.f32.mrf.mxu1 }
  0xf1   :  { %v2650_v41 = vsel %vm4674_vm4, %v722_v28, -inf  ;;  %v2746_v43 = vsel %vm4674_vm4, %v882_v33, -inf  ;;  %5846 = vst [vmem:[#allocation6_spill] sm:$0xff] %v4728_v62  ;;  %v3497_v33 = vcombine.high %v4398_v46, %v3317_v3  ;;  %vm4752_vm9 = vcmp.lt.s32.totalorder %v4728_v62, %v4635_v18 }
  0xf2   :  { %v2854_v47 = vmax.f32 %v2647_v35, %v2650_v41  ;;  %v3010_v48 = vmax.f32 %v2743_v40, %v2746_v43  ;;  %v726_v53 = vpop.f32.mrf.mxu0  ;;  %v886_v55 = vpop.f32.mrf.mxu1  ;;  %1624 = vmatmul.mubr.bf16.gmra.mxu1 %v3492_v39  ;;  %1973 = vmatmul.mubr.bf16.gmra.mxu0 %v4374_v17  ;;  %vm4766_vm10 = vcmp.lt.s32.totalorder %v4728_v62, %v4646_v32 }
  0xf3   :  { %v2652_v15 = vsel %vm4692_vm5, %v726_v53, -inf  ;;  %v2748_v20 = vsel %vm4692_vm5, %v886_v55, -inf  ;;  %3558 = vmatprep.mubr.msk.bf16.mxu1 %vm5795_vm0, %v3495_v31  ;;  %3600 = vmatprep.mubr.msk.bf16.mxu0 %vm5795_vm0, %v4381_v29 }
  0xf4   :  { %v2842_v30 = vmax.f32 %v2841_v25, %v2652_v15  ;;  %v2998_v34 = vmax.f32 %v2997_v27, %v2748_v20  ;;  %v728_v17 = vpop.f32.mrf.mxu0  ;;  %v888_v45 = vpop.f32.mrf.mxu1  ;;  %v3494_v25 = vcombine.low %v4370_v16, %v4393_v37  ;;  %v4757_v16 = vadd.s32 40, %v4611_v60 }
  0xf5   :  { %v2653_v29 = vsel %vm4710_vm6, %v728_v17, -inf  ;;  %v2749_v39 = vsel %vm4710_vm6, %v888_v45, -inf }
  0xf6   :  { %v2855_v31 = vmax.f32 %v2854_v47, %v2653_v29  ;;  %v3011_v24 = vmax.f32 %v3010_v48, %v2749_v39  ;;  %v730_v10 = vpop.f32.mrf.mxu0  ;;  %v890_v12 = vpop.f32.mrf.mxu1  ;;  %5851 = vst [vmem:[#allocation7_spill] sm:$0xff] %v4757_v16  ;;  %vm4779_vm11 = vcmp.lt.s32.totalorder %v4757_v16, %v4635_v18  ;;  %vm4792_vm12 = vcmp.lt.s32.totalorder %v4757_v16, %v4646_v32 }
  0xf7   :  { %v2655_v27 = vsel %vm4723_vm7, %v730_v10, -inf  ;;  %v2751_v28 = vsel %vm4723_vm7, %v890_v12, -inf }
  0xf8   :  { %v2843_v35 = vmax.f32 %v2842_v30, %v2655_v27  ;;  %v2999_v40 = vmax.f32 %v2998_v34, %v2751_v28  ;;  %v732_v41 = vpop.f32.mrf.mxu0  ;;  %v892_v43 = vpop.f32.mrf.mxu1 }
  0xf9   :  { %v2656_v37 = vsel %vm4739_vm8, %v732_v41, -inf  ;;  %v2752_v48 = vsel %vm4739_vm8, %v892_v43, -inf  ;;  %v3499_v43 = vcombine.high %v4424_v8, %v4446_v13 }
  0xfa   :  { %v2856_v53 = vmax.f32 %v2855_v31, %v2656_v37  ;;  %v3012_v55 = vmax.f32 %v3011_v24, %v2752_v48  ;;  %v736_v15 = vpop.f32.mrf.mxu0  ;;  %v896_v20 = vpop.f32.mrf.mxu1  ;;  %1632 = vmatmul.mubr.bf16.gmra.mxu1 %v3494_v25  ;;  %1981 = vmatmul.mubr.bf16.gmra.mxu0 %v4402_v52  ;;  %v4784_v24 = vadd.s32 48, %v4611_v60 }
  0xfb   :  { %v2658_v34 = vsel %vm4752_vm9, %v736_v15, -inf  ;;  %v2754_v17 = vsel %vm4752_vm9, %v896_v20, -inf  ;;  %3559 = vmatprep.mubr.msk.bf16.mxu1 %vm5795_vm0, %v3497_v33  ;;  %3601 = vmatprep.mubr.msk.bf16.mxu0 %vm5795_vm0, %v4409_v58  ;;  %v5857_v33 = vmov 0  ;;  %v5859_v15 = vmov 0 }
  0xfc   :  { %v2844_v45 = vmax.f32 %v2843_v35, %v2658_v34  ;;  %v3000_v29 = vmax.f32 %v2999_v40, %v2754_v17  ;;  %v738_v52 = vpop.f32.mrf.mxu0  ;;  %v898_v39 = vpop.f32.mrf.mxu1  ;;  %5856 = vst [vmem:[#allocation8_spill] sm:$0xff] %v4784_v24  ;;  %v5858_v33 = vsel %vm4792_vm12, 4294967295, %v5857_v33  ;;  %v3496_v35 = vcombine.low %v4398_v46, %v3317_v3 }
  0xfd   :  { %v2659_v10 = vsel %vm4766_vm10, %v738_v52, -inf  ;;  %v2755_v12 = vsel %vm4766_vm10, %v898_v39, -inf  ;;  %vm4805_vm13 = vcmp.lt.s32.totalorder %v4784_v24, %v4635_v18  ;;  %v4810_v46 = vadd.s32 56, %v4611_v60 }
  0xfe   :  { %v2857_v58 = vmax.f32 %v2856_v53, %v2659_v10  ;;  %v3013_v25 = vmax.f32 %v3012_v55, %v2755_v12  ;;  %v740_v27 = vpop.f32.mrf.mxu0  ;;  %v900_v28 = vpop.f32.mrf.mxu1  ;;  %v5860_v15 = vsel %vm4805_vm13, 4294967295, %v5859_v15  ;;  %vm4819_vm14 = vcmp.lt.s32.totalorder %v4784_v24, %v4646_v32 }
  0xff   :  { %v2661_v40 = vsel %vm4779_vm11, %v740_v27, -inf  ;;  %v2757_v41 = vsel %vm4779_vm11, %v900_v28, -inf  ;;  %5861 = vst [vmem:[#allocation9_spill] sm:$0xff] %v4810_v46  ;;  %v5862_v52 = vmov 0  ;;  %vm4832_vm15 = vcmp.lt.s32.totalorder %v4810_v46, %v4635_v18 }
 0x100   :  { %v2845_v37 = vmax.f32 %v2844_v45, %v2661_v40  ;;  %v3001_v48 = vmax.f32 %v3000_v29, %v2757_v41  ;;  %v742_v53 = vpop.f32.mrf.mxu0  ;;  %v902_v55 = vpop.f32.mrf.mxu1  ;;  %v5863_v52 = vsel %vm4819_vm14, 4294967295, %v5862_v52  ;;  %v5864_v27 = vmov 0 }
 0x101   :  { %v2662_v3 = vsel %vm4792_vm12, %v742_v53, -inf  ;;  %v2758_v20 = vsel %vm4792_vm12, %v902_v55, -inf  ;;  %v5865_v27 = vsel %vm4832_vm15, 4294967295, %v5864_v27  ;;  %v3498_v18 = vcombine.low %v4424_v8, %v4446_v13 }
 0x102   :  { %v2858_v34 = vmax.f32 %v2857_v58, %v2662_v3  ;;  %v3014_v17 = vmax.f32 %v3013_v25, %v2758_v20  ;;  %v746_v45 = vpop.f32.mrf.mxu0  ;;  %v906_v29 = vpop.f32.mrf.mxu1  ;;  %1640 = vmatmul.mubr.bf16.gmra.mxu1 %v3496_v35  ;;  %1989 = vmatmul.mubr.bf16.gmra.mxu0 %v4428_v26  ;;  %v3501_v55 = vcombine.high %v4451_v0, %v4473_v4 }
 0x103   :  { %v2664_v39 = vsel %vm4805_vm13, %v746_v45, -inf  ;;  %v2760_v10 = vsel %vm4805_vm13, %v906_v29, -inf  ;;  %3560 = vmatprep.mubr.msk.bf16.mxu1 %vm5795_vm0, %v3499_v43  ;;  %3602 = vmatprep.mubr.msk.bf16.mxu0 %vm5795_vm0, %v4434_v54  ;;  %vm4842_vm0 = vcmp.lt.s32.totalorder %v4810_v46, %v4646_v32  ;;  %v3860_v46 = vld [vmem:[%s5787_s0 + $0x150] ss:$8 sps:$4 sm:$0xff]  }
 0x104   :  { %v2846_v12 = vmax.f32 %v2845_v37, %v2664_v39  ;;  %v3002_v58 = vmax.f32 %v3001_v48, %v2760_v10  ;;  %v748_v26 = vpop.f32.mrf.mxu0  ;;  %v908_v25 = vpop.f32.mrf.mxu1  ;;  %v5866_v37 = vmov 0 }
 0x105   :  { %v2665_v28 = vsel %vm4819_vm14, %v748_v26, -inf  ;;  %v2761_v35 = vsel %vm4819_vm14, %v908_v25, -inf  ;;  %v5867_v37 = vsel %vm4842_vm0, 4294967295, %v5866_v37  ;;  %v3500_v25 = vcombine.low %v4451_v0, %v4473_v4 }
 0x106   :  { %v2859_v40 = vmax.f32 %v2858_v34, %v2665_v28  ;;  %v3015_v41 = vmax.f32 %v3014_v17, %v2761_v35  ;;  %v750_v43 = vpop.f32.mrf.mxu0  ;;  %v910_v54 = vpop.f32.mrf.mxu1 }
 0x107   :  { %v2667_v48 = vsel %vm4832_vm15, %v750_v43, -inf  ;;  %v2763_v53 = vsel %vm4832_vm15, %v910_v54, -inf  ;;  %vm5868_vm15 = vcmask 261120  }
 0x108   :  { %v4854_v3 = vmax.f32 %v2846_v12, %v2667_v48  ;;  %v4856_v20 = vmax.f32 %v3002_v58, %v2763_v53  ;;  %v752_v32 = vpop.f32.mrf.mxu0  ;;  %v912_v34 = vpop.f32.mrf.mxu1  ;;  %vm5869_vm14 = vmmov %vm5868_vm15 }
 0x109   :  { %v2668_v17 = vsel %vm4842_vm0, %v752_v32, -inf  ;;  %v2764_v13 = vsel %vm4842_vm0, %v912_v34, -inf }
 0x10a   :  { %v4862_v8 = vmax.f32 %v2859_v40, %v2668_v17  ;;  %v4864_v45 = vmax.f32 %v3015_v41, %v2764_v13  ;;  %v756_v29 = vpop.f32.mrf.mxu0  ;;  %v916_v39 = vpop.f32.mrf.mxu1  ;;  %1648 = vmatmul.mubr.bf16.gmra.mxu1 %v3498_v18  ;;  %1997 = vmatmul.mubr.bf16.gmra.mxu0 %v4454_v42  ;;  %v3503_v42 = vcombine.high %v4478_v22, %v4501_v9 }
 0x10b   :  { %3561 = vmatprep.mubr.msk.bf16.mxu1 %vm5868_vm15, %v3501_v55  ;;  %3603 = vmatprep.mubr.msk.bf16.mxu0 %vm5869_vm14, %v4461_v61  ;;  %v2670_v40 = vsel %vm4653_vm1, %v756_v29, -inf  ;;  %v2766_v61 = vsel %vm4653_vm1, %v916_v39, -inf  ;;  %vm5870_vm15 = vmmov %vm5869_vm14 }
 0x10c   :  { %v758_v10 = vpop.f32.mrf.mxu0  ;;  %v918_v12 = vpop.f32.mrf.mxu1 }
 0x10d   :  { %v2671_v48 = vsel %vm4668_vm3, %v758_v10, -inf  ;;  %v2767_v53 = vsel %vm4668_vm3, %v918_v12, -inf  ;;  %v3325_v12 = vld [vmem:[%s5787_s0 + $0x118] sm:$0xff] }
 0x10e   :  { %v760_v58 = vpop.f32.mrf.mxu0  ;;  %v920_v26 = vpop.f32.mrf.mxu1 }
 0x10f   :  { %v2673_v28 = vsel %vm4659_vm2, %v760_v58, -inf  ;;  %v2769_v35 = vsel %vm4659_vm2, %v920_v26, -inf }
 0x110   :  { %v762_v41 = vpop.f32.mrf.mxu0  ;;  %v922_v43 = vpop.f32.mrf.mxu1  ;;  %v2880_v54 = vmax.f32 %v2670_v40, %v2673_v28  ;;  %v3036_v18 = vmax.f32 %v2766_v61, %v2769_v35 }
 0x111   :  { %v2674_v0 = vsel %vm4674_vm4, %v762_v41, -inf  ;;  %v2770_v4 = vsel %vm4674_vm4, %v922_v43, -inf  ;;  %v3505_v43 = vcombine.high %v4506_v51, %v3325_v12 }
 0x112   :  { %v766_v55 = vpop.f32.mrf.mxu0  ;;  %v926_v32 = vpop.f32.mrf.mxu1  ;;  %1656 = vmatmul.mubr.bf16.gmra.mxu1 %v3500_v25  ;;  %2005 = vmatmul.mubr.bf16.gmra.mxu0 %v4482_v21  ;;  %v2893_v34 = vmax.f32 %v2671_v48, %v2674_v0  ;;  %v3049_v17 = vmax.f32 %v2767_v53, %v2770_v4 }
 0x113   :  { %v2676_v13 = vsel %vm4692_vm5, %v766_v55, -inf  ;;  %v2772_v29 = vsel %vm4692_vm5, %v926_v32, -inf  ;;  %3562 = vmatprep.mubr.msk.bf16.mxu1 %vm5869_vm14, %v3503_v42  ;;  %3604 = vmatprep.mubr.msk.bf16.mxu0 %vm5870_vm15, %v4489_v38  ;;  %v3502_v38 = vcombine.low %v4478_v22, %v4501_v9  ;;  %vm5871_vm15 = vmmov %vm5869_vm14 }
 0x114   :  { %v768_v39 = vpop.f32.mrf.mxu0  ;;  %v928_v10 = vpop.f32.mrf.mxu1  ;;  %v2881_v21 = vmax.f32 %v2880_v54, %v2676_v13  ;;  %v3037_v58 = vmax.f32 %v3036_v18, %v2772_v29 }
 0x115   :  { %v2677_v26 = vsel %vm4710_vm6, %v768_v39, -inf  ;;  %v2773_v25 = vsel %vm4710_vm6, %v928_v10, -inf }
 0x116   :  { %v2894_v28 = vmax.f32 %v2893_v34, %v2677_v26  ;;  %v3050_v35 = vmax.f32 %v3049_v17, %v2773_v25  ;;  %v770_v42 = vpop.f32.mrf.mxu0  ;;  %v930_v40 = vpop.f32.mrf.mxu1 }
 0x117   :  { %v2679_v61 = vsel %vm4723_vm7, %v770_v42, -inf  ;;  %v2775_v41 = vsel %vm4723_vm7, %v930_v40, -inf  ;;  %v3805_v40 = vld [vmem:[%s5787_s0 + $0x12c] ss:$8 sps:$4 sm:$0xff]  }
 0x118   :  { %v2882_v54 = vmax.f32 %v2881_v21, %v2679_v61  ;;  %v3038_v18 = vmax.f32 %v3037_v58, %v2775_v41  ;;  %v772_v0 = vpop.f32.mrf.mxu0  ;;  %v932_v4 = vpop.f32.mrf.mxu1 }
 0x119   :  { %v2680_v48 = vsel %vm4739_vm8, %v772_v0, -inf  ;;  %v2776_v53 = vsel %vm4739_vm8, %v932_v4, -inf }
 0x11a   :  { %v2895_v55 = vmax.f32 %v2894_v28, %v2680_v48  ;;  %v3051_v9 = vmax.f32 %v3050_v35, %v2776_v53  ;;  %v776_v22 = vpop.f32.mrf.mxu0  ;;  %v936_v32 = vpop.f32.mrf.mxu1  ;;  %1664 = vmatmul.mubr.bf16.gmra.mxu1 %v3502_v38  ;;  %2013 = vmatmul.mubr.bf16.gmra.mxu0 %v4510_v49  ;;  %v3504_v35 = vcombine.low %v4506_v51, %v3325_v12  ;;  %v2848_v38 = vrot.slane %v4854_v3, 4 }
 0x11b   :  { %v2682_v34 = vsel %vm4752_vm9, %v776_v22, -inf  ;;  %v2778_v17 = vsel %vm4752_vm9, %v936_v32, -inf  ;;  %3563 = vmatprep.mubr.msk.bf16.mxu1 %vm5869_vm14, %v3505_v43  ;;  %3605 = vmatprep.mubr.msk.bf16.mxu0 %vm5871_vm15, %v4517_v11  ;;  %v2861_v12 = vrot.slane %v4862_v8, 4  ;;  %v3853_v22 = vld [vmem:[%s5787_s0 + $0x124] ss:$8 sps:$4 sm:$0xff]   ;;  %vm5872_vm15 = vmmov %vm5869_vm14 }
 0x11c   :  { %v2883_v13 = vmax.f32 %v2882_v54, %v2682_v34  ;;  %v3039_v29 = vmax.f32 %v3038_v18, %v2778_v17  ;;  %v778_v39 = vpop.f32.mrf.mxu0  ;;  %v938_v10 = vpop.f32.mrf.mxu1  ;;  %v2849_v32 = vmax.f32 %v4854_v3, %v2848_v38  ;;  %v3807_v3 = vld [vmem:[%s5787_s0 + $0x128] ss:$8 sps:$4 sm:$0xff]  }
 0x11d   :  { %v2683_v21 = vsel %vm4766_vm10, %v778_v39, -inf  ;;  %v2779_v49 = vsel %vm4766_vm10, %v938_v10, -inf  ;;  %v2862_v10 = vmax.f32 %v4862_v8, %v2861_v12 }
 0x11e   :  { %v2896_v58 = vmax.f32 %v2895_v55, %v2683_v21  ;;  %v3052_v26 = vmax.f32 %v3051_v9, %v2779_v49  ;;  %v780_v25 = vpop.f32.mrf.mxu0  ;;  %v940_v28 = vpop.f32.mrf.mxu1 }
 0x11f   :  { %v2685_v42 = vsel %vm4779_vm11, %v780_v25, -inf  ;;  %v2781_v11 = vsel %vm4779_vm11, %v940_v28, -inf }
 0x120   :  { %v2884_v61 = vmax.f32 %v2883_v13, %v2685_v42  ;;  %v3040_v41 = vmax.f32 %v3039_v29, %v2781_v11  ;;  %v782_v43 = vpop.f32.mrf.mxu0  ;;  %v942_v54 = vpop.f32.mrf.mxu1  ;;  %v2850_v42 = vrot.slane %v2849_v32, 2 }
 0x121   :  { %v2686_v18 = vsel %vm4792_vm12, %v782_v43, -inf  ;;  %v2782_v51 = vsel %vm4792_vm12, %v942_v54, -inf  ;;  %vm5873_vm12 = vnez %v5863_v52  ;;  %v2863_v43 = vrot.slane %v2862_v10, 2 }
 0x122   :  { %v2897_v0 = vmax.f32 %v2896_v58, %v2686_v18  ;;  %v3053_v4 = vmax.f32 %v3052_v26, %v2782_v51  ;;  %v786_v48 = vpop.f32.mrf.mxu0  ;;  %v946_v53 = vpop.f32.mrf.mxu1  ;;  %1672 = vmatmul.mubr.bf16.gmra.mxu1 %v3504_v35  ;;  %2021 = vmatmul.mubr.bf16.gmra.mxu0 %v4528_v36  ;;  %v3808_v35 = vld [vmem:[%s5787_s0 + $0x13c] ss:$8 sps:$4 sm:$0xff]  }
 0x123   :  { %v2688_v55 = vsel %vm4805_vm13, %v786_v48, -inf  ;;  %v2784_v9 = vsel %vm4805_vm13, %v946_v53, -inf  ;;  %3564 = vmatprep.mubr.msk.bf16.mxu1 %vm5869_vm14, %v3805_v40  ;;  %3606 = vmatprep.mubr.msk.bf16.mxu0 %vm5872_vm15, %v3853_v22  ;;  %vm5874_vm14 = vnez %v5865_v27  ;;  %v3855_v48 = vld [vmem:[%s5787_s0 + $0x134] ss:$8 sps:$4 sm:$0xff]   ;;  %v2851_v53 = vmax.f32 %v2849_v32, %v2850_v42 }
 0x124   :  { %v2885_v34 = vmax.f32 %v2884_v61, %v2688_v55  ;;  %v3041_v17 = vmax.f32 %v3040_v41, %v2784_v9  ;;  %v788_v13 = vpop.f32.mrf.mxu0  ;;  %v948_v36 = vpop.f32.mrf.mxu1  ;;  %v3811_v32 = vld [vmem:[%s5787_s0 + $0x14c] ss:$8 sps:$4 sm:$0xff]  }
 0x125   :  { %v2689_v29 = vsel %vm5873_vm12, %v788_v13, -inf  ;;  %v2785_v39 = vsel %vm5873_vm12, %v948_v36, -inf  ;;  %vm5876_vm12 = vmmov %vm5872_vm15 }
 0x126   :  { %v2898_v21 = vmax.f32 %v2897_v0, %v2689_v29  ;;  %v3054_v49 = vmax.f32 %v3053_v4, %v2785_v39  ;;  %v790_v58 = vpop.f32.mrf.mxu0  ;;  %v950_v26 = vpop.f32.mrf.mxu1  ;;  %v3854_v4 = vld [vmem:[%s5787_s0 + $0x120] ss:$8 sps:$4 sm:$0xff]  }
 0x127   :  { %v2691_v25 = vsel %vm5874_vm14, %v790_v58, -inf  ;;  %v2787_v28 = vsel %vm5874_vm14, %v950_v26, -inf }
 0x128   :  { %v2886_v8 = vmax.f32 %v2885_v34, %v2691_v25  ;;  %v4968_v11 = vmax.f32 %v3041_v17, %v2787_v28  ;;  %v792_v40 = vpop.f32.mrf.mxu0  ;;  %v952_v38 = vpop.f32.mrf.mxu1  ;;  %v2864_v17 = vmax.f32 %v2862_v10, %v2863_v43 }
 0x129   :  { %v2692_v61 = vsel %vm4842_vm0, %v792_v40, -inf  ;;  %v2788_v41 = vsel %vm4842_vm0, %v952_v38, -inf  ;;  %vm5875_vm0 = vmmov %vm5872_vm15  ;;  %v3856_v40 = vld [vmem:[%s5787_s0 + $0x130] ss:$8 sps:$4 sm:$0xff]   ;;  %v3857_v38 = vld [vmem:[%s5787_s0 + $0x144] ss:$8 sps:$4 sm:$0xff]  }
 0x12a   :  { %v2887_v54 = vrot.slane %v2886_v8, 4  ;;  %v2899_v18 = vmax.f32 %v2898_v21, %v2692_v61  ;;  %v4974_v51 = vmax.f32 %v3054_v49, %v2788_v41  ;;  %v4976_v12 = vpop.f32.mrf.mxu0  ;;  %v4978_v0 = vpop.f32.mrf.mxu1  ;;  %1680 = vmatmul.mubr.bf16.gmra.mxu1 %v3807_v3  ;;  %2029 = vmatmul.mubr.bf16.gmra.mxu0 %v3854_v4  ;;  %v3810_v21 = vld [vmem:[%s5787_s0 + $0x138] ss:$8 sps:$4 sm:$0xff]   ;;  %v2852_v49 = vrot.slane %v2851_v53, 1 }
 0x12b   :  { %3565 = vmatprep.mubr.msk.bf16.mxu1 %vm5872_vm15, %v3808_v35  ;;  %3607 = vmatprep.mubr.msk.bf16.mxu0 %vm5875_vm0, %v3855_v48  ;;  %v2865_v25 = vrot.slane %v2864_v17, 1  ;;  %vm5812_vm0 = vcmask 1041409  }
 0x12c   :  { %v2888_v55 = vmax.f32 %v2886_v8, %v2887_v54  ;;  %v2900_v9 = vrot.slane %v2899_v18, 4  ;;  %v4988_v22 = vpop.f32.mrf.mxu0  ;;  %v4990_v34 = vpop.f32.mrf.mxu1  ;;  %v2853_v61 = vmax.f32 %v2851_v53, %v2852_v49  ;;  %v3814_v53 = vld [vmem:[%s5787_s0 + $0x15c] ss:$8 sps:$4 sm:$0xff]   ;;  %v3004_v49 = vrot.slane %v4856_v20, 4 }
 0x12d   :  { %v2866_v4 = vmax.f32 %v2864_v17, %v2865_v25  ;;  %v3858_v25 = vld [vmem:[%s5787_s0 + $0x140] ss:$8 sps:$4 sm:$0xff]  }
 0x12e   :  { %v2889_v13 = vrot.slane %v2888_v55, 2  ;;  %v2901_v36 = vmax.f32 %v2899_v18, %v2900_v9  ;;  %v4992_v29 = vpop.f32.mrf.mxu0  ;;  %v4994_v39 = vpop.f32.mrf.mxu1 }
 0x12f   :  { %v2697_v24 = vsel %vm4659_vm2, %v4992_v29, -inf  ;;  %v2793_v29 = vsel %vm4659_vm2, %v4994_v39, -inf  ;;  %v2790_v39 = vsel %vm4653_vm1, %v4978_v0, -inf  ;;  %v2695_v0 = vsel %vm4668_vm3, %v4988_v22, -inf }
 0x130   :  { %v2890_v58 = vmax.f32 %v2888_v55, %v2889_v13  ;;  %v2902_v26 = vrot.slane %v2901_v36, 2  ;;  %v5002_v3 = vpop.f32.mrf.mxu0  ;;  %v5004_v10 = vpop.f32.mrf.mxu1 }
 0x132   :  { %v2891_v28 = vrot.slane %v2890_v58, 1  ;;  %v2903_v35 = vmax.f32 %v2901_v36, %v2902_v26  ;;  %v5006_v42 = vpop.f32.mrf.mxu0  ;;  %v5008_v8 = vpop.f32.mrf.mxu1  ;;  %1688 = vmatmul.mubr.bf16.gmra.mxu1 %v3810_v21  ;;  %2037 = vmatmul.mubr.bf16.gmra.mxu0 %v3856_v40  ;;  %v3813_v36 = vld [vmem:[%s5787_s0 + $0x148] ss:$8 sps:$4 sm:$0xff]  }
 0x133   :  { %3566 = vmatprep.mubr.msk.bf16.mxu1 %vm5872_vm15, %v3811_v32  ;;  %3608 = vmatprep.mubr.msk.bf16.mxu0 %vm5876_vm12, %v3857_v38  ;;  %vm5879_vm15 = vmmov %vm5876_vm12  ;;  %v3005_v38 = vmax.f32 %v4856_v20, %v3004_v49 }
 0x134   :  { %v2892_v41 = vmax.f32 %v2890_v58, %v2891_v28  ;;  %v2904_v43 = vrot.slane %v2903_v35, 1  ;;  %v5018_v54 = vpop.f32.mrf.mxu0  ;;  %v5020_v18 = vpop.f32.mrf.mxu1  ;;  %v3859_v28 = vld [vmem:[%s5787_s0 + $0x154] ss:$8 sps:$4 sm:$0xff]  }
 0x135   :  { %v2701_v57 = vsel %vm4710_vm6, %v5018_v54, -inf  ;;  %v3862_v54 = vld [vmem:[%s5787_s0 + $0x168] ss:$8 sps:$4 sm:$0xff]  }
 0x136   :  { %v5023_v48 = vsel %vm5812_vm0, %v2892_v41, %v2853_v61  ;;  %v2905_v55 = vmax.f32 %v2903_v35, %v2904_v43  ;;  %v5025_v9 = vpop.f32.mrf.mxu0  ;;  %v5027_v13 = vpop.f32.mrf.mxu1  ;;  %v3017_v61 = vrot.slane %v4864_v45, 4 }
 0x137   :  { %5877 = vst [vmem:[#allocation10_spill] sm:$0xff] %v5023_v48  ;;  %v2799_v22 = vsel %vm4723_vm7, %v5027_v13, -inf }
 0x138   :  { %v5036_v21 = vsel %vm5812_vm0, %v2905_v55, %v2866_v4  ;;  %v5038_v17 = vpop.f32.mrf.mxu0  ;;  %v5040_v32 = vpop.f32.mrf.mxu1  ;;  %v3816_v4 = vld [vmem:[%s5787_s0 + $0x158] ss:$8 sps:$4 sm:$0xff]   ;;  %v3817_v55 = vld [vmem:[%s5787_s0 + $0x174] ss:$8 sps:$4 sm:$0xff]   ;;  %v5076_v20 = vmax.f32 %v4864_v45, %v3017_v61  ;;  %vm5886_vm0 = vnez %v5867_v37 }
 0x139   :  { %5878 = vst [vmem:[#allocation11_spill] sm:$0xff] %v5036_v21  ;;  %v3861_v45 = vld [vmem:[%s5787_s0 + $0x16c] ss:$8 sps:$4 sm:$0xff]  }
 0x13a   :  { %v5043_v58 = vpop.f32.mrf.mxu0  ;;  %v5045_v26 = vpop.f32.mrf.mxu1  ;;  %1696 = vmatmul.mubr.bf16.gmra.mxu1 %v3813_v36  ;;  %2045 = vmatmul.mubr.bf16.gmra.mxu0 %v3858_v25  ;;  %v3006_v25 = vrot.slane %v3005_v38, 2 }
 0x13b   :  { %3567 = vmatprep.mubr.msk.bf16.mxu1 %vm5876_vm12, %v3814_v53  ;;  %3609 = vmatprep.mubr.msk.bf16.mxu0 %vm5879_vm15, %v3859_v28  ;;  %vm5880_vm15 = vmmov %vm5876_vm12 }
 0x13c   :  { %v5055_v35 = vpop.f32.mrf.mxu0  ;;  %v5057_v40 = vpop.f32.mrf.mxu1  ;;  %v5106_v16 = vmax.f32 %v3005_v38, %v3006_v25  ;;  %v2703_v38 = vsel %vm4723_vm7, %v5025_v9, -inf  ;;  %v3820_v25 = vld [vmem:[%s5787_s0 + $0x184] ss:$8 sps:$4 sm:$0xff]   ;;  %v2791_v9 = vsel %vm4668_vm3, %v4990_v34, -inf }
 0x13e   :  { %v5061_v41 = vpop.f32.mrf.mxu0  ;;  %v5063_v43 = vpop.f32.mrf.mxu1 }
 0x140   :  { %v5071_v36 = vpop.f32.mrf.mxu0  ;;  %v5073_v53 = vpop.f32.mrf.mxu1 }
 0x142   :  { %v5078_v49 = vpop.f32.mrf.mxu0  ;;  %v5080_v28 = vpop.f32.mrf.mxu1  ;;  %1704 = vmatmul.mubr.bf16.gmra.mxu1 %v3816_v4  ;;  %2053 = vmatmul.mubr.bf16.gmra.mxu0 %v3860_v46  ;;  %v2694_v46 = vsel %vm4653_vm1, %v4976_v12, -inf  ;;  %v3819_v12 = vld [vmem:[%s5787_s0 + $0x170] ss:$8 sps:$4 sm:$0xff]  }
 0x143   :  { %3568 = vmatprep.mubr.msk.bf16.mxu1 %vm5876_vm12, %v3817_v55  ;;  %3610 = vmatprep.mubr.msk.bf16.mxu0 %vm5880_vm15, %v3861_v45  ;;  %v2700_v55 = vsel %vm4692_vm5, %v5006_v42, -inf  ;;  %v2919_v48 = vmax.f32 %v2694_v46, %v2697_v24  ;;  %v2698_v42 = vsel %vm4674_vm4, %v5002_v3, -inf  ;;  %v2796_v24 = vsel %vm4692_vm5, %v5008_v8, -inf  ;;  %vm5881_vm15 = vmmov %vm5876_vm12 }
 0x144   :  { %v5093_v61 = vpop.f32.mrf.mxu0  ;;  %v5095_v4 = vpop.f32.mrf.mxu1  ;;  %v3075_v46 = vmax.f32 %v2790_v39, %v2793_v29  ;;  %v2794_v3 = vsel %vm4674_vm4, %v5004_v10, -inf  ;;  %v2706_v10 = vsel %vm4752_vm9, %v5043_v58, -inf  ;;  %v2704_v58 = vsel %vm4739_vm8, %v5038_v17, -inf }
 0x145   :  { %v2920_v21 = vmax.f32 %v2919_v48, %v2700_v55  ;;  %v2932_v48 = vmax.f32 %v2695_v0, %v2698_v42  ;;  %v2797_v55 = vsel %vm4710_vm6, %v5020_v18, -inf  ;;  %v3088_v13 = vmax.f32 %v2791_v9, %v2794_v3 }
 0x146   :  { %v5110_v62 = vpop.f32.mrf.mxu0  ;;  %v5112_v14 = vpop.f32.mrf.mxu1  ;;  %v3076_v29 = vmax.f32 %v3075_v46, %v2796_v24  ;;  %v2802_v18 = vsel %vm4752_vm9, %v5045_v26, -inf  ;;  %v2800_v17 = vsel %vm4739_vm8, %v5040_v32, -inf  ;;  %v2805_v46 = vsel %vm4779_vm11, %v5063_v43, -inf }
 0x147   :  { %v2921_v39 = vmax.f32 %v2920_v21, %v2703_v38  ;;  %v2709_v21 = vsel %vm4779_vm11, %v5061_v41, -inf  ;;  %v2933_v42 = vmax.f32 %v2932_v48, %v2701_v57  ;;  %v3089_v41 = vmax.f32 %v3088_v13, %v2797_v55  ;;  %v3823_v55 = vld [vmem:[%s5787_s0 + $0x194] ss:$8 sps:$4 sm:$0xff]  }
 0x148   :  { %v5138_v45 = vpop.f32.mrf.mxu0  ;;  %v5140_v8 = vpop.f32.mrf.mxu1  ;;  %v3077_v24 = vmax.f32 %v3076_v29, %v2799_v22  ;;  %v2712_v57 = vsel %vm4805_vm13, %v5078_v49, -inf  ;;  %v2803_v9 = vsel %vm4766_vm10, %v5057_v40, -inf  ;;  %v2808_v29 = vsel %vm4805_vm13, %v5080_v28, -inf }
 0x149   :  { %v2922_v38 = vmax.f32 %v2921_v39, %v2706_v10  ;;  %v2934_v3 = vmax.f32 %v2933_v42, %v2704_v58  ;;  %v3090_v43 = vmax.f32 %v3089_v41, %v2800_v17  ;;  %v2715_v40 = vsel %vm5874_vm14, %v5110_v62, -inf }
 0x14a   :  { %v5157_v34 = vpop.f32.mrf.mxu0  ;;  %v5159_v19 = vpop.f32.mrf.mxu1  ;;  %1712 = vmatmul.mubr.bf16.gmra.mxu1 %v3819_v12  ;;  %2061 = vmatmul.mubr.bf16.gmra.mxu0 %v3862_v54  ;;  %v3863_v12 = vld [vmem:[%s5787_s0 + $0x17c] ss:$8 sps:$4 sm:$0xff]   ;;  %v3078_v32 = vmax.f32 %v3077_v24, %v2802_v18  ;;  %v3008_v42 = vrot.slane %v5106_v16, 1 }
 0x14b   :  { %3569 = vmatprep.mubr.msk.bf16.mxu1 %vm5876_vm12, %v3820_v25  ;;  %3611 = vmatprep.mubr.msk.bf16.mxu0 %vm5881_vm15, %v3863_v12  ;;  %v2707_v25 = vsel %vm4766_vm10, %v5055_v35, -inf  ;;  %v2923_v22 = vmax.f32 %v2922_v38, %v2709_v21  ;;  %v3822_v35 = vld [vmem:[%s5787_s0 + $0x180] ss:$8 sps:$4 sm:$0xff]   ;;  %vm5882_vm12 = vnez %v5858_v33  ;;  %v3091_v21 = vmax.f32 %v3090_v43, %v2803_v9 }
 0x14c   :  { %v5181_v26 = vpop.f32.mrf.mxu0  ;;  %v5183_v0 = vpop.f32.mrf.mxu1  ;;  %v2710_v49 = vsel %vm5882_vm12, %v5071_v36, -inf  ;;  %v2935_v39 = vmax.f32 %v2934_v3, %v2707_v25  ;;  %v3079_v54 = vmax.f32 %v3078_v32, %v2805_v46  ;;  %v5221_v36 = vsub.s32 2, %v4611_v60 }
 0x14d   :  { %v2924_v13 = vmax.f32 %v2923_v22, %v2712_v57  ;;  %v2806_v28 = vsel %vm5882_vm12, %v5073_v53, -inf  ;;  %vm5883_vm15 = vnez %v5863_v52  ;;  %v2811_v12 = vsel %vm5874_vm14, %v5112_v14, -inf  ;;  %v3864_v53 = vld [vmem:[%s5787_s0 + $0x178] ss:$8 sps:$4 sm:$0xff]  }
 0x14e   :  { %v5197_v10 = vpop.f32.mrf.mxu0  ;;  %v5199_v48 = vpop.f32.mrf.mxu1  ;;  %v2713_v62 = vsel %vm5883_vm15, %v5093_v61, -inf  ;;  %v2936_v24 = vmax.f32 %v2935_v39, %v2710_v49  ;;  %v3080_v17 = vmax.f32 %v3079_v54, %v2808_v29  ;;  %v5884_v61 = vrot.slane %v5076_v20, 2  ;;  %v5274_v49 = vld [vmem:[%s5792_s6] sm:$0x7] }
 0x14f   :  { %v2925_v38 = vmax.f32 %v2924_v13, %v2715_v40  ;;  %v5885_v14 = vrot.slane %v4968_v11, 4  ;;  %v2809_v3 = vsel %vm5883_vm15, %v5095_v4, -inf  ;;  %v2716_v32 = vsel %vm5886_vm0, %v5138_v45, -inf }
 0x150   :  { %v5216_v58 = vpop.f32.mrf.mxu0  ;;  %v5218_v18 = vpop.f32.mrf.mxu1  ;;  %v5243_v46 = vmax.f32 %v5076_v20, %v5884_v61  ;;  %vm5887_vm14 = vcmask 261120   ;;  %v3865_v20 = vld [vmem:[%s5787_s0 + $0x18c] ss:$8 sps:$4 sm:$0xff]   ;;  %v3056_v9 = vrot.slane %v4974_v51, 4  ;;  %v3092_v4 = vmax.f32 %v3091_v21, %v2806_v28  ;;  %v3825_v28 = vld [vmem:[%s5787_s0 + $0x190] ss:$8 sps:$4 sm:$0xff]  }
 0x151   :  { %v5248_v57 = vmax.f32 %v4968_v11, %v5885_v14  ;;  %vm5888_vm13 = vmmov %vm5887_vm14  ;;  %v5264_v11 = vld [vmem:[%s5791_s5] sm:$0x7]  ;;  %v2937_v22 = vmax.f32 %v2936_v24, %v2713_v62  ;;  %v2812_v29 = vsel %vm5886_vm0, %v5140_v8, -inf  ;;  %v5281_v40 = vrot.slane %v4626_v5, %v5221_v36  ;;  %v3826_v5 = vld [vmem:[%s5787_s0 + $0x1a4] ss:$8 sps:$4 sm:$0xff]  }
 0x152   :  { %v5233_v41 = vpop.f32.mrf.mxu0  ;;  %v5235_v25 = vpop.f32.mrf.mxu1  ;;  %1720 = vmatmul.mubr.bf16.gmra.mxu1 %v3822_v35  ;;  %2069 = vmatmul.mubr.bf16.gmra.mxu0 %v3864_v53  ;;  %v5267_v35 = vmax.f32 %v3080_v17, %v2811_v12  ;;  %v2926_v39 = vrot.slane %v2925_v38, 4  ;;  %v3225_v62 = vrot.slane %v5264_v11, %v4621_v1  ;;  %v5289_v12 = vmax.f32 %v5106_v16, %v3008_v42 }
 0x153   :  { %3570 = vmatprep.mubr.msk.bf16.mxu1 %vm5887_vm14, %v3823_v55  ;;  %3612 = vmatprep.mubr.msk.bf16.mxu0 %vm5888_vm13, %v3865_v20  ;;  %v3093_v55 = vmax.f32 %v3092_v4, %v2809_v3  ;;  %v2938_v54 = vmax.f32 %v2937_v22, %v2716_v32  ;;  %v3021_v8 = vrot.slane %v5243_v46, 1  ;;  %v3248_v24 = vrot.slane %v5274_v49, %v4621_v1 }
 0x154   :  { %v848_v45 = vpop.f32.mrf.mxu0  ;;  %v5269_v43 = vpop.f32.mrf.mxu1  ;;  %v3229_v17 = vrot.slane %v5264_v11, %v4629_v6  ;;  %v3045_v53 = vrot.slane %v5248_v57, 2  ;;  %v5301_v61 = vmax.f32 %v4974_v51, %v3056_v9  ;;  %v3082_v16 = vrot.slane %v5267_v35, 4  ;;  %v3840_v11 = vld [vmem:[%s5787_s0 + $0x1e8] ss:$8 sps:$4 sm:$0xff]  }
 0x155   :  { %v5304_v42 = vmax.f32 %v3093_v55, %v2812_v29  ;;  %v2718_v32 = vsel %vm4653_vm1, %v5157_v34, -inf  ;;  %v2721_v20 = vsel %vm4659_vm2, %v5197_v10, -inf  ;;  %v2817_v4 = vsel %vm4659_vm2, %v5199_v48, -inf }
 0x156   :  { %v850_v13 = vpop.f32.mrf.mxu0  ;;  %v1010_v21 = vpop.f32.mrf.mxu1  ;;  %v2722_v51 = vsel %vm4674_vm4, %v5216_v58, -inf  ;;  %v5318_v9 = vmax.f32 %v2925_v38, %v2926_v39  ;;  %v2939_v22 = vrot.slane %v2938_v54, 4  ;;  %v2814_v29 = vsel %vm4653_vm1, %v5159_v19, -inf  ;;  %vm5889_vm1 = vmmov %vm5888_vm13  ;;  %v3867_v58 = vld [vmem:[%s5787_s0 + $0x19c] ss:$8 sps:$4 sm:$0xff]  }
 0x157   :  { %v2719_v34 = vsel %vm4668_vm3, %v5181_v26, -inf  ;;  %v2818_v48 = vsel %vm4674_vm4, %v5218_v18, -inf  ;;  %v2724_v19 = vsel %vm4692_vm5, %v5233_v41, -inf  ;;  %v2820_v44 = vsel %vm4692_vm5, %v5235_v25, -inf  ;;  %vm5890_vm2 = vmmov %vm5889_vm1 }
 0x158   :  { %v852_v14 = vpop.f32.mrf.mxu0  ;;  %v1012_v3 = vpop.f32.mrf.mxu1  ;;  %v2725_v26 = vsel %vm4710_vm6, %v848_v45, -inf  ;;  %v2815_v7 = vsel %vm4668_vm3, %v5183_v0, -inf  ;;  %v2958_v18 = vmax.f32 %v2718_v32, %v2721_v20  ;;  %v3114_v38 = vmax.f32 %v2814_v29, %v2817_v4  ;;  %vm5892_vm4 = vmmov %vm5889_vm1 }
 0x159   :  { %v2971_v41 = vmax.f32 %v2719_v34, %v2722_v51  ;;  %v2821_v45 = vsel %vm4710_vm6, %v5269_v43, -inf  ;;  %v2727_v39 = vsel %vm4723_vm7, %v850_v13, -inf  ;;  %v3127_v59 = vmax.f32 %v2815_v7, %v2818_v48  ;;  %vm5893_vm5 = vmmov %vm5889_vm1 }
 0x15a   :  { %v856_v10 = vpop.f32.mrf.mxu0  ;;  %v1016_v55 = vpop.f32.mrf.mxu1  ;;  %1728 = vmatmul.mubr.bf16.gmra.mxu1 %v3825_v28  ;;  %2077 = vmatmul.mubr.bf16.gmra.mxu0 %v3866_v56  ;;  %v2823_v28 = vsel %vm4723_vm7, %v1010_v21, -inf  ;;  %v2959_v0 = vmax.f32 %v2958_v18, %v2724_v19  ;;  %v3115_v32 = vmax.f32 %v3114_v38, %v2820_v44  ;;  %v5360_v43 = vmax.f32 %v2938_v54, %v2939_v22  ;;  %v3868_v18 = vld [vmem:[%s5787_s0 + $0x198] ss:$8 sps:$4 sm:$0xff]   ;;  %vm5903_vm13 = vmmov %vm5889_vm1 }
 0x15b   :  { %3571 = vmatprep.mubr.msk.bf16.mxu1 %vm5889_vm1, %v3826_v5  ;;  %3613 = vmatprep.mubr.msk.bf16.mxu0 %vm5890_vm2, %v3867_v58  ;;  %v2728_v5 = vsel %vm4739_vm8, %v852_v14, -inf  ;;  %v2972_v20 = vmax.f32 %v2971_v41, %v2725_v26  ;;  %v2824_v13 = vsel %vm4739_vm8, %v1012_v3, -inf  ;;  %v2730_v50 = vsel %vm4752_vm9, %v856_v10, -inf  ;;  %v3829_v14 = vld [vmem:[%s5787_s0 + $0x1bc] ss:$8 sps:$4 sm:$0xff]   ;;  %vm5904_vm14 = vmmov %vm5889_vm1 }
 0x15c   :  { %v858_v2 = vpop.f32.mrf.mxu0  ;;  %v1018_v25 = vpop.f32.mrf.mxu1  ;;  %v2826_v21 = vsel %vm4752_vm9, %v1016_v55, -inf  ;;  %v3128_v29 = vmax.f32 %v3127_v59, %v2821_v45  ;;  %v2960_v34 = vmax.f32 %v2959_v0, %v2727_v39  ;;  %v3116_v56 = vmax.f32 %v3115_v32, %v2823_v28 }
 0x15d   :  { %v2973_v48 = vmax.f32 %v2972_v20, %v2728_v5  ;;  %v2731_v23 = vsel %vm4766_vm10, %v858_v2, -inf  ;;  %v2827_v3 = vsel %vm4766_vm10, %v1018_v25, -inf  ;;  %v3095_v10 = vrot.slane %v5304_v42, 4  ;;  %v3869_v2 = vld [vmem:[%s5787_s0 + $0x1b4] ss:$8 sps:$4 sm:$0xff]  }
 0x15e   :  { %v860_v4 = vpop.f32.mrf.mxu0  ;;  %v1020_v51 = vpop.f32.mrf.mxu1  ;;  %v3129_v55 = vmax.f32 %v3128_v29, %v2824_v13  ;;  %v2961_v44 = vmax.f32 %v2960_v34, %v2730_v50  ;;  %v3117_v26 = vmax.f32 %v3116_v56, %v2826_v21  ;;  %vm5891_vm3 = vnez %v5860_v15  ;;  %v3831_v21 = vld [vmem:[%s5787_s0 + $0x1b8] ss:$8 sps:$4 sm:$0xff]  }
 0x15f   :  { %v2733_v47 = vsel %vm4779_vm11, %v860_v4, -inf  ;;  %v2829_v22 = vsel %vm4779_vm11, %v1020_v51, -inf  ;;  %v2974_v25 = vmax.f32 %v2973_v48, %v2731_v23  ;;  %v2928_v59 = vrot.slane %v5318_v9, 2  ;;  %v3832_v48 = vld [vmem:[%s5787_s0 + $0x1cc] ss:$8 sps:$4 sm:$0xff]  }
 0x160   :  { %v862_v19 = vpop.f32.mrf.mxu0  ;;  %v1022_v54 = vpop.f32.mrf.mxu1  ;;  %v3130_v45 = vmax.f32 %v3129_v55, %v2827_v3  ;;  %v2962_v39 = vmax.f32 %v2961_v44, %v2733_v47  ;;  %v3118_v28 = vmax.f32 %v3117_v26, %v2829_v22  ;;  %v5400_v15 = vmax.f32 %v5267_v35, %v3082_v16 }
 0x161   :  { %v2734_v30 = vsel %vm5882_vm12, %v862_v19, -inf  ;;  %v2830_v31 = vsel %vm5882_vm12, %v1022_v54, -inf  ;;  %v2941_v16 = vrot.slane %v5360_v43, 2  ;;  %v3096_v52 = vmax.f32 %v5304_v42, %v3095_v10 }
 0x162   :  { %v866_v58 = vpop.f32.mrf.mxu0  ;;  %v1026_v7 = vpop.f32.mrf.mxu1  ;;  %1736 = vmatmul.mubr.bf16.gmra.mxu1 %v3828_v63  ;;  %2085 = vmatmul.mubr.bf16.gmra.mxu0 %v3868_v18  ;;  %v2975_v20 = vmax.f32 %v2974_v25, %v2734_v30  ;;  %v3131_v4 = vmax.f32 %v3130_v45, %v2830_v31  ;;  %vm5897_vm7 = vnez %v5865_v27  ;;  %vm5423_vm8 = vcmp.lt.s32.totalorder %v4611_v60, %v5281_v40  ;;  %v3870_v30 = vld [vmem:[%s5787_s0 + $0x1b0] ss:$8 sps:$4 sm:$0xff]   ;;  %v3871_v25 = vld [vmem:[%s5787_s0 + $0x1c4] ss:$8 sps:$4 sm:$0xff]  }
 0x163   :  { %v2736_v38 = vsel %vm5891_vm3, %v866_v58, -inf  ;;  %v2832_v41 = vsel %vm5891_vm3, %v1026_v7, -inf  ;;  %3572 = vmatprep.mubr.msk.bf16.mxu1 %vm5892_vm4, %v3829_v14  ;;  %3614 = vmatprep.mubr.msk.bf16.mxu0 %vm5893_vm5, %v3869_v2  ;;  %v5894_v14 = vld [vmem:[#allocation3_spill] sm:$0xff]  ;;  %v3058_v22 = vrot.slane %v5301_v61, 2  ;;  %v2929_v27 = vmax.f32 %v5318_v9, %v2928_v59  ;;  %v5900_v9 = vld [vmem:[#allocation4_spill] sm:$0xff]  ;;  %vm5911_vm5 = vmmov %vm5892_vm4 }
 0x164   :  { %v868_v33 = vpop.f32.mrf.mxu0  ;;  %v1028_v5 = vpop.f32.mrf.mxu1  ;;  %v2963_v51 = vmax.f32 %v2962_v39, %v2736_v38  ;;  %v3119_v63 = vmax.f32 %v3118_v28, %v2832_v41  ;;  %vm5411_vm6 = vcmp.lt.s32.totalorder %v5894_v14, %v5281_v40  ;;  %vm3179_vm9 = vcmask 1042434  }
 0x165   :  { %v2737_v0 = vsel %vm5883_vm15, %v868_v33, -inf  ;;  %v2833_v32 = vsel %vm5883_vm15, %v1028_v5, -inf  ;;  %vm5441_vm10 = vcmp.lt.s32.totalorder %v5900_v9, %v5281_v40  ;;  %v3084_v37 = vrot.slane %v5400_v15, 2 }
 0x166   :  { %v870_v13 = vpop.f32.mrf.mxu0  ;;  %v1030_v50 = vpop.f32.mrf.mxu1  ;;  %v2976_v19 = vmax.f32 %v2975_v20, %v2737_v0  ;;  %v3132_v54 = vmax.f32 %v3131_v4, %v2833_v32  ;;  %v2942_v38 = vmax.f32 %v5360_v43, %v2941_v16  ;;  %v3097_v41 = vrot.slane %v3096_v52, 2 }
 0x167   :  { %v2739_v29 = vsel %vm5897_vm7, %v870_v13, -inf  ;;  %v2835_v34 = vsel %vm5897_vm7, %v1030_v50, -inf  ;;  %vm3181_vm11 = vcmask 1043459   ;;  %v5455_v43 = vmax.f32 %v5243_v46, %v3021_v8  ;;  %v3834_v46 = vld [vmem:[%s5787_s0 + $0x1c8] ss:$8 sps:$4 sm:$0xff]   ;;  %vm5914_vm7 = vmmov %vm5892_vm4 }
 0x168   :  { %v2964_v23 = vmax.f32 %v2963_v51, %v2739_v29  ;;  %v3120_v42 = vmax.f32 %v3119_v63, %v2835_v34  ;;  %v872_v3 = vpop.f32.mrf.mxu0  ;;  %v1032_v47 = vpop.f32.mrf.mxu1  ;;  %v3046_v0 = vmax.f32 %v5248_v57, %v3045_v53  ;;  %v3059_v32 = vmax.f32 %v5301_v61, %v3058_v22  ;;  %v5905_v8 = vld [vmem:[#allocation5_spill] sm:$0xff]  ;;  %v3835_v29 = vld [vmem:[%s5787_s0 + $0x1dc] ss:$8 sps:$4 sm:$0xff]  }
 0x169   :  { %v2740_v60 = vsel %vm5886_vm0, %v872_v3, -inf  ;;  %v2836_v10 = vsel %vm5886_vm0, %v1032_v47, -inf  ;;  %vm3183_vm0 = vcmask 1044484   ;;  %v2930_v20 = vrot.slane %v2929_v27, 1 }
 0x16a   :  { %v2965_v55 = vrot.slane %v2964_v23, 4  ;;  %v3121_v44 = vrot.slane %v3120_v42, 4  ;;  %v2977_v26 = vmax.f32 %v2976_v19, %v2740_v60  ;;  %v3133_v58 = vmax.f32 %v3132_v54, %v2836_v10  ;;  %v1553_v7 = vpop.f32.mrf.mxu1  ;;  %1744 = vmatmul.mubr.bf16.gmra.mxu1 %v3831_v21  ;;  %v1902_v18 = vpop.f32.mrf.mxu0  ;;  %2093 = vmatmul.mubr.bf16.gmra.mxu0 %v3870_v30 }
 0x16b   :  { %v1903_v2 = vadd.f32 %v1902_v18, %v1553_v7  ;;  %3573 = vmatprep.mubr.msk.bf16.mxu1 %vm5903_vm13, %v3832_v48  ;;  %3615 = vmatprep.mubr.msk.bf16.mxu0 %vm5904_vm14, %v3871_v25  ;;  %vm3185_vm12 = vcmask 1045509   ;;  %vm3187_vm15 = vcmask 1046534   ;;  %vm5466_vm1 = vcmp.lt.s32.totalorder %v5905_v8, %v5281_v40  ;;  %v5908_v7 = vld [vmem:[#allocation6_spill] sm:$0xff]  ;;  %vm5915_vm13 = vmmov %vm5892_vm4 }
 0x16c   :  { %v2966_v45 = vmax.f32 %v2964_v23, %v2965_v55  ;;  %v3122_v39 = vmax.f32 %v3120_v42, %v3121_v44  ;;  %v2978_v28 = vrot.slane %v2977_v26, 4  ;;  %v3134_v33 = vrot.slane %v3133_v58, 4  ;;  %v1555_v5 = vpop.f32.mrf.mxu1  ;;  %v1904_v59 = vpop.f32.mrf.mxu0  ;;  %v3837_v8 = vld [vmem:[%s5787_s0 + $0x1d8] ss:$8 sps:$4 sm:$0xff]  }
 0x16d   :  { %v3085_v57 = vmax.f32 %v5400_v15, %v3084_v37  ;;  %v2943_v53 = vrot.slane %v2942_v38, 1  ;;  %v3098_v61 = vmax.f32 %v3096_v52, %v3097_v41  ;;  %vm3189_vm2 = vcmask 1047559   ;;  %v3873_v41 = vld [vmem:[%s5787_s0 + $0x1d4] ss:$8 sps:$4 sm:$0xff]  }
 0x16e   :  { %v2967_v4 = vrot.slane %v2966_v45, 2  ;;  %v3123_v51 = vrot.slane %v3122_v39, 2  ;;  %v2979_v63 = vmax.f32 %v2977_v26, %v2978_v28  ;;  %v3135_v13 = vmax.f32 %v3133_v58, %v3134_v33  ;;  %v1556_v50 = vpop.f32.mrf.mxu1  ;;  %v1905_v21 = vpop.f32.mrf.mxu0  ;;  %v3872_v58 = vld [vmem:[%s5787_s0 + $0x1c0] ss:$8 sps:$4 sm:$0xff]   ;;  %v5912_v59 = vld [vmem:[#allocation10_spill] sm:$0xff] }
 0x16f   :  { %v1906_v16 = vadd.f32 %v1905_v21, %v1556_v50  ;;  %v3047_v3 = vrot.slane %v3046_v0, 1  ;;  %v3060_v47 = vrot.slane %v3059_v32, 1  ;;  %v2931_v22 = vmax.f32 %v2929_v27, %v2930_v20 }
 0x170   :  { %v2968_v34 = vmax.f32 %v2966_v45, %v2967_v4  ;;  %v3124_v48 = vmax.f32 %v3122_v39, %v3123_v51  ;;  %v2980_v19 = vrot.slane %v2979_v63, 2  ;;  %v3136_v54 = vrot.slane %v3135_v13, 2  ;;  %v1558_v23 = vpop.f32.mrf.mxu1  ;;  %v1907_v42 = vpop.f32.mrf.mxu0 }
 0x171   :  { %v2651_v15 = vsel %vm5411_vm6, %v1906_v16, -inf  ;;  %v2648_v55 = vsel %vm5423_vm8, %v1903_v2, -inf  ;;  %vm5483_vm3 = vcmp.lt.s32.totalorder %v5908_v7, %v5281_v40  ;;  %v3086_v18 = vrot.slane %v3085_v57, 1  ;;  %v3875_v7 = vld [vmem:[%s5787_s0 + $0x1e4] ss:$8 sps:$4 sm:$0xff]  }
 0x172   :  { %v2969_v60 = vrot.slane %v2968_v34, 1  ;;  %v2981_v52 = vmax.f32 %v2979_v63, %v2980_v19  ;;  %v3137_v10 = vmax.f32 %v3135_v13, %v3136_v54  ;;  %v1561_v44 = vpop.f32.mrf.mxu1  ;;  %1752 = vmatmul.mubr.bf16.gmra.mxu1 %v3834_v46  ;;  %v1910_v26 = vpop.f32.mrf.mxu0  ;;  %2101 = vmatmul.mubr.bf16.gmra.mxu0 %v3872_v58  ;;  %v2944_v30 = vmax.f32 %v2942_v38, %v2943_v53 }
 0x173   :  { %v2867_v9 = vmax.f32 %v2648_v55, %v2651_v15  ;;  %v1911_v37 = vadd.f32 %v1910_v26, %v1561_v44  ;;  %3574 = vmatprep.mubr.msk.bf16.mxu1 %vm5892_vm4, %v3835_v29  ;;  %3616 = vmatprep.mubr.msk.bf16.mxu0 %vm5911_vm5, %v3873_v41  ;;  %v3099_v2 = vrot.slane %v3098_v61, 1  ;;  %v3125_v45 = vrot.slane %v3124_v48, 1  ;;  %v3874_v26 = vld [vmem:[%s5787_s0 + $0x1d0] ss:$8 sps:$4 sm:$0xff]  }
 0x174   :  { %v2970_v25 = vmax.f32 %v2968_v34, %v2969_v60  ;;  %v2982_v39 = vrot.slane %v2981_v52, 1  ;;  %v1563_v28 = vpop.f32.mrf.mxu1  ;;  %v1912_v33 = vpop.f32.mrf.mxu0  ;;  %v3048_v5 = vmax.f32 %v3046_v0, %v3047_v3  ;;  %v3180_v38 = vsel %vm3179_vm9, %v2931_v22, %v5912_v59  ;;  %v5913_v0 = vld [vmem:[#allocation11_spill] sm:$0xff] }
 0x175   :  { %v3138_v20 = vrot.slane %v3137_v10, 1  ;;  %v2654_v4 = vsel %vm5441_vm10, %v1911_v37, -inf  ;;  %v3061_v51 = vmax.f32 %v3059_v32, %v3060_v47  ;;  %v3087_v53 = vmax.f32 %v3085_v57, %v3086_v18  ;;  %v3838_v32 = vld [vmem:[%s5787_s0 + $0x1ec] ss:$8 sps:$4 sm:$0xff]   ;;  %v3263_v22 = vld [vmem:[%s5793_s7] sm:$0x7] }
 0x176   :  { %v3182_v63 = vsel %vm3181_vm11, %v2970_v25, %v3180_v38  ;;  %v2983_v13 = vmax.f32 %v2981_v52, %v2982_v39  ;;  %v2868_v50 = vmax.f32 %v2867_v9, %v2654_v4  ;;  %v1564_v21 = vpop.f32.mrf.mxu1  ;;  %v1913_v46 = vpop.f32.mrf.mxu0  ;;  %v3192_v16 = vsel %vm3179_vm9, %v2944_v30, %v5913_v0  ;;  %v5916_v33 = vld [vmem:[#allocation7_spill] sm:$0xff] }
 0x177   :  { %v3184_v29 = vsel %vm3183_vm0, %v5289_v12, %v3182_v63  ;;  %v1914_v34 = vadd.f32 %v1913_v46, %v1564_v21  ;;  %v3100_v19 = vmax.f32 %v3098_v61, %v3099_v2  ;;  %v3126_v54 = vmax.f32 %v3124_v48, %v3125_v45  ;;  %v3841_v4 = vld [vmem:[%s5787_s0 + $0x204] ss:$8 sps:$4 sm:$0xff]  }
 0x178   :  { %v3186_v23 = vsel %vm3185_vm12, %v3048_v5, %v3184_v29  ;;  %v3193_v42 = vsel %vm3181_vm11, %v2983_v13, %v3192_v16  ;;  %v1566_v3 = vpop.f32.mrf.mxu1  ;;  %v1915_v47 = vpop.f32.mrf.mxu0  ;;  %v3139_v15 = vmax.f32 %v3137_v10, %v3138_v20  ;;  %v3268_v18 = vrot.slane %v3263_v22, %v4621_v1  ;;  %v3877_v16 = vld [vmem:[%s5787_s0 + $0x1fc] ss:$8 sps:$4 sm:$0xff]  }
 0x179   :  { %v3188_v57 = vsel %vm3187_vm15, %v3087_v53, %v3186_v23  ;;  %v3194_v12 = vsel %vm3183_vm0, %v5455_v43, %v3193_v42  ;;  %v2657_v61 = vsel %vm5466_vm1, %v1914_v34, -inf  ;;  %v3252_v2 = vrot.slane %v5274_v49, %v4629_v6  ;;  %v5919_v49 = vld [vmem:[#allocation8_spill] sm:$0xff]  ;;  %v5923_v42 = vld [vmem:[#allocation9_spill] sm:$0xff] }
 0x17a   :  { %v3190_v48 = vsel %vm3189_vm2, %v3126_v54, %v3188_v57  ;;  %v3195_v60 = vsel %vm3185_vm12, %v3061_v51, %v3194_v12  ;;  %v2869_v52 = vmax.f32 %v2868_v50, %v2657_v61  ;;  %v1569_v55 = vpop.f32.mrf.mxu1  ;;  %1760 = vmatmul.mubr.bf16.gmra.mxu1 %v3837_v8  ;;  %v1918_v44 = vpop.f32.mrf.mxu0  ;;  %2109 = vmatmul.mubr.bf16.gmra.mxu0 %v3874_v26  ;;  %v3843_v47 = vld [vmem:[%s5787_s0 + $0x200] ss:$8 sps:$4 sm:$0xff]  }
 0x17b   :  { %v3237_v43 = vadd.f32 %v3225_v62, %v3190_v48  ;;  %v3196_v10 = vsel %vm3187_vm15, %v3100_v19, %v3195_v60  ;;  %v1919_v58 = vadd.f32 %v1918_v44, %v1569_v55  ;;  %3575 = vmatprep.mubr.msk.bf16.mxu1 %vm5914_vm7, %v3838_v32  ;;  %3617 = vmatprep.mubr.msk.bf16.mxu0 %vm5915_vm13, %v3875_v7  ;;  %vm5922_vm7 = vmmov %vm5911_vm5  ;;  %v3879_v44 = vld [vmem:[%s5787_s0 + $0x20c] ss:$8 sps:$4 sm:$0xff]   ;;  %v3846_v7 = vld [vmem:[%s5787_s0 + $0x210] ss:$8 sps:$4 sm:$0xff]  }
 0x17c   :  { %v3197_v30 = vsel %vm3189_vm2, %v3139_v15, %v3196_v10  ;;  %v1571_v9 = vpop.f32.mrf.mxu1  ;;  %v1920_v37 = vpop.f32.mrf.mxu0  ;;  %vm5542_vm14 = vcmp.lt.s32.totalorder %v5916_v33, %v5281_v40  ;;  %v3272_v38 = vrot.slane %v3263_v22, %v4629_v6  ;;  %vm5560_vm4 = vcmp.lt.s32.totalorder %v5919_v49, %v5281_v40  ;;  %v3844_v22 = vld [vmem:[%s5787_s0 + $0x214] ss:$8 sps:$4 sm:$0xff]  }
 0x17d   :  { %v3240_v41 = vmax.f32 %v3237_v43, 0.0  ;;  %v3238_v62 = vadd.f32 %v3229_v17, %v3197_v30  ;;  %v2660_v25 = vsel %vm5483_vm3, %v1919_v58, -inf  ;;  %vm5582_vm13 = vcmp.lt.s32.totalorder %v5923_v42, %v5281_v40  ;;  %v3847_v30 = vld [vmem:[%s5787_s0 + $0x224] ss:$8 sps:$4 sm:$0xff]  }
 0x17e   :  { %v2870_v45 = vmax.f32 %v2869_v52, %v2660_v25  ;;  %v1572_v39 = vpop.f32.mrf.mxu1  ;;  %v1921_v28 = vpop.f32.mrf.mxu0  ;;  %v3878_v52 = vld [vmem:[%s5787_s0 + $0x1f8] ss:$8 sps:$4 sm:$0xff]   ;;  %v3881_v33 = vld [vmem:[%s5787_s0 + $0x21c] ss:$8 sps:$4 sm:$0xff]  }
 0x17f   :  { %v3260_v17 = vmul.f32 %v3248_v24, %v3240_v41  ;;  %v3241_v59 = vmax.f32 %v3238_v62, 0.0  ;;  %v1922_v20 = vadd.f32 %v1921_v28, %v1572_v39  ;;  %v3876_v24 = vld [vmem:[%s5787_s0 + $0x1e0] ss:$8 sps:$4 sm:$0xff]  }
 0x180   :  { %v1574_v51 = vpop.f32.mrf.mxu1  ;;  %v1923_v63 = vpop.f32.mrf.mxu0  ;;  %v3880_v39 = vld [vmem:[%s5787_s0 + $0x208] ss:$8 sps:$4 sm:$0xff]  }
 0x181   :  { %v3280_v13 = vadd.f32 %v3268_v18, %v3260_v17  ;;  %v3261_v50 = vmul.f32 %v3252_v2, %v3241_v59  ;;  %v2663_v21 = vsel %vm5542_vm14, %v1922_v20, -inf  ;;  %v3849_v51 = vld [vmem:[%s5787_s0 + $0x220] ss:$8 sps:$4 sm:$0xff]  }
 0x182   :  { %v2871_v46 = vmax.f32 %v2870_v45, %v2663_v21  ;;  %v1577_v8 = vpop.f32.mrf.mxu1  ;;  %1768 = vmatmul.mubr.bf16.gmra.mxu1 %v3840_v11  ;;  %v1926_v1 = vpop.f32.mrf.mxu0  ;;  %2117 = vmatmul.mubr.bf16.gmra.mxu0 %v3876_v24  ;;  %v3882_v24 = vld [vmem:[%s5787_s0 + $0x218] ss:$8 sps:$4 sm:$0xff]  }
 0x183   :  { %3283 = vst [vmem:[%s5794_s8] sm:$0xff] %v3280_v13  ;;  %v3281_v53 = vadd.f32 %v3272_v38, %v3261_v50  ;;  %v1927_v0 = vadd.f32 %v1926_v1, %v1577_v8  ;;  %3576 = vmatprep.mubr.msk.bf16.mxu1 %vm5911_vm5, %v3841_v4  ;;  %3618 = vmatprep.mubr.msk.bf16.mxu0 %vm5922_vm7, %v3877_v16  ;;  %vm5926_vm7 = vmmov %vm5911_vm5  ;;  %v3850_v13 = vld [vmem:[%s5787_s0 + $0x234] ss:$8 sps:$4 sm:$0xff]  }
 0x184   :  { %v1579_v29 = vpop.f32.mrf.mxu1  ;;  %v1928_v34 = vpop.f32.mrf.mxu0 }
 0x185   :  { %3284 = vst [vmem:[%s5794_s8 + $0x8] sm:$0xff] %v3281_v53  ;;  %v2666_v32 = vsel %vm5560_vm4, %v1927_v0, -inf  ;;  %v3883_v0 = vld [vmem:[%s5787_s0 + $0x22c] ss:$8 sps:$4 sm:$0xff]  }
 0x186   :  { %v2872_v19 = vmax.f32 %v2871_v46, %v2666_v32  ;;  %v1580_v54 = vpop.f32.mrf.mxu1  ;;  %v1929_v23 = vpop.f32.mrf.mxu0 }
 0x187   :  { %v1930_v57 = vadd.f32 %v1929_v23, %v1580_v54  ;;  %v3852_v23 = vld [vmem:[%s5787_s0 + $0x230] ss:$8 sps:$4 sm:$0xff]  }
 0x188   :  { %v1582_v12 = vpop.f32.mrf.mxu1  ;;  %v1931_v15 = vpop.f32.mrf.mxu0 }
 0x189   :  { %v2669_v61 = vsel %vm5582_vm13, %v1930_v57, -inf }
 0x18a   :  { %v5594_v48 = vmax.f32 %v2872_v19, %v2669_v61  ;;  %v1585_v40 = vpop.f32.mrf.mxu1  ;;  %1776 = vmatmul.mubr.bf16.gmra.mxu1 %v3843_v47  ;;  %v1934_v60 = vpop.f32.mrf.mxu0  ;;  %2125 = vmatmul.mubr.bf16.gmra.mxu0 %v3878_v52 }
 0x18b   :  { %v1935_v55 = vadd.f32 %v1934_v60, %v1585_v40  ;;  %3577 = vmatprep.mubr.msk.bf16.mxu1 %vm5911_vm5, %v3844_v22  ;;  %3619 = vmatprep.mubr.msk.bf16.mxu0 %vm5926_vm7, %v3879_v44  ;;  %vm5927_vm7 = vmmov %vm5911_vm5  ;;  %v3884_v60 = vld [vmem:[%s5787_s0 + $0x228] ss:$8 sps:$4 sm:$0xff]  }
 0x18c   :  { %v1587_v26 = vpop.f32.mrf.mxu1  ;;  %v1936_v43 = vpop.f32.mrf.mxu0  ;;  %v2874_v12 = vrot.slane %v5594_v48, 4 }
 0x18d   :  { %v2672_v41 = vsel %vm5423_vm8, %v1935_v55, -inf }
 0x18e   :  { %v1588_v10 = vpop.f32.mrf.mxu1  ;;  %v1937_v58 = vpop.f32.mrf.mxu0  ;;  %v2875_v43 = vmax.f32 %v5594_v48, %v2874_v12 }
 0x18f   :  { %v1938_v18 = vadd.f32 %v1937_v58, %v1588_v10 }
 0x190   :  { %v1590_v9 = vpop.f32.mrf.mxu1  ;;  %v1939_v37 = vpop.f32.mrf.mxu0 }
 0x191   :  { %v2675_v62 = vsel %vm5411_vm6, %v1938_v18, -inf }
 0x192   :  { %v2906_v2 = vmax.f32 %v2672_v41, %v2675_v62  ;;  %v1593_v25 = vpop.f32.mrf.mxu1  ;;  %1784 = vmatmul.mubr.bf16.gmra.mxu1 %v3846_v7  ;;  %v1942_v45 = vpop.f32.mrf.mxu0  ;;  %2133 = vmatmul.mubr.bf16.gmra.mxu0 %v3880_v39  ;;  %v2876_v41 = vrot.slane %v2875_v43, 2 }
 0x193   :  { %v1943_v28 = vadd.f32 %v1942_v45, %v1593_v25  ;;  %3578 = vmatprep.mubr.msk.bf16.mxu1 %vm5911_vm5, %v3847_v30  ;;  %3620 = vmatprep.mubr.msk.bf16.mxu0 %vm5927_vm7, %v3881_v33  ;;  %vm5928_vm7 = vmmov %vm5911_vm5 }
 0x194   :  { %v1595_v11 = vpop.f32.mrf.mxu1  ;;  %v1944_v17 = vpop.f32.mrf.mxu0 }
 0x195   :  { %v2678_v59 = vsel %vm5441_vm10, %v1943_v28, -inf  ;;  %v2877_v11 = vmax.f32 %v2875_v43, %v2876_v41 }
 0x196   :  { %v2907_v38 = vmax.f32 %v2906_v2, %v2678_v59  ;;  %v1596_v20 = vpop.f32.mrf.mxu1  ;;  %v1945_v4 = vpop.f32.mrf.mxu0 }
 0x197   :  { %v1946_v63 = vadd.f32 %v1945_v4, %v1596_v20 }
 0x198   :  { %v1598_v50 = vpop.f32.mrf.mxu1  ;;  %v1947_v21 = vpop.f32.mrf.mxu0 }
 0x199   :  { %v2681_v46 = vsel %vm5466_vm1, %v1946_v63, -inf  ;;  %v2878_v50 = vrot.slane %v2877_v11, 1 }
 0x19a   :  { %v2908_v8 = vmax.f32 %v2907_v38, %v2681_v46  ;;  %v1601_v1 = vpop.f32.mrf.mxu1  ;;  %1792 = vmatmul.mubr.bf16.gmra.mxu1 %v3849_v51  ;;  %v1950_v49 = vpop.f32.mrf.mxu0  ;;  %2141 = vmatmul.mubr.bf16.gmra.mxu0 %v3882_v24 }
 0x19b   :  { %v1951_v53 = vadd.f32 %v1950_v49, %v1601_v1  ;;  %3579 = vmatprep.mubr.msk.bf16.mxu1 %vm5911_vm5, %v3850_v13  ;;  %3621 = vmatprep.mubr.msk.bf16.mxu0 %vm5928_vm7, %v3883_v0  ;;  %vm5929_vm5 = vcmask 1041409  }
 0x19c   :  { %v1603_v16 = vpop.f32.mrf.mxu1  ;;  %v1952_v29 = vpop.f32.mrf.mxu0 }
 0x19d   :  { %v2684_v34 = vsel %vm5483_vm3, %v1951_v53, -inf  ;;  %v2879_v29 = vmax.f32 %v2877_v11, %v2878_v50 }
 0x19e   :  { %v2909_v32 = vmax.f32 %v2908_v8, %v2684_v34  ;;  %v1604_v19 = vpop.f32.mrf.mxu1  ;;  %v1953_v54 = vpop.f32.mrf.mxu0 }
 0x19f   :  { %v1954_v42 = vadd.f32 %v1953_v54, %v1604_v19 }
 0x1a0   :  { %v1606_v47 = vpop.f32.mrf.mxu1  ;;  %v1955_v57 = vpop.f32.mrf.mxu0 }
 0x1a1   :  { %v2687_v22 = vsel %vm5542_vm14, %v1954_v42, -inf }
 0x1a2   :  { %v2910_v15 = vmax.f32 %v2909_v32, %v2687_v22  ;;  %v1609_v61 = vpop.f32.mrf.mxu1  ;;  %1800 = vmatmul.mubr.bf16.gmra.mxu1 %v3852_v23  ;;  %v1958_v40 = vpop.f32.mrf.mxu0  ;;  %2149 = vmatmul.mubr.bf16.gmra.mxu0 %v3884_v60 }
 0x1a3   :  { %v1959_v52 = vadd.f32 %v1958_v40, %v1609_v61 }
 0x1a4   :  { %v1611_v55 = vpop.f32.mrf.mxu1  ;;  %v1960_v44 = vpop.f32.mrf.mxu0 }
 0x1a5   :  { %v2690_v26 = vsel %vm5560_vm4, %v1959_v52, -inf }
 0x1a6   :  { %v2911_v10 = vmax.f32 %v2910_v15, %v2690_v26  ;;  %v1612_v58 = vpop.f32.mrf.mxu1  ;;  %v1961_v7 = vpop.f32.mrf.mxu0 }
 0x1a7   :  { %v1962_v18 = vadd.f32 %v1961_v7, %v1612_v58 }
 0x1a8   :  { %v1614_v30 = vpop.f32.mrf.mxu1  ;;  %v1963_v9 = vpop.f32.mrf.mxu0 }
 0x1a9   :  { %v2693_v37 = vsel %vm5582_vm13, %v1962_v18, -inf }
 0x1aa   :  { %v2912_v62 = vmax.f32 %v2911_v10, %v2693_v37  ;;  %v1617_v2 = vpop.f32.mrf.mxu1  ;;  %v1966_v25 = vpop.f32.mrf.mxu0 }
 0x1ab   :  { %v1967_v45 = vadd.f32 %v1966_v25, %v1617_v2 }
 0x1ac   :  { %v2913_v39 = vrot.slane %v2912_v62, 4  ;;  %v1619_v28 = vpop.f32.mrf.mxu1  ;;  %v1968_v33 = vpop.f32.mrf.mxu0 }
 0x1ad   :  { %v2696_v63 = vsel %vm5423_vm8, %v1967_v45, -inf }
 0x1ae   :  { %v2914_v17 = vmax.f32 %v2912_v62, %v2913_v39  ;;  %v1620_v48 = vpop.f32.mrf.mxu1  ;;  %v1969_v59 = vpop.f32.mrf.mxu0 }
 0x1af   :  { %v1970_v38 = vadd.f32 %v1969_v59, %v1620_v48 }
 0x1b0   :  { %v2915_v20 = vrot.slane %v2914_v17, 2  ;;  %v1622_v4 = vpop.f32.mrf.mxu1  ;;  %v1971_v51 = vpop.f32.mrf.mxu0 }
 0x1b1   :  { %v2699_v13 = vsel %vm5411_vm6, %v1970_v38, -inf }
 0x1b2   :  { %v2916_v21 = vmax.f32 %v2914_v17, %v2915_v20  ;;  %v2945_v46 = vmax.f32 %v2696_v63, %v2699_v13  ;;  %v1625_v8 = vpop.f32.mrf.mxu1  ;;  %v1974_v1 = vpop.f32.mrf.mxu0 }
 0x1b3   :  { %v1975_v49 = vadd.f32 %v1974_v1, %v1625_v8 }
 0x1b4   :  { %v2917_v24 = vrot.slane %v2916_v21, 1  ;;  %v1627_v53 = vpop.f32.mrf.mxu1  ;;  %v1976_v0 = vpop.f32.mrf.mxu0 }
 0x1b5   :  { %v2702_v16 = vsel %vm5441_vm10, %v1975_v49, -inf }
 0x1b6   :  { %v2918_v34 = vmax.f32 %v2916_v21, %v2917_v24  ;;  %v2946_v32 = vmax.f32 %v2945_v46, %v2702_v16  ;;  %v1628_v19 = vpop.f32.mrf.mxu1  ;;  %v1977_v54 = vpop.f32.mrf.mxu0 }
 0x1b7   :  { %v1978_v23 = vadd.f32 %v1977_v54, %v1628_v19 }
 0x1b8   :  { %v5663_v42 = vsel %vm5929_vm5, %v2918_v34, %v2879_v29  ;;  %v1630_v47 = vpop.f32.mrf.mxu1  ;;  %v1979_v57 = vpop.f32.mrf.mxu0 }
 0x1b9   :  { %v2705_v22 = vsel %vm5466_vm1, %v1978_v23, -inf }
 0x1ba   :  { %v2947_v12 = vmax.f32 %v2946_v32, %v2705_v22  ;;  %v1633_v15 = vpop.f32.mrf.mxu1  ;;  %v1982_v61 = vpop.f32.mrf.mxu0 }
 0x1bb   :  { %v1983_v40 = vadd.f32 %v1982_v61, %v1633_v15 }
 0x1bc   :  { %v1635_v60 = vpop.f32.mrf.mxu1  ;;  %v1984_v52 = vpop.f32.mrf.mxu0 }
 0x1bd   :  { %v2708_v55 = vsel %vm5483_vm3, %v1983_v40, -inf }
 0x1be   :  { %v2948_v44 = vmax.f32 %v2947_v12, %v2708_v55  ;;  %v1636_v26 = vpop.f32.mrf.mxu1  ;;  %v1985_v43 = vpop.f32.mrf.mxu0 }
 0x1bf   :  { %v1986_v10 = vadd.f32 %v1985_v43, %v1636_v26 }
 0x1c0   :  { %v1638_v58 = vpop.f32.mrf.mxu1  ;;  %v1987_v7 = vpop.f32.mrf.mxu0 }
 0x1c1   :  { %v2711_v18 = vsel %vm5542_vm14, %v1986_v10, -inf }
 0x1c2   :  { %v2949_v30 = vmax.f32 %v2948_v44, %v2711_v18  ;;  %v1641_v9 = vpop.f32.mrf.mxu1  ;;  %v1990_v37 = vpop.f32.mrf.mxu0 }
 0x1c3   :  { %v1991_v41 = vadd.f32 %v1990_v37, %v1641_v9 }
 0x1c4   :  { %v1643_v62 = vpop.f32.mrf.mxu1  ;;  %v1992_v2 = vpop.f32.mrf.mxu0 }
 0x1c5   :  { %v2714_v25 = vsel %vm5560_vm4, %v1991_v41, -inf }
 0x1c6   :  { %v2950_v45 = vmax.f32 %v2949_v30, %v2714_v25  ;;  %v1644_v39 = vpop.f32.mrf.mxu1  ;;  %v1993_v28 = vpop.f32.mrf.mxu0 }
 0x1c7   :  { %v1994_v33 = vadd.f32 %v1993_v28, %v1644_v39 }
 0x1c8   :  { %v1646_v11 = vpop.f32.mrf.mxu1  ;;  %v1995_v17 = vpop.f32.mrf.mxu0 }
 0x1c9   :  { %v2717_v48 = vsel %vm5582_vm13, %v1994_v33, -inf }
 0x1ca   :  { %v2951_v59 = vmax.f32 %v2950_v45, %v2717_v48  ;;  %v1649_v38 = vpop.f32.mrf.mxu1  ;;  %v1998_v20 = vpop.f32.mrf.mxu0 }
 0x1cb   :  { %v1999_v4 = vadd.f32 %v1998_v20, %v1649_v38 }
 0x1cc   :  { %v2952_v51 = vrot.slane %v2951_v59, 4  ;;  %v1651_v63 = vpop.f32.mrf.mxu1  ;;  %v2000_v13 = vpop.f32.mrf.mxu0 }
 0x1cd   :  { %v2720_v53 = vsel %vm5423_vm8, %v1999_v4, -inf }
 0x1ce   :  { %v2953_v50 = vmax.f32 %v2951_v59, %v2952_v51  ;;  %v1652_v21 = vpop.f32.mrf.mxu1  ;;  %v2001_v46 = vpop.f32.mrf.mxu0 }
 0x1cf   :  { %v2002_v8 = vadd.f32 %v2001_v46, %v1652_v21 }
 0x1d0   :  { %v2954_v1 = vrot.slane %v2953_v50, 2  ;;  %v1654_v49 = vpop.f32.mrf.mxu1  ;;  %v2003_v24 = vpop.f32.mrf.mxu0 }
 0x1d1   :  { %v2723_v0 = vsel %vm5411_vm6, %v2002_v8, -inf }
 0x1d2   :  { %v2955_v16 = vmax.f32 %v2953_v50, %v2954_v1  ;;  %v2984_v29 = vmax.f32 %v2720_v53, %v2723_v0  ;;  %v1657_v34 = vpop.f32.mrf.mxu1  ;;  %v2006_v32 = vpop.f32.mrf.mxu0 }
 0x1d3   :  { %v2007_v19 = vadd.f32 %v2006_v32, %v1657_v34 }
 0x1d4   :  { %v2956_v54 = vrot.slane %v2955_v16, 1  ;;  %v1659_v23 = vpop.f32.mrf.mxu1  ;;  %v2008_v47 = vpop.f32.mrf.mxu0 }
 0x1d5   :  { %v2726_v57 = vsel %vm5441_vm10, %v2007_v19, -inf }
 0x1d6   :  { %v2957_v22 = vmax.f32 %v2955_v16, %v2956_v54  ;;  %v2985_v12 = vmax.f32 %v2984_v29, %v2726_v57  ;;  %v1660_v15 = vpop.f32.mrf.mxu1  ;;  %v2009_v61 = vpop.f32.mrf.mxu0 }
 0x1d7   :  { %v2010_v40 = vadd.f32 %v2009_v61, %v1660_v15 }
 0x1d8   :  { %v5683_v60 = vsel %vm3179_vm9, %v2957_v22, %v5663_v42  ;;  %v1662_v52 = vpop.f32.mrf.mxu1  ;;  %v2011_v55 = vpop.f32.mrf.mxu0 }
 0x1d9   :  { %v2729_v44 = vsel %vm5466_vm1, %v2010_v40, -inf }
 0x1da   :  { %v2986_v26 = vmax.f32 %v2985_v12, %v2729_v44  ;;  %v1665_v43 = vpop.f32.mrf.mxu1  ;;  %v2014_v10 = vpop.f32.mrf.mxu0 }
 0x1db   :  { %v2015_v58 = vadd.f32 %v2014_v10, %v1665_v43 }
 0x1dc   :  { %v1667_v7 = vpop.f32.mrf.mxu1  ;;  %v2016_v18 = vpop.f32.mrf.mxu0 }
 0x1dd   :  { %v2732_v30 = vsel %vm5483_vm3, %v2015_v58, -inf }
 0x1de   :  { %v2987_v9 = vmax.f32 %v2986_v26, %v2732_v30  ;;  %v1668_v37 = vpop.f32.mrf.mxu1  ;;  %v2017_v41 = vpop.f32.mrf.mxu0 }
 0x1df   :  { %v2018_v62 = vadd.f32 %v2017_v41, %v1668_v37 }
 0x1e0   :  { %v1670_v42 = vpop.f32.mrf.mxu1  ;;  %v2019_v2 = vpop.f32.mrf.mxu0 }
 0x1e1   :  { %v2735_v25 = vsel %vm5542_vm14, %v2018_v62, -inf }
 0x1e2   :  { %v2988_v45 = vmax.f32 %v2987_v9, %v2735_v25  ;;  %v1673_v39 = vpop.f32.mrf.mxu1  ;;  %v2022_v28 = vpop.f32.mrf.mxu0 }
 0x1e3   :  { %v2023_v33 = vadd.f32 %v2022_v28, %v1673_v39 }
 0x1e4   :  { %v1675_v11 = vpop.f32.mrf.mxu1  ;;  %v2024_v17 = vpop.f32.mrf.mxu0 }
 0x1e5   :  { %v2738_v48 = vsel %vm5560_vm4, %v2023_v33, -inf }
 0x1e6   :  { %v2989_v59 = vmax.f32 %v2988_v45, %v2738_v48  ;;  %v1676_v38 = vpop.f32.mrf.mxu1  ;;  %v2025_v20 = vpop.f32.mrf.mxu0 }
 0x1e7   :  { %v2026_v4 = vadd.f32 %v2025_v20, %v1676_v38 }
 0x1e8   :  { %v1678_v51 = vpop.f32.mrf.mxu1  ;;  %v2027_v63 = vpop.f32.mrf.mxu0 }
 0x1e9   :  { %v2741_v13 = vsel %vm5582_vm13, %v2026_v4, -inf }
 0x1ea   :  { %v2990_v50 = vmax.f32 %v2989_v59, %v2741_v13  ;;  %v1681_v21 = vpop.f32.mrf.mxu1  ;;  %v2030_v46 = vpop.f32.mrf.mxu0 }
 0x1eb   :  { %v2031_v8 = vadd.f32 %v2030_v46, %v1681_v21 }
 0x1ec   :  { %v2991_v1 = vrot.slane %v2990_v50, 4  ;;  %v1683_v49 = vpop.f32.mrf.mxu1  ;;  %v2032_v24 = vpop.f32.mrf.mxu0 }
 0x1ed   :  { %v2744_v54 = vsel %vm5423_vm8, %v2031_v8, -inf }
 0x1ee   :  { %v2992_v53 = vmax.f32 %v2990_v50, %v2991_v1  ;;  %v1684_v0 = vpop.f32.mrf.mxu1  ;;  %v2033_v16 = vpop.f32.mrf.mxu0 }
 0x1ef   :  { %v2034_v29 = vadd.f32 %v2033_v16, %v1684_v0 }
 0x1f0   :  { %v2993_v34 = vrot.slane %v2992_v53, 2  ;;  %v1686_v32 = vpop.f32.mrf.mxu1  ;;  %v2035_v19 = vpop.f32.mrf.mxu0 }
 0x1f1   :  { %v2747_v23 = vsel %vm5411_vm6, %v2034_v29, -inf }
 0x1f2   :  { %v2994_v47 = vmax.f32 %v2992_v53, %v2993_v34  ;;  %v3023_v57 = vmax.f32 %v2744_v54, %v2747_v23  ;;  %v1689_v22 = vpop.f32.mrf.mxu1  ;;  %v2038_v12 = vpop.f32.mrf.mxu0 }
 0x1f3   :  { %v2039_v15 = vadd.f32 %v2038_v12, %v1689_v22 }
 0x1f4   :  { %v2995_v61 = vrot.slane %v2994_v47, 1  ;;  %v1691_v40 = vpop.f32.mrf.mxu1  ;;  %v2040_v52 = vpop.f32.mrf.mxu0 }
 0x1f5   :  { %v2750_v55 = vsel %vm5441_vm10, %v2039_v15, -inf }
 0x1f6   :  { %v2996_v44 = vmax.f32 %v2994_v47, %v2995_v61  ;;  %v3024_v26 = vmax.f32 %v3023_v57, %v2750_v55  ;;  %v1692_v43 = vpop.f32.mrf.mxu1  ;;  %v2041_v10 = vpop.f32.mrf.mxu0 }
 0x1f7   :  { %v2042_v58 = vadd.f32 %v2041_v10, %v1692_v43 }
 0x1f8   :  { %v5703_v7 = vsel %vm3181_vm11, %v2996_v44, %v5683_v60  ;;  %v1694_v18 = vpop.f32.mrf.mxu1  ;;  %v2043_v30 = vpop.f32.mrf.mxu0 }
 0x1f9   :  { %v2753_v9 = vsel %vm5466_vm1, %v2042_v58, -inf }
 0x1fa   :  { %v3025_v37 = vmax.f32 %v3024_v26, %v2753_v9  ;;  %v1697_v41 = vpop.f32.mrf.mxu1  ;;  %v2046_v62 = vpop.f32.mrf.mxu0 }
 0x1fb   :  { %v2047_v42 = vadd.f32 %v2046_v62, %v1697_v41 }
 0x1fc   :  { %v1699_v2 = vpop.f32.mrf.mxu1  ;;  %v2048_v25 = vpop.f32.mrf.mxu0 }
 0x1fd   :  { %v2756_v45 = vsel %vm5483_vm3, %v2047_v42, -inf }
 0x1fe   :  { %v3026_v39 = vmax.f32 %v3025_v37, %v2756_v45  ;;  %v1700_v28 = vpop.f32.mrf.mxu1  ;;  %v2049_v33 = vpop.f32.mrf.mxu0 }
 0x1ff   :  { %v2050_v11 = vadd.f32 %v2049_v33, %v1700_v28 }
 0x200   :  { %v1702_v60 = vpop.f32.mrf.mxu1  ;;  %v2051_v17 = vpop.f32.mrf.mxu0 }
 0x201   :  { %v2759_v48 = vsel %vm5542_vm14, %v2050_v11, -inf }
 0x202   :  { %v3027_v59 = vmax.f32 %v3026_v39, %v2759_v48  ;;  %v1705_v38 = vpop.f32.mrf.mxu1  ;;  %v2054_v20 = vpop.f32.mrf.mxu0 }
 0x203   :  { %v2055_v4 = vadd.f32 %v2054_v20, %v1705_v38 }
 0x204   :  { %v1707_v51 = vpop.f32.mrf.mxu1  ;;  %v2056_v63 = vpop.f32.mrf.mxu0 }
 0x205   :  { %v2762_v13 = vsel %vm5560_vm4, %v2055_v4, -inf }
 0x206   :  { %v3028_v50 = vmax.f32 %v3027_v59, %v2762_v13  ;;  %v1708_v21 = vpop.f32.mrf.mxu1  ;;  %v2057_v46 = vpop.f32.mrf.mxu0 }
 0x207   :  { %v2058_v8 = vadd.f32 %v2057_v46, %v1708_v21 }
 0x208   :  { %v1710_v1 = vpop.f32.mrf.mxu1  ;;  %v2059_v49 = vpop.f32.mrf.mxu0 }
 0x209   :  { %v2765_v24 = vsel %vm5582_vm13, %v2058_v8, -inf }
 0x20a   :  { %v3029_v53 = vmax.f32 %v3028_v50, %v2765_v24  ;;  %v1713_v0 = vpop.f32.mrf.mxu1  ;;  %v2062_v16 = vpop.f32.mrf.mxu0 }
 0x20b   :  { %v2063_v29 = vadd.f32 %v2062_v16, %v1713_v0 }
 0x20c   :  { %v3030_v34 = vrot.slane %v3029_v53, 4  ;;  %v1715_v32 = vpop.f32.mrf.mxu1  ;;  %v2064_v19 = vpop.f32.mrf.mxu0 }
 0x20d   :  { %v2768_v61 = vsel %vm5423_vm8, %v2063_v29, -inf }
 0x20e   :  { %v3031_v54 = vmax.f32 %v3029_v53, %v3030_v34  ;;  %v1716_v23 = vpop.f32.mrf.mxu1  ;;  %v2065_v47 = vpop.f32.mrf.mxu0 }
 0x20f   :  { %v2066_v57 = vadd.f32 %v2065_v47, %v1716_v23 }
 0x210   :  { %v3032_v22 = vrot.slane %v3031_v54, 2  ;;  %v1718_v12 = vpop.f32.mrf.mxu1  ;;  %v2067_v15 = vpop.f32.mrf.mxu0 }
 0x211   :  { %v2771_v40 = vsel %vm5411_vm6, %v2066_v57, -inf }
 0x212   :  { %v3033_v52 = vmax.f32 %v3031_v54, %v3032_v22  ;;  %v3062_v55 = vmax.f32 %v2768_v61, %v2771_v40  ;;  %v1721_v44 = vpop.f32.mrf.mxu1  ;;  %v2070_v26 = vpop.f32.mrf.mxu0 }
 0x213   :  { %v2071_v43 = vadd.f32 %v2070_v26, %v1721_v44 }
 0x214   :  { %v3034_v10 = vrot.slane %v3033_v52, 1  ;;  %v1723_v58 = vpop.f32.mrf.mxu1  ;;  %v2072_v18 = vpop.f32.mrf.mxu0 }
 0x215   :  { %v2774_v30 = vsel %vm5441_vm10, %v2071_v43, -inf }
 0x216   :  { %v3035_v9 = vmax.f32 %v3033_v52, %v3034_v10  ;;  %v3063_v37 = vmax.f32 %v3062_v55, %v2774_v30  ;;  %v1724_v41 = vpop.f32.mrf.mxu1  ;;  %v2073_v62 = vpop.f32.mrf.mxu0 }
 0x217   :  { %v2074_v42 = vadd.f32 %v2073_v62, %v1724_v41 }
 0x218   :  { %v3201_v2 = vsel %vm3183_vm0, %v3035_v9, %v5703_v7  ;;  %v1726_v25 = vpop.f32.mrf.mxu1  ;;  %v2075_v45 = vpop.f32.mrf.mxu0 }
 0x219   :  { %v2777_v39 = vsel %vm5466_vm1, %v2074_v42, -inf }
 0x21a   :  { %v3064_v28 = vmax.f32 %v3063_v37, %v2777_v39  ;;  %v1729_v33 = vpop.f32.mrf.mxu1  ;;  %v2078_v11 = vpop.f32.mrf.mxu0 }
 0x21b   :  { %v2079_v60 = vadd.f32 %v2078_v11, %v1729_v33 }
 0x21c   :  { %v1731_v17 = vpop.f32.mrf.mxu1  ;;  %v2080_v48 = vpop.f32.mrf.mxu0 }
 0x21d   :  { %v2780_v59 = vsel %vm5483_vm3, %v2079_v60, -inf }
 0x21e   :  { %v3065_v38 = vmax.f32 %v3064_v28, %v2780_v59  ;;  %v1732_v20 = vpop.f32.mrf.mxu1  ;;  %v2081_v4 = vpop.f32.mrf.mxu0 }
 0x21f   :  { %v2082_v51 = vadd.f32 %v2081_v4, %v1732_v20 }
 0x220   :  { %v1734_v63 = vpop.f32.mrf.mxu1  ;;  %v2083_v7 = vpop.f32.mrf.mxu0 }
 0x221   :  { %v2783_v13 = vsel %vm5542_vm14, %v2082_v51, -inf }
 0x222   :  { %v3066_v50 = vmax.f32 %v3065_v38, %v2783_v13  ;;  %v1737_v21 = vpop.f32.mrf.mxu1  ;;  %v2086_v46 = vpop.f32.mrf.mxu0 }
 0x223   :  { %v2087_v8 = vadd.f32 %v2086_v46, %v1737_v21 }
 0x224   :  { %v1739_v1 = vpop.f32.mrf.mxu1  ;;  %v2088_v49 = vpop.f32.mrf.mxu0 }
 0x225   :  { %v2786_v24 = vsel %vm5560_vm4, %v2087_v8, -inf }
 0x226   :  { %v3067_v53 = vmax.f32 %v3066_v50, %v2786_v24  ;;  %v1740_v0 = vpop.f32.mrf.mxu1  ;;  %v2089_v16 = vpop.f32.mrf.mxu0 }
 0x227   :  { %v2090_v29 = vadd.f32 %v2089_v16, %v1740_v0 }
 0x228   :  { %v1742_v34 = vpop.f32.mrf.mxu1  ;;  %v2091_v32 = vpop.f32.mrf.mxu0 }
 0x229   :  { %v2789_v19 = vsel %vm5582_vm13, %v2090_v29, -inf }
 0x22a   :  { %v3068_v54 = vmax.f32 %v3067_v53, %v2789_v19  ;;  %v1745_v23 = vpop.f32.mrf.mxu1  ;;  %v2094_v47 = vpop.f32.mrf.mxu0 }
 0x22b   :  { %v2095_v50 = vadd.f32 %v2094_v47, %v1745_v23 }
 0x22c   :  { %v3069_v57 = vrot.slane %v3068_v54, 4  ;;  %v1747_v22 = vpop.f32.mrf.mxu1  ;;  %v2096_v12 = vpop.f32.mrf.mxu0 }
 0x22d   :  { %v2792_v0 = vsel %vm5423_vm8, %v2095_v50, -inf }
 0x22e   :  { %v3070_v15 = vmax.f32 %v3068_v54, %v3069_v57  ;;  %v1748_v61 = vpop.f32.mrf.mxu1  ;;  %v2097_v40 = vpop.f32.mrf.mxu0 }
 0x22f   :  { %v2098_v7 = vadd.f32 %v2097_v40, %v1748_v61 }
 0x230   :  { %v3071_v52 = vrot.slane %v3070_v15, 2  ;;  %v1750_v55 = vpop.f32.mrf.mxu1  ;;  %v2099_v44 = vpop.f32.mrf.mxu0 }
 0x231   :  { %v2795_v1 = vsel %vm5411_vm6, %v2098_v7, -inf }
 0x232   :  { %v3072_v26 = vmax.f32 %v3070_v15, %v3071_v52  ;;  %v1753_v43 = vpop.f32.mrf.mxu1  ;;  %v2102_v10 = vpop.f32.mrf.mxu0  ;;  %v3101_v19 = vmax.f32 %v2792_v0, %v2795_v1 }
 0x233   :  { %v2103_v21 = vadd.f32 %v2102_v10, %v1753_v43 }
 0x234   :  { %v3073_v58 = vrot.slane %v3072_v26, 1  ;;  %v1755_v18 = vpop.f32.mrf.mxu1  ;;  %v2104_v30 = vpop.f32.mrf.mxu0 }
 0x235   :  { %v2798_v16 = vsel %vm5441_vm10, %v2103_v21, -inf }
 0x236   :  { %v3074_v9 = vmax.f32 %v3072_v26, %v3073_v58  ;;  %v1756_v37 = vpop.f32.mrf.mxu1  ;;  %v2105_v41 = vpop.f32.mrf.mxu0  ;;  %v3102_v22 = vmax.f32 %v3101_v19, %v2798_v16 }
 0x237   :  { %v2106_v49 = vadd.f32 %v2105_v41, %v1756_v37 }
 0x238   :  { %v5734_v62 = vsel %vm3185_vm12, %v3074_v9, %v3201_v2  ;;  %v1758_v42 = vpop.f32.mrf.mxu1  ;;  %v2107_v25 = vpop.f32.mrf.mxu0 }
 0x239   :  { %v2801_v54 = vsel %vm5466_vm1, %v2106_v49, -inf }
 0x23a   :  { %v1761_v45 = vpop.f32.mrf.mxu1  ;;  %v2110_v39 = vpop.f32.mrf.mxu0  ;;  %v3103_v52 = vmax.f32 %v3102_v22, %v2801_v54 }
 0x23b   :  { %v2111_v29 = vadd.f32 %v2110_v39, %v1761_v45 }
 0x23c   :  { %v1763_v28 = vpop.f32.mrf.mxu1  ;;  %v2112_v33 = vpop.f32.mrf.mxu0 }
 0x23d   :  { %v2804_v12 = vsel %vm5483_vm3, %v2111_v29, -inf }
 0x23e   :  { %v1764_v11 = vpop.f32.mrf.mxu1  ;;  %v2113_v60 = vpop.f32.mrf.mxu0  ;;  %v3104_v10 = vmax.f32 %v3103_v52, %v2804_v12 }
 0x23f   :  { %v2114_v23 = vadd.f32 %v2113_v60, %v1764_v11 }
 0x240   :  { %v1766_v17 = vpop.f32.mrf.mxu1  ;;  %v2115_v48 = vpop.f32.mrf.mxu0 }
 0x241   :  { %v2807_v55 = vsel %vm5542_vm14, %v2114_v23, -inf }
 0x242   :  { %v1769_v59 = vpop.f32.mrf.mxu1  ;;  %v2118_v38 = vpop.f32.mrf.mxu0  ;;  %v3105_v9 = vmax.f32 %v3104_v10, %v2807_v55 }
 0x243   :  { %v2119_v15 = vadd.f32 %v2118_v38, %v1769_v59 }
 0x244   :  { %v1771_v20 = vpop.f32.mrf.mxu1  ;;  %v2120_v4 = vpop.f32.mrf.mxu0 }
 0x245   :  { %v2810_v58 = vsel %vm5560_vm4, %v2119_v15, -inf }
 0x246   :  { %v1772_v51 = vpop.f32.mrf.mxu1  ;;  %v2121_v63 = vpop.f32.mrf.mxu0  ;;  %v3106_v45 = vmax.f32 %v3105_v9, %v2810_v58  ;;  %v3886_v9 = vld [vmem:[%s5792_s6] sm:$0x7] }
 0x247   :  { %v2122_v44 = vadd.f32 %v2121_v63, %v1772_v51 }
 0x248   :  { %v1774_v13 = vpop.f32.mrf.mxu1  ;;  %v2123_v2 = vpop.f32.mrf.mxu0 }
 0x249   :  { %v2813_v41 = vsel %vm5582_vm13, %v2122_v44, -inf }
 0x24a   :  { %v1777_v46 = vpop.f32.mrf.mxu1  ;;  %v2126_v8 = vpop.f32.mrf.mxu0  ;;  %v3107_v60 = vmax.f32 %v3106_v45, %v2813_v41 }
 0x24b   :  { %v2127_v39 = vadd.f32 %v2126_v8, %v1777_v46 }
 0x24c   :  { %v1779_v24 = vpop.f32.mrf.mxu1  ;;  %v2128_v53 = vpop.f32.mrf.mxu0  ;;  %v3108_v2 = vrot.slane %v3107_v60, 4 }
 0x24d   :  { %v2816_v20 = vsel %vm5423_vm8, %v2127_v39, -inf }
 0x24e   :  { %v1780_v34 = vpop.f32.mrf.mxu1  ;;  %v2129_v32 = vpop.f32.mrf.mxu0  ;;  %v3109_v31 = vmax.f32 %v3107_v60, %v3108_v2 }
 0x24f   :  { %v2130_v37 = vadd.f32 %v2129_v32, %v1780_v34 }
 0x250   :  { %v1782_v47 = vpop.f32.mrf.mxu1  ;;  %v2131_v57 = vpop.f32.mrf.mxu0  ;;  %v3110_v23 = vrot.slane %v3109_v31, 2 }
 0x251   :  { %v2819_v17 = vsel %vm5411_vm6, %v2130_v37, -inf  ;;  %v3256_v37 = vrot.slane %v3886_v9, %v5221_v36 }
 0x252   :  { %v1785_v61 = vpop.f32.mrf.mxu1  ;;  %v2134_v40 = vpop.f32.mrf.mxu0  ;;  %v3140_v63 = vmax.f32 %v2816_v20, %v2819_v17  ;;  %v3111_v15 = vmax.f32 %v3109_v31, %v3110_v23 }
 0x253   :  { %v2135_v28 = vadd.f32 %v2134_v40, %v1785_v61 }
 0x254   :  { %v1787_v26 = vpop.f32.mrf.mxu1  ;;  %v2136_v43 = vpop.f32.mrf.mxu0  ;;  %v3112_v52 = vrot.slane %v3111_v15, 1 }
 0x255   :  { %v2822_v4 = vsel %vm5441_vm10, %v2135_v28, -inf  ;;  %v3885_v43 = vld [vmem:[%s5791_s5] sm:$0x7] }
 0x256   :  { %v1788_v18 = vpop.f32.mrf.mxu1  ;;  %v2137_v30 = vpop.f32.mrf.mxu0  ;;  %v3141_v35 = vmax.f32 %v3140_v63, %v2822_v4  ;;  %v3113_v6 = vmax.f32 %v3111_v15, %v3112_v52  ;;  %v3233_v10 = vrot.slane %v3885_v43, %v5221_v36 }
 0x257   :  { %v2138_v48 = vadd.f32 %v2137_v30, %v1788_v18 }
 0x258   :  { %v1790_v42 = vpop.f32.mrf.mxu1  ;;  %v2139_v25 = vpop.f32.mrf.mxu0  ;;  %v3203_v3 = vsel %vm3187_vm15, %v3113_v6, %v5734_v62 }
 0x259   :  { %v2825_v50 = vsel %vm5466_vm1, %v2138_v48, -inf  ;;  %v3887_v42 = vld [vmem:[%s5793_s7] sm:$0x7] }
 0x25a   :  { %v1793_v33 = vpop.f32.mrf.mxu1  ;;  %v2142_v11 = vpop.f32.mrf.mxu0  ;;  %v3142_v56 = vmax.f32 %v3141_v35, %v2825_v50  ;;  %v3276_v25 = vrot.slane %v3887_v42, %v5221_v36 }
 0x25b   :  { %v2143_v51 = vadd.f32 %v2142_v11, %v1793_v33 }
 0x25c   :  { %v1795_v59 = vpop.f32.mrf.mxu1  ;;  %v2144_v38 = vpop.f32.mrf.mxu0 }
 0x25d   :  { %v2828_v1 = vsel %vm5483_vm3, %v2143_v51, -inf }
 0x25e   :  { %v1796_v7 = vpop.f32.mrf.mxu1  ;;  %v2145_v13 = vpop.f32.mrf.mxu0  ;;  %v3143_v16 = vmax.f32 %v3142_v56, %v2828_v1 }
 0x25f   :  { %v2146_v21 = vadd.f32 %v2145_v13, %v1796_v7 }
 0x260   :  { %v1798_v46 = vpop.f32.mrf.mxu1  ;;  %v2147_v8 = vpop.f32.mrf.mxu0 }
 0x261   :  { %v2831_v53 = vsel %vm5542_vm14, %v2146_v21, -inf }
 0x262   :  { %v1801_v49 = vpop.f32.mrf.mxu1  ;;  %v2150_v24 = vpop.f32.mrf.mxu0  ;;  %v3144_v32 = vmax.f32 %v3143_v16, %v2831_v53 }
 0x263   :  { %v2151_v0 = vadd.f32 %v2150_v24, %v1801_v49 }
 0x264   :  { %v1803_v29 = vpop.f32.mrf.mxu1  ;;  %v2152_v34 = vpop.f32.mrf.mxu0 }
 0x265   :  { %v2834_v14 = vsel %vm5560_vm4, %v2151_v0, -inf }
 0x266   :  { %v1804_v19 = vpop.f32.mrf.mxu1  ;;  %v2153_v54 = vpop.f32.mrf.mxu0  ;;  %v3145_v47 = vmax.f32 %v3144_v32, %v2834_v14 }
 0x267   :  { %v2154_v27 = vadd.f32 %v2153_v54, %v1804_v19 }
 0x268   :  { %v1806_v57 = vpop.f32.mrf.mxu1  ;;  %v2155_v22 = vpop.f32.mrf.mxu0 }
 0x269   :  { %v2837_v12 = vsel %vm5582_vm13, %v2154_v27, -inf }
 0x26a   :  { %v3146_v5 = vmax.f32 %v3145_v47, %v2837_v12 }
 0x26c   :  { %v3147_v61 = vrot.slane %v3146_v5, 4 }
 0x26e   :  { %v3148_v40 = vmax.f32 %v3146_v5, %v3147_v61 }
 0x270   :  { %v3149_v55 = vrot.slane %v3148_v40, 2 }
 0x272   :  { %v3150_v44 = vmax.f32 %v3148_v40, %v3149_v55 }
 0x274   :  { %v3151_v26 = vrot.slane %v3150_v44, 1 }
 0x276   :  { %v3152_v58 = vmax.f32 %v3150_v44, %v3151_v26 }
 0x278   :  { %v3204_v18 = vsel %vm3189_vm2, %v3152_v58, %v3203_v3 }
 0x279   :  { %v3239_v30 = vadd.f32 %v3233_v10, %v3204_v18 }
 0x27b   :  { %v3242_v41 = vmax.f32 %v3239_v30, 0.0 }
 0x27d   :  { %v3262_v45 = vmul.f32 %v3256_v37, %v3242_v41 }
 0x27f   :  { %v3282_v39 = vadd.f32 %v3276_v25, %v3262_v45 }
 0x281   :  { %3285 = vst [vmem:[%s5794_s8 + $0x10] sm:$0xff] %v3282_v39 }

// kernel: ecpick_forward.3
= control target key start
LH: loop header
LB: loop body
LE: loop exit
PB: predicated region body
PF: predicated region fallthrough
CT: control target
= control target key end

     0   :  { %s8348_s6 = smov 1   ;;  %s8349_s10 = smov 2   ;;  %s11153_s0 = inlined_call_operand.smem [shape: u32[45], index: -1, kind: input, shape index: {}] }
   0x1   :  { %s8405_s5 = sld [smem:[%s11153_s0]]   ;;  %s8350_s14 = smov 3  }
   0x2   :  { %s8410_s9 = sld [smem:[%s11153_s0 + %s8348_s6]]   ;;  %s8351_s18 = smov 4  }
   0x3   :  { %s8415_s13 = sld [smem:[%s11153_s0 + %s8349_s10]]   ;;  %s8352_s22 = smov 5  }
   0x4   :  { %s8420_s17 = sld [smem:[%s11153_s0 + %s8350_s14]]   ;;  %s8353_s26 = smov 6  }
   0x5   :  { %s8425_s21 = sld [smem:[%s11153_s0 + %s8351_s18]]   ;;  %s8354_s30 = smov 7  }
   0x6   :  { %s8430_s25 = sld [smem:[%s11153_s0 + %s8352_s22]]   ;;  %s8355_s4 = smov 8  }
   0x7   :  { %s8435_s29 = sld [smem:[%s11153_s0 + %s8353_s26]]   ;;  %s8356_s10 = smov 9  }
   0x8   :  { %s8440_s3 = sld [smem:[%s11153_s0 + %s8354_s30]]   ;;  %s8357_s15 = smov 10  }
   0x9   :  { %s8445_s8 = sld [smem:[%s11153_s0 + %s8355_s4]]   ;;  %s8358_s20 = smov 11  }
   0xa   :  { %s8450_s14 = sld [smem:[%s11153_s0 + %s8356_s10]]   ;;  %s8359_s26 = smov 12  }
   0xb   :  { %s8455_s19 = sld [smem:[%s11153_s0 + %s8357_s15]]   ;;  %s8360_s1 = smov 13  }
   0xc   :  { %s8460_s24 = sld [smem:[%s11153_s0 + %s8358_s20]]   ;;  %s8361_s7 = smov 14  }
   0xd   :  { %s8465_s30 = sld [smem:[%s11153_s0 + %s8359_s26]]   ;;  %s8362_s15 = smov 15  }
   0xe   :  { %s8470_s6 = sld [smem:[%s11153_s0 + %s8360_s1]]   ;;  %s8363_s22 = smov 16  }
   0xf   :  { %s8475_s12 = sld [smem:[%s11153_s0 + %s8361_s7]]   ;;  %s8364_s28 = smov 17  }
  0x10   :  { %s8480_s20 = sld [smem:[%s11153_s0 + %s8362_s15]]   ;;  %s8365_s7 = smov 18  }
  0x11   :  { %11168 = sst [smem:[#allocation9_spill]] %s8455_s19  ;;  %s8366_s15 = smov 19  }
  0x12   :  { %11169 = sst [smem:[#allocation10_spill]] %s8460_s24 }
  0x13   :  { %11170 = sst [smem:[#allocation11_spill]] %s8465_s30 }
  0x14   :  { %11171 = sst [smem:[#allocation12_spill]] %s8470_s6 }
  0x15   :  { %s8485_s27 = sld [smem:[%s11153_s0 + %s8363_s22]]   ;;  %s8367_s22 = smov 20  }
  0x16   :  { %11172 = sst [smem:[#allocation13_spill]] %s8480_s20 }
  0x17   :  { %s8490_s4 = sld [smem:[%s11153_s0 + %s8364_s28]]   ;;  %s8368_s28 = smov 21  }
  0x18   :  { %s8495_s30 = sld [smem:[%s11153_s0 + %s8365_s7]]   ;;  %s8369_s7 = smov 22  }
  0x19   :  { %s8500_s20 = sld [smem:[%s11153_s0 + %s8366_s15]]   ;;  %s8370_s15 = smov 23  }
  0x1a   :  { %s8505_s24 = sld [smem:[%s11153_s0 + %s8367_s22]]   ;;  %s8371_s22 = smov 24  }
  0x1b   :  { %11173 = sst [smem:[#allocation14_spill]] %s8485_s27 }
  0x1c   :  { %s8510_s19 = sld [smem:[%s11153_s0 + %s8368_s28]]   ;;  %s8372_s28 = smov 25  }
  0x1d   :  { %11174 = sst [smem:[#allocation15_spill]] %s8490_s4 }
  0x1e   :  { %11175 = sst [smem:[#allocation16_spill]] %s8495_s30 }
  0x1f   :  { %11176 = sst [smem:[#allocation17_spill]] %s8500_s20 }
  0x20   :  { %11177 = sst [smem:[#allocation18_spill]] %s8505_s24 }
  0x21   :  { %s8515_s30 = sld [smem:[%s11153_s0 + %s8369_s7]]   ;;  %s8373_s7 = smov 26  }
  0x22   :  { %11178 = sst [smem:[#allocation19_spill]] %s8510_s19 }
  0x23   :  { %s8520_s20 = sld [smem:[%s11153_s0 + %s8370_s15]]   ;;  %s8374_s15 = smov 27  }
  0x24   :  { %s8525_s24 = sld [smem:[%s11153_s0 + %s8371_s22]]   ;;  %s8375_s22 = smov 28  }
  0x25   :  { %s8530_s19 = sld [smem:[%s11153_s0 + %s8372_s28]]   ;;  %s8376_s28 = smov 29  }
  0x27   :  { %11179 = sst [smem:[#allocation20_spill]] %s8515_s30 }
  0x28   :  { %s8535_s30 = sld [smem:[%s11153_s0 + %s8373_s7]]   ;;  %s8377_s7 = smov 30  }
  0x29   :  { %11180 = sst [smem:[#allocation21_spill]] %s8520_s20 }
  0x2a   :  { %11181 = sst [smem:[#allocation22_spill]] %s8525_s24 }
  0x2b   :  { %11182 = sst [smem:[#allocation23_spill]] %s8530_s19 }
  0x2c   :  { %s8540_s20 = sld [smem:[%s11153_s0 + %s8374_s15]]   ;;  %s8378_s15 = smov 31  }
  0x2d   :  { %s8545_s24 = sld [smem:[%s11153_s0 + %s8375_s22]]   ;;  %s8379_s22 = smov 32  }
  0x2e   :  { %11183 = sst [smem:[#allocation24_spill]] %s8535_s30 }
  0x2f   :  { %s8550_s19 = sld [smem:[%s11153_s0 + %s8376_s28]]   ;;  %s8380_s28 = smov 33  }
  0x30   :  { %s8555_s30 = sld [smem:[%s11153_s0 + %s8377_s7]]   ;;  %s8381_s7 = smov 34  }
  0x31   :  { %s8570_s27 = sld [smem:[%s11153_s0 + %s8380_s28]]   ;;  %s8384_s28 = smov 37  }
  0x32   :  { %11184 = sst [smem:[#allocation25_spill]] %s8540_s20 }
  0x33   :  { %11185 = sst [smem:[#allocation26_spill]] %s8545_s24 }
  0x34   :  { %s8560_s20 = sld [smem:[%s11153_s0 + %s8378_s15]]   ;;  %s8382_s15 = smov 35  }
  0x35   :  { %s8565_s24 = sld [smem:[%s11153_s0 + %s8379_s22]]   ;;  %s8383_s22 = smov 36  }
  0x36   :  { %s8575_s4 = sld [smem:[%s11153_s0 + %s8381_s7]]   ;;  %s8385_s7 = smov 38  }
  0x37   :  { %11187 = sst [smem:[#allocation28_spill]] %s8570_s27 }
  0x38   :  { %s8580_s6 = sld [smem:[%s11153_s0 + %s8382_s15]]   ;;  %s8386_s15 = smov 39  }
  0x39   :  { %s8590_s27 = sld [smem:[%s11153_s0 + %s8384_s28]]   ;;  %s8388_s28 = smov 41  }
  0x3b   :  { %11186 = sst [smem:[#allocation27_spill]] %s8565_s24 }
  0x3c   :  { %11188 = sst [smem:[#allocation29_spill]] %s8575_s4 }
  0x3d   :  { %s8585_s24 = sld [smem:[%s11153_s0 + %s8383_s22]]   ;;  %s8387_s22 = smov 40  }
  0x3e   :  { %11189 = sst [smem:[#allocation30_spill]] %s8580_s6 }
  0x3f   :  { %11191 = sst [smem:[#allocation32_spill]] %s8590_s27 }
  0x40   :  { %s8595_s4 = sld [smem:[%s11153_s0 + %s8385_s7]]   ;;  %s8389_s7 = smov 42  }
  0x41   :  { %s8600_s6 = sld [smem:[%s11153_s0 + %s8386_s15]]   ;;  %s8390_s15 = smov 43  }
  0x42   :  { %s8610_s27 = sld [smem:[%s11153_s0 + %s8388_s28]]  }
  0x43   :  { %11190 = sst [smem:[#allocation31_spill]] %s8585_s24 }
  0x44   :  { %s8605_s24 = sld [smem:[%s11153_s0 + %s8387_s22]]   ;;  %s8391_s22 = smov 44  }
  0x46   :  { %11192 = sst [smem:[#allocation33_spill]] %s8595_s4 }
  0x47   :  { %11193 = sst [smem:[#allocation34_spill]] %s8600_s6 }
  0x48   :  { %s8615_s4 = sld [smem:[%s11153_s0 + %s8389_s7]]  }
  0x49   :  { %s8620_s6 = sld [smem:[%s11153_s0 + %s8390_s15]]  }
  0x4a   :  { %11194 = sst [smem:[#allocation35_spill]] %s8605_s24 }
  0x4b   :  { %s8625_s24 = sld [smem:[%s11153_s0 + %s8391_s22]]  }
  0x4c   :  { %95 = vsyncpa [#allocation3], 0 }
  0x4d   :  { %96 = vsyncpa [#allocation5], 0  ;;  %s8392_s28 = smov [#allocation4]   ;;  %s8393_s2 = smov [#allocation2]  }
  0x4e   :  { %s171_s1 = sshll.u32 %s8392_s28, 4  ;;  %s161_s10 = sshll.u32 %s8393_s2, 4  ;;  %s172_s1 = int_to_ptr.vmem [resolvable:$true] %s171_s1  ;;  %s162_s10 = int_to_ptr.vmem [resolvable:$true] %s161_s10 }
  0x4f   :  { %s8292_s7 = scalar_lea.vmem %s172_s1, 48  ;;  %s8296_s11 = scalar_lea.vmem %s172_s1, 64 }
  0x50   :  { %p8293_p0 = scmp.ne.s32.totalorder %s172_s1, %s8292_s7  ;;  %p8297_p1 = scmp.lt.s32.totalorder %s172_s1, %s172_s1 }
  0x51   :  { %p8298_p2 = scmp.lt.s32.totalorder %s8296_s11, %s8292_s7 }
  0x53   :  { %p8299_p3 = por %p8298_p2, %p8297_p1 }
  0x55   :  { %p8300_p4 = pnand %p8299_p3, %p8293_p0 }
  0x57   :  { %8303 = shalt.err (!%p8300_p4)
}
  0x58   :  { %174 = dma.hbm_to_vmem [thread:$0]  %s8555_s30, 48, %s172_s1, [#allocation5]  }
  0x59   :  { %s8312_s0 = scalar_lea.vmem %s162_s10, 48  ;;  %s8316_s15 = scalar_lea.vmem %s162_s10, 64 }
  0x5a   :  { %p8313_p5 = scmp.ne.s32.totalorder %s162_s10, %s8312_s0  ;;  %p8317_p6 = scmp.lt.s32.totalorder %s162_s10, %s162_s10 }
  0x5b   :  { %p8318_p7 = scmp.lt.s32.totalorder %s8316_s15, %s8312_s0 }
  0x5d   :  { %p8319_p8 = por %p8318_p7, %p8317_p6 }
  0x5f   :  { %p8320_p9 = pnand %p8319_p8, %p8313_p5 }
  0x61   :  { %8323 = shalt.err (!%p8320_p9)
}
  0x62   :  { %164 = dma.hbm_to_vmem [thread:$0]  %s8550_s19, 48, %s162_s10, [#allocation3]  }
  0x63   :  { %s8394_s16 = smov [#allocation6]  }
  0x64   :  { %s181_s18 = sshll.u32 %s8394_s16, 4  ;;  %s182_s18 = int_to_ptr.vmem [resolvable:$true] %s181_s18 }
  0x65   :  { %s8332_s22 = scalar_lea.vmem %s182_s18, 48  ;;  %s8336_s23 = scalar_lea.vmem %s182_s18, 64 }
  0x66   :  { %p8333_p10 = scmp.ne.s32.totalorder %s182_s18, %s8332_s22  ;;  %p8337_p11 = scmp.lt.s32.totalorder %s182_s18, %s182_s18 }
  0x67   :  { %p8338_p12 = scmp.lt.s32.totalorder %s8336_s23, %s8332_s22 }
  0x69   :  { %p8339_p13 = por %p8338_p12, %p8337_p11 }
  0x6b   :  { %p8340_p0 = pnand %p8339_p13, %p8333_p10 }
  0x6d   :  { %8343 = shalt.err (!%p8340_p0)
}
  0x6e   :  { %184 = dma.hbm_to_vmem [thread:$0]  %s8560_s20, 48, %s182_s18, [#allocation5]  }
  0x6f   :  { %8344 = dma.done.wait [#allocation3], 48  }
  0x70   :  { %8345 = vsyncadd [#allocation3], 4294967248 }
  0x71   :  { %8346 = dma.done.wait [#allocation5], 96  }
  0x72   :  { %8347 = vsyncadd [#allocation5], 4294967200  ;;  %v8395_v0 = vmov 0.0   ;;  %v261_v1 = vld [vmem:[%s8425_s21 + $0x170] sm:$0xff]  ;;  %v260_v2 = vld [vmem:[%s8425_s21 + $0x168] sm:$0xff]  ;;  %vm8396_vm0 = vmmov 0  }
  0x73   :  { %511 = vmatprep.mubr.f32.mxu1 %v8395_v0  ;;  %v258_v3 = vld [vmem:[%s8425_s21 + $0x158] sm:$0xff]  ;;  %376 = vmatprep.subr.mxu0 %v261_v1  ;;  %v257_v4 = vld [vmem:[%s8425_s21 + $0x150] sm:$0xff]  ;;  %v255_v5 = vld [vmem:[%s8425_s21 + $0x140] sm:$0xff]  ;;  %s11204_s19 = sld [smem:[#allocation13_spill]] }
  0x74   :  { %377 = vmatpush1.msra.mxu0 %v260_v2  ;;  %v254_v6 = vld [vmem:[%s8425_s21 + $0x138] sm:$0xff]  ;;  %v252_v7 = vld [vmem:[%s8425_s21 + $0x128] sm:$0xff]  ;;  %v251_v8 = vld [vmem:[%s8425_s21 + $0x120] sm:$0xff]  ;;  %s11205_s30 = sld [smem:[#allocation25_spill]] }
  0x75   :  { %378 = vmatprep.subr.mxu0 %v258_v3  ;;  %v249_v9 = vld [vmem:[%s8425_s21 + $0x110] sm:$0xff]  ;;  %v248_v10 = vld [vmem:[%s8425_s21 + $0x108] sm:$0xff]  ;;  %v246_v11 = vld [vmem:[%s8425_s21 + $0xf8] sm:$0xff]  ;;  %s11207_s20 = sld [smem:[#allocation17_spill]] }
  0x76   :  { %379 = vmatpush1.msra.mxu0 %v257_v4  ;;  %v357_v12 = vld [vmem:[%s8425_s21 + $0x470] sm:$0xff]  ;;  %v356_v14 = vld [vmem:[%s8425_s21 + $0x468] sm:$0xff]  ;;  %v354_v15 = vld [vmem:[%s8425_s21 + $0x458] sm:$0xff]  ;;  %s11209_s26 = sld [smem:[#allocation24_spill]] }
  0x77   :  { %380 = vmatprep.subr.mxu0 %v255_v5  ;;  %v245_v13 = vld [vmem:[%s8425_s21 + $0xf0] sm:$0xff]  ;;  %447 = vmatprep.subr.mxu1 %v357_v12  ;;  %v243_v16 = vld [vmem:[%s8425_s21 + $0xe0] sm:$0xff]  ;;  %v242_v18 = vld [vmem:[%s8425_s21 + $0xd8] sm:$0xff]  ;;  %s11210_s28 = sld [smem:[#allocation26_spill]] }
  0x78   :  { %381 = vmatpush1.msra.mxu0 %v254_v6  ;;  %448 = vmatpush1.msra.mxu1 %v356_v14  ;;  %v353_v17 = vld [vmem:[%s8425_s21 + $0x450] sm:$0xff]  ;;  %v351_v19 = vld [vmem:[%s8425_s21 + $0x440] sm:$0xff]  ;;  %v350_v20 = vld [vmem:[%s8425_s21 + $0x438] sm:$0xff]  ;;  %s11211_s1 = sld [smem:[#allocation30_spill]] }
  0x79   :  { %382 = vmatprep.subr.mxu0 %v252_v7  ;;  %449 = vmatprep.subr.mxu1 %v354_v15  ;;  %v240_v21 = vld [vmem:[%s8425_s21 + $0xc8] sm:$0xff]  ;;  %v239_v23 = vld [vmem:[%s8425_s21 + $0xc0] sm:$0xff]  ;;  %v237_v25 = vld [vmem:[%s8425_s21 + $0xb0] sm:$0xff]  ;;  %s11212_s2 = sld [smem:[#allocation33_spill]] }
  0x7a   :  { %383 = vmatpush1.msra.mxu0 %v251_v8  ;;  %450 = vmatpush1.msra.mxu1 %v353_v17  ;;  %v348_v22 = vld [vmem:[%s8425_s21 + $0x428] sm:$0xff]  ;;  %v347_v24 = vld [vmem:[%s8425_s21 + $0x420] sm:$0xff]  ;;  %v345_v26 = vld [vmem:[%s8425_s21 + $0x410] sm:$0xff]  ;;  %s11214_s10 = sld [smem:[#allocation21_spill]] }
  0x7b   :  { %384 = vmatprep.subr.mxu0 %v249_v9  ;;  %451 = vmatprep.subr.mxu1 %v351_v19  ;;  %v236_v27 = vld [vmem:[%s8425_s21 + $0xa8] sm:$0xff]  ;;  %v234_v29 = vld [vmem:[%s8425_s21 + $0x98] sm:$0xff]  ;;  %v233_v31 = vld [vmem:[%s8425_s21 + $0x90] sm:$0xff]  ;;  %s11215_s7 = sld [smem:[#allocation22_spill]] }
  0x7c   :  { %385 = vmatpush1.msra.mxu0 %v248_v10  ;;  %452 = vmatpush1.msra.mxu1 %v350_v20  ;;  %v344_v28 = vld [vmem:[%s8425_s21 + $0x408] sm:$0xff]  ;;  %v342_v30 = vld [vmem:[%s8425_s21 + $0x3f8] sm:$0xff]  ;;  %v341_v32 = vld [vmem:[%s8425_s21 + $0x3f0] sm:$0xff]  ;;  %s11216_s11 = sld [smem:[#allocation23_spill]] }
  0x7d   :  { %386 = vmatprep.subr.mxu0 %v246_v11  ;;  %453 = vmatprep.subr.mxu1 %v348_v22  ;;  %v231_v33 = vld [vmem:[%s8425_s21 + $0x80] sm:$0xff]  ;;  %v230_v35 = vld [vmem:[%s8425_s21 + $0x78] sm:$0xff]  ;;  %v228_v37 = vld [vmem:[%s8425_s21 + $0x68] sm:$0xff]  ;;  %s11217_s0 = sld [smem:[#allocation27_spill]] }
  0x7e   :  { %387 = vmatpush1.msra.mxu0 %v245_v13  ;;  %454 = vmatpush1.msra.mxu1 %v347_v24  ;;  %v339_v34 = vld [vmem:[%s8425_s21 + $0x3e0] sm:$0xff]  ;;  %v338_v36 = vld [vmem:[%s8425_s21 + $0x3d8] sm:$0xff]  ;;  %v336_v38 = vld [vmem:[%s8425_s21 + $0x3c8] sm:$0xff]  ;;  %s11219_s15 = sld [smem:[#allocation32_spill]] }
  0x7f   :  { %388 = vmatprep.subr.mxu0 %v243_v16  ;;  %455 = vmatprep.subr.mxu1 %v345_v26  ;;  %v227_v39 = vld [vmem:[%s8425_s21 + $0x60] sm:$0xff]  ;;  %v225_v41 = vld [vmem:[%s8425_s21 + $0x50] sm:$0xff]  ;;  %v224_v43 = vld [vmem:[%s8425_s21 + $0x48] sm:$0xff]  ;;  %s11220_s16 = sld [smem:[#allocation35_spill]] }
  0x80   :  { %389 = vmatpush1.msra.mxu0 %v242_v18  ;;  %456 = vmatpush1.msra.mxu1 %v344_v28  ;;  %v335_v40 = vld [vmem:[%s8425_s21 + $0x3c0] sm:$0xff]  ;;  %v333_v42 = vld [vmem:[%s8425_s21 + $0x3b0] sm:$0xff]  ;;  %v332_v44 = vld [vmem:[%s8425_s21 + $0x3a8] sm:$0xff] }
  0x81   :  { %390 = vmatprep.subr.mxu0 %v240_v21  ;;  %457 = vmatprep.subr.mxu1 %v342_v30  ;;  %v222_v45 = vld [vmem:[%s8425_s21 + $0x38] sm:$0xff]  ;;  %v221_v47 = vld [vmem:[%s8425_s21 + $0x30] sm:$0xff]  ;;  %v219_v49 = vld [vmem:[%s8425_s21 + $0x20] sm:$0xff] }
  0x82   :  { %391 = vmatpush1.msra.mxu0 %v239_v23  ;;  %458 = vmatpush1.msra.mxu1 %v341_v32  ;;  %v330_v46 = vld [vmem:[%s8425_s21 + $0x398] sm:$0xff]  ;;  %v329_v48 = vld [vmem:[%s8425_s21 + $0x390] sm:$0xff]  ;;  %v327_v50 = vld [vmem:[%s8425_s21 + $0x380] sm:$0xff] }
  0x83   :  { %392 = vmatprep.subr.mxu0 %v237_v25  ;;  %459 = vmatprep.subr.mxu1 %v339_v34  ;;  %v218_v51 = vld [vmem:[%s8425_s21 + $0x18] sm:$0xff]  ;;  %v216_v53 = vld [vmem:[%s8425_s21 + $0x8] sm:$0xff]  ;;  %v215_v55 = vld [vmem:[%s8425_s21] sm:$0xff] }
  0x84   :  { %393 = vmatpush1.msra.mxu0 %v236_v27  ;;  %460 = vmatpush1.msra.mxu1 %v338_v36  ;;  %v326_v52 = vld [vmem:[%s8425_s21 + $0x378] sm:$0xff]  ;;  %v324_v54 = vld [vmem:[%s8425_s21 + $0x368] sm:$0xff]  ;;  %v323_v56 = vld [vmem:[%s8425_s21 + $0x360] sm:$0xff] }
  0x85   :  { %394 = vmatprep.subr.mxu0 %v234_v29  ;;  %461 = vmatprep.subr.mxu1 %v336_v38  ;;  %v309_v57 = vld [vmem:[%s8425_s21 + $0x2f0] sm:$0xff]  ;;  %v308_v59 = vld [vmem:[%s8425_s21 + $0x2e8] sm:$0xff]  ;;  %v306_v61 = vld [vmem:[%s8425_s21 + $0x2d8] sm:$0xff] }
  0x86   :  { %395 = vmatpush1.msra.mxu0 %v233_v31  ;;  %462 = vmatpush1.msra.mxu1 %v335_v40  ;;  %v321_v58 = vld [vmem:[%s8425_s21 + $0x350] sm:$0xff]  ;;  %v320_v60 = vld [vmem:[%s8425_s21 + $0x348] sm:$0xff]  ;;  %v318_v62 = vld [vmem:[%s8425_s21 + $0x338] sm:$0xff] }
  0x87   :  { %396 = vmatprep.subr.mxu0 %v231_v33  ;;  %463 = vmatprep.subr.mxu1 %v333_v42  ;;  %v305_v63 = vld [vmem:[%s8425_s21 + $0x2d0] sm:$0xff]  ;;  %v303_v2 = vld [vmem:[%s8425_s21 + $0x2c0] sm:$0xff]  ;;  %v302_v4 = vld [vmem:[%s8425_s21 + $0x2b8] sm:$0xff] }
  0x88   :  { %397 = vmatpush1.msra.mxu0 %v230_v35  ;;  %464 = vmatpush1.msra.mxu1 %v332_v44  ;;  %v317_v1 = vld [vmem:[%s8425_s21 + $0x330] sm:$0xff]  ;;  %v315_v3 = vld [vmem:[%s8425_s21 + $0x320] sm:$0xff]  ;;  %v314_v5 = vld [vmem:[%s8425_s21 + $0x318] sm:$0xff] }
  0x89   :  { %398 = vmatprep.subr.mxu0 %v228_v37  ;;  %465 = vmatprep.subr.mxu1 %v330_v46  ;;  %v300_v6 = vld [vmem:[%s8425_s21 + $0x2a8] sm:$0xff]  ;;  %v299_v8 = vld [vmem:[%s8425_s21 + $0x2a0] sm:$0xff]  ;;  %v297_v10 = vld [vmem:[%s8425_s21 + $0x290] sm:$0xff] }
  0x8a   :  { %399 = vmatpush1.msra.mxu0 %v227_v39  ;;  %466 = vmatpush1.msra.mxu1 %v329_v48  ;;  %v312_v7 = vld [vmem:[%s8425_s21 + $0x308] sm:$0xff]  ;;  %v311_v9 = vld [vmem:[%s8425_s21 + $0x300] sm:$0xff]  ;;  %v310_v11 = vld [vmem:[%s8425_s21 + $0x2f8] sm:$0xff] }
  0x8b   :  { %400 = vmatprep.subr.mxu0 %v225_v41  ;;  %467 = vmatprep.subr.mxu1 %v327_v50  ;;  %v296_v12 = vld [vmem:[%s8425_s21 + $0x288] sm:$0xff]  ;;  %v8707_v13 = vld [vmem:[%s8405_s5 + $0x10] sm:$0xff]  ;;  %v294_v14 = vld [vmem:[%s8425_s21 + $0x278] sm:$0xff] }
  0x8c   :  { %401 = vmatpush1.msra.mxu0 %v224_v43  ;;  %468 = vmatpush1.msra.mxu1 %v326_v52  ;;  %v262_v15 = vld [vmem:[%s8425_s21 + $0x178] sm:$0xff]  ;;  %v293_v16 = vld [vmem:[%s8425_s21 + $0x270] sm:$0xff]  ;;  %v307_v17 = vld [vmem:[%s8425_s21 + $0x2e0] sm:$0xff] }
  0x8d   :  { %402 = vmatprep.subr.mxu0 %v222_v45  ;;  %469 = vmatprep.subr.mxu1 %v324_v54  ;;  %v291_v18 = vld [vmem:[%s8425_s21 + $0x260] sm:$0xff]  ;;  %v290_v20 = vld [vmem:[%s8425_s21 + $0x258] sm:$0xff]  ;;  %v304_v21 = vld [vmem:[%s8425_s21 + $0x2c8] sm:$0xff] }
  0x8e   :  { %403 = vmatpush1.msra.mxu0 %v221_v47  ;;  %470 = vmatpush1.msra.mxu1 %v323_v56  ;;  %v259_v19 = vld [vmem:[%s8425_s21 + $0x160] sm:$0xff]  ;;  %v288_v22 = vld [vmem:[%s8425_s21 + $0x248] sm:$0xff]  ;;  %v301_v25 = vld [vmem:[%s8425_s21 + $0x2b0] sm:$0xff] }
  0x8f   :  { %404 = vmatprep.subr.mxu0 %v219_v49  ;;  %471 = vmatprep.subr.mxu1 %v321_v58  ;;  %v256_v23 = vld [vmem:[%s8425_s21 + $0x148] sm:$0xff]  ;;  %v287_v24 = vld [vmem:[%s8425_s21 + $0x240] sm:$0xff]  ;;  %v285_v26 = vld [vmem:[%s8425_s21 + $0x230] sm:$0xff] }
  0x90   :  { %405 = vmatpush1.msra.mxu0 %v218_v51  ;;  %472 = vmatpush1.msra.mxu1 %v320_v60  ;;  %v8724_v27 = vld [vmem:[%s8405_s5 + $0x8] sm:$0xff]  ;;  %v253_v29 = vld [vmem:[%s8425_s21 + $0x130] sm:$0xff]  ;;  %v282_v30 = vld [vmem:[%s8425_s21 + $0x218] sm:$0xff] }
  0x91   :  { %406 = vmatprep.subr.mxu0 %v216_v53  ;;  %473 = vmatprep.subr.mxu1 %v318_v62  ;;  %v284_v28 = vld [vmem:[%s8425_s21 + $0x228] sm:$0xff]  ;;  %v298_v31 = vld [vmem:[%s8425_s21 + $0x298] sm:$0xff]  ;;  %v281_v32 = vld [vmem:[%s8425_s21 + $0x210] sm:$0xff] }
  0x92   :  { %407 = vmatpush1.msra.mxu0 %v215_v55  ;;  %474 = vmatpush1.msra.mxu1 %v317_v1  ;;  %v250_v33 = vld [vmem:[%s8425_s21 + $0x118] sm:$0xff]  ;;  %v279_v34 = vld [vmem:[%s8425_s21 + $0x200] sm:$0xff]  ;;  %v276_v38 = vld [vmem:[%s8425_s21 + $0x1e8] sm:$0xff] }
  0x93   :  { %408 = vmatprep.subr.mxu0 %v309_v57  ;;  %475 = vmatprep.subr.mxu1 %v315_v3  ;;  %v295_v35 = vld [vmem:[%s8425_s21 + $0x280] sm:$0xff]  ;;  %v278_v36 = vld [vmem:[%s8425_s21 + $0x1f8] sm:$0xff]  ;;  %v292_v39 = vld [vmem:[%s8425_s21 + $0x268] sm:$0xff] }
  0x94   :  { %409 = vmatpush2.msra.mxu0 %v308_v59  ;;  %476 = vmatpush1.msra.mxu1 %v314_v5  ;;  %v247_v37 = vld [vmem:[%s8425_s21 + $0x100] sm:$0xff]  ;;  %v244_v41 = vld [vmem:[%s8425_s21 + $0xe8] sm:$0xff]  ;;  %v273_v42 = vld [vmem:[%s8425_s21 + $0x1d0] sm:$0xff] }
  0x95   :  { %410 = vmatprep.subr.mxu0 %v306_v61  ;;  %477 = vmatprep.subr.mxu1 %v312_v7  ;;  %v275_v40 = vld [vmem:[%s8425_s21 + $0x1e0] sm:$0xff]  ;;  %v289_v43 = vld [vmem:[%s8425_s21 + $0x250] sm:$0xff]  ;;  %v272_v44 = vld [vmem:[%s8425_s21 + $0x1c8] sm:$0xff] }
  0x96   :  { %411 = vmatpush2.msra.mxu0 %v305_v63  ;;  %478 = vmatpush1.msra.mxu1 %v311_v9  ;;  %v241_v45 = vld [vmem:[%s8425_s21 + $0xd0] sm:$0xff]  ;;  %v270_v46 = vld [vmem:[%s8425_s21 + $0x1b8] sm:$0xff]  ;;  %v267_v50 = vld [vmem:[%s8425_s21 + $0x1a0] sm:$0xff] }
  0x97   :  { %412 = vmatprep.subr.mxu0 %v303_v2  ;;  %6715 = vmatprep.subr.mxu1 %v310_v11  ;;  %v286_v47 = vld [vmem:[%s8425_s21 + $0x238] sm:$0xff]  ;;  %v269_v48 = vld [vmem:[%s8425_s21 + $0x1b0] sm:$0xff]  ;;  %v283_v51 = vld [vmem:[%s8425_s21 + $0x220] sm:$0xff] }
  0x98   :  { %413 = vmatpush2.msra.mxu0 %v302_v4  ;;  %512 = vmatmul.mubr.f32.vlgmr.msra.gmra.mxu1 %v8707_v13  ;;  %v238_v49 = vld [vmem:[%s8425_s21 + $0xb8] sm:$0xff]  ;;  %v235_v53 = vld [vmem:[%s8425_s21 + $0xa0] sm:$0xff]  ;;  %v264_v54 = vld [vmem:[%s8425_s21 + $0x188] sm:$0xff] }
  0x99   :  { %414 = vmatprep.subr.mxu0 %v300_v6  ;;  %6716 = vmatpush3.msra.mxu1 %v262_v15  ;;  %v266_v52 = vld [vmem:[%s8425_s21 + $0x198] sm:$0xff]  ;;  %v280_v55 = vld [vmem:[%s8425_s21 + $0x208] sm:$0xff]  ;;  %v263_v56 = vld [vmem:[%s8425_s21 + $0x180] sm:$0xff] }
  0x9a   :  { %415 = vmatpush2.msra.mxu0 %v299_v8  ;;  %6717 = vmatprep.subr.mxu1 %v307_v17  ;;  %v232_v57 = vld [vmem:[%s8425_s21 + $0x88] sm:$0xff]  ;;  %v212_v58 = vld [vmem:[%s8405_s5] sm:$0xff]  ;;  %v358_v59 = vld [vmem:[%s8425_s21 + $0x478] sm:$0xff] }
  0x9b   :  { %416 = vmatprep.subr.mxu0 %v297_v10  ;;  %6718 = vmatpush3.msra.mxu1 %v259_v19  ;;  %v277_v60 = vld [vmem:[%s8425_s21 + $0x1f0] sm:$0xff]  ;;  %v355_v62 = vld [vmem:[%s8425_s21 + $0x460] sm:$0xff]  ;;  %v274_v63 = vld [vmem:[%s8425_s21 + $0x1d8] sm:$0xff] }
  0x9c   :  { %417 = vmatpush2.msra.mxu0 %v296_v12  ;;  %6719 = vmatprep.subr.mxu1 %v304_v21  ;;  %v229_v61 = vld [vmem:[%s8425_s21 + $0x70] sm:$0xff]  ;;  %v226_v1 = vld [vmem:[%s8425_s21 + $0x58] sm:$0xff]  ;;  %v352_v2 = vld [vmem:[%s8425_s21 + $0x448] sm:$0xff] }
  0x9d   :  { %418 = vmatprep.subr.mxu0 %v294_v14  ;;  %6720 = vmatpush3.msra.mxu1 %v256_v23  ;;  %v271_v3 = vld [vmem:[%s8425_s21 + $0x1c0] sm:$0xff]  ;;  %v349_v5 = vld [vmem:[%s8425_s21 + $0x430] sm:$0xff]  ;;  %v268_v6 = vld [vmem:[%s8425_s21 + $0x1a8] sm:$0xff] }
  0x9e   :  { %419 = vmatpush2.msra.mxu0 %v293_v16  ;;  %6721 = vmatprep.subr.mxu1 %v301_v25  ;;  %v223_v4 = vld [vmem:[%s8425_s21 + $0x40] sm:$0xff]  ;;  %v220_v7 = vld [vmem:[%s8425_s21 + $0x28] sm:$0xff]  ;;  %v346_v8 = vld [vmem:[%s8425_s21 + $0x418] sm:$0xff] }
  0x9f   :  { %420 = vmatprep.subr.mxu0 %v291_v18  ;;  %440 = vmatprep.mubr.f32.mxu0 %v8724_v27  ;;  %v265_v9 = vld [vmem:[%s8425_s21 + $0x190] sm:$0xff]  ;;  %v343_v11 = vld [vmem:[%s8425_s21 + $0x400] sm:$0xff]  ;;  %v340_v12 = vld [vmem:[%s8425_s21 + $0x3e8] sm:$0xff] }
  0xa0   :  { %421 = vmatpush2.msra.mxu0 %v290_v20  ;;  %6722 = vmatpush3.msra.mxu1 %v253_v29  ;;  %v217_v10 = vld [vmem:[%s8425_s21 + $0x10] sm:$0xff]  ;;  %v890_v16 = vld [vmem:[%s8450_s14 + $0x168] sm:$0xff]  ;;  %v888_v17 = vld [vmem:[%s8450_s14 + $0x158] sm:$0xff] }
  0xa1   :  { %422 = vmatprep.subr.mxu0 %v288_v22  ;;  %6723 = vmatprep.subr.mxu1 %v298_v31  ;;  %v891_v14 = vld [vmem:[%s8450_s14 + $0x170] sm:$0xff]  ;;  %v334_v18 = vld [vmem:[%s8425_s21 + $0x3b8] sm:$0xff]  ;;  %v885_v20 = vld [vmem:[%s8450_s14 + $0x140] sm:$0xff] }
  0xa2   :  { %423 = vmatpush2.msra.mxu0 %v287_v24  ;;  %6724 = vmatpush3.msra.mxu1 %v250_v33  ;;  %v337_v15 = vld [vmem:[%s8425_s21 + $0x3d0] sm:$0xff]  ;;  %v331_v21 = vld [vmem:[%s8425_s21 + $0x3a0] sm:$0xff]  ;;  %v884_v22 = vld [vmem:[%s8450_s14 + $0x138] sm:$0xff] }
  0xa3   :  { %424 = vmatprep.subr.mxu0 %v285_v26  ;;  %6725 = vmatprep.subr.mxu1 %v295_v35  ;;  %v887_v19 = vld [vmem:[%s8450_s14 + $0x150] sm:$0xff]  ;;  %v882_v23 = vld [vmem:[%s8450_s14 + $0x128] sm:$0xff]  ;;  %v881_v25 = vld [vmem:[%s8450_s14 + $0x120] sm:$0xff] }
  0xa4   :  { %425 = vmatpush2.msra.mxu0 %v284_v28  ;;  %6726 = vmatpush3.msra.mxu1 %v247_v37  ;;  %v328_v24 = vld [vmem:[%s8425_s21 + $0x388] sm:$0xff]  ;;  %v879_v26 = vld [vmem:[%s8450_s14 + $0x110] sm:$0xff]  ;;  %v876_v29 = vld [vmem:[%s8450_s14 + $0xf8] sm:$0xff] }
  0xa5   :  { %426 = vmatprep.subr.mxu0 %v282_v30  ;;  %6727 = vmatprep.subr.mxu1 %v292_v39  ;;  %v878_v28 = vld [vmem:[%s8450_s14 + $0x108] sm:$0xff]  ;;  %v322_v30 = vld [vmem:[%s8425_s21 + $0x358] sm:$0xff]  ;;  %v875_v31 = vld [vmem:[%s8450_s14 + $0xf0] sm:$0xff] }
  0xa6   :  { %427 = vmatpush2.msra.mxu0 %v281_v32  ;;  %6728 = vmatpush3.msra.mxu1 %v244_v41  ;;  %v873_v32 = vld [vmem:[%s8450_s14 + $0xe0] sm:$0xff]  ;;  %v870_v35 = vld [vmem:[%s8450_s14 + $0xc8] sm:$0xff]  ;;  %v313_v39 = vld [vmem:[%s8425_s21 + $0x310] sm:$0xff] }
  0xa7   :  { %428 = vmatprep.subr.mxu0 %v279_v34  ;;  %6729 = vmatprep.subr.mxu1 %v289_v43  ;;  %v319_v33 = vld [vmem:[%s8425_s21 + $0x340] sm:$0xff]  ;;  %v872_v34 = vld [vmem:[%s8450_s14 + $0xd8] sm:$0xff] }
  0xa8   :  { %429 = vmatpush2.msra.mxu0 %v278_v36  ;;  %6730 = vmatpush3.msra.mxu1 %v241_v45  ;;  %v316_v36 = vld [vmem:[%s8425_s21 + $0x328] sm:$0xff]  ;;  %v869_v37 = vld [vmem:[%s8450_s14 + $0xc0] sm:$0xff]  ;;  %v864_v41 = vld [vmem:[%s8450_s14 + $0x98] sm:$0xff] }
  0xa9   :  { %430 = vmatprep.subr.mxu0 %v276_v38  ;;  %6731 = vmatprep.subr.mxu1 %v286_v47  ;;  %v867_v38 = vld [vmem:[%s8450_s14 + $0xb0] sm:$0xff]  ;;  %v861_v43 = vld [vmem:[%s8450_s14 + $0x80] sm:$0xff]  ;;  %v858_v45 = vld [vmem:[%s8450_s14 + $0x68] sm:$0xff] }
  0xaa   :  { %431 = vmatpush2.msra.mxu0 %v275_v40  ;;  %6732 = vmatpush3.msra.mxu1 %v238_v49  ;;  %v866_v40 = vld [vmem:[%s8450_s14 + $0xa8] sm:$0xff]  ;;  %v855_v47 = vld [vmem:[%s8450_s14 + $0x50] sm:$0xff] }
  0xab   :  { %432 = vmatprep.subr.mxu0 %v273_v42  ;;  %6733 = vmatprep.subr.mxu1 %v283_v51  ;;  %v863_v42 = vld [vmem:[%s8450_s14 + $0x90] sm:$0xff]  ;;  %v848_v51 = vld [vmem:[%s8450_s14 + $0x18] sm:$0xff] }
  0xac   :  { %433 = vmatpush2.msra.mxu0 %v272_v44  ;;  %6734 = vmatpush3.msra.mxu1 %v235_v53  ;;  %v860_v44 = vld [vmem:[%s8450_s14 + $0x78] sm:$0xff]  ;;  %v851_v49 = vld [vmem:[%s8450_s14 + $0x30] sm:$0xff]  ;;  %v845_v53 = vld [vmem:[%s8450_s14] sm:$0xff] }
  0xad   :  { %434 = vmatprep.subr.mxu0 %v270_v46  ;;  %6735 = vmatprep.subr.mxu1 %v280_v55  ;;  %v857_v46 = vld [vmem:[%s8450_s14 + $0x60] sm:$0xff]  ;;  %v938_v55 = vld [vmem:[%s8450_s14 + $0x2e8] sm:$0xff] }
  0xae   :  { %435 = vmatpush2.msra.mxu0 %v269_v48  ;;  %6736 = vmatpush3.msra.mxu1 %v232_v57  ;;  %v854_v48 = vld [vmem:[%s8450_s14 + $0x48] sm:$0xff]  ;;  %v935_v57 = vld [vmem:[%s8450_s14 + $0x2d0] sm:$0xff] }
  0xaf   :  { %436 = vmatprep.subr.mxu0 %v267_v50  ;;  %6737 = vmatprep.subr.mxu1 %v277_v60  ;;  %v849_v50 = vld [vmem:[%s8450_s14 + $0x20] sm:$0xff]  ;;  %v930_v60 = vld [vmem:[%s8450_s14 + $0x2a8] sm:$0xff] }
  0xb0   :  { %437 = vmatpush2.msra.mxu0 %v266_v52  ;;  %6738 = vmatpush3.msra.mxu1 %v229_v61  ;;  %v846_v52 = vld [vmem:[%s8450_s14 + $0x8] sm:$0xff]  ;;  %v929_v61 = vld [vmem:[%s8450_s14 + $0x2a0] sm:$0xff] }
  0xb1   :  { %438 = vmatprep.subr.mxu0 %v264_v54  ;;  %6739 = vmatprep.subr.mxu1 %v274_v63  ;;  %v939_v54 = vld [vmem:[%s8450_s14 + $0x2f0] sm:$0xff]  ;;  %v926_v63 = vld [vmem:[%s8450_s14 + $0x288] sm:$0xff] }
  0xb2   :  { %439 = vmatpush2.msra.mxu0 %v263_v56  ;;  %6740 = vmatpush3.msra.mxu1 %v226_v1  ;;  %v936_v56 = vld [vmem:[%s8450_s14 + $0x2d8] sm:$0xff] }
  0xb3   :  { %441 = vmatmul.mubr.f32.vlgmr.msra.gmra.mxu0 %v212_v58  ;;  %7581 = vmatprep.subr.mxu0 %v8395_v0  ;;  %v924_v1 = vld [vmem:[%s8450_s14 + $0x278] sm:$0xff] }
  0xb4   :  { %7582 = vmatpush3.msra.mxu0 %v358_v59  ;;  %6741 = vmatprep.subr.mxu1 %v271_v3  ;;  %v932_v59 = vld [vmem:[%s8450_s14 + $0x2b8] sm:$0xff]  ;;  %v921_v3 = vld [vmem:[%s8450_s14 + $0x260] sm:$0xff] }
  0xb5   :  { %7583 = vmatprep.subr.mxu0 %v8395_v0  ;;  %6742 = vmatpush3.msra.mxu1 %v223_v4  ;;  %v920_v4 = vld [vmem:[%s8450_s14 + $0x258] sm:$0xff] }
  0xb6   :  { %7584 = vmatpush3.msra.mxu0 %v355_v62  ;;  %6743 = vmatprep.subr.mxu1 %v268_v6  ;;  %v927_v62 = vld [vmem:[%s8450_s14 + $0x290] sm:$0xff]  ;;  %v917_v6 = vld [vmem:[%s8450_s14 + $0x240] sm:$0xff] }
  0xb7   :  { %7585 = vmatprep.subr.mxu0 %v8395_v0  ;;  %6744 = vmatpush3.msra.mxu1 %v220_v7  ;;  %v915_v7 = vld [vmem:[%s8450_s14 + $0x230] sm:$0xff] }
  0xb8   :  { %7586 = vmatpush3.msra.mxu0 %v352_v2  ;;  %6745 = vmatprep.subr.mxu1 %v265_v9  ;;  %v923_v2 = vld [vmem:[%s8450_s14 + $0x270] sm:$0xff]  ;;  %v912_v9 = vld [vmem:[%s8450_s14 + $0x218] sm:$0xff] }
  0xb9   :  { %7587 = vmatprep.subr.mxu0 %v8395_v0  ;;  %6746 = vmatpush3.msra.mxu1 %v217_v10  ;;  %v911_v10 = vld [vmem:[%s8450_s14 + $0x210] sm:$0xff] }
  0xba   :  { %7588 = vmatpush3.msra.mxu0 %v349_v5  ;;  %582 = vmatprep.mubr.f32.mxu1 %v8724_v27  ;;  %v325_v27 = vld [vmem:[%s8425_s21 + $0x370] sm:$0xff]  ;;  %v918_v5 = vld [vmem:[%s8450_s14 + $0x248] sm:$0xff]  ;;  %s11198_s21 = sld [smem:[#allocation9_spill]] }
  0xbb   :  { %7589 = vmatprep.subr.mxu0 %v8395_v0  ;;  %583 = vmatmul.mubr.f32.vlgmr.msra.gmra.mxu1 %v212_v58  ;;  %v933_v58 = vld [vmem:[%s8450_s14 + $0x2c0] sm:$0xff] }
  0xbc   :  { %7590 = vmatpush3.msra.mxu0 %v346_v8  ;;  %7613 = vmatprep.mubr.msk.f32.mxu0 %vm8396_vm0, %v8395_v0  ;;  %v914_v8 = vld [vmem:[%s8450_s14 + $0x228] sm:$0xff] }
  0xbd   :  { %7591 = vmatprep.subr.mxu0 %v8395_v0  ;;  %989 = vmatprep.subr.mxu1 %v891_v14  ;;  %v906_v14 = vld [vmem:[%s8450_s14 + $0x1e8] sm:$0xff] }
  0xbe   :  { %7592 = vmatpush3.msra.mxu0 %v343_v11  ;;  %990 = vmatpush1.msra.mxu1 %v890_v16  ;;  %v909_v11 = vld [vmem:[%s8450_s14 + $0x200] sm:$0xff]  ;;  %v903_v16 = vld [vmem:[%s8450_s14 + $0x1d0] sm:$0xff] }
  0xbf   :  { %7593 = vmatprep.subr.mxu0 %v8395_v0  ;;  %991 = vmatprep.subr.mxu1 %v888_v17  ;;  %v902_v17 = vld [vmem:[%s8450_s14 + $0x1c8] sm:$0xff] }
  0xc0   :  { %7594 = vmatpush3.msra.mxu0 %v340_v12  ;;  %992 = vmatpush1.msra.mxu1 %v887_v19  ;;  %v908_v12 = vld [vmem:[%s8450_s14 + $0x1f8] sm:$0xff]  ;;  %v899_v19 = vld [vmem:[%s8450_s14 + $0x1b0] sm:$0xff] }
  0xc1   :  { %7595 = vmatprep.subr.mxu0 %v8395_v0  ;;  %993 = vmatprep.subr.mxu1 %v885_v20  ;;  %v987_v20 = vld [vmem:[%s8450_s14 + $0x470] sm:$0xff] }
  0xc2   :  { %7596 = vmatpush3.msra.mxu0 %v337_v15  ;;  %994 = vmatpush1.msra.mxu1 %v884_v22  ;;  %v905_v15 = vld [vmem:[%s8450_s14 + $0x1e0] sm:$0xff]  ;;  %v986_v22 = vld [vmem:[%s8450_s14 + $0x468] sm:$0xff] }
  0xc3   :  { %7597 = vmatprep.subr.mxu0 %v8395_v0  ;;  %995 = vmatprep.subr.mxu1 %v882_v23  ;;  %v896_v23 = vld [vmem:[%s8450_s14 + $0x198] sm:$0xff] }
  0xc4   :  { %7598 = vmatpush3.msra.mxu0 %v334_v18  ;;  %996 = vmatpush1.msra.mxu1 %v881_v25  ;;  %v900_v18 = vld [vmem:[%s8450_s14 + $0x1b8] sm:$0xff]  ;;  %v894_v25 = vld [vmem:[%s8450_s14 + $0x188] sm:$0xff] }
  0xc5   :  { %7599 = vmatprep.subr.mxu0 %v8395_v0  ;;  %997 = vmatprep.subr.mxu1 %v879_v26  ;;  %v983_v26 = vld [vmem:[%s8450_s14 + $0x450] sm:$0xff] }
  0xc6   :  { %7600 = vmatpush3.msra.mxu0 %v331_v21  ;;  %998 = vmatpush1.msra.mxu1 %v878_v28  ;;  %v897_v21 = vld [vmem:[%s8450_s14 + $0x1a0] sm:$0xff] }
  0xc7   :  { %7601 = vmatprep.subr.mxu0 %v8395_v0  ;;  %999 = vmatprep.subr.mxu1 %v876_v29  ;;  %v981_v28 = vld [vmem:[%s8450_s14 + $0x440] sm:$0xff]  ;;  %v980_v29 = vld [vmem:[%s8450_s14 + $0x438] sm:$0xff] }
  0xc8   :  { %7602 = vmatpush3.msra.mxu0 %v328_v24  ;;  %1000 = vmatpush1.msra.mxu1 %v875_v31  ;;  %v984_v24 = vld [vmem:[%s8450_s14 + $0x458] sm:$0xff]  ;;  %v977_v31 = vld [vmem:[%s8450_s14 + $0x420] sm:$0xff] }
  0xc9   :  { %7603 = vmatprep.subr.mxu0 %v8395_v0  ;;  %1001 = vmatprep.subr.mxu1 %v873_v32  ;;  %v975_v32 = vld [vmem:[%s8450_s14 + $0x410] sm:$0xff] }
  0xca   :  { %7604 = vmatpush3.msra.mxu0 %v325_v27  ;;  %1002 = vmatpush1.msra.mxu1 %v872_v34  ;;  %v893_v27 = vld [vmem:[%s8450_s14 + $0x180] sm:$0xff]  ;;  %v972_v34 = vld [vmem:[%s8450_s14 + $0x3f8] sm:$0xff] }
  0xcb   :  { %7605 = vmatprep.subr.mxu0 %v8395_v0  ;;  %1003 = vmatprep.subr.mxu1 %v870_v35  ;;  %v971_v35 = vld [vmem:[%s8450_s14 + $0x3f0] sm:$0xff] }
  0xcc   :  { %7606 = vmatpush3.msra.mxu0 %v322_v30  ;;  %1004 = vmatpush1.msra.mxu1 %v869_v37  ;;  %v978_v30 = vld [vmem:[%s8450_s14 + $0x428] sm:$0xff]  ;;  %v968_v37 = vld [vmem:[%s8450_s14 + $0x3d8] sm:$0xff] }
  0xcd   :  { %7607 = vmatprep.subr.mxu0 %v8395_v0  ;;  %1005 = vmatprep.subr.mxu1 %v867_v38  ;;  %v966_v38 = vld [vmem:[%s8450_s14 + $0x3c8] sm:$0xff] }
  0xce   :  { %7608 = vmatpush3.msra.mxu0 %v319_v33  ;;  %1006 = vmatpush1.msra.mxu1 %v866_v40  ;;  %v974_v33 = vld [vmem:[%s8450_s14 + $0x408] sm:$0xff]  ;;  %v963_v40 = vld [vmem:[%s8450_s14 + $0x3b0] sm:$0xff] }
  0xcf   :  { %7609 = vmatprep.subr.mxu0 %v8395_v0  ;;  %1007 = vmatprep.subr.mxu1 %v864_v41  ;;  %v962_v41 = vld [vmem:[%s8450_s14 + $0x3a8] sm:$0xff] }
  0xd0   :  { %7610 = vmatpush3.msra.mxu0 %v316_v36  ;;  %1008 = vmatpush1.msra.mxu1 %v863_v42  ;;  %v969_v36 = vld [vmem:[%s8450_s14 + $0x3e0] sm:$0xff]  ;;  %v960_v42 = vld [vmem:[%s8450_s14 + $0x398] sm:$0xff] }
  0xd1   :  { %7611 = vmatprep.subr.mxu0 %v8395_v0  ;;  %1009 = vmatprep.subr.mxu1 %v861_v43  ;;  %v959_v43 = vld [vmem:[%s8450_s14 + $0x390] sm:$0xff] }
  0xd2   :  { %7612 = vmatpush3.msra.mxu0 %v313_v39  ;;  %1010 = vmatpush1.msra.mxu1 %v860_v44  ;;  %v965_v39 = vld [vmem:[%s8450_s14 + $0x3c0] sm:$0xff] }
  0xd3   :  { %7614 = vmatmul.mubr.f32.vlgmr.msra.gmra.mxu0 %v8707_v13  ;;  %1011 = vmatprep.subr.mxu1 %v858_v45  ;;  %v852_v13 = vld [vmem:[%s8450_s14 + $0x38] sm:$0xff]  ;;  %v957_v44 = vld [vmem:[%s8450_s14 + $0x380] sm:$0xff] }
  0xd4   :  { %1124 = vmatprep.mubr.f32.mxu0 %v8395_v0  ;;  %1012 = vmatpush1.msra.mxu1 %v857_v46  ;;  %v956_v45 = vld [vmem:[%s8450_s14 + $0x378] sm:$0xff]  ;;  %v954_v46 = vld [vmem:[%s8450_s14 + $0x368] sm:$0xff] }
  0xd5   :  { %1013 = vmatprep.subr.mxu1 %v855_v47  ;;  %1060 = vmatprep.subr.mxu0 %v987_v20  ;;  %v953_v47 = vld [vmem:[%s8450_s14 + $0x360] sm:$0xff] }
  0xd6   :  { %1014 = vmatpush1.msra.mxu1 %v854_v48  ;;  %1061 = vmatpush1.msra.mxu0 %v986_v22  ;;  %v951_v48 = vld [vmem:[%s8450_s14 + $0x350] sm:$0xff]  ;;  %v985_v22 = vld [vmem:[%s8450_s14 + $0x460] sm:$0xff] }
  0xd7   :  { %1015 = vmatprep.subr.mxu1 %v852_v13  ;;  %1062 = vmatprep.subr.mxu0 %v984_v24  ;;  %v950_v13 = vld [vmem:[%s8450_s14 + $0x348] sm:$0xff]  ;;  %v979_v24 = vld [vmem:[%s8450_s14 + $0x430] sm:$0xff] }
  0xd8   :  { %1016 = vmatpush1.msra.mxu1 %v851_v49  ;;  %1063 = vmatpush1.msra.mxu0 %v983_v26  ;;  %v948_v49 = vld [vmem:[%s8450_s14 + $0x338] sm:$0xff] }
  0xd9   :  { %1017 = vmatprep.subr.mxu1 %v849_v50  ;;  %1064 = vmatprep.subr.mxu0 %v981_v28  ;;  %v947_v50 = vld [vmem:[%s8450_s14 + $0x330] sm:$0xff] }
  0xda   :  { %1018 = vmatpush1.msra.mxu1 %v848_v51  ;;  %1065 = vmatpush1.msra.mxu0 %v980_v29  ;;  %v945_v51 = vld [vmem:[%s8450_s14 + $0x320] sm:$0xff] }
  0xdb   :  { %1019 = vmatprep.subr.mxu1 %v846_v52  ;;  %1066 = vmatprep.subr.mxu0 %v978_v30  ;;  %v944_v52 = vld [vmem:[%s8450_s14 + $0x318] sm:$0xff]  ;;  %v970_v30 = vld [vmem:[%s8450_s14 + $0x3e8] sm:$0xff] }
  0xdc   :  { %1020 = vmatpush1.msra.mxu1 %v845_v53  ;;  %1067 = vmatpush1.msra.mxu0 %v977_v31  ;;  %v942_v53 = vld [vmem:[%s8450_s14 + $0x308] sm:$0xff]  ;;  %v967_v31 = vld [vmem:[%s8450_s14 + $0x3d0] sm:$0xff] }
  0xdd   :  { %1021 = vmatprep.subr.mxu1 %v939_v54  ;;  %1068 = vmatprep.subr.mxu0 %v975_v32  ;;  %v941_v54 = vld [vmem:[%s8450_s14 + $0x300] sm:$0xff] }
  0xde   :  { %1022 = vmatpush2.msra.mxu1 %v938_v55  ;;  %1069 = vmatpush1.msra.mxu0 %v974_v33  ;;  %v940_v55 = vld [vmem:[%s8450_s14 + $0x2f8] sm:$0xff] }
  0xdf   :  { %1023 = vmatprep.subr.mxu1 %v936_v56  ;;  %1070 = vmatprep.subr.mxu0 %v972_v34  ;;  %v361_v56 = vlaneseq  ;;  %v964_v34 = vld [vmem:[%s8450_s14 + $0x3b8] sm:$0xff] }
  0xe0   :  { %1024 = vmatpush2.msra.mxu1 %v935_v57  ;;  %1071 = vmatpush1.msra.mxu0 %v971_v35  ;;  %v961_v35 = vld [vmem:[%s8450_s14 + $0x3a0] sm:$0xff] }
  0xe1   :  { %1025 = vmatprep.subr.mxu1 %v933_v58  ;;  %1072 = vmatprep.subr.mxu0 %v969_v36  ;;  %v362_v57 = vshrl.u32 %v361_v56, 7  ;;  %v931_v56 = vld [vmem:[%s8450_s14 + $0x2b0] sm:$0xff] }
  0xe2   :  { %1026 = vmatpush2.msra.mxu1 %v932_v59  ;;  %1073 = vmatpush1.msra.mxu0 %v968_v37  ;;  %v359_v59 = vld [vmem:[%s8410_s9] sm:$0x7]  ;;  %s11195_s9 = sld [smem:[#allocation12_spill]] }
  0xe3   :  { %1027 = vmatprep.subr.mxu1 %v930_v60  ;;  %1074 = vmatprep.subr.mxu0 %v966_v38  ;;  %v8903_v58 = vsub.s32 0, %v362_v57  ;;  %v8906_v60 = vsub.s32 1, %v362_v57  ;;  %v8942_v28 = vsub.s32 2, %v362_v57  ;;  %v958_v38 = vld [vmem:[%s8450_s14 + $0x388] sm:$0xff] }
  0xe4   :  { %1028 = vmatpush2.msra.mxu1 %v929_v61  ;;  %1075 = vmatpush1.msra.mxu0 %v965_v39  ;;  %v842_v57 = vld [vmem:[%s8445_s8 + $0x468] sm:$0xff] }
  0xe5   :  { %1029 = vmatprep.subr.mxu1 %v927_v62  ;;  %1076 = vmatprep.subr.mxu0 %v963_v40  ;;  %v364_v61 = vrot.slane %v359_v59, %v8903_v58  ;;  %v368_v62 = vrot.slane %v359_v59, %v8906_v60  ;;  %v372_v33 = vrot.slane %v359_v59, %v8942_v28  ;;  %v883_v59 = vld [vmem:[%s8450_s14 + $0x130] sm:$0xff] }
  0xe6   :  { %1030 = vmatpush2.msra.mxu1 %v926_v63  ;;  %1077 = vmatpush1.msra.mxu0 %v962_v41 }
  0xe7   :  { %1031 = vmatprep.subr.mxu1 %v924_v1  ;;  %1078 = vmatprep.subr.mxu0 %v960_v42  ;;  %v955_v42 = vld [vmem:[%s8450_s14 + $0x370] sm:$0xff] }
  0xe8   :  { %1032 = vmatpush2.msra.mxu1 %v923_v2  ;;  %1079 = vmatpush1.msra.mxu0 %v959_v43 }
  0xe9   :  { %1033 = vmatprep.subr.mxu1 %v921_v3  ;;  %1080 = vmatprep.subr.mxu0 %v957_v44  ;;  %v8911_v3 = vld [vmem:[%s8415_s13] sm:$0x7]  ;;  %s11196_s13 = sld [smem:[#allocation15_spill]] }
  0xea   :  { %1034 = vmatpush2.msra.mxu1 %v920_v4  ;;  %1081 = vmatpush1.msra.mxu0 %v956_v45  ;;  %v674_v40 = vrot.slane %v8911_v3, %v8942_v28  ;;  %v952_v45 = vld [vmem:[%s8450_s14 + $0x358] sm:$0xff] }
  0xeb   :  { %1035 = vmatprep.subr.mxu1 %v918_v5  ;;  %1082 = vmatprep.subr.mxu0 %v954_v46 }
  0xec   :  { %1036 = vmatpush2.msra.mxu1 %v917_v6  ;;  %1083 = vmatpush1.msra.mxu0 %v953_v47  ;;  %v949_v47 = vld [vmem:[%s8450_s14 + $0x340] sm:$0xff] }
  0xed   :  { %1037 = vmatprep.subr.mxu1 %v915_v7  ;;  %1084 = vmatprep.subr.mxu0 %v951_v48 }
  0xee   :  { %1038 = vmatpush2.msra.mxu1 %v914_v8  ;;  %1085 = vmatpush1.msra.mxu0 %v950_v13  ;;  %v666_v8 = vrot.slane %v8911_v3, %v8903_v58  ;;  %v892_v13 = vld [vmem:[%s8450_s14 + $0x178] sm:$0xff] }
  0xef   :  { %1039 = vmatprep.subr.mxu1 %v912_v9  ;;  %1086 = vmatprep.subr.mxu0 %v948_v49  ;;  %v937_v49 = vld [vmem:[%s8450_s14 + $0x2e0] sm:$0xff] }
  0xf0   :  { %1040 = vmatpush2.msra.mxu1 %v911_v10  ;;  %1087 = vmatpush1.msra.mxu0 %v947_v50  ;;  %v8916_v10 = vld [vmem:[%s8420_s17] sm:$0x7]  ;;  %v946_v50 = vld [vmem:[%s8450_s14 + $0x328] sm:$0xff]  ;;  %s11197_s17 = sld [smem:[#allocation14_spill]] }
  0xf1   :  { %1041 = vmatprep.subr.mxu1 %v909_v11  ;;  %1088 = vmatprep.subr.mxu0 %v945_v51  ;;  %v694_v44 = vrot.slane %v8916_v10, %v8942_v28  ;;  %v889_v51 = vld [vmem:[%s8450_s14 + $0x160] sm:$0xff] }
  0xf2   :  { %1042 = vmatpush2.msra.mxu1 %v908_v12  ;;  %1089 = vmatpush1.msra.mxu0 %v944_v52  ;;  %v670_v12 = vrot.slane %v8911_v3, %v8906_v60  ;;  %v934_v52 = vld [vmem:[%s8450_s14 + $0x2c8] sm:$0xff]  ;;  %v925_v3 = vld [vmem:[%s8450_s14 + $0x280] sm:$0xff] }
  0xf3   :  { %1043 = vmatprep.subr.mxu1 %v906_v14  ;;  %1090 = vmatprep.subr.mxu0 %v942_v53  ;;  %v943_v53 = vld [vmem:[%s8450_s14 + $0x310] sm:$0xff] }
  0xf4   :  { %1044 = vmatpush2.msra.mxu1 %v905_v15  ;;  %1091 = vmatpush1.msra.mxu0 %v941_v54  ;;  %v690_v15 = vrot.slane %v8916_v10, %v8906_v60  ;;  %v886_v54 = vld [vmem:[%s8450_s14 + $0x148] sm:$0xff] }
  0xf5   :  { %1045 = vmatprep.subr.mxu1 %v903_v16  ;;  %6767 = vmatprep.subr.mxu0 %v940_v55  ;;  %v843_v55 = vld [vmem:[%s8445_s8 + $0x470] sm:$0xff] }
  0xf6   :  { %1046 = vmatpush2.msra.mxu1 %v902_v17  ;;  %v686_v17 = vrot.slane %v8916_v10, %v8903_v58  ;;  %v831_v10 = vld [vmem:[%s8445_s8 + $0x410] sm:$0xff] }
  0xf7   :  { %1047 = vmatprep.subr.mxu1 %v900_v18 }
  0xf8   :  { %1048 = vmatpush2.msra.mxu1 %v899_v19 }
  0xf9   :  { %1049 = vmatprep.subr.mxu1 %v897_v21  ;;  %v988_v21 = vld [vmem:[%s8450_s14 + $0x478] sm:$0xff] }
  0xfa   :  { %1050 = vmatpush2.msra.mxu1 %v896_v23  ;;  %v982_v23 = vld [vmem:[%s8450_s14 + $0x448] sm:$0xff] }
  0xfb   :  { %1051 = vmatprep.subr.mxu1 %v894_v25  ;;  %v976_v25 = vld [vmem:[%s8450_s14 + $0x418] sm:$0xff] }
  0xfc   :  { %1052 = vmatpush2.msra.mxu1 %v893_v27  ;;  %v973_v27 = vld [vmem:[%s8450_s14 + $0x400] sm:$0xff] }
  0xfd   :  { %7616 = vmatprep.subr.mxu1 %v8395_v0 }
 0x158   :  { %v513_v63 = vpop.f32.mrf.mxu1 }
 0x15a   :  { %v515_v7 = vpop.f32.mrf.mxu1 }
 0x173   :  { %v442_v1 = vpop.f32.mrf.mxu0 }
 0x174   :  { %v443_v2 = vadd.f32 %v442_v1, %v364_v61  ;;  %v840_v61 = vld [vmem:[%s8445_s8 + $0x458] sm:$0xff] }
 0x175   :  { %v444_v4 = vpop.f32.mrf.mxu0  ;;  %v880_v1 = vld [vmem:[%s8450_s14 + $0x118] sm:$0xff] }
 0x176   :  { %v514_v5 = vadd.f32 %v513_v63, %v443_v2  ;;  %v445_v6 = vadd.f32 %v444_v4, %v368_v62  ;;  %v928_v62 = vld [vmem:[%s8450_s14 + $0x298] sm:$0xff]  ;;  %v839_v63 = vld [vmem:[%s8445_s8 + $0x450] sm:$0xff]  ;;  %v837_v2 = vld [vmem:[%s8445_s8 + $0x440] sm:$0xff] }
 0x177   :  { %v836_v4 = vld [vmem:[%s8445_s8 + $0x438] sm:$0xff] }
 0x178   :  { %v658_v9 = vmax.f32 %v514_v5, 0.0  ;;  %v516_v11 = vadd.f32 %v515_v7, %v445_v6  ;;  %v877_v5 = vld [vmem:[%s8450_s14 + $0x100] sm:$0xff]  ;;  %v834_v6 = vld [vmem:[%s8445_s8 + $0x428] sm:$0xff] }
 0x179   :  { %v922_v7 = vld [vmem:[%s8450_s14 + $0x268] sm:$0xff] }
 0x17a   :  { %v659_v14 = vmax.f32 %v516_v11, 0.0  ;;  %v678_v16 = vmul.f32 %v666_v8, %v658_v9  ;;  %v833_v8 = vld [vmem:[%s8445_s8 + $0x420] sm:$0xff]  ;;  %v874_v9 = vld [vmem:[%s8450_s14 + $0xe8] sm:$0xff]  ;;  %v919_v11 = vld [vmem:[%s8450_s14 + $0x250] sm:$0xff] }
 0x17b   :  { %v6747_v26 = vpop.f32.mrf.mxu1 }
 0x17c   :  { %v679_v18 = vmul.f32 %v670_v12, %v659_v14  ;;  %v8926_v20 = vadd.f32 %v686_v17, %v678_v16  ;;  %v830_v12 = vld [vmem:[%s8445_s8 + $0x408] sm:$0xff]  ;;  %v871_v14 = vld [vmem:[%s8450_s14 + $0xd0] sm:$0xff]  ;;  %v916_v16 = vld [vmem:[%s8450_s14 + $0x238] sm:$0xff] }
 0x17d   :  { %v6748_v29 = vpop.f32.mrf.mxu1  ;;  %v827_v17 = vld [vmem:[%s8445_s8 + $0x3f0] sm:$0xff] }
 0x17e   :  { %v8924_v19 = vadd.f32 %v690_v15, %v679_v18  ;;  %v6749_v32 = vadd.f32 %v6748_v29, %v6747_v26  ;;  %v828_v15 = vld [vmem:[%s8445_s8 + $0x3f8] sm:$0xff]  ;;  %v910_v26 = vld [vmem:[%s8450_s14 + $0x208] sm:$0xff] }
 0x17f   :  { %v868_v18 = vld [vmem:[%s8450_s14 + $0xb8] sm:$0xff]  ;;  %v862_v29 = vld [vmem:[%s8450_s14 + $0x88] sm:$0xff] }
 0x180   :  { %1053 = vmatprep.mubr.f32.mxu1 %v8924_v19  ;;  %v585_v36 = vadd.f32 %v6749_v32, %v372_v33  ;;  %v818_v32 = vld [vmem:[%s8445_s8 + $0x3a8] sm:$0xff]  ;;  %v859_v33 = vld [vmem:[%s8450_s14 + $0x70] sm:$0xff] }
 0x181   :  { %1054 = vmatmul.mubr.f32.vlgmr.msra.gmra.mxu1 %v8926_v20 }
 0x182   :  { %7617 = vmatpush3.msra.mxu1 %v988_v21  ;;  %7648 = vmatprep.mubr.msk.f32.mxu1 %vm8396_vm0, %v8395_v0  ;;  %v825_v21 = vld [vmem:[%s8445_s8 + $0x3e0] sm:$0xff] }
 0x183   :  { %7618 = vmatprep.subr.mxu1 %v8395_v0 }
 0x184   :  { %7619 = vmatpush3.msra.mxu1 %v985_v22  ;;  %v913_v22 = vld [vmem:[%s8450_s14 + $0x220] sm:$0xff] }
 0x185   :  { %7620 = vmatprep.subr.mxu1 %v8395_v0 }
 0x186   :  { %7621 = vmatpush3.msra.mxu1 %v982_v23  ;;  %v824_v23 = vld [vmem:[%s8445_s8 + $0x3d8] sm:$0xff] }
 0x187   :  { %7622 = vmatprep.subr.mxu1 %v8395_v0 }
 0x188   :  { %7623 = vmatpush3.msra.mxu1 %v979_v24  ;;  %v865_v24 = vld [vmem:[%s8450_s14 + $0xa0] sm:$0xff] }
 0x189   :  { %7624 = vmatprep.subr.mxu1 %v8395_v0 }
 0x18a   :  { %7625 = vmatpush3.msra.mxu1 %v976_v25  ;;  %v822_v25 = vld [vmem:[%s8445_s8 + $0x3c8] sm:$0xff] }
 0x18b   :  { %7626 = vmatprep.subr.mxu1 %v8395_v0 }
 0x18c   :  { %7627 = vmatpush3.msra.mxu1 %v973_v27  ;;  %v821_v27 = vld [vmem:[%s8445_s8 + $0x3c0] sm:$0xff] }
 0x18d   :  { %7628 = vmatprep.subr.mxu1 %v8395_v0 }
 0x18e   :  { %7629 = vmatpush3.msra.mxu1 %v970_v30  ;;  %v819_v30 = vld [vmem:[%s8445_s8 + $0x3b0] sm:$0xff] }
 0x18f   :  { %7630 = vmatprep.subr.mxu1 %v8395_v0 }
 0x190   :  { %7631 = vmatpush3.msra.mxu1 %v967_v31  ;;  %v907_v31 = vld [vmem:[%s8450_s14 + $0x1f0] sm:$0xff] }
 0x191   :  { %7632 = vmatprep.subr.mxu1 %v8395_v0 }
 0x192   :  { %7633 = vmatpush3.msra.mxu1 %v964_v34  ;;  %v816_v34 = vld [vmem:[%s8445_s8 + $0x398] sm:$0xff] }
 0x193   :  { %7634 = vmatprep.subr.mxu1 %v8395_v0  ;;  %v654_v37 = vpop.f32.mrf.mxu0 }
 0x194   :  { %v655_v39 = vadd.f32 %v654_v37, %v585_v36  ;;  %7635 = vmatpush3.msra.mxu1 %v961_v35  ;;  %v904_v35 = vld [vmem:[%s8450_s14 + $0x1d8] sm:$0xff]  ;;  %v815_v36 = vld [vmem:[%s8445_s8 + $0x390] sm:$0xff] }
 0x195   :  { %7636 = vmatprep.subr.mxu1 %v8395_v0  ;;  %v7615_v41 = vpop.f32.mrf.mxu0  ;;  %v856_v37 = vld [vmem:[%s8450_s14 + $0x58] sm:$0xff] }
 0x196   :  { %v660_v43 = vmax.f32 %v655_v39, 0.0  ;;  %7637 = vmatpush3.msra.mxu1 %v958_v38  ;;  %v813_v38 = vld [vmem:[%s8445_s8 + $0x380] sm:$0xff] }
 0x197   :  { %7638 = vmatprep.subr.mxu1 %v8395_v0  ;;  %v901_v39 = vld [vmem:[%s8450_s14 + $0x1c0] sm:$0xff] }
 0x198   :  { %v680_v46 = vmul.f32 %v674_v40, %v660_v43  ;;  %7639 = vmatpush3.msra.mxu1 %v955_v42  ;;  %v812_v40 = vld [vmem:[%s8445_s8 + $0x378] sm:$0xff]  ;;  %v853_v41 = vld [vmem:[%s8450_s14 + $0x40] sm:$0xff]  ;;  %v810_v42 = vld [vmem:[%s8445_s8 + $0x368] sm:$0xff] }
 0x199   :  { %7640 = vmatprep.subr.mxu1 %v8395_v0  ;;  %v898_v43 = vld [vmem:[%s8450_s14 + $0x1a8] sm:$0xff] }
 0x19a   :  { %v8965_v48 = vadd.f32 %v694_v44, %v680_v46  ;;  %7641 = vmatpush3.msra.mxu1 %v952_v45  ;;  %v809_v44 = vld [vmem:[%s8445_s8 + $0x360] sm:$0xff]  ;;  %v850_v45 = vld [vmem:[%s8450_s14 + $0x28] sm:$0xff]  ;;  %v807_v46 = vld [vmem:[%s8445_s8 + $0x350] sm:$0xff] }
 0x19b   :  { %7642 = vmatprep.subr.mxu1 %v8395_v0 }
 0x19c   :  { %7643 = vmatpush3.msra.mxu1 %v949_v47  ;;  %1125 = vmatmul.mubr.f32.vlgmr.msra.gmra.mxu0 %v8965_v48  ;;  %v895_v47 = vld [vmem:[%s8450_s14 + $0x190] sm:$0xff] }
 0x19d   :  { %6768 = vmatpush3.msra.mxu0 %v892_v13  ;;  %7644 = vmatprep.subr.mxu1 %v8395_v0  ;;  %v806_v13 = vld [vmem:[%s8445_s8 + $0x348] sm:$0xff] }
 0x19e   :  { %6769 = vmatprep.subr.mxu0 %v937_v49  ;;  %1195 = vmatprep.mubr.f32.mxu0 %v8924_v19  ;;  %v847_v49 = vld [vmem:[%s8450_s14 + $0x10] sm:$0xff]  ;;  %s11203_s14 = sld [smem:[#allocation31_spill]] }
 0x19f   :  { %7645 = vmatpush3.msra.mxu1 %v946_v50  ;;  %6770 = vmatpush3.msra.mxu0 %v889_v51  ;;  %v804_v50 = vld [vmem:[%s8445_s8 + $0x338] sm:$0xff]  ;;  %v747_v51 = vld [vmem:[%s8445_s8 + $0x170] sm:$0xff] }
 0x1a0   :  { %7646 = vmatprep.subr.mxu1 %v8395_v0  ;;  %6771 = vmatprep.subr.mxu0 %v934_v52  ;;  %v803_v52 = vld [vmem:[%s8445_s8 + $0x330] sm:$0xff] }
 0x1a1   :  { %7647 = vmatpush3.msra.mxu1 %v943_v53  ;;  %6772 = vmatpush3.msra.mxu0 %v886_v54  ;;  %v746_v53 = vld [vmem:[%s8445_s8 + $0x168] sm:$0xff]  ;;  %v801_v54 = vld [vmem:[%s8445_s8 + $0x320] sm:$0xff] }
 0x1a2   :  { %7649 = vmatmul.mubr.f32.vlgmr.msra.gmra.mxu1 %v8965_v48  ;;  %1342 = vmatprep.subr.mxu1 %v843_v55  ;;  %v744_v55 = vld [vmem:[%s8445_s8 + $0x158] sm:$0xff] }
 0x1a3   :  { %6773 = vmatprep.subr.mxu0 %v931_v56  ;;  %1343 = vmatpush1.msra.mxu1 %v842_v57  ;;  %v800_v56 = vld [vmem:[%s8445_s8 + $0x318] sm:$0xff]  ;;  %v743_v57 = vld [vmem:[%s8445_s8 + $0x150] sm:$0xff] }
 0x1a4   :  { %6774 = vmatpush3.msra.mxu0 %v883_v59  ;;  %1344 = vmatprep.subr.mxu1 %v840_v61  ;;  %v798_v59 = vld [vmem:[%s8445_s8 + $0x308] sm:$0xff]  ;;  %v741_v61 = vld [vmem:[%s8445_s8 + $0x140] sm:$0xff] }
 0x1a5   :  { %6775 = vmatprep.subr.mxu0 %v928_v62  ;;  %1345 = vmatpush1.msra.mxu1 %v839_v63  ;;  %v797_v62 = vld [vmem:[%s8445_s8 + $0x300] sm:$0xff]  ;;  %v740_v63 = vld [vmem:[%s8445_s8 + $0x138] sm:$0xff] }
 0x1a6   :  { %6776 = vmatpush3.msra.mxu0 %v880_v1  ;;  %1346 = vmatprep.subr.mxu1 %v837_v2  ;;  %v796_v1 = vld [vmem:[%s8445_s8 + $0x2f8] sm:$0xff]  ;;  %v738_v2 = vld [vmem:[%s8445_s8 + $0x128] sm:$0xff] }
 0x1a7   :  { %6777 = vmatprep.subr.mxu0 %v925_v3  ;;  %1347 = vmatpush1.msra.mxu1 %v836_v4  ;;  %v748_v3 = vld [vmem:[%s8445_s8 + $0x178] sm:$0xff]  ;;  %v737_v4 = vld [vmem:[%s8445_s8 + $0x120] sm:$0xff] }
 0x1a8   :  { %6778 = vmatpush3.msra.mxu0 %v877_v5  ;;  %1348 = vmatprep.subr.mxu1 %v834_v6  ;;  %v793_v5 = vld [vmem:[%s8445_s8 + $0x2e0] sm:$0xff]  ;;  %v735_v6 = vld [vmem:[%s8445_s8 + $0x110] sm:$0xff] }
 0x1a9   :  { %6779 = vmatprep.subr.mxu0 %v922_v7  ;;  %1349 = vmatpush1.msra.mxu1 %v833_v8  ;;  %v9053_v7 = vld [vmem:[%s8405_s5 + $0x10] sm:$0xff]  ;;  %v745_v8 = vld [vmem:[%s8445_s8 + $0x160] sm:$0xff] }
 0x1aa   :  { %6780 = vmatpush3.msra.mxu0 %v874_v9  ;;  %1350 = vmatprep.subr.mxu1 %v831_v10  ;;  %v734_v9 = vld [vmem:[%s8445_s8 + $0x108] sm:$0xff] }
 0x1ab   :  { %6781 = vmatprep.subr.mxu0 %v919_v11  ;;  %1351 = vmatpush1.msra.mxu1 %v830_v12  ;;  %v790_v10 = vld [vmem:[%s8445_s8 + $0x2c8] sm:$0xff]  ;;  %v732_v11 = vld [vmem:[%s8445_s8 + $0xf8] sm:$0xff] }
 0x1ac   :  { %6782 = vmatpush3.msra.mxu0 %v871_v14  ;;  %1352 = vmatprep.subr.mxu1 %v828_v15  ;;  %v742_v12 = vld [vmem:[%s8445_s8 + $0x148] sm:$0xff]  ;;  %v731_v14 = vld [vmem:[%s8445_s8 + $0xf0] sm:$0xff] }
 0x1ad   :  { %6783 = vmatprep.subr.mxu0 %v916_v16  ;;  %1353 = vmatpush1.msra.mxu1 %v827_v17  ;;  %v787_v15 = vld [vmem:[%s8445_s8 + $0x2b0] sm:$0xff]  ;;  %v729_v16 = vld [vmem:[%s8445_s8 + $0xe0] sm:$0xff] }
 0x1ae   :  { %6784 = vmatpush3.msra.mxu0 %v868_v18  ;;  %1354 = vmatprep.subr.mxu1 %v825_v21  ;;  %v739_v17 = vld [vmem:[%s8445_s8 + $0x130] sm:$0xff]  ;;  %v728_v18 = vld [vmem:[%s8445_s8 + $0xd8] sm:$0xff] }
 0x1af   :  { %6785 = vmatprep.subr.mxu0 %v913_v22  ;;  %1355 = vmatpush1.msra.mxu1 %v824_v23  ;;  %v784_v21 = vld [vmem:[%s8445_s8 + $0x298] sm:$0xff]  ;;  %v726_v22 = vld [vmem:[%s8445_s8 + $0xc8] sm:$0xff] }
 0x1b0   :  { %6786 = vmatpush3.msra.mxu0 %v865_v24  ;;  %1356 = vmatprep.subr.mxu1 %v822_v25  ;;  %v736_v23 = vld [vmem:[%s8445_s8 + $0x118] sm:$0xff]  ;;  %v725_v24 = vld [vmem:[%s8445_s8 + $0xc0] sm:$0xff] }
 0x1b1   :  { %6787 = vmatprep.subr.mxu0 %v910_v26  ;;  %1357 = vmatpush1.msra.mxu1 %v821_v27  ;;  %v781_v25 = vld [vmem:[%s8445_s8 + $0x280] sm:$0xff]  ;;  %v723_v26 = vld [vmem:[%s8445_s8 + $0xb0] sm:$0xff] }
 0x1b2   :  { %6788 = vmatpush3.msra.mxu0 %v862_v29  ;;  %1358 = vmatprep.subr.mxu1 %v819_v30  ;;  %v733_v27 = vld [vmem:[%s8445_s8 + $0x100] sm:$0xff]  ;;  %v722_v29 = vld [vmem:[%s8445_s8 + $0xa8] sm:$0xff] }
 0x1b3   :  { %6789 = vmatprep.subr.mxu0 %v907_v31  ;;  %1359 = vmatpush1.msra.mxu1 %v818_v32  ;;  %v778_v30 = vld [vmem:[%s8445_s8 + $0x268] sm:$0xff]  ;;  %v720_v31 = vld [vmem:[%s8445_s8 + $0x98] sm:$0xff] }
 0x1b4   :  { %6790 = vmatpush3.msra.mxu0 %v859_v33  ;;  %1360 = vmatprep.subr.mxu1 %v816_v34  ;;  %v730_v32 = vld [vmem:[%s8445_s8 + $0xe8] sm:$0xff]  ;;  %v719_v33 = vld [vmem:[%s8445_s8 + $0x90] sm:$0xff] }
 0x1b5   :  { %6791 = vmatprep.subr.mxu0 %v904_v35  ;;  %1361 = vmatpush1.msra.mxu1 %v815_v36  ;;  %v775_v34 = vld [vmem:[%s8445_s8 + $0x250] sm:$0xff]  ;;  %v717_v35 = vld [vmem:[%s8445_s8 + $0x80] sm:$0xff] }
 0x1b6   :  { %6792 = vmatpush3.msra.mxu0 %v856_v37  ;;  %1362 = vmatprep.subr.mxu1 %v813_v38  ;;  %v727_v36 = vld [vmem:[%s8445_s8 + $0xd0] sm:$0xff]  ;;  %v716_v37 = vld [vmem:[%s8445_s8 + $0x78] sm:$0xff] }
 0x1b7   :  { %6793 = vmatprep.subr.mxu0 %v901_v39  ;;  %1363 = vmatpush1.msra.mxu1 %v812_v40  ;;  %v772_v38 = vld [vmem:[%s8445_s8 + $0x238] sm:$0xff]  ;;  %v714_v39 = vld [vmem:[%s8445_s8 + $0x68] sm:$0xff] }
 0x1b8   :  { %6794 = vmatpush3.msra.mxu0 %v853_v41  ;;  %1364 = vmatprep.subr.mxu1 %v810_v42  ;;  %v724_v40 = vld [vmem:[%s8445_s8 + $0xb8] sm:$0xff]  ;;  %v713_v41 = vld [vmem:[%s8445_s8 + $0x60] sm:$0xff] }
 0x1b9   :  { %6795 = vmatprep.subr.mxu0 %v898_v43  ;;  %1365 = vmatpush1.msra.mxu1 %v809_v44  ;;  %v769_v42 = vld [vmem:[%s8445_s8 + $0x220] sm:$0xff]  ;;  %v711_v43 = vld [vmem:[%s8445_s8 + $0x50] sm:$0xff] }
 0x1ba   :  { %6796 = vmatpush3.msra.mxu0 %v850_v45  ;;  %1366 = vmatprep.subr.mxu1 %v807_v46  ;;  %v721_v44 = vld [vmem:[%s8445_s8 + $0xa0] sm:$0xff]  ;;  %v710_v45 = vld [vmem:[%s8445_s8 + $0x48] sm:$0xff] }
 0x1bb   :  { %6797 = vmatprep.subr.mxu0 %v895_v47  ;;  %1367 = vmatpush1.msra.mxu1 %v806_v13  ;;  %v766_v46 = vld [vmem:[%s8445_s8 + $0x208] sm:$0xff]  ;;  %v708_v47 = vld [vmem:[%s8445_s8 + $0x38] sm:$0xff] }
 0x1bc   :  { %6798 = vmatpush3.msra.mxu0 %v847_v49  ;;  %1368 = vmatprep.subr.mxu1 %v804_v50  ;;  %v718_v13 = vld [vmem:[%s8445_s8 + $0x88] sm:$0xff]  ;;  %v707_v49 = vld [vmem:[%s8445_s8 + $0x30] sm:$0xff] }
 0x1bd   :  { %1196 = vmatmul.mubr.f32.vlgmr.msra.gmra.mxu0 %v8926_v20  ;;  %1271 = vmatprep.subr.mxu0 %v747_v51  ;;  %v763_v50 = vld [vmem:[%s8445_s8 + $0x1f0] sm:$0xff]  ;;  %v705_v51 = vld [vmem:[%s8445_s8 + $0x20] sm:$0xff] }
 0x1be   :  { %1369 = vmatpush1.msra.mxu1 %v803_v52  ;;  %1272 = vmatpush1.msra.mxu0 %v746_v53  ;;  %v715_v52 = vld [vmem:[%s8445_s8 + $0x70] sm:$0xff]  ;;  %v704_v53 = vld [vmem:[%s8445_s8 + $0x18] sm:$0xff] }
 0x1bf   :  { %1370 = vmatprep.subr.mxu1 %v801_v54  ;;  %1273 = vmatprep.subr.mxu0 %v744_v55  ;;  %v760_v54 = vld [vmem:[%s8445_s8 + $0x1d8] sm:$0xff]  ;;  %v702_v55 = vld [vmem:[%s8445_s8 + $0x8] sm:$0xff] }
 0x1c0   :  { %1371 = vmatpush1.msra.mxu1 %v800_v56  ;;  %1274 = vmatpush1.msra.mxu0 %v743_v57  ;;  %v712_v56 = vld [vmem:[%s8445_s8 + $0x58] sm:$0xff]  ;;  %v701_v57 = vld [vmem:[%s8445_s8] sm:$0xff] }
 0x1c1   :  { %1372 = vmatprep.subr.mxu1 %v798_v59  ;;  %1275 = vmatprep.subr.mxu0 %v741_v61  ;;  %v757_v59 = vld [vmem:[%s8445_s8 + $0x1c0] sm:$0xff]  ;;  %v795_v61 = vld [vmem:[%s8445_s8 + $0x2f0] sm:$0xff] }
 0x1c2   :  { %1373 = vmatpush1.msra.mxu1 %v797_v62  ;;  %1276 = vmatpush1.msra.mxu0 %v740_v63  ;;  %v709_v62 = vld [vmem:[%s8445_s8 + $0x40] sm:$0xff]  ;;  %v794_v63 = vld [vmem:[%s8445_s8 + $0x2e8] sm:$0xff] }
 0x1c3   :  { %1406 = vmatprep.mubr.f32.mxu1 %v8395_v0  ;;  %6819 = vmatprep.subr.mxu1 %v796_v1  ;;  %v754_v1 = vld [vmem:[%s8445_s8 + $0x1a8] sm:$0xff] }
 0x1c4   :  { %1277 = vmatprep.subr.mxu0 %v738_v2  ;;  %1407 = vmatmul.mubr.f32.vlgmr.msra.gmra.mxu1 %v9053_v7  ;;  %v792_v2 = vld [vmem:[%s8445_s8 + $0x2d8] sm:$0xff] }
 0x1c5   :  { %6820 = vmatpush3.msra.mxu1 %v748_v3  ;;  %1278 = vmatpush1.msra.mxu0 %v737_v4  ;;  %v706_v3 = vld [vmem:[%s8445_s8 + $0x28] sm:$0xff]  ;;  %v791_v4 = vld [vmem:[%s8445_s8 + $0x2d0] sm:$0xff] }
 0x1c6   :  { %6821 = vmatprep.subr.mxu1 %v793_v5  ;;  %1279 = vmatprep.subr.mxu0 %v735_v6  ;;  %v751_v5 = vld [vmem:[%s8445_s8 + $0x190] sm:$0xff]  ;;  %v789_v6 = vld [vmem:[%s8445_s8 + $0x2c0] sm:$0xff] }
 0x1c7   :  { %6822 = vmatpush3.msra.mxu1 %v745_v8  ;;  %1280 = vmatpush1.msra.mxu0 %v734_v9  ;;  %v703_v8 = vld [vmem:[%s8445_s8 + $0x10] sm:$0xff]  ;;  %v788_v9 = vld [vmem:[%s8445_s8 + $0x2b8] sm:$0xff] }
 0x1c8   :  { %6823 = vmatprep.subr.mxu1 %v790_v10  ;;  %1281 = vmatprep.subr.mxu0 %v732_v11  ;;  %v786_v10 = vld [vmem:[%s8445_s8 + $0x2a8] sm:$0xff] }
 0x1c9   :  { %6824 = vmatpush3.msra.mxu1 %v742_v12  ;;  %1282 = vmatpush1.msra.mxu0 %v731_v14  ;;  %v8269_v11 = vld [vmem:[%s8405_s5 + $0x8] sm:$0xff]  ;;  %v785_v12 = vld [vmem:[%s8445_s8 + $0x2a0] sm:$0xff] }
 0x1ca   :  { %6825 = vmatprep.subr.mxu1 %v787_v15  ;;  %1283 = vmatprep.subr.mxu0 %v729_v16  ;;  %v8270_v14 = vld [vmem:[%s8405_s5] sm:$0xff]  ;;  %v783_v15 = vld [vmem:[%s8445_s8 + $0x290] sm:$0xff]  ;;  %v782_v16 = vld [vmem:[%s8445_s8 + $0x288] sm:$0xff] }
 0x1cb   :  { %6826 = vmatpush3.msra.mxu1 %v739_v17  ;;  %1284 = vmatpush1.msra.mxu0 %v728_v18  ;;  %v780_v17 = vld [vmem:[%s8445_s8 + $0x278] sm:$0xff]  ;;  %v779_v18 = vld [vmem:[%s8445_s8 + $0x270] sm:$0xff] }
 0x1cc   :  { %6827 = vmatprep.subr.mxu1 %v784_v21  ;;  %1285 = vmatprep.subr.mxu0 %v726_v22  ;;  %v777_v21 = vld [vmem:[%s8445_s8 + $0x260] sm:$0xff]  ;;  %v776_v22 = vld [vmem:[%s8445_s8 + $0x258] sm:$0xff] }
 0x1cd   :  { %6828 = vmatpush3.msra.mxu1 %v736_v23  ;;  %1286 = vmatpush1.msra.mxu0 %v725_v24  ;;  %v774_v23 = vld [vmem:[%s8445_s8 + $0x248] sm:$0xff]  ;;  %v773_v24 = vld [vmem:[%s8445_s8 + $0x240] sm:$0xff] }
 0x1ce   :  { %6829 = vmatprep.subr.mxu1 %v781_v25  ;;  %1287 = vmatprep.subr.mxu0 %v723_v26  ;;  %v771_v25 = vld [vmem:[%s8445_s8 + $0x230] sm:$0xff]  ;;  %v770_v26 = vld [vmem:[%s8445_s8 + $0x228] sm:$0xff] }
 0x1cf   :  { %6830 = vmatpush3.msra.mxu1 %v733_v27  ;;  %1288 = vmatpush1.msra.mxu0 %v722_v29  ;;  %v768_v27 = vld [vmem:[%s8445_s8 + $0x218] sm:$0xff]  ;;  %v767_v29 = vld [vmem:[%s8445_s8 + $0x210] sm:$0xff] }
 0x1d0   :  { %6831 = vmatprep.subr.mxu1 %v778_v30  ;;  %1289 = vmatprep.subr.mxu0 %v720_v31  ;;  %v765_v30 = vld [vmem:[%s8445_s8 + $0x200] sm:$0xff]  ;;  %v764_v31 = vld [vmem:[%s8445_s8 + $0x1f8] sm:$0xff] }
 0x1d1   :  { %6832 = vmatpush3.msra.mxu1 %v730_v32  ;;  %1290 = vmatpush1.msra.mxu0 %v719_v33  ;;  %v762_v32 = vld [vmem:[%s8445_s8 + $0x1e8] sm:$0xff]  ;;  %v761_v33 = vld [vmem:[%s8445_s8 + $0x1e0] sm:$0xff] }
 0x1d2   :  { %6833 = vmatprep.subr.mxu1 %v775_v34  ;;  %1291 = vmatprep.subr.mxu0 %v717_v35  ;;  %v759_v34 = vld [vmem:[%s8445_s8 + $0x1d0] sm:$0xff]  ;;  %v758_v35 = vld [vmem:[%s8445_s8 + $0x1c8] sm:$0xff] }
 0x1d3   :  { %6834 = vmatpush3.msra.mxu1 %v727_v36  ;;  %1292 = vmatpush1.msra.mxu0 %v716_v37  ;;  %v756_v36 = vld [vmem:[%s8445_s8 + $0x1b8] sm:$0xff]  ;;  %v755_v37 = vld [vmem:[%s8445_s8 + $0x1b0] sm:$0xff] }
 0x1d4   :  { %6835 = vmatprep.subr.mxu1 %v772_v38  ;;  %1293 = vmatprep.subr.mxu0 %v714_v39  ;;  %v753_v38 = vld [vmem:[%s8445_s8 + $0x1a0] sm:$0xff]  ;;  %v752_v39 = vld [vmem:[%s8445_s8 + $0x198] sm:$0xff] }
 0x1d5   :  { %6836 = vmatpush3.msra.mxu1 %v724_v40  ;;  %1294 = vmatpush1.msra.mxu0 %v713_v41  ;;  %v750_v40 = vld [vmem:[%s8445_s8 + $0x188] sm:$0xff]  ;;  %v749_v41 = vld [vmem:[%s8445_s8 + $0x180] sm:$0xff] }
 0x1d6   :  { %6837 = vmatprep.subr.mxu1 %v769_v42  ;;  %1295 = vmatprep.subr.mxu0 %v711_v43  ;;  %v844_v42 = vld [vmem:[%s8445_s8 + $0x478] sm:$0xff]  ;;  %v841_v43 = vld [vmem:[%s8445_s8 + $0x460] sm:$0xff] }
 0x1d7   :  { %6838 = vmatpush3.msra.mxu1 %v721_v44  ;;  %1296 = vmatpush1.msra.mxu0 %v710_v45  ;;  %v838_v44 = vld [vmem:[%s8445_s8 + $0x448] sm:$0xff]  ;;  %v1806_v45 = vld [vmem:[%s8475_s12 + $0x170] sm:$0xff] }
 0x1d8   :  { %6839 = vmatprep.subr.mxu1 %v766_v46  ;;  %1297 = vmatprep.subr.mxu0 %v708_v47  ;;  %v1805_v46 = vld [vmem:[%s8475_s12 + $0x168] sm:$0xff]  ;;  %v1803_v47 = vld [vmem:[%s8475_s12 + $0x158] sm:$0xff] }
 0x1d9   :  { %6840 = vmatpush3.msra.mxu1 %v718_v13  ;;  %1298 = vmatpush1.msra.mxu0 %v707_v49  ;;  %v835_v13 = vld [vmem:[%s8445_s8 + $0x430] sm:$0xff] }
 0x1da   :  { %6841 = vmatprep.subr.mxu1 %v763_v50  ;;  %1299 = vmatprep.subr.mxu0 %v705_v51  ;;  %v1802_v49 = vld [vmem:[%s8475_s12 + $0x150] sm:$0xff]  ;;  %v1800_v50 = vld [vmem:[%s8475_s12 + $0x140] sm:$0xff]  ;;  %v832_v51 = vld [vmem:[%s8445_s8 + $0x418] sm:$0xff] }
 0x1db   :  { %6842 = vmatpush3.msra.mxu1 %v715_v52  ;;  %1300 = vmatpush1.msra.mxu0 %v704_v53  ;;  %v1799_v52 = vld [vmem:[%s8475_s12 + $0x138] sm:$0xff]  ;;  %v1797_v53 = vld [vmem:[%s8475_s12 + $0x128] sm:$0xff] }
 0x1dc   :  { %6843 = vmatprep.subr.mxu1 %v760_v54  ;;  %1301 = vmatprep.subr.mxu0 %v702_v55  ;;  %v829_v54 = vld [vmem:[%s8445_s8 + $0x400] sm:$0xff] }
 0x1dd   :  { %6844 = vmatpush3.msra.mxu1 %v712_v56  ;;  %1302 = vmatpush1.msra.mxu0 %v701_v57  ;;  %v1796_v55 = vld [vmem:[%s8475_s12 + $0x120] sm:$0xff]  ;;  %v1794_v56 = vld [vmem:[%s8475_s12 + $0x110] sm:$0xff]  ;;  %v826_v57 = vld [vmem:[%s8445_s8 + $0x3e8] sm:$0xff] }
 0x1de   :  { %6845 = vmatprep.subr.mxu1 %v757_v59  ;;  %1303 = vmatprep.subr.mxu0 %v795_v61  ;;  %v1793_v59 = vld [vmem:[%s8475_s12 + $0x108] sm:$0xff]  ;;  %v1791_v61 = vld [vmem:[%s8475_s12 + $0xf8] sm:$0xff] }
 0x1df   :  { %6846 = vmatpush3.msra.mxu1 %v709_v62  ;;  %1304 = vmatpush2.msra.mxu0 %v794_v63  ;;  %v823_v62 = vld [vmem:[%s8445_s8 + $0x3d0] sm:$0xff] }
 0x1e0   :  { %6847 = vmatprep.subr.mxu1 %v754_v1  ;;  %1305 = vmatprep.subr.mxu0 %v792_v2  ;;  %v1790_v63 = vld [vmem:[%s8475_s12 + $0xf0] sm:$0xff]  ;;  %v1788_v1 = vld [vmem:[%s8475_s12 + $0xe0] sm:$0xff]  ;;  %v820_v2 = vld [vmem:[%s8445_s8 + $0x3b8] sm:$0xff] }
 0x1e1   :  { %6848 = vmatpush3.msra.mxu1 %v706_v3  ;;  %1306 = vmatpush2.msra.mxu0 %v791_v4  ;;  %v1787_v3 = vld [vmem:[%s8475_s12 + $0xd8] sm:$0xff]  ;;  %v1785_v4 = vld [vmem:[%s8475_s12 + $0xc8] sm:$0xff] }
 0x1e2   :  { %6849 = vmatprep.subr.mxu1 %v751_v5  ;;  %1307 = vmatprep.subr.mxu0 %v789_v6  ;;  %v817_v5 = vld [vmem:[%s8445_s8 + $0x3a0] sm:$0xff] }
 0x1e3   :  { %6850 = vmatpush3.msra.mxu1 %v703_v8  ;;  %1477 = vmatprep.mubr.f32.mxu1 %v8269_v11  ;;  %v1784_v6 = vld [vmem:[%s8475_s12 + $0xc0] sm:$0xff]  ;;  %v1782_v8 = vld [vmem:[%s8475_s12 + $0xb0] sm:$0xff] }
 0x1e4   :  { %1308 = vmatpush2.msra.mxu0 %v788_v9  ;;  %1478 = vmatmul.mubr.f32.vlgmr.msra.gmra.mxu1 %v8270_v14  ;;  %v814_v9 = vld [vmem:[%s8445_s8 + $0x388] sm:$0xff] }
 0x1e5   :  { %1309 = vmatprep.subr.mxu0 %v786_v10  ;;  %1335 = vmatprep.mubr.f32.mxu0 %v8269_v11  ;;  %v1781_v10 = vld [vmem:[%s8475_s12 + $0xa8] sm:$0xff]  ;;  %v1779_v11 = vld [vmem:[%s8475_s12 + $0x98] sm:$0xff] }
 0x1e6   :  { %1310 = vmatpush2.msra.mxu0 %v785_v12  ;;  %1904 = vmatprep.subr.mxu1 %v1806_v45  ;;  %v811_v12 = vld [vmem:[%s8445_s8 + $0x370] sm:$0xff]  ;;  %v1836_v45 = vld [vmem:[%s8475_s12 + $0x260] sm:$0xff] }
 0x1e7   :  { %1311 = vmatprep.subr.mxu0 %v783_v15  ;;  %1905 = vmatpush1.msra.mxu1 %v1805_v46  ;;  %v1776_v15 = vld [vmem:[%s8475_s12 + $0x80] sm:$0xff]  ;;  %v1835_v46 = vld [vmem:[%s8475_s12 + $0x258] sm:$0xff] }
 0x1e8   :  { %1312 = vmatpush2.msra.mxu0 %v782_v16  ;;  %1906 = vmatprep.subr.mxu1 %v1803_v47  ;;  %v808_v16 = vld [vmem:[%s8445_s8 + $0x358] sm:$0xff]  ;;  %v1833_v47 = vld [vmem:[%s8475_s12 + $0x248] sm:$0xff] }
 0x1e9   :  { %1313 = vmatprep.subr.mxu0 %v780_v17  ;;  %1907 = vmatpush1.msra.mxu1 %v1802_v49  ;;  %v1775_v17 = vld [vmem:[%s8475_s12 + $0x78] sm:$0xff]  ;;  %v1830_v49 = vld [vmem:[%s8475_s12 + $0x230] sm:$0xff] }
 0x1ea   :  { %1314 = vmatpush2.msra.mxu0 %v779_v18  ;;  %1908 = vmatprep.subr.mxu1 %v1800_v50  ;;  %v805_v18 = vld [vmem:[%s8445_s8 + $0x340] sm:$0xff]  ;;  %v1829_v50 = vld [vmem:[%s8475_s12 + $0x228] sm:$0xff] }
 0x1eb   :  { %1315 = vmatprep.subr.mxu0 %v777_v21  ;;  %1909 = vmatpush1.msra.mxu1 %v1799_v52  ;;  %v802_v21 = vld [vmem:[%s8445_s8 + $0x328] sm:$0xff]  ;;  %v1826_v52 = vld [vmem:[%s8475_s12 + $0x210] sm:$0xff] }
 0x1ec   :  { %1316 = vmatpush2.msra.mxu0 %v776_v22  ;;  %1910 = vmatprep.subr.mxu1 %v1797_v53  ;;  %v799_v22 = vld [vmem:[%s8445_s8 + $0x310] sm:$0xff]  ;;  %v1824_v53 = vld [vmem:[%s8475_s12 + $0x200] sm:$0xff]  ;;  %s11202_s8 = sld [smem:[#allocation19_spill]] }
 0x1ed   :  { %1317 = vmatprep.subr.mxu0 %v774_v23  ;;  %1911 = vmatpush1.msra.mxu1 %v1796_v55  ;;  %v1773_v23 = vld [vmem:[%s8475_s12 + $0x68] sm:$0xff] }
 0x1ee   :  { %1318 = vmatpush2.msra.mxu0 %v773_v24  ;;  %1912 = vmatprep.subr.mxu1 %v1794_v56  ;;  %v1772_v24 = vld [vmem:[%s8475_s12 + $0x60] sm:$0xff]  ;;  %v1821_v55 = vld [vmem:[%s8475_s12 + $0x1e8] sm:$0xff] }
 0x1ef   :  { %1319 = vmatprep.subr.mxu0 %v771_v25  ;;  %1913 = vmatpush1.msra.mxu1 %v1793_v59  ;;  %v1770_v25 = vld [vmem:[%s8475_s12 + $0x50] sm:$0xff]  ;;  %v1820_v56 = vld [vmem:[%s8475_s12 + $0x1e0] sm:$0xff]  ;;  %v1817_v59 = vld [vmem:[%s8475_s12 + $0x1c8] sm:$0xff] }
 0x1f0   :  { %1320 = vmatpush2.msra.mxu0 %v770_v26  ;;  %1914 = vmatprep.subr.mxu1 %v1791_v61  ;;  %v1769_v26 = vld [vmem:[%s8475_s12 + $0x48] sm:$0xff]  ;;  %v1815_v61 = vld [vmem:[%s8475_s12 + $0x1b8] sm:$0xff] }
 0x1f1   :  { %1321 = vmatprep.subr.mxu0 %v768_v27  ;;  %1915 = vmatpush1.msra.mxu1 %v1790_v63  ;;  %v1767_v27 = vld [vmem:[%s8475_s12 + $0x38] sm:$0xff]  ;;  %v1902_v63 = vld [vmem:[%s8475_s12 + $0x470] sm:$0xff] }
 0x1f2   :  { %1322 = vmatpush2.msra.mxu0 %v767_v29  ;;  %1916 = vmatprep.subr.mxu1 %v1788_v1  ;;  %v1766_v29 = vld [vmem:[%s8475_s12 + $0x30] sm:$0xff]  ;;  %v1812_v1 = vld [vmem:[%s8475_s12 + $0x1a0] sm:$0xff] }
 0x1f3   :  { %1323 = vmatprep.subr.mxu0 %v765_v30  ;;  %1917 = vmatpush1.msra.mxu1 %v1787_v3  ;;  %v1764_v30 = vld [vmem:[%s8475_s12 + $0x20] sm:$0xff]  ;;  %v1811_v3 = vld [vmem:[%s8475_s12 + $0x198] sm:$0xff] }
 0x1f4   :  { %1324 = vmatpush2.msra.mxu0 %v764_v31  ;;  %1918 = vmatprep.subr.mxu1 %v1785_v4  ;;  %v1761_v31 = vld [vmem:[%s8475_s12 + $0x8] sm:$0xff]  ;;  %v1899_v4 = vld [vmem:[%s8475_s12 + $0x458] sm:$0xff] }
 0x1f5   :  { %1325 = vmatprep.subr.mxu0 %v762_v32  ;;  %1919 = vmatpush1.msra.mxu1 %v1784_v6  ;;  %v1760_v32 = vld [vmem:[%s8475_s12] sm:$0xff]  ;;  %v1898_v6 = vld [vmem:[%s8475_s12 + $0x450] sm:$0xff] }
 0x1f6   :  { %1326 = vmatpush2.msra.mxu0 %v761_v33  ;;  %1920 = vmatprep.subr.mxu1 %v1782_v8  ;;  %v1854_v33 = vld [vmem:[%s8475_s12 + $0x2f0] sm:$0xff]  ;;  %v1808_v8 = vld [vmem:[%s8475_s12 + $0x180] sm:$0xff] }
 0x1f7   :  { %1327 = vmatprep.subr.mxu0 %v759_v34  ;;  %1921 = vmatpush1.msra.mxu1 %v1781_v10  ;;  %v1853_v34 = vld [vmem:[%s8475_s12 + $0x2e8] sm:$0xff]  ;;  %v1895_v10 = vld [vmem:[%s8475_s12 + $0x438] sm:$0xff] }
 0x1f8   :  { %1328 = vmatpush2.msra.mxu0 %v758_v35  ;;  %1922 = vmatprep.subr.mxu1 %v1779_v11  ;;  %v1851_v35 = vld [vmem:[%s8475_s12 + $0x2d8] sm:$0xff]  ;;  %v1893_v11 = vld [vmem:[%s8475_s12 + $0x428] sm:$0xff] }
 0x1f9   :  { %1329 = vmatprep.subr.mxu0 %v756_v36  ;;  %v1850_v36 = vld [vmem:[%s8475_s12 + $0x2d0] sm:$0xff] }
 0x1fa   :  { %1330 = vmatpush2.msra.mxu0 %v755_v37  ;;  %v1848_v37 = vld [vmem:[%s8475_s12 + $0x2c0] sm:$0xff] }
 0x1fb   :  { %1331 = vmatprep.subr.mxu0 %v753_v38  ;;  %v1847_v38 = vld [vmem:[%s8475_s12 + $0x2b8] sm:$0xff] }
 0x1fc   :  { %1332 = vmatpush2.msra.mxu0 %v752_v39  ;;  %v1845_v39 = vld [vmem:[%s8475_s12 + $0x2a8] sm:$0xff] }
 0x1fd   :  { %1333 = vmatprep.subr.mxu0 %v750_v40  ;;  %v1844_v40 = vld [vmem:[%s8475_s12 + $0x2a0] sm:$0xff] }
 0x1fe   :  { %1334 = vmatpush2.msra.mxu0 %v749_v41  ;;  %v1842_v41 = vld [vmem:[%s8475_s12 + $0x290] sm:$0xff] }
 0x1ff   :  { %1336 = vmatmul.mubr.f32.vlgmr.msra.gmra.mxu0 %v8270_v14  ;;  %7651 = vmatprep.subr.mxu0 %v8395_v0  ;;  %v1778_v14 = vld [vmem:[%s8475_s12 + $0x90] sm:$0xff] }
 0x200   :  { %7652 = vmatpush3.msra.mxu0 %v844_v42  ;;  %7683 = vmatprep.mubr.msk.f32.mxu0 %vm8396_vm0, %v8395_v0  ;;  %v1841_v42 = vld [vmem:[%s8475_s12 + $0x288] sm:$0xff] }
 0x201   :  { %7653 = vmatprep.subr.mxu0 %v8395_v0  ;;  %1923 = vmatpush1.msra.mxu1 %v1778_v14  ;;  %v1890_v14 = vld [vmem:[%s8475_s12 + $0x410] sm:$0xff] }
 0x202   :  { %7654 = vmatpush3.msra.mxu0 %v841_v43  ;;  %1924 = vmatprep.subr.mxu1 %v1776_v15  ;;  %v1839_v43 = vld [vmem:[%s8475_s12 + $0x278] sm:$0xff]  ;;  %v1889_v15 = vld [vmem:[%s8475_s12 + $0x408] sm:$0xff] }
 0x203   :  { %7655 = vmatprep.subr.mxu0 %v8395_v0  ;;  %1925 = vmatpush1.msra.mxu1 %v1775_v17  ;;  %v1886_v17 = vld [vmem:[%s8475_s12 + $0x3f0] sm:$0xff] }
 0x204   :  { %7656 = vmatpush3.msra.mxu0 %v838_v44  ;;  %1926 = vmatprep.subr.mxu1 %v1773_v23  ;;  %v1838_v44 = vld [vmem:[%s8475_s12 + $0x270] sm:$0xff]  ;;  %v1880_v23 = vld [vmem:[%s8475_s12 + $0x3c0] sm:$0xff] }
 0x205   :  { %7657 = vmatprep.subr.mxu0 %v8395_v0  ;;  %1927 = vmatpush1.msra.mxu1 %v1772_v24  ;;  %v1878_v24 = vld [vmem:[%s8475_s12 + $0x3b0] sm:$0xff] }
 0x206   :  { %7658 = vmatpush3.msra.mxu0 %v835_v13  ;;  %1928 = vmatprep.subr.mxu1 %v1770_v25  ;;  %v1832_v13 = vld [vmem:[%s8475_s12 + $0x240] sm:$0xff]  ;;  %v1877_v25 = vld [vmem:[%s8475_s12 + $0x3a8] sm:$0xff] }
 0x207   :  { %7659 = vmatprep.subr.mxu0 %v8395_v0  ;;  %1929 = vmatpush1.msra.mxu1 %v1769_v26  ;;  %v1875_v26 = vld [vmem:[%s8475_s12 + $0x398] sm:$0xff] }
 0x208   :  { %7660 = vmatpush3.msra.mxu0 %v832_v51  ;;  %1930 = vmatprep.subr.mxu1 %v1767_v27  ;;  %v1827_v51 = vld [vmem:[%s8475_s12 + $0x218] sm:$0xff] }
 0x209   :  { %7661 = vmatprep.subr.mxu0 %v8395_v0  ;;  %1931 = vmatpush1.msra.mxu1 %v1766_v29  ;;  %v1874_v29 = vld [vmem:[%s8475_s12 + $0x390] sm:$0xff] }
 0x20a   :  { %7662 = vmatpush3.msra.mxu0 %v829_v54  ;;  %1932 = vmatprep.subr.mxu1 %v1764_v30  ;;  %v1823_v54 = vld [vmem:[%s8475_s12 + $0x1f8] sm:$0xff]  ;;  %v1872_v30 = vld [vmem:[%s8475_s12 + $0x380] sm:$0xff] }
 0x20b   :  { %7663 = vmatprep.subr.mxu0 %v8395_v0 }
 0x20c   :  { %7664 = vmatpush3.msra.mxu0 %v826_v57  ;;  %v1818_v57 = vld [vmem:[%s8475_s12 + $0x1d0] sm:$0xff] }
 0x20d   :  { %7665 = vmatprep.subr.mxu0 %v8395_v0 }
 0x20e   :  { %7666 = vmatpush3.msra.mxu0 %v823_v62  ;;  %v1814_v62 = vld [vmem:[%s8475_s12 + $0x1b0] sm:$0xff] }
 0x20f   :  { %7667 = vmatprep.subr.mxu0 %v8395_v0 }
 0x210   :  { %7668 = vmatpush3.msra.mxu0 %v820_v2  ;;  %v1901_v2 = vld [vmem:[%s8475_s12 + $0x468] sm:$0xff] }
 0x211   :  { %7669 = vmatprep.subr.mxu0 %v8395_v0 }
 0x212   :  { %7670 = vmatpush3.msra.mxu0 %v817_v5  ;;  %v1809_v5 = vld [vmem:[%s8475_s12 + $0x188] sm:$0xff] }
 0x213   :  { %7671 = vmatprep.subr.mxu0 %v8395_v0 }
 0x214   :  { %7672 = vmatpush3.msra.mxu0 %v814_v9  ;;  %v1896_v9 = vld [vmem:[%s8475_s12 + $0x440] sm:$0xff] }
 0x215   :  { %7673 = vmatprep.subr.mxu0 %v8395_v0 }
 0x216   :  { %7674 = vmatpush3.msra.mxu0 %v811_v12  ;;  %v1892_v12 = vld [vmem:[%s8475_s12 + $0x420] sm:$0xff] }
 0x217   :  { %7675 = vmatprep.subr.mxu0 %v8395_v0 }
 0x218   :  { %7676 = vmatpush3.msra.mxu0 %v808_v16  ;;  %v1887_v16 = vld [vmem:[%s8475_s12 + $0x3f8] sm:$0xff] }
 0x219   :  { %7677 = vmatprep.subr.mxu0 %v8395_v0 }
 0x21a   :  { %7678 = vmatpush3.msra.mxu0 %v805_v18  ;;  %v1884_v18 = vld [vmem:[%s8475_s12 + $0x3e0] sm:$0xff] }
 0x21b   :  { %7679 = vmatprep.subr.mxu0 %v8395_v0 }
 0x21c   :  { %7680 = vmatpush3.msra.mxu0 %v802_v21  ;;  %v1883_v21 = vld [vmem:[%s8475_s12 + $0x3d8] sm:$0xff] }
 0x21d   :  { %7681 = vmatprep.subr.mxu0 %v8395_v0 }
 0x21e   :  { %7682 = vmatpush3.msra.mxu0 %v799_v22  ;;  %v1881_v22 = vld [vmem:[%s8475_s12 + $0x3c8] sm:$0xff] }
 0x21f   :  { %7684 = vmatmul.mubr.f32.vlgmr.msra.gmra.mxu0 %v9053_v7  ;;  %v1763_v7 = vld [vmem:[%s8475_s12 + $0x18] sm:$0xff]  ;;  %1975 = vmatprep.subr.mxu0 %v1902_v63 }
 0x220   :  { %2039 = vmatprep.mubr.f32.mxu0 %v8395_v0  ;;  %1933 = vmatpush1.msra.mxu1 %v1763_v7  ;;  %v1871_v7 = vld [vmem:[%s8475_s12 + $0x378] sm:$0xff] }
 0x221   :  { %1934 = vmatprep.subr.mxu1 %v1761_v31  ;;  %1976 = vmatpush1.msra.mxu0 %v1901_v2  ;;  %v1869_v31 = vld [vmem:[%s8475_s12 + $0x368] sm:$0xff] }
 0x222   :  { %1935 = vmatpush1.msra.mxu1 %v1760_v32  ;;  %1977 = vmatprep.subr.mxu0 %v1899_v4 }
 0x223   :  { %1936 = vmatprep.subr.mxu1 %v1854_v33  ;;  %1978 = vmatpush1.msra.mxu0 %v1898_v6  ;;  %v1868_v33 = vld [vmem:[%s8475_s12 + $0x360] sm:$0xff] }
 0x224   :  { %1937 = vmatpush2.msra.mxu1 %v1853_v34  ;;  %1979 = vmatprep.subr.mxu0 %v1896_v9  ;;  %v1866_v34 = vld [vmem:[%s8475_s12 + $0x350] sm:$0xff] }
 0x225   :  { %1938 = vmatprep.subr.mxu1 %v1851_v35  ;;  %1980 = vmatpush1.msra.mxu0 %v1895_v10 }
 0x226   :  { %1939 = vmatpush2.msra.mxu1 %v1850_v36  ;;  %1981 = vmatprep.subr.mxu0 %v1893_v11  ;;  %v1865_v36 = vld [vmem:[%s8475_s12 + $0x348] sm:$0xff] }
 0x227   :  { %1940 = vmatprep.subr.mxu1 %v1848_v37  ;;  %1982 = vmatpush1.msra.mxu0 %v1892_v12  ;;  %v1863_v37 = vld [vmem:[%s8475_s12 + $0x338] sm:$0xff] }
 0x228   :  { %1941 = vmatpush2.msra.mxu1 %v1847_v38  ;;  %1983 = vmatprep.subr.mxu0 %v1890_v14 }
 0x229   :  { %1942 = vmatprep.subr.mxu1 %v1845_v39  ;;  %1984 = vmatpush1.msra.mxu0 %v1889_v15  ;;  %v1862_v39 = vld [vmem:[%s8475_s12 + $0x330] sm:$0xff] }
 0x22a   :  { %1943 = vmatpush2.msra.mxu1 %v1844_v40  ;;  %1985 = vmatprep.subr.mxu0 %v1887_v16  ;;  %v1860_v40 = vld [vmem:[%s8475_s12 + $0x320] sm:$0xff] }
 0x22b   :  { %1944 = vmatprep.subr.mxu1 %v1842_v41  ;;  %1986 = vmatpush1.msra.mxu0 %v1886_v17  ;;  %v1859_v41 = vld [vmem:[%s8475_s12 + $0x318] sm:$0xff] }
 0x22c   :  { %1945 = vmatpush2.msra.mxu1 %v1841_v42  ;;  %1987 = vmatprep.subr.mxu0 %v1884_v18  ;;  %v1857_v42 = vld [vmem:[%s8475_s12 + $0x308] sm:$0xff]  ;;  %v1903_v17 = vld [vmem:[%s8475_s12 + $0x478] sm:$0xff]  ;;  %v1900_v18 = vld [vmem:[%s8475_s12 + $0x460] sm:$0xff] }
 0x22d   :  { %1946 = vmatprep.subr.mxu1 %v1839_v43  ;;  %1988 = vmatpush1.msra.mxu0 %v1883_v21  ;;  %v1856_v43 = vld [vmem:[%s8475_s12 + $0x300] sm:$0xff]  ;;  %v1897_v21 = vld [vmem:[%s8475_s12 + $0x448] sm:$0xff] }
 0x22e   :  { %1947 = vmatpush2.msra.mxu1 %v1838_v44  ;;  %1989 = vmatprep.subr.mxu0 %v1881_v22  ;;  %v1855_v44 = vld [vmem:[%s8475_s12 + $0x2f8] sm:$0xff] }
 0x22f   :  { %1948 = vmatprep.subr.mxu1 %v1836_v45  ;;  %1990 = vmatpush1.msra.mxu0 %v1880_v23  ;;  %v1894_v23 = vld [vmem:[%s8475_s12 + $0x430] sm:$0xff] }
 0x230   :  { %1949 = vmatpush2.msra.mxu1 %v1835_v46  ;;  %1991 = vmatprep.subr.mxu0 %v1878_v24  ;;  %v1891_v24 = vld [vmem:[%s8475_s12 + $0x418] sm:$0xff] }
 0x231   :  { %1950 = vmatprep.subr.mxu1 %v1833_v47  ;;  %1992 = vmatpush1.msra.mxu0 %v1877_v25 }
 0x232   :  { %1951 = vmatpush2.msra.mxu1 %v1832_v13  ;;  %1993 = vmatprep.subr.mxu0 %v1875_v26  ;;  %v1888_v26 = vld [vmem:[%s8475_s12 + $0x400] sm:$0xff] }
 0x233   :  { %1952 = vmatprep.subr.mxu1 %v1830_v49  ;;  %1994 = vmatpush1.msra.mxu0 %v1874_v29  ;;  %v9279_v49 = vld [vmem:[%s8430_s25] sm:$0x7]  ;;  %v1885_v29 = vld [vmem:[%s8475_s12 + $0x3e8] sm:$0xff]  ;;  %s11199_s25 = sld [smem:[#allocation10_spill]] }
 0x234   :  { %1953 = vmatpush2.msra.mxu1 %v1829_v50  ;;  %1995 = vmatprep.subr.mxu0 %v1872_v30 }
 0x235   :  { %1954 = vmatprep.subr.mxu1 %v1827_v51  ;;  %1996 = vmatpush1.msra.mxu0 %v1871_v7  ;;  %v1882_v7 = vld [vmem:[%s8475_s12 + $0x3d0] sm:$0xff] }
 0x236   :  { %1955 = vmatpush2.msra.mxu1 %v1826_v52  ;;  %1997 = vmatprep.subr.mxu0 %v1869_v31 }
 0x237   :  { %1956 = vmatprep.subr.mxu1 %v1824_v53  ;;  %1998 = vmatpush1.msra.mxu0 %v1868_v33 }
 0x238   :  { %1957 = vmatpush2.msra.mxu1 %v1823_v54  ;;  %1999 = vmatprep.subr.mxu0 %v1866_v34  ;;  %v1566_v34 = vrot.slane %v9279_v49, %v8942_v28 }
 0x239   :  { %1958 = vmatprep.subr.mxu1 %v1821_v55  ;;  %2000 = vmatpush1.msra.mxu0 %v1865_v36  ;;  %v1558_v55 = vrot.slane %v9279_v49, %v8903_v58 }
 0x23a   :  { %1959 = vmatpush2.msra.mxu1 %v1820_v56  ;;  %2001 = vmatprep.subr.mxu0 %v1863_v37  ;;  %v1876_v37 = vld [vmem:[%s8475_s12 + $0x3a0] sm:$0xff] }
 0x23b   :  { %1960 = vmatprep.subr.mxu1 %v1818_v57  ;;  %2002 = vmatpush1.msra.mxu0 %v1862_v39  ;;  %v1873_v39 = vld [vmem:[%s8475_s12 + $0x388] sm:$0xff] }
 0x23c   :  { %1961 = vmatpush2.msra.mxu1 %v1817_v59  ;;  %2003 = vmatprep.subr.mxu0 %v1860_v40  ;;  %v9284_v59 = vld [vmem:[%s8435_s29] sm:$0x7]  ;;  %s11200_s29 = sld [smem:[#allocation11_spill]] }
 0x23d   :  { %1962 = vmatprep.subr.mxu1 %v1815_v61  ;;  %2004 = vmatpush1.msra.mxu0 %v1859_v41  ;;  %v1585_v6 = vrot.slane %v9284_v59, %v8906_v60  ;;  %v1589_v41 = vrot.slane %v9284_v59, %v8942_v28 }
 0x23e   :  { %1963 = vmatpush2.msra.mxu1 %v1814_v62  ;;  %2005 = vmatprep.subr.mxu0 %v1857_v42  ;;  %v1562_v62 = vrot.slane %v9279_v49, %v8906_v60  ;;  %v1870_v42 = vld [vmem:[%s8475_s12 + $0x370] sm:$0xff]  ;;  %v1807_v49 = vld [vmem:[%s8475_s12 + $0x178] sm:$0xff] }
 0x23f   :  { %1964 = vmatprep.subr.mxu1 %v1812_v1  ;;  %2006 = vmatpush1.msra.mxu0 %v1856_v43 }
 0x240   :  { %1965 = vmatpush2.msra.mxu1 %v1811_v3  ;;  %6871 = vmatprep.subr.mxu0 %v1855_v44  ;;  %v1581_v3 = vrot.slane %v9284_v59, %v8903_v58  ;;  %v1757_v59 = vld [vmem:[%s11195_s9 + $0x468] sm:$0xff] }
 0x241   :  { %1966 = vmatprep.subr.mxu1 %v1809_v5  ;;  %v1055_v27 = vpop.f32.mrf.mxu1 }
 0x242   :  { %1967 = vmatpush2.msra.mxu1 %v1808_v8  ;;  %v9293_v8 = vld [vmem:[%s8440_s3] sm:$0x7]  ;;  %s11201_s3 = sld [smem:[#allocation20_spill]] }
 0x243   :  { %7686 = vmatprep.subr.mxu1 %v8395_v0  ;;  %v1057_v32 = vpop.f32.mrf.mxu1  ;;  %v1605_v10 = vrot.slane %v9293_v8, %v8906_v60  ;;  %v1601_v12 = vrot.slane %v9293_v8, %v8903_v58  ;;  %v1609_v44 = vrot.slane %v9293_v8, %v8942_v28  ;;  %v1749_v8 = vld [vmem:[%s11195_s9 + $0x428] sm:$0xff] }
 0x25c   :  { %v1126_v45 = vpop.f32.mrf.mxu0 }
 0x25d   :  { %v1127_v50 = vadd.f32 %v1126_v45, %v1055_v27  ;;  %v1867_v45 = vld [vmem:[%s8475_s12 + $0x358] sm:$0xff] }
 0x25e   :  { %v1128_v46 = vpop.f32.mrf.mxu0 }
 0x25f   :  { %v1129_v53 = vadd.f32 %v1128_v46, %v1057_v32  ;;  %v1879_v32 = vld [vmem:[%s8475_s12 + $0x3b8] sm:$0xff] }
 0x262   :  { %v9268_v35 = vpop.f32.mrf.mxu1 }
 0x264   :  { %v7650_v38 = vpop.f32.mrf.mxu1 }
 0x27d   :  { %v6799_v47 = vpop.f32.mrf.mxu0 }
 0x27f   :  { %v6800_v13 = vpop.f32.mrf.mxu0 }
 0x280   :  { %v6801_v27 = vadd.f32 %v6800_v13, %v6799_v47  ;;  %v1864_v47 = vld [vmem:[%s8475_s12 + $0x340] sm:$0xff] }
 0x282   :  { %v1268_v31 = vadd.f32 %v6801_v27, %v9268_v35  ;;  %v1739_v27 = vld [vmem:[%s11195_s9 + $0x3d8] sm:$0xff] }
 0x284   :  { %v1408_v51 = vpop.f32.mrf.mxu1 }
 0x286   :  { %v1410_v63 = vpop.f32.mrf.mxu1 }
 0x2a4   :  { %v6851_v22 = vpop.f32.mrf.mxu1 }
 0x2a6   :  { %v6852_v25 = vpop.f32.mrf.mxu1 }
 0x2a7   :  { %v6853_v30 = vadd.f32 %v6852_v25, %v6851_v22  ;;  %v1831_v22 = vld [vmem:[%s8475_s12 + $0x238] sm:$0xff]  ;;  %v1740_v25 = vld [vmem:[%s11195_s9 + $0x3e0] sm:$0xff] }
 0x2a9   :  { %v1480_v33 = vadd.f32 %v6853_v30, %v1268_v31  ;;  %v1737_v30 = vld [vmem:[%s11195_s9 + $0x3c8] sm:$0xff]  ;;  %v1736_v31 = vld [vmem:[%s11195_s9 + $0x3c0] sm:$0xff] }
 0x2bf   :  { %v1337_v52 = vpop.f32.mrf.mxu0 }
 0x2c0   :  { %v1338_v54 = vadd.f32 %v1337_v52, %v1127_v50  ;;  %v1852_v50 = vld [vmem:[%s8475_s12 + $0x2e0] sm:$0xff] }
 0x2c1   :  { %v1339_v56 = vpop.f32.mrf.mxu0  ;;  %v1804_v52 = vld [vmem:[%s8475_s12 + $0x160] sm:$0xff] }
 0x2c2   :  { %v1409_v57 = vadd.f32 %v1408_v51, %v1338_v54  ;;  %v1340_v61 = vadd.f32 %v1339_v56, %v1129_v53  ;;  %v1861_v51 = vld [vmem:[%s8475_s12 + $0x328] sm:$0xff]  ;;  %v1858_v54 = vld [vmem:[%s8475_s12 + $0x310] sm:$0xff] }
 0x2c3   :  { %v1849_v53 = vld [vmem:[%s8475_s12 + $0x2c8] sm:$0xff]  ;;  %v1758_v56 = vld [vmem:[%s11195_s9 + $0x470] sm:$0xff] }
 0x2c4   :  { %v1570_v1 = vadd.f32 %v1558_v55, %v1409_v57  ;;  %v1411_v2 = vadd.f32 %v1410_v63, %v1340_v61  ;;  %v1801_v55 = vld [vmem:[%s8475_s12 + $0x148] sm:$0xff]  ;;  %v1846_v57 = vld [vmem:[%s8475_s12 + $0x2b0] sm:$0xff]  ;;  %v1843_v63 = vld [vmem:[%s8475_s12 + $0x298] sm:$0xff] }
 0x2c5   :  { %v1798_v61 = vld [vmem:[%s8475_s12 + $0x130] sm:$0xff] }
 0x2c6   :  { %v1573_v4 = vmax.f32 %v1570_v1, 0.0  ;;  %v1571_v5 = vadd.f32 %v1562_v62, %v1411_v2  ;;  %v1755_v62 = vld [vmem:[%s11195_s9 + $0x458] sm:$0xff]  ;;  %v1754_v1 = vld [vmem:[%s11195_s9 + $0x450] sm:$0xff] }
 0x2c7   :  { %v1795_v2 = vld [vmem:[%s8475_s12 + $0x118] sm:$0xff] }
 0x2c8   :  { %v1574_v9 = vmax.f32 %v1571_v5, 0.0  ;;  %v1593_v11 = vmul.f32 %v1581_v3, %v1573_v4  ;;  %v1752_v3 = vld [vmem:[%s11195_s9 + $0x440] sm:$0xff]  ;;  %v1751_v5 = vld [vmem:[%s11195_s9 + $0x438] sm:$0xff] }
 0x2c9   :  { %v1840_v4 = vld [vmem:[%s8475_s12 + $0x280] sm:$0xff] }
 0x2ca   :  { %v1594_v14 = vmul.f32 %v1585_v6, %v1574_v9  ;;  %v9301_v16 = vadd.f32 %v1601_v12, %v1593_v11  ;;  %v1792_v6 = vld [vmem:[%s8475_s12 + $0x100] sm:$0xff]  ;;  %v1837_v9 = vld [vmem:[%s8475_s12 + $0x268] sm:$0xff]  ;;  %v1746_v12 = vld [vmem:[%s11195_s9 + $0x410] sm:$0xff] }
 0x2cb   :  { %v1789_v11 = vld [vmem:[%s8475_s12 + $0xe8] sm:$0xff] }
 0x2cc   :  { %v9299_v15 = vadd.f32 %v1605_v10, %v1594_v14  ;;  %v1748_v10 = vld [vmem:[%s11195_s9 + $0x420] sm:$0xff]  ;;  %v1834_v14 = vld [vmem:[%s8475_s12 + $0x250] sm:$0xff] }
 0x2ce   :  { %1968 = vmatprep.mubr.f32.mxu1 %v9299_v15 }
 0x2cf   :  { %1969 = vmatmul.mubr.f32.vlgmr.msra.gmra.mxu1 %v9301_v16 }
 0x2d0   :  { %7687 = vmatpush3.msra.mxu1 %v1903_v17  ;;  %7718 = vmatprep.mubr.msk.f32.mxu1 %vm8396_vm0, %v8395_v0  ;;  %v1745_v17 = vld [vmem:[%s11195_s9 + $0x408] sm:$0xff] }
 0x2d1   :  { %7688 = vmatprep.subr.mxu1 %v8395_v0 }
 0x2d2   :  { %7689 = vmatpush3.msra.mxu1 %v1900_v18  ;;  %v1786_v18 = vld [vmem:[%s8475_s12 + $0xd0] sm:$0xff] }
 0x2d3   :  { %7690 = vmatprep.subr.mxu1 %v8395_v0 }
 0x2d4   :  { %7691 = vmatpush3.msra.mxu1 %v1897_v21  ;;  %v1743_v21 = vld [vmem:[%s11195_s9 + $0x3f8] sm:$0xff] }
 0x2d5   :  { %7692 = vmatprep.subr.mxu1 %v8395_v0 }
 0x2d6   :  { %7693 = vmatpush3.msra.mxu1 %v1894_v23  ;;  %v1742_v23 = vld [vmem:[%s11195_s9 + $0x3f0] sm:$0xff] }
 0x2d7   :  { %7694 = vmatprep.subr.mxu1 %v8395_v0 }
 0x2d8   :  { %7695 = vmatpush3.msra.mxu1 %v1891_v24  ;;  %v1783_v24 = vld [vmem:[%s8475_s12 + $0xb8] sm:$0xff] }
 0x2d9   :  { %7696 = vmatprep.subr.mxu1 %v8395_v0 }
 0x2da   :  { %7697 = vmatpush3.msra.mxu1 %v1888_v26  ;;  %v1828_v26 = vld [vmem:[%s8475_s12 + $0x220] sm:$0xff] }
 0x2db   :  { %7698 = vmatprep.subr.mxu1 %v8395_v0 }
 0x2dc   :  { %7699 = vmatpush3.msra.mxu1 %v1885_v29  ;;  %v1780_v29 = vld [vmem:[%s8475_s12 + $0xa0] sm:$0xff] }
 0x2dd   :  { %7700 = vmatprep.subr.mxu1 %v8395_v0 }
 0x2de   :  { %7701 = vmatpush3.msra.mxu1 %v1882_v7  ;;  %v1825_v7 = vld [vmem:[%s8475_s12 + $0x208] sm:$0xff] }
 0x2df   :  { %7702 = vmatprep.subr.mxu1 %v8395_v0  ;;  %v1549_v36 = vpop.f32.mrf.mxu0 }
 0x2e0   :  { %v1550_v38 = vadd.f32 %v1549_v36, %v1480_v33  ;;  %7703 = vmatpush3.msra.mxu1 %v1879_v32  ;;  %v1777_v32 = vld [vmem:[%s8475_s12 + $0x88] sm:$0xff]  ;;  %v1734_v33 = vld [vmem:[%s11195_s9 + $0x3b0] sm:$0xff] }
 0x2e1   :  { %7704 = vmatprep.subr.mxu1 %v8395_v0  ;;  %v7685_v35 = vpop.f32.mrf.mxu0  ;;  %v1733_v36 = vld [vmem:[%s11195_s9 + $0x3a8] sm:$0xff] }
 0x2e2   :  { %v1572_v40 = vadd.f32 %v1566_v34, %v1550_v38  ;;  %7705 = vmatpush3.msra.mxu1 %v1876_v37  ;;  %v1822_v34 = vld [vmem:[%s8475_s12 + $0x1f0] sm:$0xff]  ;;  %v1731_v38 = vld [vmem:[%s11195_s9 + $0x398] sm:$0xff] }
 0x2e3   :  { %7706 = vmatprep.subr.mxu1 %v8395_v0  ;;  %v1774_v37 = vld [vmem:[%s8475_s12 + $0x70] sm:$0xff]  ;;  %v1819_v35 = vld [vmem:[%s8475_s12 + $0x1d8] sm:$0xff] }
 0x2e4   :  { %v1575_v43 = vmax.f32 %v1572_v40, 0.0  ;;  %7707 = vmatpush3.msra.mxu1 %v1873_v39  ;;  %v1730_v39 = vld [vmem:[%s11195_s9 + $0x390] sm:$0xff]  ;;  %v1771_v40 = vld [vmem:[%s8475_s12 + $0x58] sm:$0xff] }
 0x2e5   :  { %7708 = vmatprep.subr.mxu1 %v8395_v0 }
 0x2e6   :  { %v1595_v46 = vmul.f32 %v1589_v41, %v1575_v43  ;;  %7709 = vmatpush3.msra.mxu1 %v1870_v42  ;;  %v1728_v41 = vld [vmem:[%s11195_s9 + $0x380] sm:$0xff]  ;;  %v1727_v43 = vld [vmem:[%s11195_s9 + $0x378] sm:$0xff] }
 0x2e7   :  { %7710 = vmatprep.subr.mxu1 %v8395_v0  ;;  %v1816_v42 = vld [vmem:[%s8475_s12 + $0x1c0] sm:$0xff] }
 0x2e8   :  { %v9340_v13 = vadd.f32 %v1609_v44, %v1595_v46  ;;  %7711 = vmatpush3.msra.mxu1 %v1867_v45  ;;  %v1768_v44 = vld [vmem:[%s8475_s12 + $0x40] sm:$0xff]  ;;  %v1725_v45 = vld [vmem:[%s11195_s9 + $0x368] sm:$0xff] }
 0x2e9   :  { %7712 = vmatprep.subr.mxu1 %v8395_v0  ;;  %v1813_v46 = vld [vmem:[%s8475_s12 + $0x1a8] sm:$0xff] }
 0x2ea   :  { %7713 = vmatpush3.msra.mxu1 %v1864_v47  ;;  %2040 = vmatmul.mubr.f32.vlgmr.msra.gmra.mxu0 %v9340_v13  ;;  %v1724_v47 = vld [vmem:[%s11195_s9 + $0x360] sm:$0xff] }
 0x2eb   :  { %6872 = vmatpush3.msra.mxu0 %v1807_v49  ;;  %7714 = vmatprep.subr.mxu1 %v8395_v0  ;;  %v1765_v49 = vld [vmem:[%s8475_s12 + $0x28] sm:$0xff] }
 0x2ec   :  { %6873 = vmatprep.subr.mxu0 %v1852_v50  ;;  %2110 = vmatprep.mubr.f32.mxu0 %v9299_v15  ;;  %v1722_v50 = vld [vmem:[%s11195_s9 + $0x350] sm:$0xff] }
 0x2ed   :  { %7715 = vmatpush3.msra.mxu1 %v1861_v51  ;;  %6874 = vmatpush3.msra.mxu0 %v1804_v52  ;;  %v1810_v51 = vld [vmem:[%s8475_s12 + $0x190] sm:$0xff]  ;;  %v1721_v52 = vld [vmem:[%s11195_s9 + $0x348] sm:$0xff] }
 0x2ee   :  { %7716 = vmatprep.subr.mxu1 %v8395_v0  ;;  %6875 = vmatprep.subr.mxu0 %v1849_v53  ;;  %v1762_v53 = vld [vmem:[%s8475_s12 + $0x10] sm:$0xff]  ;;  %s11206_s12 = sld [smem:[#allocation16_spill]] }
 0x2ef   :  { %7717 = vmatpush3.msra.mxu1 %v1858_v54  ;;  %6876 = vmatpush3.msra.mxu0 %v1801_v55  ;;  %v1719_v54 = vld [vmem:[%s11195_s9 + $0x338] sm:$0xff]  ;;  %v1662_v55 = vld [vmem:[%s11195_s9 + $0x170] sm:$0xff] }
 0x2f0   :  { %7719 = vmatmul.mubr.f32.vlgmr.msra.gmra.mxu1 %v9340_v13  ;;  %2257 = vmatprep.subr.mxu1 %v1758_v56  ;;  %v1718_v56 = vld [vmem:[%s11195_s9 + $0x330] sm:$0xff] }
 0x2f1   :  { %6877 = vmatprep.subr.mxu0 %v1846_v57  ;;  %2258 = vmatpush1.msra.mxu1 %v1757_v59  ;;  %v1661_v57 = vld [vmem:[%s11195_s9 + $0x168] sm:$0xff]  ;;  %v1716_v59 = vld [vmem:[%s11195_s9 + $0x320] sm:$0xff] }
 0x2f2   :  { %6878 = vmatpush3.msra.mxu0 %v1798_v61  ;;  %2259 = vmatprep.subr.mxu1 %v1755_v62  ;;  %v1659_v61 = vld [vmem:[%s11195_s9 + $0x158] sm:$0xff] }
 0x2f3   :  { %6879 = vmatprep.subr.mxu0 %v1843_v63  ;;  %2260 = vmatpush1.msra.mxu1 %v1754_v1  ;;  %v1715_v62 = vld [vmem:[%s11195_s9 + $0x318] sm:$0xff]  ;;  %v1658_v63 = vld [vmem:[%s11195_s9 + $0x150] sm:$0xff]  ;;  %v1713_v1 = vld [vmem:[%s11195_s9 + $0x308] sm:$0xff] }
 0x2f4   :  { %6880 = vmatpush3.msra.mxu0 %v1795_v2  ;;  %2261 = vmatprep.subr.mxu1 %v1752_v3  ;;  %v1656_v2 = vld [vmem:[%s11195_s9 + $0x140] sm:$0xff] }
 0x2f5   :  { %6881 = vmatprep.subr.mxu0 %v1840_v4  ;;  %2262 = vmatpush1.msra.mxu1 %v1751_v5  ;;  %v1712_v3 = vld [vmem:[%s11195_s9 + $0x300] sm:$0xff]  ;;  %v1655_v4 = vld [vmem:[%s11195_s9 + $0x138] sm:$0xff] }
 0x2f6   :  { %6882 = vmatpush3.msra.mxu0 %v1792_v6  ;;  %2263 = vmatprep.subr.mxu1 %v1749_v8  ;;  %v1711_v5 = vld [vmem:[%s11195_s9 + $0x2f8] sm:$0xff]  ;;  %v1653_v6 = vld [vmem:[%s11195_s9 + $0x128] sm:$0xff] }
 0x2f7   :  { %6883 = vmatprep.subr.mxu0 %v1837_v9  ;;  %2264 = vmatpush1.msra.mxu1 %v1748_v10  ;;  %v1663_v8 = vld [vmem:[%s11195_s9 + $0x178] sm:$0xff]  ;;  %v1652_v9 = vld [vmem:[%s11195_s9 + $0x120] sm:$0xff] }
 0x2f8   :  { %6884 = vmatpush3.msra.mxu0 %v1789_v11  ;;  %2265 = vmatprep.subr.mxu1 %v1746_v12  ;;  %v1708_v10 = vld [vmem:[%s11195_s9 + $0x2e0] sm:$0xff]  ;;  %v1650_v11 = vld [vmem:[%s11195_s9 + $0x110] sm:$0xff] }
 0x2f9   :  { %6885 = vmatprep.subr.mxu0 %v1834_v14  ;;  %2266 = vmatpush1.msra.mxu1 %v1745_v17  ;;  %v9428_v12 = vld [vmem:[%s8405_s5 + $0x10] sm:$0xff]  ;;  %v1660_v14 = vld [vmem:[%s11195_s9 + $0x160] sm:$0xff]  ;;  %v1649_v17 = vld [vmem:[%s11195_s9 + $0x108] sm:$0xff] }
 0x2fa   :  { %6886 = vmatpush3.msra.mxu0 %v1786_v18  ;;  %2267 = vmatprep.subr.mxu1 %v1743_v21  ;;  %v1705_v18 = vld [vmem:[%s11195_s9 + $0x2c8] sm:$0xff]  ;;  %v1647_v21 = vld [vmem:[%s11195_s9 + $0xf8] sm:$0xff] }
 0x2fb   :  { %6887 = vmatprep.subr.mxu0 %v1831_v22  ;;  %2268 = vmatpush1.msra.mxu1 %v1742_v23  ;;  %v1657_v22 = vld [vmem:[%s11195_s9 + $0x148] sm:$0xff]  ;;  %v1646_v23 = vld [vmem:[%s11195_s9 + $0xf0] sm:$0xff] }
 0x2fc   :  { %6888 = vmatpush3.msra.mxu0 %v1783_v24  ;;  %2269 = vmatprep.subr.mxu1 %v1740_v25  ;;  %v1702_v24 = vld [vmem:[%s11195_s9 + $0x2b0] sm:$0xff]  ;;  %v1644_v25 = vld [vmem:[%s11195_s9 + $0xe0] sm:$0xff] }
 0x2fd   :  { %6889 = vmatprep.subr.mxu0 %v1828_v26  ;;  %2270 = vmatpush1.msra.mxu1 %v1739_v27  ;;  %v1654_v26 = vld [vmem:[%s11195_s9 + $0x130] sm:$0xff]  ;;  %v1643_v27 = vld [vmem:[%s11195_s9 + $0xd8] sm:$0xff] }
 0x2fe   :  { %6890 = vmatpush3.msra.mxu0 %v1780_v29  ;;  %2271 = vmatprep.subr.mxu1 %v1737_v30  ;;  %v1699_v29 = vld [vmem:[%s11195_s9 + $0x298] sm:$0xff]  ;;  %v1641_v30 = vld [vmem:[%s11195_s9 + $0xc8] sm:$0xff] }
 0x2ff   :  { %6891 = vmatprep.subr.mxu0 %v1825_v7  ;;  %2272 = vmatpush1.msra.mxu1 %v1736_v31  ;;  %v1651_v7 = vld [vmem:[%s11195_s9 + $0x118] sm:$0xff]  ;;  %v1640_v31 = vld [vmem:[%s11195_s9 + $0xc0] sm:$0xff] }
 0x300   :  { %6892 = vmatpush3.msra.mxu0 %v1777_v32  ;;  %2273 = vmatprep.subr.mxu1 %v1734_v33  ;;  %v1696_v32 = vld [vmem:[%s11195_s9 + $0x280] sm:$0xff]  ;;  %v1638_v33 = vld [vmem:[%s11195_s9 + $0xb0] sm:$0xff] }
 0x301   :  { %6893 = vmatprep.subr.mxu0 %v1822_v34  ;;  %2274 = vmatpush1.msra.mxu1 %v1733_v36  ;;  %v1648_v34 = vld [vmem:[%s11195_s9 + $0x100] sm:$0xff]  ;;  %v1637_v36 = vld [vmem:[%s11195_s9 + $0xa8] sm:$0xff] }
 0x302   :  { %6894 = vmatpush3.msra.mxu0 %v1774_v37  ;;  %2275 = vmatprep.subr.mxu1 %v1731_v38  ;;  %v1693_v37 = vld [vmem:[%s11195_s9 + $0x268] sm:$0xff]  ;;  %v1635_v38 = vld [vmem:[%s11195_s9 + $0x98] sm:$0xff] }
 0x303   :  { %6895 = vmatprep.subr.mxu0 %v1819_v35  ;;  %2276 = vmatpush1.msra.mxu1 %v1730_v39  ;;  %v1645_v35 = vld [vmem:[%s11195_s9 + $0xe8] sm:$0xff]  ;;  %v1634_v39 = vld [vmem:[%s11195_s9 + $0x90] sm:$0xff] }
 0x304   :  { %6896 = vmatpush3.msra.mxu0 %v1771_v40  ;;  %2277 = vmatprep.subr.mxu1 %v1728_v41  ;;  %v1690_v40 = vld [vmem:[%s11195_s9 + $0x250] sm:$0xff]  ;;  %v1632_v41 = vld [vmem:[%s11195_s9 + $0x80] sm:$0xff] }
 0x305   :  { %6897 = vmatprep.subr.mxu0 %v1816_v42  ;;  %2278 = vmatpush1.msra.mxu1 %v1727_v43  ;;  %v1642_v42 = vld [vmem:[%s11195_s9 + $0xd0] sm:$0xff]  ;;  %v1631_v43 = vld [vmem:[%s11195_s9 + $0x78] sm:$0xff] }
 0x306   :  { %6898 = vmatpush3.msra.mxu0 %v1768_v44  ;;  %2279 = vmatprep.subr.mxu1 %v1725_v45  ;;  %v1687_v44 = vld [vmem:[%s11195_s9 + $0x238] sm:$0xff]  ;;  %v1629_v45 = vld [vmem:[%s11195_s9 + $0x68] sm:$0xff] }
 0x307   :  { %6899 = vmatprep.subr.mxu0 %v1813_v46  ;;  %2280 = vmatpush1.msra.mxu1 %v1724_v47  ;;  %v1639_v46 = vld [vmem:[%s11195_s9 + $0xb8] sm:$0xff]  ;;  %v1628_v47 = vld [vmem:[%s11195_s9 + $0x60] sm:$0xff] }
 0x308   :  { %6900 = vmatpush3.msra.mxu0 %v1765_v49  ;;  %2281 = vmatprep.subr.mxu1 %v1722_v50  ;;  %v1684_v49 = vld [vmem:[%s11195_s9 + $0x220] sm:$0xff]  ;;  %v1626_v50 = vld [vmem:[%s11195_s9 + $0x50] sm:$0xff] }
 0x309   :  { %6901 = vmatprep.subr.mxu0 %v1810_v51  ;;  %2282 = vmatpush1.msra.mxu1 %v1721_v52  ;;  %v1636_v51 = vld [vmem:[%s11195_s9 + $0xa0] sm:$0xff]  ;;  %v1625_v52 = vld [vmem:[%s11195_s9 + $0x48] sm:$0xff] }
 0x30a   :  { %6902 = vmatpush3.msra.mxu0 %v1762_v53  ;;  %2283 = vmatprep.subr.mxu1 %v1719_v54  ;;  %v1681_v53 = vld [vmem:[%s11195_s9 + $0x208] sm:$0xff]  ;;  %v1623_v54 = vld [vmem:[%s11195_s9 + $0x38] sm:$0xff] }
 0x30b   :  { %2111 = vmatmul.mubr.f32.vlgmr.msra.gmra.mxu0 %v9301_v16  ;;  %2186 = vmatprep.subr.mxu0 %v1662_v55  ;;  %v1633_v55 = vld [vmem:[%s11195_s9 + $0x88] sm:$0xff] }
 0x30c   :  { %2284 = vmatpush1.msra.mxu1 %v1718_v56  ;;  %2187 = vmatpush1.msra.mxu0 %v1661_v57  ;;  %v1622_v56 = vld [vmem:[%s11195_s9 + $0x30] sm:$0xff] }
 0x30d   :  { %2285 = vmatprep.subr.mxu1 %v1716_v59  ;;  %2188 = vmatprep.subr.mxu0 %v1659_v61  ;;  %v1678_v57 = vld [vmem:[%s11195_s9 + $0x1f0] sm:$0xff]  ;;  %v1620_v59 = vld [vmem:[%s11195_s9 + $0x20] sm:$0xff] }
 0x30e   :  { %2286 = vmatpush1.msra.mxu1 %v1715_v62  ;;  %2189 = vmatpush1.msra.mxu0 %v1658_v63  ;;  %v1630_v61 = vld [vmem:[%s11195_s9 + $0x70] sm:$0xff]  ;;  %v1619_v62 = vld [vmem:[%s11195_s9 + $0x18] sm:$0xff] }
 0x30f   :  { %2287 = vmatprep.subr.mxu1 %v1713_v1  ;;  %2190 = vmatprep.subr.mxu0 %v1656_v2  ;;  %v1675_v63 = vld [vmem:[%s11195_s9 + $0x1d8] sm:$0xff]  ;;  %v1617_v1 = vld [vmem:[%s11195_s9 + $0x8] sm:$0xff] }
 0x310   :  { %2288 = vmatpush1.msra.mxu1 %v1712_v3  ;;  %2191 = vmatpush1.msra.mxu0 %v1655_v4  ;;  %v1627_v2 = vld [vmem:[%s11195_s9 + $0x58] sm:$0xff]  ;;  %v1616_v3 = vld [vmem:[%s11195_s9] sm:$0xff] }
 0x311   :  { %2321 = vmatprep.mubr.f32.mxu1 %v8395_v0  ;;  %6923 = vmatprep.subr.mxu1 %v1711_v5  ;;  %v1672_v4 = vld [vmem:[%s11195_s9 + $0x1c0] sm:$0xff]  ;;  %v1710_v5 = vld [vmem:[%s11195_s9 + $0x2f0] sm:$0xff] }
 0x312   :  { %2192 = vmatprep.subr.mxu0 %v1653_v6  ;;  %2322 = vmatmul.mubr.f32.vlgmr.msra.gmra.mxu1 %v9428_v12  ;;  %v1624_v6 = vld [vmem:[%s11195_s9 + $0x40] sm:$0xff] }
 0x313   :  { %6924 = vmatpush3.msra.mxu1 %v1663_v8  ;;  %2193 = vmatpush1.msra.mxu0 %v1652_v9  ;;  %v1709_v8 = vld [vmem:[%s11195_s9 + $0x2e8] sm:$0xff] }
 0x314   :  { %6925 = vmatprep.subr.mxu1 %v1708_v10  ;;  %2194 = vmatprep.subr.mxu0 %v1650_v11  ;;  %v1669_v9 = vld [vmem:[%s11195_s9 + $0x1a8] sm:$0xff]  ;;  %v1707_v10 = vld [vmem:[%s11195_s9 + $0x2d8] sm:$0xff] }
 0x315   :  { %6926 = vmatpush3.msra.mxu1 %v1660_v14  ;;  %2195 = vmatpush1.msra.mxu0 %v1649_v17  ;;  %v1621_v11 = vld [vmem:[%s11195_s9 + $0x28] sm:$0xff]  ;;  %v1706_v14 = vld [vmem:[%s11195_s9 + $0x2d0] sm:$0xff] }
 0x316   :  { %6927 = vmatprep.subr.mxu1 %v1705_v18  ;;  %2196 = vmatprep.subr.mxu0 %v1647_v21  ;;  %v1666_v17 = vld [vmem:[%s11195_s9 + $0x190] sm:$0xff]  ;;  %v1704_v18 = vld [vmem:[%s11195_s9 + $0x2c0] sm:$0xff] }
 0x317   :  { %6928 = vmatpush3.msra.mxu1 %v1657_v22  ;;  %2197 = vmatpush1.msra.mxu0 %v1646_v23  ;;  %v1618_v21 = vld [vmem:[%s11195_s9 + $0x10] sm:$0xff]  ;;  %v1703_v22 = vld [vmem:[%s11195_s9 + $0x2b8] sm:$0xff]  ;;  %v1701_v23 = vld [vmem:[%s11195_s9 + $0x2a8] sm:$0xff] }
 0x318   :  { %6929 = vmatprep.subr.mxu1 %v1702_v24  ;;  %2198 = vmatprep.subr.mxu0 %v1644_v25  ;;  %v9491_v24 = vld [vmem:[%s8405_s5 + $0x8] sm:$0xff]  ;;  %v1700_v25 = vld [vmem:[%s11195_s9 + $0x2a0] sm:$0xff] }
 0x319   :  { %6930 = vmatpush3.msra.mxu1 %v1654_v26  ;;  %2199 = vmatpush1.msra.mxu0 %v1643_v27  ;;  %v9496_v26 = vld [vmem:[%s8405_s5] sm:$0xff]  ;;  %v1698_v27 = vld [vmem:[%s11195_s9 + $0x290] sm:$0xff] }
 0x31a   :  { %6931 = vmatprep.subr.mxu1 %v1699_v29  ;;  %2200 = vmatprep.subr.mxu0 %v1641_v30  ;;  %v1697_v29 = vld [vmem:[%s11195_s9 + $0x288] sm:$0xff]  ;;  %v1695_v30 = vld [vmem:[%s11195_s9 + $0x278] sm:$0xff] }
 0x31b   :  { %6932 = vmatpush3.msra.mxu1 %v1651_v7  ;;  %2201 = vmatpush1.msra.mxu0 %v1640_v31  ;;  %v1694_v7 = vld [vmem:[%s11195_s9 + $0x270] sm:$0xff]  ;;  %v1692_v31 = vld [vmem:[%s11195_s9 + $0x260] sm:$0xff] }
 0x31c   :  { %6933 = vmatprep.subr.mxu1 %v1696_v32  ;;  %2202 = vmatprep.subr.mxu0 %v1638_v33  ;;  %v1691_v32 = vld [vmem:[%s11195_s9 + $0x258] sm:$0xff]  ;;  %v1689_v33 = vld [vmem:[%s11195_s9 + $0x248] sm:$0xff] }
 0x31d   :  { %6934 = vmatpush3.msra.mxu1 %v1648_v34  ;;  %2203 = vmatpush1.msra.mxu0 %v1637_v36  ;;  %v1688_v34 = vld [vmem:[%s11195_s9 + $0x240] sm:$0xff]  ;;  %v1686_v36 = vld [vmem:[%s11195_s9 + $0x230] sm:$0xff] }
 0x31e   :  { %6935 = vmatprep.subr.mxu1 %v1693_v37  ;;  %2204 = vmatprep.subr.mxu0 %v1635_v38  ;;  %v1685_v37 = vld [vmem:[%s11195_s9 + $0x228] sm:$0xff]  ;;  %v1683_v38 = vld [vmem:[%s11195_s9 + $0x218] sm:$0xff] }
 0x31f   :  { %6936 = vmatpush3.msra.mxu1 %v1645_v35  ;;  %2205 = vmatpush1.msra.mxu0 %v1634_v39  ;;  %v1682_v35 = vld [vmem:[%s11195_s9 + $0x210] sm:$0xff]  ;;  %v1680_v39 = vld [vmem:[%s11195_s9 + $0x200] sm:$0xff] }
 0x320   :  { %6937 = vmatprep.subr.mxu1 %v1690_v40  ;;  %2206 = vmatprep.subr.mxu0 %v1632_v41  ;;  %v1679_v40 = vld [vmem:[%s11195_s9 + $0x1f8] sm:$0xff]  ;;  %v1677_v41 = vld [vmem:[%s11195_s9 + $0x1e8] sm:$0xff] }
 0x321   :  { %6938 = vmatpush3.msra.mxu1 %v1642_v42  ;;  %2207 = vmatpush1.msra.mxu0 %v1631_v43  ;;  %v1676_v42 = vld [vmem:[%s11195_s9 + $0x1e0] sm:$0xff]  ;;  %v1674_v43 = vld [vmem:[%s11195_s9 + $0x1d0] sm:$0xff] }
 0x322   :  { %6939 = vmatprep.subr.mxu1 %v1687_v44  ;;  %2208 = vmatprep.subr.mxu0 %v1629_v45  ;;  %v1673_v44 = vld [vmem:[%s11195_s9 + $0x1c8] sm:$0xff]  ;;  %v1671_v45 = vld [vmem:[%s11195_s9 + $0x1b8] sm:$0xff] }
 0x323   :  { %6940 = vmatpush3.msra.mxu1 %v1639_v46  ;;  %2209 = vmatpush1.msra.mxu0 %v1628_v47  ;;  %v1670_v46 = vld [vmem:[%s11195_s9 + $0x1b0] sm:$0xff]  ;;  %v1668_v47 = vld [vmem:[%s11195_s9 + $0x1a0] sm:$0xff] }
 0x324   :  { %6941 = vmatprep.subr.mxu1 %v1684_v49  ;;  %2210 = vmatprep.subr.mxu0 %v1626_v50  ;;  %v1667_v49 = vld [vmem:[%s11195_s9 + $0x198] sm:$0xff]  ;;  %v1665_v50 = vld [vmem:[%s11195_s9 + $0x188] sm:$0xff] }
 0x325   :  { %6942 = vmatpush3.msra.mxu1 %v1636_v51  ;;  %2211 = vmatpush1.msra.mxu0 %v1625_v52  ;;  %v1664_v51 = vld [vmem:[%s11195_s9 + $0x180] sm:$0xff]  ;;  %v1759_v52 = vld [vmem:[%s11195_s9 + $0x478] sm:$0xff] }
 0x326   :  { %6943 = vmatprep.subr.mxu1 %v1681_v53  ;;  %2212 = vmatprep.subr.mxu0 %v1623_v54  ;;  %v1756_v53 = vld [vmem:[%s11195_s9 + $0x460] sm:$0xff]  ;;  %v1753_v54 = vld [vmem:[%s11195_s9 + $0x448] sm:$0xff] }
 0x327   :  { %6944 = vmatpush3.msra.mxu1 %v1633_v55  ;;  %2213 = vmatpush1.msra.mxu0 %v1622_v56  ;;  %v1750_v55 = vld [vmem:[%s11195_s9 + $0x430] sm:$0xff]  ;;  %v1747_v56 = vld [vmem:[%s11195_s9 + $0x418] sm:$0xff] }
 0x328   :  { %6945 = vmatprep.subr.mxu1 %v1678_v57  ;;  %2214 = vmatprep.subr.mxu0 %v1620_v59  ;;  %v1744_v57 = vld [vmem:[%s11195_s9 + $0x400] sm:$0xff]  ;;  %v1741_v59 = vld [vmem:[%s11195_s9 + $0x3e8] sm:$0xff] }
 0x329   :  { %6946 = vmatpush3.msra.mxu1 %v1630_v61  ;;  %2215 = vmatpush1.msra.mxu0 %v1619_v62  ;;  %v1738_v61 = vld [vmem:[%s11195_s9 + $0x3d0] sm:$0xff]  ;;  %v1735_v62 = vld [vmem:[%s11195_s9 + $0x3b8] sm:$0xff] }
 0x32a   :  { %6947 = vmatprep.subr.mxu1 %v1675_v63  ;;  %2216 = vmatprep.subr.mxu0 %v1617_v1  ;;  %v1732_v63 = vld [vmem:[%s11195_s9 + $0x3a0] sm:$0xff]  ;;  %v1729_v1 = vld [vmem:[%s11195_s9 + $0x388] sm:$0xff] }
 0x32b   :  { %6948 = vmatpush3.msra.mxu1 %v1627_v2  ;;  %2217 = vmatpush1.msra.mxu0 %v1616_v3  ;;  %v1726_v2 = vld [vmem:[%s11195_s9 + $0x370] sm:$0xff]  ;;  %v1723_v3 = vld [vmem:[%s11195_s9 + $0x358] sm:$0xff] }
 0x32c   :  { %6949 = vmatprep.subr.mxu1 %v1672_v4  ;;  %2218 = vmatprep.subr.mxu0 %v1710_v5  ;;  %v1720_v4 = vld [vmem:[%s11195_s9 + $0x340] sm:$0xff]  ;;  %v1717_v5 = vld [vmem:[%s11195_s9 + $0x328] sm:$0xff] }
 0x32d   :  { %6950 = vmatpush3.msra.mxu1 %v1624_v6  ;;  %2219 = vmatpush2.msra.mxu0 %v1709_v8  ;;  %v1714_v6 = vld [vmem:[%s11195_s9 + $0x310] sm:$0xff]  ;;  %v2610_v8 = vld [vmem:[%s11196_s13 + $0xf8] sm:$0xff] }
 0x32e   :  { %6951 = vmatprep.subr.mxu1 %v1669_v9  ;;  %2220 = vmatprep.subr.mxu0 %v1707_v10  ;;  %v2594_v9 = vld [vmem:[%s11196_s13 + $0x78] sm:$0xff]  ;;  %v2609_v10 = vld [vmem:[%s11196_s13 + $0xf0] sm:$0xff] }
 0x32f   :  { %6952 = vmatpush3.msra.mxu1 %v1621_v11  ;;  %2221 = vmatpush2.msra.mxu0 %v1706_v14  ;;  %v2593_v11 = vld [vmem:[%s11196_s13 + $0x70] sm:$0xff]  ;;  %v2608_v14 = vld [vmem:[%s11196_s13 + $0xe8] sm:$0xff] }
 0x330   :  { %6953 = vmatprep.subr.mxu1 %v1666_v17  ;;  %2222 = vmatprep.subr.mxu0 %v1704_v18  ;;  %v2592_v17 = vld [vmem:[%s11196_s13 + $0x68] sm:$0xff]  ;;  %v2591_v18 = vld [vmem:[%s11196_s13 + $0x60] sm:$0xff] }
 0x331   :  { %6954 = vmatpush3.msra.mxu1 %v1618_v21  ;;  %2392 = vmatprep.mubr.f32.mxu1 %v9491_v24  ;;  %v2606_v21 = vld [vmem:[%s11196_s13 + $0xd8] sm:$0xff] }
 0x332   :  { %2223 = vmatpush2.msra.mxu0 %v1703_v22  ;;  %2393 = vmatmul.mubr.f32.vlgmr.msra.gmra.mxu1 %v9496_v26  ;;  %v2590_v22 = vld [vmem:[%s11196_s13 + $0x58] sm:$0xff] }
 0x333   :  { %2224 = vmatprep.subr.mxu0 %v1701_v23  ;;  %2250 = vmatprep.mubr.f32.mxu0 %v9491_v24  ;;  %v2605_v23 = vld [vmem:[%s11196_s13 + $0xd0] sm:$0xff] }
 0x334   :  { %2225 = vmatpush2.msra.mxu0 %v1700_v25  ;;  %6975 = vmatprep.subr.mxu1 %v2610_v8  ;;  %v2589_v25 = vld [vmem:[%s11196_s13 + $0x50] sm:$0xff]  ;;  %v2611_v8 = vld [vmem:[%s11196_s13 + $0x100] sm:$0xff] }
 0x335   :  { %2226 = vmatprep.subr.mxu0 %v1698_v27  ;;  %6976 = vmatpush3.msra.mxu1 %v2594_v9  ;;  %v2604_v27 = vld [vmem:[%s11196_s13 + $0xc8] sm:$0xff] }
 0x336   :  { %2227 = vmatpush2.msra.mxu0 %v1697_v29  ;;  %6977 = vmatprep.subr.mxu1 %v2609_v10  ;;  %v2588_v29 = vld [vmem:[%s11196_s13 + $0x48] sm:$0xff] }
 0x337   :  { %2228 = vmatprep.subr.mxu0 %v1695_v30  ;;  %6978 = vmatpush3.msra.mxu1 %v2593_v11  ;;  %v2603_v30 = vld [vmem:[%s11196_s13 + $0xc0] sm:$0xff] }
 0x338   :  { %2229 = vmatpush2.msra.mxu0 %v1694_v7  ;;  %6979 = vmatprep.subr.mxu1 %v2608_v14  ;;  %v2587_v7 = vld [vmem:[%s11196_s13 + $0x40] sm:$0xff] }
 0x339   :  { %2230 = vmatprep.subr.mxu0 %v1692_v31  ;;  %6980 = vmatpush3.msra.mxu1 %v2592_v17  ;;  %v2602_v31 = vld [vmem:[%s11196_s13 + $0xb8] sm:$0xff]  ;;  %v9631_v17 = vld [vmem:[%s11198_s21] sm:$0x7] }
 0x33a   :  { %2231 = vmatpush2.msra.mxu0 %v1691_v32  ;;  %v2586_v32 = vld [vmem:[%s11196_s13 + $0x38] sm:$0xff] }
 0x33b   :  { %2232 = vmatprep.subr.mxu0 %v1689_v33  ;;  %v2601_v33 = vld [vmem:[%s11196_s13 + $0xb0] sm:$0xff] }
 0x33c   :  { %2233 = vmatpush2.msra.mxu0 %v1688_v34  ;;  %v2585_v34 = vld [vmem:[%s11196_s13 + $0x30] sm:$0xff] }
 0x33d   :  { %2234 = vmatprep.subr.mxu0 %v1686_v36  ;;  %v2600_v36 = vld [vmem:[%s11196_s13 + $0xa8] sm:$0xff] }
 0x33e   :  { %2235 = vmatpush2.msra.mxu0 %v1685_v37  ;;  %v2584_v37 = vld [vmem:[%s11196_s13 + $0x28] sm:$0xff] }
 0x33f   :  { %2236 = vmatprep.subr.mxu0 %v1683_v38  ;;  %v2599_v38 = vld [vmem:[%s11196_s13 + $0xa0] sm:$0xff] }
 0x340   :  { %2237 = vmatpush2.msra.mxu0 %v1682_v35  ;;  %v2583_v35 = vld [vmem:[%s11196_s13 + $0x20] sm:$0xff] }
 0x341   :  { %2238 = vmatprep.subr.mxu0 %v1680_v39  ;;  %v2598_v39 = vld [vmem:[%s11196_s13 + $0x98] sm:$0xff] }
 0x342   :  { %2239 = vmatpush2.msra.mxu0 %v1679_v40  ;;  %v2582_v40 = vld [vmem:[%s11196_s13 + $0x18] sm:$0xff] }
 0x343   :  { %2240 = vmatprep.subr.mxu0 %v1677_v41  ;;  %v2597_v41 = vld [vmem:[%s11196_s13 + $0x90] sm:$0xff] }
 0x344   :  { %2241 = vmatpush2.msra.mxu0 %v1676_v42  ;;  %v2581_v42 = vld [vmem:[%s11196_s13 + $0x10] sm:$0xff] }
 0x345   :  { %2242 = vmatprep.subr.mxu0 %v1674_v43  ;;  %v2596_v43 = vld [vmem:[%s11196_s13 + $0x88] sm:$0xff] }
 0x346   :  { %2243 = vmatpush2.msra.mxu0 %v1673_v44  ;;  %v2626_v44 = vld [vmem:[%s11196_s13 + $0x178] sm:$0xff] }
 0x347   :  { %2244 = vmatprep.subr.mxu0 %v1671_v45  ;;  %v2580_v45 = vld [vmem:[%s11196_s13 + $0x8] sm:$0xff] }
 0x348   :  { %2245 = vmatpush2.msra.mxu0 %v1670_v46  ;;  %v2595_v46 = vld [vmem:[%s11196_s13 + $0x80] sm:$0xff] }
 0x349   :  { %2246 = vmatprep.subr.mxu0 %v1668_v47  ;;  %v2625_v47 = vld [vmem:[%s11196_s13 + $0x170] sm:$0xff] }
 0x34a   :  { %2247 = vmatpush2.msra.mxu0 %v1667_v49  ;;  %v2579_v49 = vld [vmem:[%s11196_s13] sm:$0xff] }
 0x34b   :  { %2248 = vmatprep.subr.mxu0 %v1665_v50  ;;  %v2624_v50 = vld [vmem:[%s11196_s13 + $0x168] sm:$0xff] }
 0x34c   :  { %2249 = vmatpush2.msra.mxu0 %v1664_v51  ;;  %v2562_v51 = vld [vmem:[%s11197_s17 + $0xf8] sm:$0xff] }
 0x34d   :  { %2251 = vmatmul.mubr.f32.vlgmr.msra.gmra.mxu0 %v9496_v26  ;;  %7721 = vmatprep.subr.mxu0 %v8395_v0 }
 0x34e   :  { %7722 = vmatpush3.msra.mxu0 %v1759_v52  ;;  %7753 = vmatprep.mubr.msk.f32.mxu0 %vm8396_vm0, %v8395_v0  ;;  %v2623_v52 = vld [vmem:[%s11196_s13 + $0x160] sm:$0xff] }
 0x34f   :  { %7723 = vmatprep.subr.mxu0 %v8395_v0 }
 0x350   :  { %7724 = vmatpush3.msra.mxu0 %v1756_v53  ;;  %v2622_v53 = vld [vmem:[%s11196_s13 + $0x158] sm:$0xff] }
 0x351   :  { %7725 = vmatprep.subr.mxu0 %v8395_v0 }
 0x352   :  { %7726 = vmatpush3.msra.mxu0 %v1753_v54  ;;  %v2621_v54 = vld [vmem:[%s11196_s13 + $0x150] sm:$0xff] }
 0x353   :  { %7727 = vmatprep.subr.mxu0 %v8395_v0 }
 0x354   :  { %7728 = vmatpush3.msra.mxu0 %v1750_v55  ;;  %v2620_v55 = vld [vmem:[%s11196_s13 + $0x148] sm:$0xff] }
 0x355   :  { %7729 = vmatprep.subr.mxu0 %v8395_v0 }
 0x356   :  { %7730 = vmatpush3.msra.mxu0 %v1747_v56  ;;  %v2619_v56 = vld [vmem:[%s11196_s13 + $0x140] sm:$0xff] }
 0x357   :  { %7731 = vmatprep.subr.mxu0 %v8395_v0 }
 0x358   :  { %7732 = vmatpush3.msra.mxu0 %v1744_v57  ;;  %v2618_v57 = vld [vmem:[%s11196_s13 + $0x138] sm:$0xff] }
 0x359   :  { %7733 = vmatprep.subr.mxu0 %v8395_v0 }
 0x35a   :  { %7734 = vmatpush3.msra.mxu0 %v1741_v59 }
 0x35b   :  { %7735 = vmatprep.subr.mxu0 %v8395_v0 }
 0x35c   :  { %7736 = vmatpush3.msra.mxu0 %v1738_v61  ;;  %v2617_v61 = vld [vmem:[%s11196_s13 + $0x130] sm:$0xff] }
 0x35d   :  { %7737 = vmatprep.subr.mxu0 %v8395_v0 }
 0x35e   :  { %7738 = vmatpush3.msra.mxu0 %v1735_v62  ;;  %v2616_v62 = vld [vmem:[%s11196_s13 + $0x128] sm:$0xff] }
 0x35f   :  { %7739 = vmatprep.subr.mxu0 %v8395_v0 }
 0x360   :  { %7740 = vmatpush3.msra.mxu0 %v1732_v63 }
 0x361   :  { %7741 = vmatprep.subr.mxu0 %v8395_v0 }
 0x362   :  { %7742 = vmatpush3.msra.mxu0 %v1729_v1  ;;  %v2615_v1 = vld [vmem:[%s11196_s13 + $0x120] sm:$0xff] }
 0x363   :  { %7743 = vmatprep.subr.mxu0 %v8395_v0 }
 0x364   :  { %7744 = vmatpush3.msra.mxu0 %v1726_v2 }
 0x365   :  { %7745 = vmatprep.subr.mxu0 %v8395_v0 }
 0x366   :  { %7746 = vmatpush3.msra.mxu0 %v1723_v3  ;;  %v2614_v3 = vld [vmem:[%s11196_s13 + $0x118] sm:$0xff] }
 0x367   :  { %7747 = vmatprep.subr.mxu0 %v8395_v0 }
 0x368   :  { %7748 = vmatpush3.msra.mxu0 %v1720_v4 }
 0x369   :  { %7749 = vmatprep.subr.mxu0 %v8395_v0 }
 0x36a   :  { %7750 = vmatpush3.msra.mxu0 %v1717_v5  ;;  %v2613_v5 = vld [vmem:[%s11196_s13 + $0x110] sm:$0xff] }
 0x36b   :  { %7751 = vmatprep.subr.mxu0 %v8395_v0 }
 0x36c   :  { %7752 = vmatpush3.msra.mxu0 %v1714_v6  ;;  %v2612_v6 = vld [vmem:[%s11196_s13 + $0x108] sm:$0xff] }
 0x36d   :  { %7754 = vmatmul.mubr.f32.vlgmr.msra.gmra.mxu0 %v9428_v12  ;;  %7756 = vmatprep.subr.mxu0 %v8395_v0  ;;  %v2607_v12 = vld [vmem:[%s11196_s13 + $0xe0] sm:$0xff] }
 0x36e   :  { %7788 = vmatprep.mubr.msk.f32.mxu0 %vm8396_vm0, %v8395_v0  ;;  %6981 = vmatprep.subr.mxu1 %v2607_v12 }
 0x36f   :  { %6982 = vmatpush3.msra.mxu1 %v2591_v18  ;;  %7757 = vmatpush3.msra.mxu0 %v2626_v44 }
 0x370   :  { %6983 = vmatprep.subr.mxu1 %v2606_v21  ;;  %7758 = vmatprep.subr.mxu0 %v8395_v0 }
 0x371   :  { %6984 = vmatpush3.msra.mxu1 %v2590_v22  ;;  %7759 = vmatpush3.msra.mxu0 %v2625_v47  ;;  %v2546_v47 = vld [vmem:[%s11197_s17 + $0x78] sm:$0xff] }
 0x372   :  { %6985 = vmatprep.subr.mxu1 %v2605_v23  ;;  %7760 = vmatprep.subr.mxu0 %v8395_v0 }
 0x373   :  { %6986 = vmatpush3.msra.mxu1 %v2589_v25  ;;  %7761 = vmatpush3.msra.mxu0 %v2624_v50  ;;  %v2473_v25 = vrot.slane %v9631_v17, %v8903_v58  ;;  %v2545_v50 = vld [vmem:[%s11197_s17 + $0x70] sm:$0xff] }
 0x374   :  { %6987 = vmatprep.subr.mxu1 %v2604_v27  ;;  %7762 = vmatprep.subr.mxu0 %v8395_v0 }
 0x375   :  { %6988 = vmatpush3.msra.mxu1 %v2588_v29  ;;  %7763 = vmatpush3.msra.mxu0 %v2623_v52  ;;  %v2544_v52 = vld [vmem:[%s11197_s17 + $0x68] sm:$0xff] }
 0x376   :  { %6989 = vmatprep.subr.mxu1 %v2603_v30  ;;  %7764 = vmatprep.subr.mxu0 %v8395_v0  ;;  %v9636_v30 = vld [vmem:[%s11199_s25] sm:$0x7] }
 0x377   :  { %6990 = vmatpush3.msra.mxu1 %v2587_v7  ;;  %7765 = vmatpush3.msra.mxu0 %v2622_v53  ;;  %v2559_v53 = vld [vmem:[%s11197_s17 + $0xe0] sm:$0xff] }
 0x378   :  { %6991 = vmatprep.subr.mxu1 %v2602_v31  ;;  %7766 = vmatprep.subr.mxu0 %v8395_v0  ;;  %v2477_v31 = vrot.slane %v9631_v17, %v8906_v60 }
 0x379   :  { %6992 = vmatpush3.msra.mxu1 %v2586_v32  ;;  %7767 = vmatpush3.msra.mxu0 %v2621_v54 }
 0x37a   :  { %6993 = vmatprep.subr.mxu1 %v2601_v33  ;;  %7768 = vmatprep.subr.mxu0 %v8395_v0 }
 0x37b   :  { %6994 = vmatpush3.msra.mxu1 %v2585_v34  ;;  %7769 = vmatpush3.msra.mxu0 %v2620_v55  ;;  %v2543_v55 = vld [vmem:[%s11197_s17 + $0x60] sm:$0xff] }
 0x37c   :  { %6995 = vmatprep.subr.mxu1 %v2600_v36  ;;  %7770 = vmatprep.subr.mxu0 %v8395_v0  ;;  %v2496_v36 = vrot.slane %v9636_v30, %v8903_v58 }
 0x37d   :  { %6996 = vmatpush3.msra.mxu1 %v2584_v37  ;;  %7771 = vmatpush3.msra.mxu0 %v2619_v56  ;;  %v2558_v56 = vld [vmem:[%s11197_s17 + $0xd8] sm:$0xff] }
 0x37e   :  { %6997 = vmatprep.subr.mxu1 %v2599_v38  ;;  %7772 = vmatprep.subr.mxu0 %v8395_v0 }
 0x37f   :  { %6998 = vmatpush3.msra.mxu1 %v2583_v35  ;;  %7773 = vmatpush3.msra.mxu0 %v2618_v57  ;;  %v2500_v35 = vrot.slane %v9636_v30, %v8906_v60  ;;  %v2542_v57 = vld [vmem:[%s11197_s17 + $0x58] sm:$0xff] }
 0x380   :  { %6999 = vmatprep.subr.mxu1 %v2598_v39  ;;  %7774 = vmatprep.subr.mxu0 %v8395_v0  ;;  %v9645_v39 = vld [vmem:[%s11200_s29] sm:$0x7] }
 0x381   :  { %7000 = vmatpush3.msra.mxu1 %v2582_v40  ;;  %7775 = vmatpush3.msra.mxu0 %v2617_v61  ;;  %v2541_v61 = vld [vmem:[%s11197_s17 + $0x50] sm:$0xff] }
 0x382   :  { %7001 = vmatprep.subr.mxu1 %v2597_v41  ;;  %7776 = vmatprep.subr.mxu0 %v8395_v0  ;;  %v2520_v41 = vrot.slane %v9645_v39, %v8906_v60 }
 0x383   :  { %7002 = vmatpush3.msra.mxu1 %v2581_v42  ;;  %7777 = vmatpush3.msra.mxu0 %v2616_v62 }
 0x384   :  { %7003 = vmatprep.subr.mxu1 %v2596_v43  ;;  %7778 = vmatprep.subr.mxu0 %v8395_v0  ;;  %v2516_v43 = vrot.slane %v9645_v39, %v8903_v58 }
 0x385   :  { %7004 = vmatpush3.msra.mxu1 %v2580_v45  ;;  %7779 = vmatpush3.msra.mxu0 %v2615_v1  ;;  %v2540_v1 = vld [vmem:[%s11197_s17 + $0x48] sm:$0xff] }
 0x386   :  { %7005 = vmatprep.subr.mxu1 %v2595_v46  ;;  %7780 = vmatprep.subr.mxu0 %v8395_v0 }
 0x387   :  { %7006 = vmatpush3.msra.mxu1 %v2579_v49  ;;  %7781 = vmatpush3.msra.mxu0 %v2614_v3  ;;  %v2561_v49 = vld [vmem:[%s11197_s17 + $0xf0] sm:$0xff] }
 0x388   :  { %7027 = vmatprep.subr.mxu1 %v2562_v51  ;;  %7782 = vmatprep.subr.mxu0 %v8395_v0  ;;  %v2560_v51 = vld [vmem:[%s11197_s17 + $0xe8] sm:$0xff] }
 0x389   :  { %7783 = vmatpush3.msra.mxu0 %v2613_v5  ;;  %v2539_v5 = vld [vmem:[%s11197_s17 + $0x40] sm:$0xff] }
 0x38a   :  { %7784 = vmatprep.subr.mxu0 %v8395_v0 }
 0x38b   :  { %7785 = vmatpush3.msra.mxu0 %v2612_v6 }
 0x38c   :  { %7786 = vmatprep.subr.mxu0 %v8395_v0 }
 0x38d   :  { %7787 = vmatpush3.msra.mxu0 %v2611_v8  ;;  %v2554_v8 = vld [vmem:[%s11197_s17 + $0xb8] sm:$0xff] }
 0x38e   :  { %7791 = vmatprep.subr.mxu0 %v8395_v0 }
 0x38f   :  { %v1970_v59 = vpop.f32.mrf.mxu1 }
 0x391   :  { %v1972_v63 = vpop.f32.mrf.mxu1 }
 0x3aa   :  { %v2041_v9 = vpop.f32.mrf.mxu0 }
 0x3ab   :  { %v2042_v12 = vadd.f32 %v2041_v9, %v1970_v59  ;;  %v2557_v59 = vld [vmem:[%s11197_s17 + $0xd0] sm:$0xff]  ;;  %v2538_v9 = vld [vmem:[%s11197_s17 + $0x38] sm:$0xff] }
 0x3ac   :  { %v2043_v10 = vpop.f32.mrf.mxu0 }
 0x3ad   :  { %v2044_v22 = vadd.f32 %v2043_v10, %v1972_v63  ;;  %v2556_v63 = vld [vmem:[%s11197_s17 + $0xc8] sm:$0xff] }
 0x3b0   :  { %v9619_v2 = vpop.f32.mrf.mxu1 }
 0x3b2   :  { %v7720_v4 = vpop.f32.mrf.mxu1 }
 0x3b3   :  { %v2555_v4 = vld [vmem:[%s11197_s17 + $0xc0] sm:$0xff] }
 0x3cb   :  { %v6903_v11 = vpop.f32.mrf.mxu0 }
 0x3cd   :  { %v6904_v14 = vpop.f32.mrf.mxu0 }
 0x3ce   :  { %v6905_v62 = vadd.f32 %v6904_v14, %v6903_v11  ;;  %v2481_v11 = vrot.slane %v9631_v17, %v8942_v28  ;;  %v2553_v14 = vld [vmem:[%s11197_s17 + $0xb0] sm:$0xff]  ;;  %v2551_v17 = vld [vmem:[%s11197_s17 + $0xa0] sm:$0xff] }
 0x3d0   :  { %v2183_v6 = vadd.f32 %v6905_v62, %v9619_v2  ;;  %v2552_v2 = vld [vmem:[%s11197_s17 + $0xa8] sm:$0xff]  ;;  %v3095_v62 = vld [vmem:[%s11201_s3 + $0xf8] sm:$0xff] }
 0x3d2   :  { %v2323_v18 = vpop.f32.mrf.mxu1 }
 0x3d4   :  { %v2325_v32 = vpop.f32.mrf.mxu1 }
 0x3f2   :  { %v6955_v54 = vpop.f32.mrf.mxu1 }
 0x40d   :  { %v2252_v21 = vpop.f32.mrf.mxu0 }
 0x40e   :  { %v2253_v23 = vadd.f32 %v2252_v21, %v2042_v12 }
 0x40f   :  { %v2254_v27 = vpop.f32.mrf.mxu0 }
 0x410   :  { %v2324_v29 = vadd.f32 %v2323_v18, %v2253_v23  ;;  %v2255_v7 = vadd.f32 %v2254_v27, %v2044_v22  ;;  %v2537_v18 = vld [vmem:[%s11197_s17 + $0x30] sm:$0xff]  ;;  %v2536_v23 = vld [vmem:[%s11197_s17 + $0x28] sm:$0xff]  ;;  %v2504_v27 = vrot.slane %v9636_v30, %v8942_v28 }
 0x411   :  { %v2549_v30 = vld [vmem:[%s11197_s17 + $0x90] sm:$0xff] }
 0x412   :  { %v2485_v33 = vadd.f32 %v2473_v25, %v2324_v29  ;;  %v2326_v34 = vadd.f32 %v2325_v32, %v2255_v7  ;;  %v2535_v29 = vld [vmem:[%s11197_s17 + $0x20] sm:$0xff]  ;;  %v2550_v32 = vld [vmem:[%s11197_s17 + $0x98] sm:$0xff] }
 0x414   :  { %v2488_v37 = vmax.f32 %v2485_v33, 0.0  ;;  %v2486_v38 = vadd.f32 %v2477_v31, %v2326_v34  ;;  %v2524_v31 = vrot.slane %v9645_v39, %v8942_v28  ;;  %v2534_v33 = vld [vmem:[%s11197_s17 + $0x18] sm:$0xff]  ;;  %v2532_v39 = vld [vmem:[%s11197_s17 + $0x8] sm:$0xff] }
 0x416   :  { %v2489_v40 = vmax.f32 %v2486_v38, 0.0  ;;  %v2508_v42 = vmul.f32 %v2496_v36, %v2488_v37  ;;  %v2533_v36 = vld [vmem:[%s11197_s17 + $0x10] sm:$0xff]  ;;  %v2548_v38 = vld [vmem:[%s11197_s17 + $0x88] sm:$0xff] }
 0x418   :  { %v2509_v44 = vmul.f32 %v2500_v35, %v2489_v40  ;;  %v9653_v46 = vadd.f32 %v2516_v43, %v2508_v42  ;;  %v2578_v35 = vld [vmem:[%s11197_s17 + $0x178] sm:$0xff]  ;;  %v2547_v40 = vld [vmem:[%s11197_s17 + $0x80] sm:$0xff]  ;;  %v2576_v43 = vld [vmem:[%s11197_s17 + $0x168] sm:$0xff] }
 0x419   :  { %v2531_v42 = vld [vmem:[%s11197_s17] sm:$0xff] }
 0x41a   :  { %v9651_v45 = vadd.f32 %v2520_v41, %v2509_v44  ;;  %v2577_v41 = vld [vmem:[%s11197_s17 + $0x170] sm:$0xff] }
 0x41b   :  { %v3110_v44 = vld [vmem:[%s11201_s3 + $0x170] sm:$0xff] }
 0x41c   :  { %2691 = vmatprep.mubr.f32.mxu1 %v9651_v45 }
 0x41d   :  { %2692 = vmatmul.mubr.f32.vlgmr.msra.gmra.mxu1 %v9653_v46 }
 0x41e   :  { %7028 = vmatpush3.msra.mxu1 %v2546_v47  ;;  %2831 = vmatprep.mubr.f32.mxu1 %v9491_v24  ;;  %v6956_v24 = vpop.f32.mrf.mxu1  ;;  %v3109_v47 = vld [vmem:[%s11201_s3 + $0x168] sm:$0xff] }
 0x41f   :  { %7029 = vmatprep.subr.mxu1 %v2561_v49  ;;  %v6957_v3 = vadd.f32 %v6956_v24, %v6955_v54  ;;  %v2575_v49 = vld [vmem:[%s11197_s17 + $0x160] sm:$0xff]  ;;  %v2573_v54 = vld [vmem:[%s11197_s17 + $0x150] sm:$0xff]  ;;  %v3097_v24 = vld [vmem:[%s11201_s3 + $0x108] sm:$0xff] }
 0x420   :  { %7030 = vmatpush3.msra.mxu1 %v2545_v50  ;;  %v3107_v50 = vld [vmem:[%s11201_s3 + $0x158] sm:$0xff] }
 0x421   :  { %7031 = vmatprep.subr.mxu1 %v2560_v51  ;;  %v2395_v10 = vadd.f32 %v6957_v3, %v2183_v6  ;;  %v3106_v51 = vld [vmem:[%s11201_s3 + $0x150] sm:$0xff]  ;;  %v3092_v3 = vld [vmem:[%s11201_s3 + $0xe0] sm:$0xff]  ;;  %v3089_v6 = vld [vmem:[%s11201_s3 + $0xc8] sm:$0xff] }
 0x422   :  { %7032 = vmatpush3.msra.mxu1 %v2544_v52  ;;  %v2574_v52 = vld [vmem:[%s11197_s17 + $0x158] sm:$0xff] }
 0x423   :  { %7033 = vmatprep.subr.mxu1 %v2559_v53  ;;  %v3104_v53 = vld [vmem:[%s11201_s3 + $0x140] sm:$0xff] }
 0x424   :  { %7034 = vmatpush3.msra.mxu1 %v2543_v55  ;;  %v3101_v55 = vld [vmem:[%s11201_s3 + $0x128] sm:$0xff] }
 0x425   :  { %7035 = vmatprep.subr.mxu1 %v2558_v56  ;;  %v3100_v56 = vld [vmem:[%s11201_s3 + $0x120] sm:$0xff] }
 0x426   :  { %7036 = vmatpush3.msra.mxu1 %v2542_v57  ;;  %v2572_v57 = vld [vmem:[%s11197_s17 + $0x148] sm:$0xff] }
 0x427   :  { %7037 = vmatprep.subr.mxu1 %v2557_v59  ;;  %v3098_v59 = vld [vmem:[%s11201_s3 + $0x110] sm:$0xff] }
 0x428   :  { %7038 = vmatpush3.msra.mxu1 %v2541_v61  ;;  %v2571_v61 = vld [vmem:[%s11197_s17 + $0x140] sm:$0xff] }
 0x429   :  { %7039 = vmatprep.subr.mxu1 %v2556_v63  ;;  %v3094_v63 = vld [vmem:[%s11201_s3 + $0xf0] sm:$0xff] }
 0x42a   :  { %7040 = vmatpush3.msra.mxu1 %v2540_v1  ;;  %v2570_v1 = vld [vmem:[%s11197_s17 + $0x138] sm:$0xff] }
 0x42b   :  { %7041 = vmatprep.subr.mxu1 %v2555_v4  ;;  %v3091_v4 = vld [vmem:[%s11201_s3 + $0xd8] sm:$0xff] }
 0x42c   :  { %7042 = vmatpush3.msra.mxu1 %v2539_v5  ;;  %v2569_v5 = vld [vmem:[%s11197_s17 + $0x130] sm:$0xff] }
 0x42d   :  { %7043 = vmatprep.subr.mxu1 %v2554_v8  ;;  %v2464_v12 = vpop.f32.mrf.mxu0  ;;  %v3088_v8 = vld [vmem:[%s11201_s3 + $0xc0] sm:$0xff] }
 0x42e   :  { %v2465_v21 = vadd.f32 %v2464_v12, %v2395_v10  ;;  %7044 = vmatpush3.msra.mxu1 %v2538_v9  ;;  %v2568_v9 = vld [vmem:[%s11197_s17 + $0x128] sm:$0xff]  ;;  %v3086_v10 = vld [vmem:[%s11201_s3 + $0xb0] sm:$0xff]  ;;  %v3083_v12 = vld [vmem:[%s11201_s3 + $0x98] sm:$0xff] }
 0x42f   :  { %7045 = vmatprep.subr.mxu1 %v2553_v14  ;;  %v7755_v22 = vpop.f32.mrf.mxu0  ;;  %v2567_v14 = vld [vmem:[%s11197_s17 + $0x120] sm:$0xff] }
 0x430   :  { %v2487_v25 = vadd.f32 %v2481_v11, %v2465_v21  ;;  %7046 = vmatpush3.msra.mxu1 %v2537_v18  ;;  %v3085_v11 = vld [vmem:[%s11201_s3 + $0xa8] sm:$0xff]  ;;  %v3082_v18 = vld [vmem:[%s11201_s3 + $0x90] sm:$0xff]  ;;  %v2566_v21 = vld [vmem:[%s11197_s17 + $0x118] sm:$0xff] }
 0x431   :  { %7047 = vmatprep.subr.mxu1 %v2552_v2  ;;  %v3080_v2 = vld [vmem:[%s11201_s3 + $0x80] sm:$0xff]  ;;  %v3079_v22 = vld [vmem:[%s11201_s3 + $0x78] sm:$0xff] }
 0x432   :  { %v2490_v7 = vmax.f32 %v2487_v25, 0.0  ;;  %7048 = vmatpush3.msra.mxu1 %v2536_v23  ;;  %v2565_v23 = vld [vmem:[%s11197_s17 + $0x110] sm:$0xff]  ;;  %v3077_v25 = vld [vmem:[%s11201_s3 + $0x68] sm:$0xff] }
 0x433   :  { %7049 = vmatprep.subr.mxu1 %v2551_v17  ;;  %v2564_v17 = vld [vmem:[%s11197_s17 + $0x108] sm:$0xff] }
 0x434   :  { %v2510_v34 = vmul.f32 %v2504_v27, %v2490_v7  ;;  %7050 = vmatpush3.msra.mxu1 %v2535_v29  ;;  %v3076_v27 = vld [vmem:[%s11201_s3 + $0x60] sm:$0xff]  ;;  %v3074_v29 = vld [vmem:[%s11201_s3 + $0x50] sm:$0xff]  ;;  %v3073_v7 = vld [vmem:[%s11201_s3 + $0x48] sm:$0xff] }
 0x435   :  { %7051 = vmatprep.subr.mxu1 %v2550_v32  ;;  %v3071_v32 = vld [vmem:[%s11201_s3 + $0x38] sm:$0xff] }
 0x436   :  { %v9692_v37 = vadd.f32 %v2524_v31, %v2510_v34  ;;  %7052 = vmatpush3.msra.mxu1 %v2534_v33  ;;  %v2563_v31 = vld [vmem:[%s11197_s17 + $0x100] sm:$0xff]  ;;  %v3070_v33 = vld [vmem:[%s11201_s3 + $0x30] sm:$0xff] }
 0x437   :  { %7053 = vmatprep.subr.mxu1 %v2549_v30  ;;  %v3206_v34 = vld [vmem:[%s11201_s3 + $0x470] sm:$0xff]  ;;  %v3068_v30 = vld [vmem:[%s11201_s3 + $0x20] sm:$0xff] }
 0x438   :  { %7054 = vmatpush3.msra.mxu1 %v2533_v36  ;;  %7789 = vmatmul.mubr.f32.vlgmr.msra.gmra.mxu0 %v9692_v37  ;;  %v3205_v36 = vld [vmem:[%s11201_s3 + $0x468] sm:$0xff] }
 0x439   :  { %7055 = vmatprep.subr.mxu1 %v2548_v38  ;;  %7792 = vmatpush3.msra.mxu0 %v2578_v35  ;;  %v9766_v38 = vld [vmem:[%s8405_s5 + $0x10] sm:$0xff]  ;;  %v3067_v35 = vld [vmem:[%s11201_s3 + $0x18] sm:$0xff] }
 0x43a   :  { %7056 = vmatpush3.msra.mxu1 %v2532_v39  ;;  %7793 = vmatprep.subr.mxu0 %v8395_v0  ;;  %v3203_v39 = vld [vmem:[%s11201_s3 + $0x458] sm:$0xff] }
 0x43b   :  { %7057 = vmatprep.subr.mxu1 %v2547_v40  ;;  %7794 = vmatpush3.msra.mxu0 %v2577_v41  ;;  %v3065_v40 = vld [vmem:[%s11201_s3 + $0x8] sm:$0xff]  ;;  %v3202_v41 = vld [vmem:[%s11201_s3 + $0x450] sm:$0xff] }
 0x43c   :  { %7058 = vmatpush3.msra.mxu1 %v2531_v42  ;;  %7795 = vmatprep.subr.mxu0 %v8395_v0  ;;  %v3064_v42 = vld [vmem:[%s11201_s3] sm:$0xff] }
 0x43d   :  { %2832 = vmatmul.mubr.f32.vlgmr.msra.gmra.mxu1 %v9496_v26  ;;  %7796 = vmatpush3.msra.mxu0 %v2576_v43  ;;  %v3103_v26 = vld [vmem:[%s11201_s3 + $0x138] sm:$0xff]  ;;  %v3200_v43 = vld [vmem:[%s11201_s3 + $0x440] sm:$0xff] }
 0x43e   :  { %3208 = vmatprep.subr.mxu1 %v3110_v44  ;;  %7797 = vmatprep.subr.mxu0 %v8395_v0  ;;  %v3158_v44 = vld [vmem:[%s11201_s3 + $0x2f0] sm:$0xff] }
 0x43f   :  { %3209 = vmatpush1.msra.mxu1 %v3109_v47  ;;  %3272 = vmatprep.mubr.f32.mxu1 %v8924_v19  ;;  %v3199_v47 = vld [vmem:[%s11201_s3 + $0x438] sm:$0xff] }
 0x440   :  { %7798 = vmatpush3.msra.mxu0 %v2575_v49  ;;  %3210 = vmatprep.subr.mxu1 %v3107_v50  ;;  %v3157_v49 = vld [vmem:[%s11201_s3 + $0x2e8] sm:$0xff] }
 0x441   :  { %7799 = vmatprep.subr.mxu0 %v8395_v0  ;;  %3211 = vmatpush1.msra.mxu1 %v3106_v51  ;;  %v3197_v50 = vld [vmem:[%s11201_s3 + $0x428] sm:$0xff]  ;;  %v3155_v51 = vld [vmem:[%s11201_s3 + $0x2d8] sm:$0xff] }
 0x442   :  { %7800 = vmatpush3.msra.mxu0 %v2574_v52  ;;  %3212 = vmatprep.subr.mxu1 %v3104_v53  ;;  %v3196_v52 = vld [vmem:[%s11201_s3 + $0x420] sm:$0xff]  ;;  %v3154_v53 = vld [vmem:[%s11201_s3 + $0x2d0] sm:$0xff] }
 0x443   :  { %7801 = vmatprep.subr.mxu0 %v8395_v0  ;;  %3213 = vmatpush1.msra.mxu1 %v3103_v26  ;;  %v3194_v26 = vld [vmem:[%s11201_s3 + $0x410] sm:$0xff] }
 0x444   :  { %7802 = vmatpush3.msra.mxu0 %v2573_v54  ;;  %3214 = vmatprep.subr.mxu1 %v3101_v55  ;;  %v3152_v54 = vld [vmem:[%s11201_s3 + $0x2c0] sm:$0xff]  ;;  %v3193_v55 = vld [vmem:[%s11201_s3 + $0x408] sm:$0xff] }
 0x445   :  { %7803 = vmatprep.subr.mxu0 %v8395_v0  ;;  %3215 = vmatpush1.msra.mxu1 %v3100_v56  ;;  %v3151_v56 = vld [vmem:[%s11201_s3 + $0x2b8] sm:$0xff] }
 0x446   :  { %7804 = vmatpush3.msra.mxu0 %v2572_v57  ;;  %3216 = vmatprep.subr.mxu1 %v3098_v59  ;;  %v3191_v57 = vld [vmem:[%s11201_s3 + $0x3f8] sm:$0xff]  ;;  %v3149_v59 = vld [vmem:[%s11201_s3 + $0x2a8] sm:$0xff] }
 0x447   :  { %7805 = vmatprep.subr.mxu0 %v8395_v0  ;;  %3217 = vmatpush1.msra.mxu1 %v3097_v24  ;;  %v3190_v24 = vld [vmem:[%s11201_s3 + $0x3f0] sm:$0xff] }
 0x448   :  { %7806 = vmatpush3.msra.mxu0 %v2571_v61  ;;  %3218 = vmatprep.subr.mxu1 %v3095_v62  ;;  %v3148_v61 = vld [vmem:[%s11201_s3 + $0x2a0] sm:$0xff] }
 0x449   :  { %7807 = vmatprep.subr.mxu0 %v8395_v0  ;;  %3219 = vmatpush1.msra.mxu1 %v3094_v63  ;;  %v3188_v62 = vld [vmem:[%s11201_s3 + $0x3e0] sm:$0xff]  ;;  %v3146_v63 = vld [vmem:[%s11201_s3 + $0x290] sm:$0xff] }
 0x44a   :  { %7808 = vmatpush3.msra.mxu0 %v2570_v1  ;;  %3220 = vmatprep.subr.mxu1 %v3092_v3  ;;  %v3187_v1 = vld [vmem:[%s11201_s3 + $0x3d8] sm:$0xff]  ;;  %v3145_v3 = vld [vmem:[%s11201_s3 + $0x288] sm:$0xff] }
 0x44b   :  { %7809 = vmatprep.subr.mxu0 %v8395_v0  ;;  %3221 = vmatpush1.msra.mxu1 %v3091_v4  ;;  %v3185_v4 = vld [vmem:[%s11201_s3 + $0x3c8] sm:$0xff] }
 0x44c   :  { %7810 = vmatpush3.msra.mxu0 %v2569_v5  ;;  %3222 = vmatprep.subr.mxu1 %v3089_v6  ;;  %v3143_v5 = vld [vmem:[%s11201_s3 + $0x278] sm:$0xff]  ;;  %v3184_v6 = vld [vmem:[%s11201_s3 + $0x3c0] sm:$0xff] }
 0x44d   :  { %7811 = vmatprep.subr.mxu0 %v8395_v0  ;;  %3223 = vmatpush1.msra.mxu1 %v3088_v8  ;;  %v3142_v8 = vld [vmem:[%s11201_s3 + $0x270] sm:$0xff] }
 0x44e   :  { %7812 = vmatpush3.msra.mxu0 %v2568_v9  ;;  %3224 = vmatprep.subr.mxu1 %v3086_v10  ;;  %v3182_v9 = vld [vmem:[%s11201_s3 + $0x3b0] sm:$0xff]  ;;  %v3140_v10 = vld [vmem:[%s11201_s3 + $0x260] sm:$0xff] }
 0x44f   :  { %7813 = vmatprep.subr.mxu0 %v8395_v0  ;;  %3225 = vmatpush1.msra.mxu1 %v3085_v11  ;;  %v3181_v11 = vld [vmem:[%s11201_s3 + $0x3a8] sm:$0xff] }
 0x450   :  { %7814 = vmatpush3.msra.mxu0 %v2567_v14  ;;  %3226 = vmatprep.subr.mxu1 %v3083_v12  ;;  %v3139_v14 = vld [vmem:[%s11201_s3 + $0x258] sm:$0xff] }
 0x451   :  { %7815 = vmatprep.subr.mxu0 %v8395_v0  ;;  %3227 = vmatpush1.msra.mxu1 %v3082_v18  ;;  %v3179_v12 = vld [vmem:[%s11201_s3 + $0x398] sm:$0xff]  ;;  %v3137_v18 = vld [vmem:[%s11201_s3 + $0x248] sm:$0xff] }
 0x452   :  { %7816 = vmatpush3.msra.mxu0 %v2566_v21  ;;  %3228 = vmatprep.subr.mxu1 %v3080_v2  ;;  %v3178_v21 = vld [vmem:[%s11201_s3 + $0x390] sm:$0xff]  ;;  %v3136_v2 = vld [vmem:[%s11201_s3 + $0x240] sm:$0xff] }
 0x453   :  { %7817 = vmatprep.subr.mxu0 %v8395_v0  ;;  %3229 = vmatpush1.msra.mxu1 %v3079_v22  ;;  %v3176_v22 = vld [vmem:[%s11201_s3 + $0x380] sm:$0xff] }
 0x454   :  { %7818 = vmatpush3.msra.mxu0 %v2565_v23  ;;  %3230 = vmatprep.subr.mxu1 %v3077_v25  ;;  %v3134_v23 = vld [vmem:[%s11201_s3 + $0x230] sm:$0xff]  ;;  %v3175_v25 = vld [vmem:[%s11201_s3 + $0x378] sm:$0xff] }
 0x455   :  { %7819 = vmatprep.subr.mxu0 %v8395_v0  ;;  %3231 = vmatpush1.msra.mxu1 %v3076_v27  ;;  %v3133_v27 = vld [vmem:[%s11201_s3 + $0x228] sm:$0xff] }
 0x456   :  { %7820 = vmatpush3.msra.mxu0 %v2564_v17  ;;  %3232 = vmatprep.subr.mxu1 %v3074_v29  ;;  %v3173_v17 = vld [vmem:[%s11201_s3 + $0x368] sm:$0xff]  ;;  %v3131_v29 = vld [vmem:[%s11201_s3 + $0x218] sm:$0xff] }
 0x457   :  { %7821 = vmatprep.subr.mxu0 %v8395_v0  ;;  %3233 = vmatpush1.msra.mxu1 %v3073_v7  ;;  %v3172_v7 = vld [vmem:[%s11201_s3 + $0x360] sm:$0xff] }
 0x458   :  { %7822 = vmatpush3.msra.mxu0 %v2563_v31  ;;  %7823 = vmatprep.mubr.msk.f32.mxu0 %vm8396_vm0, %v8395_v0  ;;  %v3130_v31 = vld [vmem:[%s11201_s3 + $0x210] sm:$0xff] }
 0x459   :  { %3234 = vmatprep.subr.mxu1 %v3071_v32  ;;  %7824 = vmatmul.mubr.f32.vlgmr.msra.gmra.mxu0 %v9766_v38  ;;  %v3170_v32 = vld [vmem:[%s11201_s3 + $0x350] sm:$0xff] }
 0x45a   :  { %3235 = vmatpush1.msra.mxu1 %v3070_v33  ;;  %3279 = vmatprep.subr.mxu0 %v3206_v34  ;;  %v3128_v33 = vld [vmem:[%s11201_s3 + $0x200] sm:$0xff]  ;;  %v3169_v34 = vld [vmem:[%s11201_s3 + $0x348] sm:$0xff] }
 0x45b   :  { %3236 = vmatprep.subr.mxu1 %v3068_v30  ;;  %3280 = vmatpush1.msra.mxu0 %v3205_v36  ;;  %v3127_v30 = vld [vmem:[%s11201_s3 + $0x1f8] sm:$0xff] }
 0x45c   :  { %3237 = vmatpush1.msra.mxu1 %v3067_v35  ;;  %3281 = vmatprep.subr.mxu0 %v3203_v39  ;;  %v3167_v36 = vld [vmem:[%s11201_s3 + $0x338] sm:$0xff]  ;;  %v3125_v35 = vld [vmem:[%s11201_s3 + $0x1e8] sm:$0xff]  ;;  %v3166_v39 = vld [vmem:[%s11201_s3 + $0x330] sm:$0xff] }
 0x45d   :  { %3238 = vmatprep.subr.mxu1 %v3065_v40  ;;  %3282 = vmatpush1.msra.mxu0 %v3202_v41  ;;  %v3124_v40 = vld [vmem:[%s11201_s3 + $0x1e0] sm:$0xff] }
 0x45e   :  { %3239 = vmatpush1.msra.mxu1 %v3064_v42  ;;  %3283 = vmatprep.subr.mxu0 %v3200_v43  ;;  %v3164_v41 = vld [vmem:[%s11201_s3 + $0x320] sm:$0xff]  ;;  %v3122_v42 = vld [vmem:[%s11201_s3 + $0x1d0] sm:$0xff]  ;;  %v3163_v43 = vld [vmem:[%s11201_s3 + $0x318] sm:$0xff] }
 0x45f   :  { %3240 = vmatprep.subr.mxu1 %v3158_v44  ;;  %3284 = vmatpush1.msra.mxu0 %v3199_v47  ;;  %v3121_v44 = vld [vmem:[%s11201_s3 + $0x1c8] sm:$0xff] }
 0x460   :  { %3241 = vmatpush2.msra.mxu1 %v3157_v49  ;;  %3285 = vmatprep.subr.mxu0 %v3197_v50  ;;  %v3161_v47 = vld [vmem:[%s11201_s3 + $0x308] sm:$0xff]  ;;  %v3119_v49 = vld [vmem:[%s11201_s3 + $0x1b8] sm:$0xff]  ;;  %v3160_v50 = vld [vmem:[%s11201_s3 + $0x300] sm:$0xff] }
 0x461   :  { %3242 = vmatprep.subr.mxu1 %v3155_v51  ;;  %3286 = vmatpush1.msra.mxu0 %v3196_v52  ;;  %v3118_v51 = vld [vmem:[%s11201_s3 + $0x1b0] sm:$0xff]  ;;  %v3159_v52 = vld [vmem:[%s11201_s3 + $0x2f8] sm:$0xff] }
 0x462   :  { %3243 = vmatpush2.msra.mxu1 %v3154_v53  ;;  %3287 = vmatprep.subr.mxu0 %v3194_v26  ;;  %v3116_v53 = vld [vmem:[%s11201_s3 + $0x1a0] sm:$0xff]  ;;  %v3111_v26 = vld [vmem:[%s11201_s3 + $0x178] sm:$0xff] }
 0x463   :  { %3244 = vmatprep.subr.mxu1 %v3152_v54  ;;  %3288 = vmatpush1.msra.mxu0 %v3193_v55  ;;  %v3115_v54 = vld [vmem:[%s11201_s3 + $0x198] sm:$0xff]  ;;  %v3156_v55 = vld [vmem:[%s11201_s3 + $0x2e0] sm:$0xff] }
 0x464   :  { %3245 = vmatpush2.msra.mxu1 %v3151_v56  ;;  %3289 = vmatprep.subr.mxu0 %v3191_v57  ;;  %v3113_v56 = vld [vmem:[%s11201_s3 + $0x188] sm:$0xff]  ;;  %v3108_v57 = vld [vmem:[%s11201_s3 + $0x160] sm:$0xff] }
 0x465   :  { %3246 = vmatprep.subr.mxu1 %v3149_v59  ;;  %3290 = vmatpush1.msra.mxu0 %v3190_v24  ;;  %v3112_v59 = vld [vmem:[%s11201_s3 + $0x180] sm:$0xff]  ;;  %v3153_v24 = vld [vmem:[%s11201_s3 + $0x2c8] sm:$0xff] }
 0x466   :  { %3247 = vmatpush2.msra.mxu1 %v3148_v61  ;;  %3291 = vmatprep.subr.mxu0 %v3188_v62  ;;  %v3105_v61 = vld [vmem:[%s11201_s3 + $0x148] sm:$0xff]  ;;  %v3150_v62 = vld [vmem:[%s11201_s3 + $0x2b0] sm:$0xff] }
 0x467   :  { %3248 = vmatprep.subr.mxu1 %v3146_v63  ;;  %3292 = vmatpush1.msra.mxu0 %v3187_v1  ;;  %v3207_v63 = vld [vmem:[%s11201_s3 + $0x478] sm:$0xff]  ;;  %v3102_v1 = vld [vmem:[%s11201_s3 + $0x130] sm:$0xff] }
 0x468   :  { %3249 = vmatpush2.msra.mxu1 %v3145_v3  ;;  %3293 = vmatprep.subr.mxu0 %v3185_v4  ;;  %v3204_v3 = vld [vmem:[%s11201_s3 + $0x460] sm:$0xff]  ;;  %v3099_v4 = vld [vmem:[%s11201_s3 + $0x118] sm:$0xff] }
 0x469   :  { %3250 = vmatprep.subr.mxu1 %v3143_v5  ;;  %3294 = vmatpush1.msra.mxu0 %v3184_v6  ;;  %v3144_v5 = vld [vmem:[%s11201_s3 + $0x280] sm:$0xff]  ;;  %v3201_v6 = vld [vmem:[%s11201_s3 + $0x448] sm:$0xff] }
 0x46a   :  { %3251 = vmatpush2.msra.mxu1 %v3142_v8  ;;  %3295 = vmatprep.subr.mxu0 %v3182_v9  ;;  %v3096_v8 = vld [vmem:[%s11201_s3 + $0x100] sm:$0xff]  ;;  %v3141_v9 = vld [vmem:[%s11201_s3 + $0x268] sm:$0xff] }
 0x46b   :  { %3252 = vmatprep.subr.mxu1 %v3140_v10  ;;  %3296 = vmatpush1.msra.mxu0 %v3181_v11  ;;  %v3198_v10 = vld [vmem:[%s11201_s3 + $0x430] sm:$0xff]  ;;  %v3093_v11 = vld [vmem:[%s11201_s3 + $0xe8] sm:$0xff] }
 0x46c   :  { %3253 = vmatpush2.msra.mxu1 %v3139_v14  ;;  %3297 = vmatprep.subr.mxu0 %v3179_v12  ;;  %v3138_v14 = vld [vmem:[%s11201_s3 + $0x250] sm:$0xff]  ;;  %v3195_v12 = vld [vmem:[%s11201_s3 + $0x418] sm:$0xff] }
 0x46d   :  { %3254 = vmatprep.subr.mxu1 %v3137_v18  ;;  %3298 = vmatpush1.msra.mxu0 %v3178_v21  ;;  %v3090_v18 = vld [vmem:[%s11201_s3 + $0xd0] sm:$0xff]  ;;  %v3135_v21 = vld [vmem:[%s11201_s3 + $0x238] sm:$0xff] }
 0x46e   :  { %3255 = vmatpush2.msra.mxu1 %v3136_v2  ;;  %3299 = vmatprep.subr.mxu0 %v3176_v22  ;;  %v3192_v2 = vld [vmem:[%s11201_s3 + $0x400] sm:$0xff]  ;;  %v3087_v22 = vld [vmem:[%s11201_s3 + $0xb8] sm:$0xff] }
 0x46f   :  { %3256 = vmatprep.subr.mxu1 %v3134_v23  ;;  %3300 = vmatpush1.msra.mxu0 %v3175_v25  ;;  %v3132_v23 = vld [vmem:[%s11201_s3 + $0x220] sm:$0xff]  ;;  %v3189_v25 = vld [vmem:[%s11201_s3 + $0x3e8] sm:$0xff] }
 0x470   :  { %3257 = vmatpush2.msra.mxu1 %v3133_v27  ;;  %3301 = vmatprep.subr.mxu0 %v3173_v17  ;;  %v3084_v27 = vld [vmem:[%s11201_s3 + $0xa0] sm:$0xff]  ;;  %v3129_v17 = vld [vmem:[%s11201_s3 + $0x208] sm:$0xff] }
 0x471   :  { %3258 = vmatprep.subr.mxu1 %v3131_v29  ;;  %3302 = vmatpush1.msra.mxu0 %v3172_v7  ;;  %v3186_v29 = vld [vmem:[%s11201_s3 + $0x3d0] sm:$0xff]  ;;  %v3081_v7 = vld [vmem:[%s11201_s3 + $0x88] sm:$0xff] }
 0x472   :  { %3259 = vmatpush2.msra.mxu1 %v3130_v31  ;;  %3303 = vmatprep.subr.mxu0 %v3170_v32  ;;  %v3126_v31 = vld [vmem:[%s11201_s3 + $0x1f0] sm:$0xff]  ;;  %v3183_v32 = vld [vmem:[%s11201_s3 + $0x3b8] sm:$0xff] }
 0x473   :  { %3260 = vmatprep.subr.mxu1 %v3128_v33  ;;  %3304 = vmatpush1.msra.mxu0 %v3169_v34  ;;  %v3078_v33 = vld [vmem:[%s11201_s3 + $0x70] sm:$0xff]  ;;  %v3123_v34 = vld [vmem:[%s11201_s3 + $0x1d8] sm:$0xff] }
 0x474   :  { %3261 = vmatpush2.msra.mxu1 %v3127_v30  ;;  %3305 = vmatprep.subr.mxu0 %v3167_v36  ;;  %v3180_v30 = vld [vmem:[%s11201_s3 + $0x3a0] sm:$0xff]  ;;  %v3075_v36 = vld [vmem:[%s11201_s3 + $0x58] sm:$0xff] }
 0x475   :  { %3262 = vmatprep.subr.mxu1 %v3125_v35  ;;  %3306 = vmatpush1.msra.mxu0 %v3166_v39  ;;  %v3120_v35 = vld [vmem:[%s11201_s3 + $0x1c0] sm:$0xff]  ;;  %v3177_v39 = vld [vmem:[%s11201_s3 + $0x388] sm:$0xff] }
 0x476   :  { %3263 = vmatpush2.msra.mxu1 %v3124_v40  ;;  %3307 = vmatprep.subr.mxu0 %v3164_v41  ;;  %v3072_v40 = vld [vmem:[%s11201_s3 + $0x40] sm:$0xff]  ;;  %v3117_v41 = vld [vmem:[%s11201_s3 + $0x1a8] sm:$0xff] }
 0x477   :  { %3264 = vmatprep.subr.mxu1 %v3122_v42  ;;  %3308 = vmatpush1.msra.mxu0 %v3163_v43  ;;  %v3174_v42 = vld [vmem:[%s11201_s3 + $0x370] sm:$0xff]  ;;  %v3069_v43 = vld [vmem:[%s11201_s3 + $0x28] sm:$0xff] }
 0x478   :  { %3265 = vmatpush2.msra.mxu1 %v3121_v44  ;;  %3309 = vmatprep.subr.mxu0 %v3161_v47  ;;  %v3114_v44 = vld [vmem:[%s11201_s3 + $0x190] sm:$0xff]  ;;  %v3171_v47 = vld [vmem:[%s11201_s3 + $0x358] sm:$0xff] }
 0x479   :  { %3266 = vmatprep.subr.mxu1 %v3119_v49  ;;  %3310 = vmatpush1.msra.mxu0 %v3160_v50  ;;  %v3066_v49 = vld [vmem:[%s11201_s3 + $0x10] sm:$0xff]  ;;  %v3168_v50 = vld [vmem:[%s11201_s3 + $0x340] sm:$0xff] }
 0x47a   :  { %3343 = vmatprep.mubr.f32.mxu0 %v8395_v0  ;;  %3267 = vmatpush2.msra.mxu1 %v3118_v51  ;;  %v2966_v51 = vld [vmem:[%s11202_s8 + $0x170] sm:$0xff] }
 0x47b   :  { %3344 = vmatmul.mubr.f32.vlgmr.msra.gmra.mxu0 %v8965_v48  ;;  %7079 = vmatprep.subr.mxu0 %v3159_v52  ;;  %v2965_v52 = vld [vmem:[%s11202_s8 + $0x168] sm:$0xff] }
 0x47c   :  { %3268 = vmatprep.subr.mxu1 %v3116_v53  ;;  %7080 = vmatpush3.msra.mxu0 %v3111_v26  ;;  %v3165_v53 = vld [vmem:[%s11201_s3 + $0x328] sm:$0xff]  ;;  %v2963_v26 = vld [vmem:[%s11202_s8 + $0x158] sm:$0xff] }
 0x47d   :  { %3414 = vmatprep.mubr.f32.mxu0 %v8924_v19  ;;  %3269 = vmatpush2.msra.mxu1 %v3115_v54  ;;  %v3147_v19 = vld [vmem:[%s11201_s3 + $0x298] sm:$0xff]  ;;  %v2962_v54 = vld [vmem:[%s11202_s8 + $0x150] sm:$0xff] }
 0x47e   :  { %7081 = vmatprep.subr.mxu0 %v3156_v55  ;;  %3270 = vmatprep.subr.mxu1 %v3113_v56  ;;  %v3162_v55 = vld [vmem:[%s11201_s3 + $0x310] sm:$0xff]  ;;  %v2960_v56 = vld [vmem:[%s11202_s8 + $0x140] sm:$0xff] }
 0x47f   :  { %7082 = vmatpush3.msra.mxu0 %v3108_v57  ;;  %3271 = vmatpush2.msra.mxu1 %v3112_v59  ;;  %v3062_v57 = vld [vmem:[%s11202_s8 + $0x470] sm:$0xff]  ;;  %v2957_v59 = vld [vmem:[%s11202_s8 + $0x128] sm:$0xff] }
 0x480   :  { %7083 = vmatprep.subr.mxu0 %v3153_v24  ;;  %3273 = vmatmul.mubr.f32.vlgmr.msra.gmra.mxu1 %v8926_v20  ;;  %v3061_v24 = vld [vmem:[%s11202_s8 + $0x468] sm:$0xff] }
 0x481   :  { %7084 = vmatpush3.msra.mxu0 %v3105_v61  ;;  %7826 = vmatprep.subr.mxu1 %v8395_v0  ;;  %v2956_v61 = vld [vmem:[%s11202_s8 + $0x120] sm:$0xff] }
 0x482   :  { %7085 = vmatprep.subr.mxu0 %v3150_v62  ;;  %7827 = vmatpush3.msra.mxu1 %v3207_v63  ;;  %v3059_v62 = vld [vmem:[%s11202_s8 + $0x458] sm:$0xff]  ;;  %v2954_v63 = vld [vmem:[%s11202_s8 + $0x110] sm:$0xff] }
 0x483   :  { %7086 = vmatpush3.msra.mxu0 %v3102_v1  ;;  %7828 = vmatprep.subr.mxu1 %v8395_v0  ;;  %v3058_v1 = vld [vmem:[%s11202_s8 + $0x450] sm:$0xff] }
 0x484   :  { %7087 = vmatprep.subr.mxu0 %v3147_v19  ;;  %7829 = vmatpush3.msra.mxu1 %v3204_v3  ;;  %v2953_v19 = vld [vmem:[%s11202_s8 + $0x108] sm:$0xff]  ;;  %v3056_v3 = vld [vmem:[%s11202_s8 + $0x440] sm:$0xff] }
 0x485   :  { %7088 = vmatpush3.msra.mxu0 %v3099_v4  ;;  %7830 = vmatprep.subr.mxu1 %v8395_v0  ;;  %v2951_v4 = vld [vmem:[%s11202_s8 + $0xf8] sm:$0xff] }
 0x486   :  { %7089 = vmatprep.subr.mxu0 %v3144_v5  ;;  %7831 = vmatpush3.msra.mxu1 %v3201_v6  ;;  %v2950_v5 = vld [vmem:[%s11202_s8 + $0xf0] sm:$0xff]  ;;  %v3053_v6 = vld [vmem:[%s11202_s8 + $0x428] sm:$0xff] }
 0x487   :  { %7090 = vmatpush3.msra.mxu0 %v3096_v8  ;;  %7832 = vmatprep.subr.mxu1 %v8395_v0  ;;  %v2948_v8 = vld [vmem:[%s11202_s8 + $0xe0] sm:$0xff] }
 0x488   :  { %7091 = vmatprep.subr.mxu0 %v3141_v9  ;;  %7833 = vmatpush3.msra.mxu1 %v3198_v10  ;;  %v3052_v9 = vld [vmem:[%s11202_s8 + $0x420] sm:$0xff]  ;;  %v2947_v10 = vld [vmem:[%s11202_s8 + $0xd8] sm:$0xff] }
 0x489   :  { %7092 = vmatpush3.msra.mxu0 %v3093_v11  ;;  %7834 = vmatprep.subr.mxu1 %v8395_v0  ;;  %v3050_v11 = vld [vmem:[%s11202_s8 + $0x410] sm:$0xff] }
 0x48a   :  { %7093 = vmatprep.subr.mxu0 %v3138_v14  ;;  %7835 = vmatpush3.msra.mxu1 %v3195_v12  ;;  %v2945_v14 = vld [vmem:[%s11202_s8 + $0xc8] sm:$0xff] }
 0x48b   :  { %7094 = vmatpush3.msra.mxu0 %v3090_v18  ;;  %7836 = vmatprep.subr.mxu1 %v8395_v0  ;;  %v3049_v12 = vld [vmem:[%s11202_s8 + $0x408] sm:$0xff]  ;;  %v2944_v18 = vld [vmem:[%s11202_s8 + $0xc0] sm:$0xff] }
 0x48c   :  { %7095 = vmatprep.subr.mxu0 %v3135_v21  ;;  %7837 = vmatpush3.msra.mxu1 %v3192_v2  ;;  %v3047_v21 = vld [vmem:[%s11202_s8 + $0x3f8] sm:$0xff]  ;;  %v2942_v2 = vld [vmem:[%s11202_s8 + $0xb0] sm:$0xff] }
 0x48d   :  { %7096 = vmatpush3.msra.mxu0 %v3087_v22  ;;  %7838 = vmatprep.subr.mxu1 %v8395_v0  ;;  %v3046_v22 = vld [vmem:[%s11202_s8 + $0x3f0] sm:$0xff] }
 0x48e   :  { %7097 = vmatprep.subr.mxu0 %v3132_v23  ;;  %7839 = vmatpush3.msra.mxu1 %v3189_v25  ;;  %v2941_v23 = vld [vmem:[%s11202_s8 + $0xa8] sm:$0xff]  ;;  %v3044_v25 = vld [vmem:[%s11202_s8 + $0x3e0] sm:$0xff] }
 0x48f   :  { %7098 = vmatpush3.msra.mxu0 %v3084_v27  ;;  %7840 = vmatprep.subr.mxu1 %v8395_v0  ;;  %v2939_v27 = vld [vmem:[%s11202_s8 + $0x98] sm:$0xff] }
 0x490   :  { %7099 = vmatprep.subr.mxu0 %v3129_v17  ;;  %7841 = vmatpush3.msra.mxu1 %v3186_v29  ;;  %v3043_v17 = vld [vmem:[%s11202_s8 + $0x3d8] sm:$0xff]  ;;  %v2938_v29 = vld [vmem:[%s11202_s8 + $0x90] sm:$0xff] }
 0x491   :  { %7100 = vmatpush3.msra.mxu0 %v3081_v7  ;;  %7842 = vmatprep.subr.mxu1 %v8395_v0  ;;  %v3041_v7 = vld [vmem:[%s11202_s8 + $0x3c8] sm:$0xff] }
 0x492   :  { %7101 = vmatprep.subr.mxu0 %v3126_v31  ;;  %7843 = vmatpush3.msra.mxu1 %v3183_v32  ;;  %v2936_v31 = vld [vmem:[%s11202_s8 + $0x80] sm:$0xff] }
 0x493   :  { %7102 = vmatpush3.msra.mxu0 %v3078_v33  ;;  %7844 = vmatprep.subr.mxu1 %v8395_v0  ;;  %v3040_v32 = vld [vmem:[%s11202_s8 + $0x3c0] sm:$0xff]  ;;  %v2935_v33 = vld [vmem:[%s11202_s8 + $0x78] sm:$0xff] }
 0x494   :  { %7103 = vmatprep.subr.mxu0 %v3123_v34  ;;  %7845 = vmatpush3.msra.mxu1 %v3180_v30  ;;  %v3038_v34 = vld [vmem:[%s11202_s8 + $0x3b0] sm:$0xff]  ;;  %v2933_v30 = vld [vmem:[%s11202_s8 + $0x68] sm:$0xff] }
 0x495   :  { %7104 = vmatpush3.msra.mxu0 %v3075_v36  ;;  %7846 = vmatprep.subr.mxu1 %v8395_v0  ;;  %v3037_v36 = vld [vmem:[%s11202_s8 + $0x3a8] sm:$0xff] }
 0x496   :  { %7105 = vmatprep.subr.mxu0 %v3120_v35  ;;  %7847 = vmatpush3.msra.mxu1 %v3177_v39  ;;  %v2932_v35 = vld [vmem:[%s11202_s8 + $0x60] sm:$0xff]  ;;  %v3035_v39 = vld [vmem:[%s11202_s8 + $0x398] sm:$0xff] }
 0x497   :  { %7106 = vmatpush3.msra.mxu0 %v3072_v40  ;;  %7848 = vmatprep.subr.mxu1 %v8395_v0  ;;  %v2930_v40 = vld [vmem:[%s11202_s8 + $0x50] sm:$0xff] }
 0x498   :  { %7107 = vmatprep.subr.mxu0 %v3117_v41  ;;  %7849 = vmatpush3.msra.mxu1 %v3174_v42  ;;  %v3034_v41 = vld [vmem:[%s11202_s8 + $0x390] sm:$0xff]  ;;  %v2929_v42 = vld [vmem:[%s11202_s8 + $0x48] sm:$0xff] }
 0x499   :  { %7108 = vmatpush3.msra.mxu0 %v3069_v43  ;;  %7850 = vmatprep.subr.mxu1 %v8395_v0  ;;  %v3032_v43 = vld [vmem:[%s11202_s8 + $0x380] sm:$0xff] }
 0x49a   :  { %7109 = vmatprep.subr.mxu0 %v3114_v44  ;;  %7851 = vmatpush3.msra.mxu1 %v3171_v47  ;;  %v2927_v44 = vld [vmem:[%s11202_s8 + $0x38] sm:$0xff] }
 0x49b   :  { %7110 = vmatpush3.msra.mxu0 %v3066_v49  ;;  %7852 = vmatprep.subr.mxu1 %v8395_v0  ;;  %v3031_v47 = vld [vmem:[%s11202_s8 + $0x378] sm:$0xff]  ;;  %v2926_v49 = vld [vmem:[%s11202_s8 + $0x30] sm:$0xff] }
 0x49c   :  { %3415 = vmatmul.mubr.f32.vlgmr.msra.gmra.mxu0 %v8926_v20  ;;  %7853 = vmatpush3.msra.mxu1 %v3168_v50  ;;  %v2959_v20 = vld [vmem:[%s11202_s8 + $0x138] sm:$0xff]  ;;  %v3029_v50 = vld [vmem:[%s11202_s8 + $0x368] sm:$0xff] }
 0x49d   :  { %3490 = vmatprep.subr.mxu0 %v2966_v51  ;;  %7854 = vmatprep.subr.mxu1 %v8395_v0  ;;  %v2924_v51 = vld [vmem:[%s11202_s8 + $0x20] sm:$0xff] }
 0x49e   :  { %3491 = vmatpush1.msra.mxu0 %v2965_v52  ;;  %7855 = vmatpush3.msra.mxu1 %v3165_v53  ;;  %v3028_v52 = vld [vmem:[%s11202_s8 + $0x360] sm:$0xff]  ;;  %v2923_v53 = vld [vmem:[%s11202_s8 + $0x18] sm:$0xff] }
 0x49f   :  { %3492 = vmatprep.subr.mxu0 %v2963_v26  ;;  %7856 = vmatprep.subr.mxu1 %v8395_v0  ;;  %v3026_v26 = vld [vmem:[%s11202_s8 + $0x350] sm:$0xff] }
 0x4a0   :  { %3493 = vmatpush1.msra.mxu0 %v2962_v54  ;;  %7857 = vmatpush3.msra.mxu1 %v3162_v55  ;;  %v2921_v54 = vld [vmem:[%s11202_s8 + $0x8] sm:$0xff] }
 0x4a1   :  { %7858 = vmatprep.mubr.msk.f32.mxu1 %vm8396_vm0, %v8395_v0  ;;  %3494 = vmatprep.subr.mxu0 %v2960_v56  ;;  %v3025_v55 = vld [vmem:[%s11202_s8 + $0x348] sm:$0xff]  ;;  %v2920_v56 = vld [vmem:[%s11202_s8] sm:$0xff] }
 0x4a2   :  { %7859 = vmatmul.mubr.f32.vlgmr.msra.gmra.mxu1 %v8965_v48  ;;  %3495 = vmatpush1.msra.mxu0 %v2959_v20  ;;  %v3055_v48 = vld [vmem:[%s11202_s8 + $0x438] sm:$0xff] }
 0x4a3   :  { %3561 = vmatprep.subr.mxu1 %v3062_v57  ;;  %3496 = vmatprep.subr.mxu0 %v2957_v59  ;;  %v3023_v20 = vld [vmem:[%s11202_s8 + $0x338] sm:$0xff]  ;;  %v3014_v57 = vld [vmem:[%s11202_s8 + $0x2f0] sm:$0xff] }
 0x4a4   :  { %3562 = vmatpush1.msra.mxu1 %v3061_v24  ;;  %3497 = vmatpush1.msra.mxu0 %v2956_v61  ;;  %v3022_v59 = vld [vmem:[%s11202_s8 + $0x330] sm:$0xff]  ;;  %v3013_v24 = vld [vmem:[%s11202_s8 + $0x2e8] sm:$0xff]  ;;  %v3020_v61 = vld [vmem:[%s11202_s8 + $0x320] sm:$0xff] }
 0x4a5   :  { %3563 = vmatprep.subr.mxu1 %v3059_v62  ;;  %3498 = vmatprep.subr.mxu0 %v2954_v63  ;;  %v3011_v62 = vld [vmem:[%s11202_s8 + $0x2d8] sm:$0xff] }
 0x4a6   :  { %3564 = vmatpush1.msra.mxu1 %v3058_v1  ;;  %3499 = vmatpush1.msra.mxu0 %v2953_v19  ;;  %v3019_v63 = vld [vmem:[%s11202_s8 + $0x318] sm:$0xff]  ;;  %v3010_v1 = vld [vmem:[%s11202_s8 + $0x2d0] sm:$0xff]  ;;  %v3017_v19 = vld [vmem:[%s11202_s8 + $0x308] sm:$0xff] }
 0x4a7   :  { %3565 = vmatprep.subr.mxu1 %v3056_v3  ;;  %3500 = vmatprep.subr.mxu0 %v2951_v4  ;;  %v3008_v3 = vld [vmem:[%s11202_s8 + $0x2c0] sm:$0xff] }
 0x4a8   :  { %3566 = vmatpush1.msra.mxu1 %v3055_v48  ;;  %3501 = vmatpush1.msra.mxu0 %v2950_v5  ;;  %v3016_v4 = vld [vmem:[%s11202_s8 + $0x300] sm:$0xff]  ;;  %v3007_v48 = vld [vmem:[%s11202_s8 + $0x2b8] sm:$0xff] }
 0x4a9   :  { %3567 = vmatprep.subr.mxu1 %v3053_v6  ;;  %3502 = vmatprep.subr.mxu0 %v2948_v8  ;;  %v3015_v5 = vld [vmem:[%s11202_s8 + $0x2f8] sm:$0xff]  ;;  %v3005_v6 = vld [vmem:[%s11202_s8 + $0x2a8] sm:$0xff] }
 0x4aa   :  { %3568 = vmatpush1.msra.mxu1 %v3052_v9  ;;  %3503 = vmatpush1.msra.mxu0 %v2947_v10  ;;  %v2967_v8 = vld [vmem:[%s11202_s8 + $0x178] sm:$0xff]  ;;  %v3004_v9 = vld [vmem:[%s11202_s8 + $0x2a0] sm:$0xff] }
 0x4ab   :  { %3569 = vmatprep.subr.mxu1 %v3050_v11  ;;  %3504 = vmatprep.subr.mxu0 %v2945_v14  ;;  %v3012_v10 = vld [vmem:[%s11202_s8 + $0x2e0] sm:$0xff]  ;;  %v3002_v11 = vld [vmem:[%s11202_s8 + $0x290] sm:$0xff] }
 0x4ac   :  { %3570 = vmatpush1.msra.mxu1 %v3049_v12  ;;  %3505 = vmatpush1.msra.mxu0 %v2944_v18  ;;  %v2964_v14 = vld [vmem:[%s11202_s8 + $0x160] sm:$0xff]  ;;  %v3001_v12 = vld [vmem:[%s11202_s8 + $0x288] sm:$0xff] }
 0x4ad   :  { %3571 = vmatprep.subr.mxu1 %v3047_v21  ;;  %3506 = vmatprep.subr.mxu0 %v2942_v2  ;;  %v3009_v18 = vld [vmem:[%s11202_s8 + $0x2c8] sm:$0xff]  ;;  %v2999_v21 = vld [vmem:[%s11202_s8 + $0x278] sm:$0xff] }
 0x4ae   :  { %3572 = vmatpush1.msra.mxu1 %v3046_v22  ;;  %3507 = vmatpush1.msra.mxu0 %v2941_v23  ;;  %v2961_v2 = vld [vmem:[%s11202_s8 + $0x148] sm:$0xff]  ;;  %v2998_v22 = vld [vmem:[%s11202_s8 + $0x270] sm:$0xff] }
 0x4af   :  { %3573 = vmatprep.subr.mxu1 %v3044_v25  ;;  %3508 = vmatprep.subr.mxu0 %v2939_v27  ;;  %v3006_v23 = vld [vmem:[%s11202_s8 + $0x2b0] sm:$0xff]  ;;  %v2995_v27 = vld [vmem:[%s11202_s8 + $0x258] sm:$0xff] }
 0x4b0   :  { %3574 = vmatpush1.msra.mxu1 %v3043_v17  ;;  %3509 = vmatpush1.msra.mxu0 %v2938_v29  ;;  %v2958_v25 = vld [vmem:[%s11202_s8 + $0x130] sm:$0xff]  ;;  %v3003_v17 = vld [vmem:[%s11202_s8 + $0x298] sm:$0xff]  ;;  %v2993_v29 = vld [vmem:[%s11202_s8 + $0x248] sm:$0xff] }
 0x4b1   :  { %3575 = vmatprep.subr.mxu1 %v3041_v7  ;;  %3510 = vmatprep.subr.mxu0 %v2936_v31  ;;  %v2955_v7 = vld [vmem:[%s11202_s8 + $0x118] sm:$0xff]  ;;  %v2992_v31 = vld [vmem:[%s11202_s8 + $0x240] sm:$0xff] }
 0x4b2   :  { %3576 = vmatpush1.msra.mxu1 %v3040_v32  ;;  %3511 = vmatpush1.msra.mxu0 %v2935_v33  ;;  %v3000_v32 = vld [vmem:[%s11202_s8 + $0x280] sm:$0xff]  ;;  %v2990_v33 = vld [vmem:[%s11202_s8 + $0x230] sm:$0xff] }
 0x4b3   :  { %3577 = vmatprep.subr.mxu1 %v3038_v34  ;;  %3512 = vmatprep.subr.mxu0 %v2933_v30  ;;  %v2952_v34 = vld [vmem:[%s11202_s8 + $0x100] sm:$0xff]  ;;  %v2989_v30 = vld [vmem:[%s11202_s8 + $0x228] sm:$0xff] }
 0x4b4   :  { %3578 = vmatpush1.msra.mxu1 %v3037_v36  ;;  %3513 = vmatpush1.msra.mxu0 %v2932_v35  ;;  %v2997_v36 = vld [vmem:[%s11202_s8 + $0x268] sm:$0xff]  ;;  %v2987_v35 = vld [vmem:[%s11202_s8 + $0x218] sm:$0xff] }
 0x4b5   :  { %3579 = vmatprep.subr.mxu1 %v3035_v39  ;;  %3514 = vmatprep.subr.mxu0 %v2930_v40  ;;  %v2949_v39 = vld [vmem:[%s11202_s8 + $0xe8] sm:$0xff]  ;;  %v2986_v40 = vld [vmem:[%s11202_s8 + $0x210] sm:$0xff] }
 0x4b6   :  { %3580 = vmatpush1.msra.mxu1 %v3034_v41  ;;  %3515 = vmatpush1.msra.mxu0 %v2929_v42  ;;  %v2994_v41 = vld [vmem:[%s11202_s8 + $0x250] sm:$0xff]  ;;  %v2984_v42 = vld [vmem:[%s11202_s8 + $0x200] sm:$0xff] }
 0x4b7   :  { %3581 = vmatprep.subr.mxu1 %v3032_v43  ;;  %3516 = vmatprep.subr.mxu0 %v2927_v44  ;;  %v2946_v43 = vld [vmem:[%s11202_s8 + $0xd0] sm:$0xff]  ;;  %v2983_v44 = vld [vmem:[%s11202_s8 + $0x1f8] sm:$0xff] }
 0x4b8   :  { %3582 = vmatpush1.msra.mxu1 %v3031_v47  ;;  %3517 = vmatpush1.msra.mxu0 %v2926_v49  ;;  %v2991_v47 = vld [vmem:[%s11202_s8 + $0x238] sm:$0xff]  ;;  %v2981_v49 = vld [vmem:[%s11202_s8 + $0x1e8] sm:$0xff] }
 0x4b9   :  { %3583 = vmatprep.subr.mxu1 %v3029_v50  ;;  %3518 = vmatprep.subr.mxu0 %v2924_v51  ;;  %v2943_v50 = vld [vmem:[%s11202_s8 + $0xb8] sm:$0xff]  ;;  %v2980_v51 = vld [vmem:[%s11202_s8 + $0x1e0] sm:$0xff] }
 0x4ba   :  { %3584 = vmatpush1.msra.mxu1 %v3028_v52  ;;  %3519 = vmatpush1.msra.mxu0 %v2923_v53  ;;  %v2988_v52 = vld [vmem:[%s11202_s8 + $0x220] sm:$0xff]  ;;  %v2978_v53 = vld [vmem:[%s11202_s8 + $0x1d0] sm:$0xff] }
 0x4bb   :  { %3585 = vmatprep.subr.mxu1 %v3026_v26  ;;  %3520 = vmatprep.subr.mxu0 %v2921_v54  ;;  %v2940_v26 = vld [vmem:[%s11202_s8 + $0xa0] sm:$0xff]  ;;  %v2977_v54 = vld [vmem:[%s11202_s8 + $0x1c8] sm:$0xff] }
 0x4bc   :  { %3586 = vmatpush1.msra.mxu1 %v3025_v55  ;;  %3521 = vmatpush1.msra.mxu0 %v2920_v56  ;;  %v2985_v55 = vld [vmem:[%s11202_s8 + $0x208] sm:$0xff]  ;;  %v2975_v56 = vld [vmem:[%s11202_s8 + $0x1b8] sm:$0xff] }
 0x4bd   :  { %3587 = vmatprep.subr.mxu1 %v3023_v20  ;;  %3522 = vmatprep.subr.mxu0 %v3014_v57  ;;  %v2937_v20 = vld [vmem:[%s11202_s8 + $0x88] sm:$0xff]  ;;  %v2974_v57 = vld [vmem:[%s11202_s8 + $0x1b0] sm:$0xff] }
 0x4be   :  { %3588 = vmatpush1.msra.mxu1 %v3022_v59  ;;  %3523 = vmatpush2.msra.mxu0 %v3013_v24  ;;  %v2982_v59 = vld [vmem:[%s11202_s8 + $0x1f0] sm:$0xff]  ;;  %v2972_v24 = vld [vmem:[%s11202_s8 + $0x1a0] sm:$0xff] }
 0x4bf   :  { %3589 = vmatprep.subr.mxu1 %v3020_v61  ;;  %3524 = vmatprep.subr.mxu0 %v3011_v62  ;;  %v2934_v61 = vld [vmem:[%s11202_s8 + $0x70] sm:$0xff]  ;;  %v2971_v62 = vld [vmem:[%s11202_s8 + $0x198] sm:$0xff] }
 0x4c0   :  { %3590 = vmatpush1.msra.mxu1 %v3019_v63  ;;  %3525 = vmatpush2.msra.mxu0 %v3010_v1  ;;  %v2979_v63 = vld [vmem:[%s11202_s8 + $0x1d8] sm:$0xff]  ;;  %v2969_v1 = vld [vmem:[%s11202_s8 + $0x188] sm:$0xff] }
 0x4c1   :  { %3591 = vmatprep.subr.mxu1 %v3017_v19  ;;  %3526 = vmatprep.subr.mxu0 %v3008_v3  ;;  %v2931_v19 = vld [vmem:[%s11202_s8 + $0x58] sm:$0xff]  ;;  %v2968_v3 = vld [vmem:[%s11202_s8 + $0x180] sm:$0xff] }
 0x4c2   :  { %3592 = vmatpush1.msra.mxu1 %v3016_v4  ;;  %3527 = vmatpush2.msra.mxu0 %v3007_v48  ;;  %v2976_v4 = vld [vmem:[%s11202_s8 + $0x1c0] sm:$0xff] }
 0x4c3   :  { %3625 = vmatprep.mubr.f32.mxu1 %v8395_v0  ;;  %7131 = vmatprep.subr.mxu1 %v3015_v5  ;;  %v2928_v48 = vld [vmem:[%s11202_s8 + $0x40] sm:$0xff]  ;;  %v2973_v5 = vld [vmem:[%s11202_s8 + $0x1a8] sm:$0xff] }
 0x4c4   :  { %3528 = vmatprep.subr.mxu0 %v3005_v6  ;;  %3626 = vmatmul.mubr.f32.vlgmr.msra.gmra.mxu1 %v9766_v38  ;;  %v2996_v38 = vld [vmem:[%s11202_s8 + $0x260] sm:$0xff]  ;;  %v8275_v6 = vld [vmem:[%s8405_s5 + $0x8] sm:$0xff] }
 0x4c5   :  { %7132 = vmatpush3.msra.mxu1 %v2967_v8  ;;  %3529 = vmatpush2.msra.mxu0 %v3004_v9  ;;  %v3063_v8 = vld [vmem:[%s11202_s8 + $0x478] sm:$0xff]  ;;  %v2925_v9 = vld [vmem:[%s11202_s8 + $0x28] sm:$0xff] }
 0x4c6   :  { %7133 = vmatprep.subr.mxu1 %v3012_v10  ;;  %3530 = vmatprep.subr.mxu0 %v3002_v11  ;;  %v8276_v10 = vld [vmem:[%s8405_s5] sm:$0xff]  ;;  %v2970_v11 = vld [vmem:[%s11202_s8 + $0x190] sm:$0xff] }
 0x4c7   :  { %7134 = vmatpush3.msra.mxu1 %v2964_v14  ;;  %3531 = vmatpush2.msra.mxu0 %v3001_v12  ;;  %v3060_v14 = vld [vmem:[%s11202_s8 + $0x460] sm:$0xff]  ;;  %v2922_v12 = vld [vmem:[%s11202_s8 + $0x10] sm:$0xff] }
 0x4c8   :  { %7135 = vmatprep.subr.mxu1 %v3009_v18  ;;  %3532 = vmatprep.subr.mxu0 %v2999_v21  ;;  %v3057_v18 = vld [vmem:[%s11202_s8 + $0x448] sm:$0xff]  ;;  %v3054_v21 = vld [vmem:[%s11202_s8 + $0x430] sm:$0xff] }
 0x4c9   :  { %7136 = vmatpush3.msra.mxu1 %v2961_v2  ;;  %3533 = vmatpush2.msra.mxu0 %v2998_v22  ;;  %v3866_v2 = vld [vmem:[%s11203_s14 + $0xf8] sm:$0xff] }
 0x4ca   :  { %7137 = vmatprep.subr.mxu1 %v3006_v23  ;;  %3534 = vmatprep.subr.mxu0 %v2996_v38  ;;  %v3850_v22 = vld [vmem:[%s11203_s14 + $0x78] sm:$0xff]  ;;  %v3865_v38 = vld [vmem:[%s11203_s14 + $0xf0] sm:$0xff] }
 0x4cb   :  { %7138 = vmatpush3.msra.mxu1 %v2958_v25  ;;  %3535 = vmatpush2.msra.mxu0 %v2995_v27  ;;  %v3051_v23 = vld [vmem:[%s11202_s8 + $0x418] sm:$0xff]  ;;  %v3849_v25 = vld [vmem:[%s11203_s14 + $0x70] sm:$0xff]  ;;  %v3048_v27 = vld [vmem:[%s11202_s8 + $0x400] sm:$0xff] }
 0x4cc   :  { %7139 = vmatprep.subr.mxu1 %v3003_v17  ;;  %3536 = vmatprep.subr.mxu0 %v2993_v29  ;;  %v3864_v17 = vld [vmem:[%s11203_s14 + $0xe8] sm:$0xff] }
 0x4cd   :  { %7140 = vmatpush3.msra.mxu1 %v2955_v7  ;;  %3537 = vmatpush2.msra.mxu0 %v2992_v31  ;;  %v3848_v29 = vld [vmem:[%s11203_s14 + $0x68] sm:$0xff]  ;;  %v3863_v31 = vld [vmem:[%s11203_s14 + $0xe0] sm:$0xff] }
 0x4ce   :  { %7141 = vmatprep.subr.mxu1 %v3000_v32  ;;  %3538 = vmatprep.subr.mxu0 %v2990_v33  ;;  %v3045_v7 = vld [vmem:[%s11202_s8 + $0x3e8] sm:$0xff]  ;;  %v3847_v32 = vld [vmem:[%s11203_s14 + $0x60] sm:$0xff]  ;;  %v3042_v33 = vld [vmem:[%s11202_s8 + $0x3d0] sm:$0xff] }
 0x4cf   :  { %7142 = vmatpush3.msra.mxu1 %v2952_v34  ;;  %3539 = vmatpush2.msra.mxu0 %v2989_v30  ;;  %v3862_v34 = vld [vmem:[%s11203_s14 + $0xd8] sm:$0xff] }
 0x4d0   :  { %7143 = vmatprep.subr.mxu1 %v2997_v36  ;;  %3540 = vmatprep.subr.mxu0 %v2987_v35  ;;  %v3846_v30 = vld [vmem:[%s11203_s14 + $0x58] sm:$0xff]  ;;  %v3036_v35 = vld [vmem:[%s11202_s8 + $0x3a0] sm:$0xff] }
 0x4d1   :  { %7144 = vmatpush3.msra.mxu1 %v2949_v39  ;;  %3541 = vmatpush2.msra.mxu0 %v2986_v40  ;;  %v3039_v36 = vld [vmem:[%s11202_s8 + $0x3b8] sm:$0xff]  ;;  %v3033_v39 = vld [vmem:[%s11202_s8 + $0x388] sm:$0xff]  ;;  %v3030_v40 = vld [vmem:[%s11202_s8 + $0x370] sm:$0xff] }
 0x4d2   :  { %7145 = vmatprep.subr.mxu1 %v2994_v41  ;;  %3542 = vmatprep.subr.mxu0 %v2984_v42  ;;  %v3027_v41 = vld [vmem:[%s11202_s8 + $0x358] sm:$0xff]  ;;  %v3024_v42 = vld [vmem:[%s11202_s8 + $0x340] sm:$0xff] }
 0x4d3   :  { %7146 = vmatpush3.msra.mxu1 %v2946_v43  ;;  %3543 = vmatpush2.msra.mxu0 %v2983_v44  ;;  %v3021_v44 = vld [vmem:[%s11202_s8 + $0x328] sm:$0xff] }
 0x4d4   :  { %7147 = vmatprep.subr.mxu1 %v2991_v47  ;;  %3544 = vmatprep.subr.mxu0 %v2981_v49  ;;  %v3018_v49 = vld [vmem:[%s11202_s8 + $0x310] sm:$0xff] }
 0x4d5   :  { %7148 = vmatpush3.msra.mxu1 %v2943_v50  ;;  %3545 = vmatpush2.msra.mxu0 %v2980_v51  ;;  %v8277_v50 = vld [vmem:[%s8405_s5 + $0x10] sm:$0xff] }
 0x4d6   :  { %7149 = vmatprep.subr.mxu1 %v2988_v52  ;;  %3546 = vmatprep.subr.mxu0 %v2978_v53  ;;  %v3861_v51 = vld [vmem:[%s11203_s14 + $0xd0] sm:$0xff]  ;;  %v3860_v53 = vld [vmem:[%s11203_s14 + $0xc8] sm:$0xff] }
 0x4d7   :  { %7150 = vmatpush3.msra.mxu1 %v2940_v26  ;;  %3547 = vmatpush2.msra.mxu0 %v2977_v54  ;;  %v3845_v52 = vld [vmem:[%s11203_s14 + $0x50] sm:$0xff]  ;;  %v3844_v26 = vld [vmem:[%s11203_s14 + $0x48] sm:$0xff]  ;;  %v3859_v54 = vld [vmem:[%s11203_s14 + $0xc0] sm:$0xff] }
 0x4d8   :  { %7151 = vmatprep.subr.mxu1 %v2985_v55  ;;  %3548 = vmatprep.subr.mxu0 %v2975_v56  ;;  %v3843_v56 = vld [vmem:[%s11203_s14 + $0x40] sm:$0xff] }
 0x4d9   :  { %7152 = vmatpush3.msra.mxu1 %v2937_v20  ;;  %3549 = vmatpush2.msra.mxu0 %v2974_v57  ;;  %v3858_v20 = vld [vmem:[%s11203_s14 + $0xb8] sm:$0xff] }
 0x4da   :  { %7153 = vmatprep.subr.mxu1 %v2982_v59  ;;  %3550 = vmatprep.subr.mxu0 %v2972_v24 }
 0x4db   :  { %7154 = vmatpush3.msra.mxu1 %v2934_v61  ;;  %3551 = vmatpush2.msra.mxu0 %v2971_v62 }
 0x4dc   :  { %7155 = vmatprep.subr.mxu1 %v2979_v63  ;;  %3552 = vmatprep.subr.mxu0 %v2969_v1 }
 0x4dd   :  { %7156 = vmatpush3.msra.mxu1 %v2931_v19  ;;  %3553 = vmatpush2.msra.mxu0 %v2968_v3  ;;  %v7007_v55 = vpop.f32.mrf.mxu1  ;;  %v6711_v3 = vld [vmem:[%s11204_s19] ss:$0 sm:$0xff] }
 0x4de   :  { %3554 = vmatprep.mubr.f32.mxu0 %v8275_v6  ;;  %7157 = vmatprep.subr.mxu1 %v2976_v4 }
 0x4df   :  { %3555 = vmatmul.mubr.f32.vlgmr.msra.gmra.mxu0 %v8276_v10  ;;  %7158 = vmatpush3.msra.mxu1 %v2928_v48  ;;  %v7008_v57 = vpop.f32.mrf.mxu1 }
 0x4e0   :  { %7861 = vmatprep.subr.mxu0 %v8395_v0  ;;  %7159 = vmatprep.subr.mxu1 %v2973_v5  ;;  %v7009_v61 = vadd.f32 %v7008_v57, %v7007_v55 }
 0x4e1   :  { %7862 = vmatpush3.msra.mxu0 %v3063_v8  ;;  %7160 = vmatpush3.msra.mxu1 %v2925_v9  ;;  %v3842_v8 = vld [vmem:[%s11203_s14 + $0x38] sm:$0xff]  ;;  %v3857_v9 = vld [vmem:[%s11203_s14 + $0xb0] sm:$0xff] }
 0x4e2   :  { %7863 = vmatprep.subr.mxu0 %v8395_v0  ;;  %7161 = vmatprep.subr.mxu1 %v2970_v11  ;;  %v3856_v11 = vld [vmem:[%s11203_s14 + $0xa8] sm:$0xff] }
 0x4e3   :  { %7864 = vmatpush3.msra.mxu0 %v3060_v14  ;;  %7162 = vmatpush3.msra.mxu1 %v2922_v12  ;;  %v3840_v14 = vld [vmem:[%s11203_s14 + $0x28] sm:$0xff]  ;;  %v3855_v12 = vld [vmem:[%s11203_s14 + $0xa0] sm:$0xff] }
 0x4e4   :  { %3696 = vmatprep.mubr.f32.mxu1 %v8275_v6  ;;  %7865 = vmatprep.subr.mxu0 %v8395_v0 }
 0x4e5   :  { %3697 = vmatmul.mubr.f32.vlgmr.msra.gmra.mxu1 %v8276_v10  ;;  %7866 = vmatpush3.msra.mxu0 %v3057_v18  ;;  %v3841_v10 = vld [vmem:[%s11203_s14 + $0x30] sm:$0xff]  ;;  %v3839_v18 = vld [vmem:[%s11203_s14 + $0x20] sm:$0xff] }
 0x4e6   :  { %7867 = vmatprep.subr.mxu0 %v8395_v0  ;;  %7893 = vmatprep.mubr.msk.f32.mxu0 %vm8396_vm0, %v8395_v0 }
 0x4e7   :  { %7868 = vmatpush3.msra.mxu0 %v3054_v21  ;;  %7183 = vmatprep.subr.mxu1 %v3866_v2  ;;  %v3854_v21 = vld [vmem:[%s11203_s14 + $0x98] sm:$0xff] }
 0x4e8   :  { %7869 = vmatprep.subr.mxu0 %v8395_v0  ;;  %7184 = vmatpush3.msra.mxu1 %v3850_v22  ;;  %v3838_v2 = vld [vmem:[%s11203_s14 + $0x18] sm:$0xff]  ;;  %v3853_v22 = vld [vmem:[%s11203_s14 + $0x90] sm:$0xff] }
 0x4e9   :  { %7870 = vmatpush3.msra.mxu0 %v3051_v23  ;;  %7185 = vmatprep.subr.mxu1 %v3865_v38  ;;  %v3837_v23 = vld [vmem:[%s11203_s14 + $0x10] sm:$0xff]  ;;  %v3852_v38 = vld [vmem:[%s11203_s14 + $0x88] sm:$0xff] }
 0x4ea   :  { %7871 = vmatprep.subr.mxu0 %v8395_v0  ;;  %7186 = vmatpush3.msra.mxu1 %v3849_v25  ;;  %v3882_v25 = vld [vmem:[%s11203_s14 + $0x178] sm:$0xff] }
 0x4eb   :  { %7872 = vmatpush3.msra.mxu0 %v3048_v27  ;;  %7187 = vmatprep.subr.mxu1 %v3864_v17  ;;  %v3836_v27 = vld [vmem:[%s11203_s14 + $0x8] sm:$0xff]  ;;  %v3851_v17 = vld [vmem:[%s11203_s14 + $0x80] sm:$0xff] }
 0x4ec   :  { %7873 = vmatprep.subr.mxu0 %v8395_v0  ;;  %7188 = vmatpush3.msra.mxu1 %v3848_v29  ;;  %v3881_v29 = vld [vmem:[%s11203_s14 + $0x170] sm:$0xff] }
 0x4ed   :  { %7874 = vmatpush3.msra.mxu0 %v3045_v7  ;;  %7189 = vmatprep.subr.mxu1 %v3863_v31  ;;  %v3835_v7 = vld [vmem:[%s11203_s14] sm:$0xff] }
 0x4ee   :  { %7875 = vmatprep.subr.mxu0 %v8395_v0  ;;  %7190 = vmatpush3.msra.mxu1 %v3847_v32 }
 0x4ef   :  { %7876 = vmatpush3.msra.mxu0 %v3042_v33  ;;  %7191 = vmatprep.subr.mxu1 %v3862_v34  ;;  %v3880_v33 = vld [vmem:[%s11203_s14 + $0x168] sm:$0xff]  ;;  %v4225_v34 = vld [vmem:[%s11205_s30 + $0x170] sm:$0xff] }
 0x4f0   :  { %7877 = vmatprep.subr.mxu0 %v8395_v0  ;;  %7192 = vmatpush3.msra.mxu1 %v3846_v30 }
 0x4f1   :  { %7878 = vmatpush3.msra.mxu0 %v3039_v36  ;;  %7193 = vmatprep.subr.mxu1 %v3861_v51  ;;  %v3879_v36 = vld [vmem:[%s11203_s14 + $0x160] sm:$0xff]  ;;  %v3868_v51 = vld [vmem:[%s11203_s14 + $0x108] sm:$0xff] }
 0x4f2   :  { %7879 = vmatprep.subr.mxu0 %v8395_v0  ;;  %7194 = vmatpush3.msra.mxu1 %v3845_v52  ;;  %v3867_v52 = vld [vmem:[%s11203_s14 + $0x100] sm:$0xff] }
 0x4f3   :  { %7880 = vmatpush3.msra.mxu0 %v3036_v35  ;;  %7195 = vmatprep.subr.mxu1 %v3860_v53  ;;  %v3878_v35 = vld [vmem:[%s11203_s14 + $0x158] sm:$0xff]  ;;  %v4321_v53 = vld [vmem:[%s11205_s30 + $0x470] sm:$0xff] }
 0x4f4   :  { %7881 = vmatprep.subr.mxu0 %v8395_v0  ;;  %7196 = vmatpush3.msra.mxu1 %v3844_v26 }
 0x4f5   :  { %7882 = vmatpush3.msra.mxu0 %v3033_v39  ;;  %7197 = vmatprep.subr.mxu1 %v3859_v54  ;;  %v3877_v39 = vld [vmem:[%s11203_s14 + $0x150] sm:$0xff] }
 0x4f6   :  { %7883 = vmatprep.subr.mxu0 %v8395_v0  ;;  %7198 = vmatpush3.msra.mxu1 %v3843_v56 }
 0x4f7   :  { %7884 = vmatpush3.msra.mxu0 %v3030_v40  ;;  %7199 = vmatprep.subr.mxu1 %v3858_v20  ;;  %v3876_v40 = vld [vmem:[%s11203_s14 + $0x148] sm:$0xff] }
 0x4f8   :  { %7885 = vmatprep.subr.mxu0 %v8395_v0  ;;  %v2763_v43 = vpop.f32.mrf.mxu0  ;;  %7200 = vmatpush3.msra.mxu1 %v3842_v8 }
 0x4f9   :  { %7886 = vmatpush3.msra.mxu0 %v3027_v41  ;;  %v2764_v63 = vadd.f32 %v7009_v61, %v2763_v43  ;;  %7201 = vmatprep.subr.mxu1 %v3857_v9  ;;  %v3875_v41 = vld [vmem:[%s11203_s14 + $0x140] sm:$0xff]  ;;  %v3873_v43 = vld [vmem:[%s11203_s14 + $0x130] sm:$0xff] }
 0x4fa   :  { %7887 = vmatprep.subr.mxu0 %v8395_v0  ;;  %v7790_v47 = vpop.f32.mrf.mxu0  ;;  %7202 = vmatpush3.msra.mxu1 %v3841_v10  ;;  %v10146_v61 = vld [vmem:[%s11206_s12] sm:$0x7] }
 0x4fb   :  { %7888 = vmatpush3.msra.mxu0 %v3024_v42  ;;  %7203 = vmatprep.subr.mxu1 %v3856_v11  ;;  %v3874_v42 = vld [vmem:[%s11203_s14 + $0x138] sm:$0xff]  ;;  %v3871_v47 = vld [vmem:[%s11203_s14 + $0x120] sm:$0xff]  ;;  %v3781_v9 = vrot.slane %v10146_v61, %v8906_v60 }
 0x4fc   :  { %7889 = vmatprep.subr.mxu0 %v8395_v0  ;;  %7204 = vmatpush3.msra.mxu1 %v3840_v14 }
 0x4fd   :  { %7890 = vmatpush3.msra.mxu0 %v3021_v44  ;;  %v7059_v59 = vpop.f32.mrf.mxu1  ;;  %7205 = vmatprep.subr.mxu1 %v3855_v12  ;;  %v3872_v44 = vld [vmem:[%s11203_s14 + $0x128] sm:$0xff] }
 0x4fe   :  { %7891 = vmatprep.subr.mxu0 %v8395_v0  ;;  %7206 = vmatpush3.msra.mxu1 %v3839_v18 }
 0x4ff   :  { %7892 = vmatpush3.msra.mxu0 %v3018_v49  ;;  %v7060_v24 = vpop.f32.mrf.mxu1  ;;  %7207 = vmatprep.subr.mxu1 %v3854_v21  ;;  %v3870_v49 = vld [vmem:[%s11203_s14 + $0x118] sm:$0xff] }
 0x500   :  { %7894 = vmatmul.mubr.f32.vlgmr.msra.gmra.mxu0 %v8277_v50  ;;  %7896 = vmatprep.subr.mxu0 %v8395_v0  ;;  %v7061_v62 = vadd.f32 %v7060_v24, %v7059_v59  ;;  %v3869_v50 = vld [vmem:[%s11203_s14 + $0x110] sm:$0xff] }
 0x501   :  { %7928 = vmatprep.mubr.msk.f32.mxu0 %vm8396_vm0, %v8395_v0  ;;  %7208 = vmatpush3.msra.mxu1 %v3838_v2 }
 0x502   :  { %v2834_v1 = vadd.f32 %v7061_v62, %v2764_v63  ;;  %7209 = vmatprep.subr.mxu1 %v3853_v22  ;;  %7897 = vmatpush3.msra.mxu0 %v3882_v25 }
 0x503   :  { %7210 = vmatpush3.msra.mxu1 %v3837_v23  ;;  %7898 = vmatprep.subr.mxu0 %v8395_v0 }
 0x504   :  { %7211 = vmatprep.subr.mxu1 %v3852_v38  ;;  %7899 = vmatpush3.msra.mxu0 %v3881_v29 }
 0x505   :  { %7212 = vmatpush3.msra.mxu1 %v3836_v27  ;;  %7900 = vmatprep.subr.mxu0 %v8395_v0 }
 0x506   :  { %7213 = vmatprep.subr.mxu1 %v3851_v17  ;;  %7901 = vmatpush3.msra.mxu0 %v3880_v33  ;;  %v4221_v33 = vld [vmem:[%s11205_s30 + $0x150] sm:$0xff] }
 0x507   :  { %7214 = vmatpush3.msra.mxu1 %v3835_v7  ;;  %7902 = vmatprep.subr.mxu0 %v8395_v0 }
 0x508   :  { %4323 = vmatprep.subr.mxu1 %v4225_v34  ;;  %7903 = vmatpush3.msra.mxu0 %v3879_v36  ;;  %v4219_v34 = vld [vmem:[%s11205_s30 + $0x140] sm:$0xff]  ;;  %v4216_v36 = vld [vmem:[%s11205_s30 + $0x128] sm:$0xff] }
 0x509   :  { %7904 = vmatprep.subr.mxu0 %v8395_v0 }
 0x50a   :  { %7905 = vmatpush3.msra.mxu0 %v3878_v35  ;;  %v4215_v35 = vld [vmem:[%s11205_s30 + $0x120] sm:$0xff] }
 0x50b   :  { %7906 = vmatprep.subr.mxu0 %v8395_v0 }
 0x50c   :  { %7907 = vmatpush3.msra.mxu0 %v3877_v39 }
 0x50d   :  { %7908 = vmatprep.subr.mxu0 %v8395_v0 }
 0x50e   :  { %7909 = vmatpush3.msra.mxu0 %v3876_v40  ;;  %v4213_v40 = vld [vmem:[%s11205_s30 + $0x110] sm:$0xff] }
 0x50f   :  { %7910 = vmatprep.subr.mxu0 %v8395_v0 }
 0x510   :  { %7911 = vmatpush3.msra.mxu0 %v3875_v41  ;;  %v4212_v41 = vld [vmem:[%s11205_s30 + $0x108] sm:$0xff] }
 0x511   :  { %7912 = vmatprep.subr.mxu0 %v8395_v0 }
 0x512   :  { %7913 = vmatpush3.msra.mxu0 %v3874_v42  ;;  %v4210_v42 = vld [vmem:[%s11205_s30 + $0xf8] sm:$0xff] }
 0x513   :  { %7914 = vmatprep.subr.mxu0 %v8395_v0 }
 0x514   :  { %7915 = vmatpush3.msra.mxu0 %v3873_v43  ;;  %v4209_v43 = vld [vmem:[%s11205_s30 + $0xf0] sm:$0xff] }
 0x515   :  { %7916 = vmatprep.subr.mxu0 %v8395_v0 }
 0x516   :  { %7917 = vmatpush3.msra.mxu0 %v3872_v44 }
 0x517   :  { %7918 = vmatprep.subr.mxu0 %v8395_v0 }
 0x518   :  { %7919 = vmatpush3.msra.mxu0 %v3871_v47  ;;  %v4207_v47 = vld [vmem:[%s11205_s30 + $0xe0] sm:$0xff] }
 0x519   :  { %v2903_v19 = vpop.f32.mrf.mxu0  ;;  %7920 = vmatprep.subr.mxu0 %v8395_v0 }
 0x51a   :  { %v2904_v4 = vadd.f32 %v2903_v19, %v2834_v1  ;;  %7921 = vmatpush3.msra.mxu0 %v3870_v49 }
 0x51b   :  { %v7825_v48 = vpop.f32.mrf.mxu0  ;;  %7922 = vmatprep.subr.mxu0 %v8395_v0 }
 0x51c   :  { %v2914_v5 = vadd.f32 %v6711_v3, %v2904_v4  ;;  %7923 = vmatpush3.msra.mxu0 %v3869_v50  ;;  %v3777_v4 = vrot.slane %v10146_v61, %v8903_v58  ;;  %v4206_v50 = vld [vmem:[%s11205_s30 + $0xd8] sm:$0xff] }
 0x51d   :  { %7924 = vmatprep.subr.mxu0 %v8395_v0 }
 0x51e   :  { %v2915_v6 = vmul.f32 0.5, %v2914_v5  ;;  %7925 = vmatpush3.msra.mxu0 %v3868_v51  ;;  %v4204_v51 = vld [vmem:[%s11205_s30 + $0xc8] sm:$0xff] }
 0x51f   :  { %7926 = vmatprep.subr.mxu0 %v8395_v0 }
 0x520   :  { %8260 = vtanh.f32 %v2915_v6  ;;  %7927 = vmatpush3.msra.mxu0 %v3867_v52  ;;  %v10151_v6 = vld [vmem:[%s11207_s20] sm:$0x7] }
 0x521   :  { %4394 = vmatprep.subr.mxu0 %v4321_v53  ;;  %v3800_v12 = vrot.slane %v10151_v6, %v8903_v58  ;;  %v3804_v2 = vrot.slane %v10151_v6, %v8906_v60  ;;  %v4203_v53 = vld [vmem:[%s11205_s30 + $0xc0] sm:$0xff] }
 0x52d   :  { %v8261_v31 = vpop.eup %8260 }
 0x52e   :  { %v2917_v32 = vadd.f32 1.0, %v8261_v31  ;;  %v4224_v31 = vld [vmem:[%s11205_s30 + $0x168] sm:$0xff] }
 0x530   :  { %v2918_v30 = vmul.f32 0.5, %v2917_v32  ;;  %v4222_v32 = vld [vmem:[%s11205_s30 + $0x158] sm:$0xff] }
 0x532   :  { %2919 = vst [vmem:[%s8610_s27] sm:$0xff] %v2918_v30  ;;  %s11208_s27 = sld [smem:[#allocation18_spill]]  ;;  %v4218_v30 = vld [vmem:[%s11205_s30 + $0x138] sm:$0xff] }
 0x538   :  { %v10160_v22 = vld [vmem:[%s11208_s27] sm:$0x7] }
 0x539   :  { %v3824_v38 = vrot.slane %v10160_v22, %v8906_v60  ;;  %v3820_v27 = vrot.slane %v10160_v22, %v8903_v58 }
 0x53b   :  { %v3345_v20 = vpop.f32.mrf.mxu0 }
 0x53d   :  { %v3347_v57 = vpop.f32.mrf.mxu0 }
 0x540   :  { %v3274_v26 = vpop.f32.mrf.mxu1 }
 0x541   :  { %v3346_v62 = vadd.f32 %v3345_v20, %v3274_v26  ;;  %v4201_v26 = vld [vmem:[%s11205_s30 + $0xb0] sm:$0xff]  ;;  %v4198_v20 = vld [vmem:[%s11205_s30 + $0x98] sm:$0xff] }
 0x542   :  { %v3276_v54 = vpop.f32.mrf.mxu1 }
 0x543   :  { %v3348_v19 = vadd.f32 %v3347_v57, %v3276_v54 }
 0x55c   :  { %v7111_v59 = vpop.f32.mrf.mxu0 }
 0x55e   :  { %v7112_v24 = vpop.f32.mrf.mxu0 }
 0x55f   :  { %v7113_v49 = vadd.f32 %v7112_v24, %v7111_v59  ;;  %v3785_v59 = vrot.slane %v10146_v61, %v8942_v28  ;;  %v4197_v24 = vld [vmem:[%s11205_s30 + $0x90] sm:$0xff]  ;;  %v4191_v61 = vld [vmem:[%s11205_s30 + $0x60] sm:$0xff] }
 0x562   :  { %v10143_v55 = vpop.f32.mrf.mxu1 }
 0x563   :  { %v3487_v54 = vadd.f32 %v7113_v49, %v10143_v55  ;;  %v4194_v55 = vld [vmem:[%s11205_s30 + $0x78] sm:$0xff] }
 0x564   :  { %v7860_v56 = vpop.f32.mrf.mxu1  ;;  %v4302_v49 = vld [vmem:[%s11205_s30 + $0x3d8] sm:$0xff] }
 0x565   :  { %v4200_v56 = vld [vmem:[%s11205_s30 + $0xa8] sm:$0xff] }
 0x584   :  { %v3627_v63 = vpop.f32.mrf.mxu1 }
 0x586   :  { %v3629_v10 = vpop.f32.mrf.mxu1 }
 0x59f   :  { %v3556_v1 = vpop.f32.mrf.mxu0 }
 0x5a0   :  { %v3557_v3 = vadd.f32 %v3556_v1, %v3346_v62 }
 0x5a1   :  { %v3558_v48 = vpop.f32.mrf.mxu0 }
 0x5a2   :  { %v3628_v5 = vadd.f32 %v3627_v63, %v3557_v3  ;;  %v3559_v8 = vadd.f32 %v3558_v48, %v3348_v19  ;;  %v4195_v63 = vld [vmem:[%s11205_s30 + $0x80] sm:$0xff]  ;;  %v4192_v3 = vld [vmem:[%s11205_s30 + $0x68] sm:$0xff]  ;;  %v3808_v48 = vrot.slane %v10151_v6, %v8942_v28  ;;  %v4185_v6 = vld [vmem:[%s11205_s30 + $0x30] sm:$0xff] }
 0x5a4   :  { %v3789_v11 = vadd.f32 %v3777_v4, %v3628_v5  ;;  %v3630_v14 = vadd.f32 %v3629_v10, %v3559_v8  ;;  %v4189_v5 = vld [vmem:[%s11205_s30 + $0x50] sm:$0xff]  ;;  %v4188_v10 = vld [vmem:[%s11205_s30 + $0x48] sm:$0xff] }
 0x5a5   :  { %v7163_v39 = vpop.f32.mrf.mxu1 }
 0x5a6   :  { %v3792_v18 = vmax.f32 %v3789_v11, 0.0  ;;  %v3790_v21 = vadd.f32 %v3781_v9, %v3630_v14  ;;  %v3828_v9 = vrot.slane %v10160_v22, %v8942_v28  ;;  %v4186_v11 = vld [vmem:[%s11205_s30 + $0x38] sm:$0xff] }
 0x5a7   :  { %v7164_v44 = vpop.f32.mrf.mxu1  ;;  %v4318_v22 = vld [vmem:[%s11205_s30 + $0x458] sm:$0xff] }
 0x5a8   :  { %v3793_v23 = vmax.f32 %v3790_v21, 0.0  ;;  %v3812_v25 = vmul.f32 %v3800_v12, %v3792_v18  ;;  %v7165_v52 = vadd.f32 %v7164_v44, %v7163_v39  ;;  %v4183_v12 = vld [vmem:[%s11205_s30 + $0x20] sm:$0xff]  ;;  %v4320_v21 = vld [vmem:[%s11205_s30 + $0x468] sm:$0xff]  ;;  %v4266_v39 = vld [vmem:[%s11205_s30 + $0x2b8] sm:$0xff] }
 0x5a9   :  { %v4303_v44 = vld [vmem:[%s11205_s30 + $0x3e0] sm:$0xff] }
 0x5aa   :  { %v3813_v17 = vmul.f32 %v3804_v2, %v3793_v23  ;;  %v3832_v7 = vadd.f32 %v3820_v27, %v3812_v25  ;;  %v3699_v57 = vadd.f32 %v7165_v52, %v3487_v54  ;;  %v4182_v2 = vld [vmem:[%s11205_s30 + $0x18] sm:$0xff]  ;;  %v4180_v23 = vld [vmem:[%s11205_s30 + $0x8] sm:$0xff]  ;;  %v4179_v25 = vld [vmem:[%s11205_s30] sm:$0xff] }
 0x5ab   :  { %v4315_v27 = vld [vmem:[%s11205_s30 + $0x440] sm:$0xff]  ;;  %v4258_v52 = vld [vmem:[%s11205_s30 + $0x278] sm:$0xff]  ;;  %v4297_v54 = vld [vmem:[%s11205_s30 + $0x3b0] sm:$0xff] }
 0x5ac   :  { %v3833_v29 = vadd.f32 %v3824_v38, %v3813_v17  ;;  %v4317_v38 = vld [vmem:[%s11205_s30 + $0x450] sm:$0xff] }
 0x5ad   :  { %v4273_v17 = vld [vmem:[%s11205_s30 + $0x2f0] sm:$0xff] }
 0x5ae   :  { %3954 = vmatprep.mubr.f32.mxu1 %v3833_v29  ;;  %v4314_v29 = vld [vmem:[%s11205_s30 + $0x438] sm:$0xff] }
 0x5af   :  { %3955 = vmatmul.mubr.f32.vlgmr.msra.gmra.mxu1 %v3832_v7  ;;  %v4272_v7 = vld [vmem:[%s11205_s30 + $0x2e8] sm:$0xff] }
 0x5b0   :  { %4324 = vmatpush1.msra.mxu1 %v4224_v31  ;;  %4387 = vmatprep.mubr.f32.mxu1 %v9299_v15  ;;  %v4312_v31 = vld [vmem:[%s11205_s30 + $0x428] sm:$0xff] }
 0x5b1   :  { %4325 = vmatprep.subr.mxu1 %v4222_v32  ;;  %v4270_v32 = vld [vmem:[%s11205_s30 + $0x2d8] sm:$0xff] }
 0x5b2   :  { %4326 = vmatpush1.msra.mxu1 %v4221_v33  ;;  %v4311_v33 = vld [vmem:[%s11205_s30 + $0x420] sm:$0xff] }
 0x5b3   :  { %4327 = vmatprep.subr.mxu1 %v4219_v34  ;;  %v4269_v34 = vld [vmem:[%s11205_s30 + $0x2d0] sm:$0xff] }
 0x5b4   :  { %4328 = vmatpush1.msra.mxu1 %v4218_v30  ;;  %v4309_v30 = vld [vmem:[%s11205_s30 + $0x410] sm:$0xff] }
 0x5b5   :  { %4329 = vmatprep.subr.mxu1 %v4216_v36  ;;  %v4267_v36 = vld [vmem:[%s11205_s30 + $0x2c0] sm:$0xff] }
 0x5b6   :  { %4330 = vmatpush1.msra.mxu1 %v4215_v35  ;;  %v4308_v35 = vld [vmem:[%s11205_s30 + $0x408] sm:$0xff] }
 0x5b7   :  { %4331 = vmatprep.subr.mxu1 %v4213_v40  ;;  %v4306_v40 = vld [vmem:[%s11205_s30 + $0x3f8] sm:$0xff] }
 0x5b8   :  { %4332 = vmatpush1.msra.mxu1 %v4212_v41  ;;  %v4264_v41 = vld [vmem:[%s11205_s30 + $0x2a8] sm:$0xff] }
 0x5b9   :  { %4333 = vmatprep.subr.mxu1 %v4210_v42  ;;  %v4305_v42 = vld [vmem:[%s11205_s30 + $0x3f0] sm:$0xff] }
 0x5ba   :  { %4334 = vmatpush1.msra.mxu1 %v4209_v43  ;;  %v4263_v43 = vld [vmem:[%s11205_s30 + $0x2a0] sm:$0xff] }
 0x5bb   :  { %4335 = vmatprep.subr.mxu1 %v4207_v47  ;;  %v4261_v47 = vld [vmem:[%s11205_s30 + $0x290] sm:$0xff] }
 0x5bc   :  { %4336 = vmatpush1.msra.mxu1 %v4206_v50  ;;  %v4260_v50 = vld [vmem:[%s11205_s30 + $0x288] sm:$0xff] }
 0x5bd   :  { %4337 = vmatprep.subr.mxu1 %v4204_v51  ;;  %v4300_v51 = vld [vmem:[%s11205_s30 + $0x3c8] sm:$0xff] }
 0x5be   :  { %4338 = vmatpush1.msra.mxu1 %v4203_v53  ;;  %v4299_v53 = vld [vmem:[%s11205_s30 + $0x3c0] sm:$0xff] }
 0x5bf   :  { %4339 = vmatprep.subr.mxu1 %v4201_v26  ;;  %v4257_v26 = vld [vmem:[%s11205_s30 + $0x270] sm:$0xff] }
 0x5c0   :  { %v3768_v62 = vpop.f32.mrf.mxu0  ;;  %4340 = vmatpush1.msra.mxu1 %v4200_v56  ;;  %v4255_v56 = vld [vmem:[%s11205_s30 + $0x260] sm:$0xff] }
 0x5c1   :  { %v3769_v1 = vadd.f32 %v3768_v62, %v3699_v57  ;;  %4341 = vmatprep.subr.mxu1 %v4198_v20  ;;  %v4296_v20 = vld [vmem:[%s11205_s30 + $0x3a8] sm:$0xff]  ;;  %v4254_v57 = vld [vmem:[%s11205_s30 + $0x258] sm:$0xff]  ;;  %v4293_v62 = vld [vmem:[%s11205_s30 + $0x390] sm:$0xff] }
 0x5c2   :  { %v7895_v19 = vpop.f32.mrf.mxu0  ;;  %4342 = vmatpush1.msra.mxu1 %v4197_v24  ;;  %v4252_v24 = vld [vmem:[%s11205_s30 + $0x248] sm:$0xff] }
 0x5c3   :  { %v3791_v4 = vadd.f32 %v3785_v59, %v3769_v1  ;;  %4343 = vmatprep.subr.mxu1 %v4195_v63  ;;  %v4294_v59 = vld [vmem:[%s11205_s30 + $0x398] sm:$0xff]  ;;  %v4251_v63 = vld [vmem:[%s11205_s30 + $0x240] sm:$0xff] }
 0x5c4   :  { %4344 = vmatpush1.msra.mxu1 %v4194_v55  ;;  %v4291_v1 = vld [vmem:[%s11205_s30 + $0x380] sm:$0xff]  ;;  %v4249_v55 = vld [vmem:[%s11205_s30 + $0x230] sm:$0xff]  ;;  %v4290_v19 = vld [vmem:[%s11205_s30 + $0x378] sm:$0xff] }
 0x5c5   :  { %v3794_v8 = vmax.f32 %v3791_v4, 0.0  ;;  %4345 = vmatprep.subr.mxu1 %v4192_v3  ;;  %v4248_v3 = vld [vmem:[%s11205_s30 + $0x228] sm:$0xff] }
 0x5c6   :  { %4346 = vmatpush1.msra.mxu1 %v4191_v61  ;;  %v4288_v4 = vld [vmem:[%s11205_s30 + $0x368] sm:$0xff]  ;;  %v4287_v61 = vld [vmem:[%s11205_s30 + $0x360] sm:$0xff] }
 0x5c7   :  { %v3814_v14 = vmul.f32 %v3808_v48, %v3794_v8  ;;  %4347 = vmatprep.subr.mxu1 %v4189_v5  ;;  %v4246_v48 = vld [vmem:[%s11205_s30 + $0x218] sm:$0xff]  ;;  %v4245_v5 = vld [vmem:[%s11205_s30 + $0x210] sm:$0xff] }
 0x5c8   :  { %4348 = vmatpush1.msra.mxu1 %v4188_v10  ;;  %v4285_v8 = vld [vmem:[%s11205_s30 + $0x350] sm:$0xff]  ;;  %v4284_v10 = vld [vmem:[%s11205_s30 + $0x348] sm:$0xff] }
 0x5c9   :  { %v3834_v18 = vadd.f32 %v3828_v9, %v3814_v14  ;;  %4349 = vmatprep.subr.mxu1 %v4186_v11  ;;  %v4243_v9 = vld [vmem:[%s11205_s30 + $0x200] sm:$0xff]  ;;  %v4242_v11 = vld [vmem:[%s11205_s30 + $0x1f8] sm:$0xff] }
 0x5ca   :  { %4350 = vmatpush1.msra.mxu1 %v4185_v6  ;;  %v4282_v14 = vld [vmem:[%s11205_s30 + $0x338] sm:$0xff]  ;;  %v4240_v6 = vld [vmem:[%s11205_s30 + $0x1e8] sm:$0xff] }
 0x5cb   :  { %7929 = vmatmul.mubr.f32.vlgmr.msra.gmra.mxu0 %v3834_v18  ;;  %4351 = vmatprep.subr.mxu1 %v4183_v12  ;;  %v4281_v12 = vld [vmem:[%s11205_s30 + $0x330] sm:$0xff]  ;;  %v4239_v18 = vld [vmem:[%s11205_s30 + $0x1e0] sm:$0xff] }
 0x5cc   :  { %4395 = vmatpush1.msra.mxu0 %v4320_v21  ;;  %4352 = vmatpush1.msra.mxu1 %v4182_v2  ;;  %v4279_v21 = vld [vmem:[%s11205_s30 + $0x320] sm:$0xff]  ;;  %v4237_v2 = vld [vmem:[%s11205_s30 + $0x1d0] sm:$0xff] }
 0x5cd   :  { %4396 = vmatprep.subr.mxu0 %v4318_v22  ;;  %4353 = vmatprep.subr.mxu1 %v4180_v23  ;;  %v4278_v22 = vld [vmem:[%s11205_s30 + $0x318] sm:$0xff]  ;;  %v4236_v23 = vld [vmem:[%s11205_s30 + $0x1c8] sm:$0xff] }
 0x5ce   :  { %4397 = vmatpush1.msra.mxu0 %v4317_v38  ;;  %4354 = vmatpush1.msra.mxu1 %v4179_v25  ;;  %v4276_v38 = vld [vmem:[%s11205_s30 + $0x308] sm:$0xff]  ;;  %v4234_v25 = vld [vmem:[%s11205_s30 + $0x1b8] sm:$0xff] }
 0x5cf   :  { %4398 = vmatprep.subr.mxu0 %v4315_v27  ;;  %4355 = vmatprep.subr.mxu1 %v4273_v17  ;;  %v4275_v27 = vld [vmem:[%s11205_s30 + $0x300] sm:$0xff]  ;;  %v4233_v17 = vld [vmem:[%s11205_s30 + $0x1b0] sm:$0xff] }
 0x5d0   :  { %4399 = vmatpush1.msra.mxu0 %v4314_v29  ;;  %4356 = vmatpush2.msra.mxu1 %v4272_v7  ;;  %v4274_v29 = vld [vmem:[%s11205_s30 + $0x2f8] sm:$0xff]  ;;  %v4231_v7 = vld [vmem:[%s11205_s30 + $0x1a0] sm:$0xff] }
 0x5d1   :  { %4400 = vmatprep.subr.mxu0 %v4312_v31  ;;  %4357 = vmatprep.subr.mxu1 %v4270_v32  ;;  %v4226_v31 = vld [vmem:[%s11205_s30 + $0x178] sm:$0xff] }
 0x5d2   :  { %4401 = vmatpush1.msra.mxu0 %v4311_v33  ;;  %4358 = vmatpush2.msra.mxu1 %v4269_v34  ;;  %v4230_v32 = vld [vmem:[%s11205_s30 + $0x198] sm:$0xff]  ;;  %v4271_v33 = vld [vmem:[%s11205_s30 + $0x2e0] sm:$0xff]  ;;  %v4228_v34 = vld [vmem:[%s11205_s30 + $0x188] sm:$0xff] }
 0x5d3   :  { %4402 = vmatprep.subr.mxu0 %v4309_v30  ;;  %4359 = vmatprep.subr.mxu1 %v4267_v36  ;;  %v4223_v30 = vld [vmem:[%s11205_s30 + $0x160] sm:$0xff] }
 0x5d4   :  { %4403 = vmatpush1.msra.mxu0 %v4308_v35  ;;  %4360 = vmatpush2.msra.mxu1 %v4266_v39  ;;  %v4227_v36 = vld [vmem:[%s11205_s30 + $0x180] sm:$0xff]  ;;  %v4268_v35 = vld [vmem:[%s11205_s30 + $0x2c8] sm:$0xff] }
 0x5d5   :  { %4404 = vmatprep.subr.mxu0 %v4306_v40  ;;  %4361 = vmatprep.subr.mxu1 %v4264_v41  ;;  %v4220_v39 = vld [vmem:[%s11205_s30 + $0x148] sm:$0xff]  ;;  %v4265_v40 = vld [vmem:[%s11205_s30 + $0x2b0] sm:$0xff]  ;;  %v4322_v41 = vld [vmem:[%s11205_s30 + $0x478] sm:$0xff] }
 0x5d6   :  { %4405 = vmatpush1.msra.mxu0 %v4305_v42  ;;  %4362 = vmatpush2.msra.mxu1 %v4263_v43  ;;  %v4217_v42 = vld [vmem:[%s11205_s30 + $0x130] sm:$0xff]  ;;  %v4319_v43 = vld [vmem:[%s11205_s30 + $0x460] sm:$0xff] }
 0x5d7   :  { %4406 = vmatprep.subr.mxu0 %v4303_v44  ;;  %4363 = vmatprep.subr.mxu1 %v4261_v47  ;;  %v4214_v44 = vld [vmem:[%s11205_s30 + $0x118] sm:$0xff]  ;;  %v4259_v47 = vld [vmem:[%s11205_s30 + $0x280] sm:$0xff] }
 0x5d8   :  { %4407 = vmatpush1.msra.mxu0 %v4302_v49  ;;  %4364 = vmatpush2.msra.mxu1 %v4260_v50  ;;  %v4316_v49 = vld [vmem:[%s11205_s30 + $0x448] sm:$0xff]  ;;  %v4211_v50 = vld [vmem:[%s11205_s30 + $0x100] sm:$0xff] }
 0x5d9   :  { %4408 = vmatprep.subr.mxu0 %v4300_v51  ;;  %4365 = vmatprep.subr.mxu1 %v4258_v52  ;;  %v4256_v51 = vld [vmem:[%s11205_s30 + $0x268] sm:$0xff]  ;;  %v4313_v52 = vld [vmem:[%s11205_s30 + $0x430] sm:$0xff] }
 0x5da   :  { %4409 = vmatpush1.msra.mxu0 %v4299_v53  ;;  %4366 = vmatpush2.msra.mxu1 %v4257_v26  ;;  %v4208_v53 = vld [vmem:[%s11205_s30 + $0xe8] sm:$0xff]  ;;  %v4253_v26 = vld [vmem:[%s11205_s30 + $0x250] sm:$0xff] }
 0x5db   :  { %4410 = vmatprep.subr.mxu0 %v4297_v54  ;;  %4367 = vmatprep.subr.mxu1 %v4255_v56  ;;  %v4310_v54 = vld [vmem:[%s11205_s30 + $0x418] sm:$0xff]  ;;  %v4205_v56 = vld [vmem:[%s11205_s30 + $0xd0] sm:$0xff] }
 0x5dc   :  { %4411 = vmatpush1.msra.mxu0 %v4296_v20  ;;  %4368 = vmatpush2.msra.mxu1 %v4254_v57  ;;  %v4250_v20 = vld [vmem:[%s11205_s30 + $0x238] sm:$0xff]  ;;  %v4307_v57 = vld [vmem:[%s11205_s30 + $0x400] sm:$0xff] }
 0x5dd   :  { %4412 = vmatprep.subr.mxu0 %v4294_v59  ;;  %4369 = vmatprep.subr.mxu1 %v4252_v24  ;;  %v4202_v59 = vld [vmem:[%s11205_s30 + $0xb8] sm:$0xff]  ;;  %v4247_v24 = vld [vmem:[%s11205_s30 + $0x220] sm:$0xff] }
 0x5de   :  { %4413 = vmatpush1.msra.mxu0 %v4293_v62  ;;  %4370 = vmatpush2.msra.mxu1 %v4251_v63  ;;  %v4304_v62 = vld [vmem:[%s11205_s30 + $0x3e8] sm:$0xff]  ;;  %v4199_v63 = vld [vmem:[%s11205_s30 + $0xa0] sm:$0xff] }
 0x5df   :  { %4414 = vmatprep.subr.mxu0 %v4291_v1  ;;  %4371 = vmatprep.subr.mxu1 %v4249_v55  ;;  %v4244_v1 = vld [vmem:[%s11205_s30 + $0x208] sm:$0xff]  ;;  %v4301_v55 = vld [vmem:[%s11205_s30 + $0x3d0] sm:$0xff] }
 0x5e0   :  { %4415 = vmatpush1.msra.mxu0 %v4290_v19  ;;  %4372 = vmatpush2.msra.mxu1 %v4248_v3  ;;  %v4196_v19 = vld [vmem:[%s11205_s30 + $0x88] sm:$0xff]  ;;  %v4241_v3 = vld [vmem:[%s11205_s30 + $0x1f0] sm:$0xff] }
 0x5e1   :  { %4416 = vmatprep.subr.mxu0 %v4288_v4  ;;  %4373 = vmatprep.subr.mxu1 %v4246_v48  ;;  %v4298_v4 = vld [vmem:[%s11205_s30 + $0x3b8] sm:$0xff]  ;;  %v4193_v48 = vld [vmem:[%s11205_s30 + $0x70] sm:$0xff] }
 0x5e2   :  { %4417 = vmatpush1.msra.mxu0 %v4287_v61  ;;  %4374 = vmatpush2.msra.mxu1 %v4245_v5  ;;  %v4238_v61 = vld [vmem:[%s11205_s30 + $0x1d8] sm:$0xff]  ;;  %v4295_v5 = vld [vmem:[%s11205_s30 + $0x3a0] sm:$0xff] }
 0x5e3   :  { %4418 = vmatprep.subr.mxu0 %v4285_v8  ;;  %4375 = vmatprep.subr.mxu1 %v4243_v9  ;;  %v4190_v8 = vld [vmem:[%s11205_s30 + $0x58] sm:$0xff]  ;;  %v4235_v9 = vld [vmem:[%s11205_s30 + $0x1c0] sm:$0xff] }
 0x5e4   :  { %4419 = vmatpush1.msra.mxu0 %v4284_v10  ;;  %4376 = vmatpush2.msra.mxu1 %v4242_v11  ;;  %v4292_v10 = vld [vmem:[%s11205_s30 + $0x388] sm:$0xff]  ;;  %v4187_v11 = vld [vmem:[%s11205_s30 + $0x40] sm:$0xff] }
 0x5e5   :  { %4420 = vmatprep.subr.mxu0 %v4282_v14  ;;  %4377 = vmatprep.subr.mxu1 %v4240_v6  ;;  %v4232_v14 = vld [vmem:[%s11205_s30 + $0x1a8] sm:$0xff]  ;;  %v4289_v6 = vld [vmem:[%s11205_s30 + $0x370] sm:$0xff] }
 0x5e6   :  { %4421 = vmatpush1.msra.mxu0 %v4281_v12  ;;  %4378 = vmatpush2.msra.mxu1 %v4239_v18  ;;  %v4184_v12 = vld [vmem:[%s11205_s30 + $0x28] sm:$0xff]  ;;  %v4229_v18 = vld [vmem:[%s11205_s30 + $0x190] sm:$0xff] }
 0x5e7   :  { %4422 = vmatprep.subr.mxu0 %v4279_v21  ;;  %4379 = vmatprep.subr.mxu1 %v4237_v2  ;;  %v4286_v21 = vld [vmem:[%s11205_s30 + $0x358] sm:$0xff]  ;;  %v4181_v2 = vld [vmem:[%s11205_s30 + $0x10] sm:$0xff] }
 0x5e8   :  { %4423 = vmatpush1.msra.mxu0 %v4278_v22  ;;  %4380 = vmatpush2.msra.mxu1 %v4236_v23  ;;  %v4283_v22 = vld [vmem:[%s11205_s30 + $0x340] sm:$0xff]  ;;  %v4081_v23 = vld [vmem:[%s11209_s26 + $0x170] sm:$0xff] }
 0x5e9   :  { %4424 = vmatprep.subr.mxu0 %v4276_v38  ;;  %4381 = vmatprep.subr.mxu1 %v4234_v25  ;;  %v4080_v38 = vld [vmem:[%s11209_s26 + $0x168] sm:$0xff] }
 0x5ea   :  { %4425 = vmatpush1.msra.mxu0 %v4275_v27  ;;  %4458 = vmatprep.mubr.f32.mxu0 %v8395_v0  ;;  %v4280_v25 = vld [vmem:[%s11205_s30 + $0x328] sm:$0xff]  ;;  %v4078_v27 = vld [vmem:[%s11209_s26 + $0x158] sm:$0xff] }
 0x5eb   :  { %4382 = vmatpush2.msra.mxu1 %v4233_v17  ;;  %4459 = vmatmul.mubr.f32.vlgmr.msra.gmra.mxu0 %v9340_v13  ;;  %v4077_v17 = vld [vmem:[%s11209_s26 + $0x150] sm:$0xff] }
 0x5ec   :  { %7235 = vmatprep.subr.mxu0 %v4274_v29  ;;  %4383 = vmatprep.subr.mxu1 %v4231_v7  ;;  %v4277_v29 = vld [vmem:[%s11205_s30 + $0x310] sm:$0xff]  ;;  %v4075_v7 = vld [vmem:[%s11209_s26 + $0x140] sm:$0xff] }
 0x5ed   :  { %7236 = vmatpush3.msra.mxu0 %v4226_v31  ;;  %4529 = vmatprep.mubr.f32.mxu0 %v9299_v15  ;;  %v4262_v15 = vld [vmem:[%s11205_s30 + $0x298] sm:$0xff]  ;;  %v4177_v31 = vld [vmem:[%s11209_s26 + $0x470] sm:$0xff] }
 0x5ee   :  { %4384 = vmatpush2.msra.mxu1 %v4230_v32  ;;  %7237 = vmatprep.subr.mxu0 %v4271_v33  ;;  %v4072_v32 = vld [vmem:[%s11209_s26 + $0x128] sm:$0xff] }
 0x5ef   :  { %4385 = vmatprep.subr.mxu1 %v4228_v34  ;;  %7238 = vmatpush3.msra.mxu0 %v4223_v30  ;;  %v4176_v33 = vld [vmem:[%s11209_s26 + $0x468] sm:$0xff]  ;;  %v4071_v34 = vld [vmem:[%s11209_s26 + $0x120] sm:$0xff]  ;;  %v4174_v30 = vld [vmem:[%s11209_s26 + $0x458] sm:$0xff] }
 0x5f0   :  { %4386 = vmatpush2.msra.mxu1 %v4227_v36  ;;  %7239 = vmatprep.subr.mxu0 %v4268_v35  ;;  %v4069_v36 = vld [vmem:[%s11209_s26 + $0x110] sm:$0xff] }
 0x5f1   :  { %4388 = vmatmul.mubr.f32.vlgmr.msra.gmra.mxu1 %v9301_v16  ;;  %7240 = vmatpush3.msra.mxu0 %v4220_v39  ;;  %v4173_v35 = vld [vmem:[%s11209_s26 + $0x450] sm:$0xff]  ;;  %v4068_v39 = vld [vmem:[%s11209_s26 + $0x108] sm:$0xff] }
 0x5f2   :  { %7931 = vmatprep.subr.mxu1 %v8395_v0  ;;  %7241 = vmatprep.subr.mxu0 %v4265_v40  ;;  %v4171_v40 = vld [vmem:[%s11209_s26 + $0x440] sm:$0xff] }
 0x5f3   :  { %7932 = vmatpush3.msra.mxu1 %v4322_v41  ;;  %7242 = vmatpush3.msra.mxu0 %v4217_v42  ;;  %v4066_v41 = vld [vmem:[%s11209_s26 + $0xf8] sm:$0xff]  ;;  %v4065_v42 = vld [vmem:[%s11209_s26 + $0xf0] sm:$0xff] }
 0x5f4   :  { %7933 = vmatprep.subr.mxu1 %v8395_v0  ;;  %7243 = vmatprep.subr.mxu0 %v4262_v15  ;;  %v4168_v15 = vld [vmem:[%s11209_s26 + $0x428] sm:$0xff] }
 0x5f5   :  { %7934 = vmatpush3.msra.mxu1 %v4319_v43  ;;  %7244 = vmatpush3.msra.mxu0 %v4214_v44  ;;  %v4063_v43 = vld [vmem:[%s11209_s26 + $0xe0] sm:$0xff] }
 0x5f6   :  { %7935 = vmatprep.subr.mxu1 %v8395_v0  ;;  %7245 = vmatprep.subr.mxu0 %v4259_v47  ;;  %v4167_v44 = vld [vmem:[%s11209_s26 + $0x420] sm:$0xff]  ;;  %v4062_v47 = vld [vmem:[%s11209_s26 + $0xd8] sm:$0xff] }
 0x5f7   :  { %7936 = vmatpush3.msra.mxu1 %v4316_v49  ;;  %7246 = vmatpush3.msra.mxu0 %v4211_v50  ;;  %v4165_v49 = vld [vmem:[%s11209_s26 + $0x410] sm:$0xff]  ;;  %v4060_v50 = vld [vmem:[%s11209_s26 + $0xc8] sm:$0xff] }
 0x5f8   :  { %7937 = vmatprep.subr.mxu1 %v8395_v0  ;;  %7247 = vmatprep.subr.mxu0 %v4256_v51  ;;  %v4164_v51 = vld [vmem:[%s11209_s26 + $0x408] sm:$0xff] }
 0x5f9   :  { %7938 = vmatpush3.msra.mxu1 %v4313_v52  ;;  %7248 = vmatpush3.msra.mxu0 %v4208_v53  ;;  %v4059_v52 = vld [vmem:[%s11209_s26 + $0xc0] sm:$0xff]  ;;  %v4162_v53 = vld [vmem:[%s11209_s26 + $0x3f8] sm:$0xff] }
 0x5fa   :  { %7939 = vmatprep.subr.mxu1 %v8395_v0  ;;  %7249 = vmatprep.subr.mxu0 %v4253_v26  ;;  %v4057_v26 = vld [vmem:[%s11209_s26 + $0xb0] sm:$0xff] }
 0x5fb   :  { %7940 = vmatpush3.msra.mxu1 %v4310_v54  ;;  %7250 = vmatpush3.msra.mxu0 %v4205_v56  ;;  %v4161_v54 = vld [vmem:[%s11209_s26 + $0x3f0] sm:$0xff]  ;;  %v4056_v56 = vld [vmem:[%s11209_s26 + $0xa8] sm:$0xff] }
 0x5fc   :  { %7941 = vmatprep.subr.mxu1 %v8395_v0  ;;  %7251 = vmatprep.subr.mxu0 %v4250_v20  ;;  %v4159_v20 = vld [vmem:[%s11209_s26 + $0x3e0] sm:$0xff] }
 0x5fd   :  { %7942 = vmatpush3.msra.mxu1 %v4307_v57  ;;  %7252 = vmatpush3.msra.mxu0 %v4202_v59  ;;  %v4054_v57 = vld [vmem:[%s11209_s26 + $0x98] sm:$0xff] }
 0x5fe   :  { %7943 = vmatprep.subr.mxu1 %v8395_v0  ;;  %7253 = vmatprep.subr.mxu0 %v4247_v24  ;;  %v4158_v59 = vld [vmem:[%s11209_s26 + $0x3d8] sm:$0xff]  ;;  %v4053_v24 = vld [vmem:[%s11209_s26 + $0x90] sm:$0xff] }
 0x5ff   :  { %7944 = vmatpush3.msra.mxu1 %v4304_v62  ;;  %7254 = vmatpush3.msra.mxu0 %v4199_v63  ;;  %v4156_v62 = vld [vmem:[%s11209_s26 + $0x3c8] sm:$0xff]  ;;  %v4051_v63 = vld [vmem:[%s11209_s26 + $0x80] sm:$0xff] }
 0x600   :  { %7945 = vmatprep.subr.mxu1 %v8395_v0  ;;  %7255 = vmatprep.subr.mxu0 %v4244_v1  ;;  %v4155_v1 = vld [vmem:[%s11209_s26 + $0x3c0] sm:$0xff] }
 0x601   :  { %7946 = vmatpush3.msra.mxu1 %v4301_v55  ;;  %7256 = vmatpush3.msra.mxu0 %v4196_v19  ;;  %v4050_v55 = vld [vmem:[%s11209_s26 + $0x78] sm:$0xff]  ;;  %v4153_v19 = vld [vmem:[%s11209_s26 + $0x3b0] sm:$0xff] }
 0x602   :  { %7947 = vmatprep.subr.mxu1 %v8395_v0  ;;  %7257 = vmatprep.subr.mxu0 %v4241_v3  ;;  %v4048_v3 = vld [vmem:[%s11209_s26 + $0x68] sm:$0xff] }
 0x603   :  { %7948 = vmatpush3.msra.mxu1 %v4298_v4  ;;  %7258 = vmatpush3.msra.mxu0 %v4193_v48  ;;  %v4152_v4 = vld [vmem:[%s11209_s26 + $0x3a8] sm:$0xff]  ;;  %v4047_v48 = vld [vmem:[%s11209_s26 + $0x60] sm:$0xff] }
 0x604   :  { %7949 = vmatprep.subr.mxu1 %v8395_v0  ;;  %7259 = vmatprep.subr.mxu0 %v4238_v61  ;;  %v4150_v61 = vld [vmem:[%s11209_s26 + $0x398] sm:$0xff] }
 0x605   :  { %7950 = vmatpush3.msra.mxu1 %v4295_v5  ;;  %7260 = vmatpush3.msra.mxu0 %v4190_v8  ;;  %v4045_v5 = vld [vmem:[%s11209_s26 + $0x50] sm:$0xff] }
 0x606   :  { %7951 = vmatprep.subr.mxu1 %v8395_v0  ;;  %7261 = vmatprep.subr.mxu0 %v4235_v9  ;;  %v4149_v8 = vld [vmem:[%s11209_s26 + $0x390] sm:$0xff]  ;;  %v4044_v9 = vld [vmem:[%s11209_s26 + $0x48] sm:$0xff] }
 0x607   :  { %7952 = vmatpush3.msra.mxu1 %v4292_v10  ;;  %7262 = vmatpush3.msra.mxu0 %v4187_v11  ;;  %v4147_v10 = vld [vmem:[%s11209_s26 + $0x380] sm:$0xff]  ;;  %v4042_v11 = vld [vmem:[%s11209_s26 + $0x38] sm:$0xff] }
 0x608   :  { %7953 = vmatprep.subr.mxu1 %v8395_v0  ;;  %7263 = vmatprep.subr.mxu0 %v4232_v14  ;;  %v4146_v14 = vld [vmem:[%s11209_s26 + $0x378] sm:$0xff] }
 0x609   :  { %7954 = vmatpush3.msra.mxu1 %v4289_v6  ;;  %7264 = vmatpush3.msra.mxu0 %v4184_v12  ;;  %v4041_v6 = vld [vmem:[%s11209_s26 + $0x30] sm:$0xff]  ;;  %v4144_v12 = vld [vmem:[%s11209_s26 + $0x368] sm:$0xff] }
 0x60a   :  { %7955 = vmatprep.subr.mxu1 %v8395_v0  ;;  %7265 = vmatprep.subr.mxu0 %v4229_v18  ;;  %v4039_v18 = vld [vmem:[%s11209_s26 + $0x20] sm:$0xff] }
 0x60b   :  { %7956 = vmatpush3.msra.mxu1 %v4286_v21  ;;  %7266 = vmatpush3.msra.mxu0 %v4181_v2  ;;  %v4143_v21 = vld [vmem:[%s11209_s26 + $0x360] sm:$0xff]  ;;  %v4038_v2 = vld [vmem:[%s11209_s26 + $0x18] sm:$0xff] }
 0x60c   :  { %7957 = vmatprep.subr.mxu1 %v8395_v0  ;;  %4530 = vmatmul.mubr.f32.vlgmr.msra.gmra.mxu0 %v9301_v16  ;;  %v4074_v16 = vld [vmem:[%s11209_s26 + $0x138] sm:$0xff] }
 0x60d   :  { %7958 = vmatpush3.msra.mxu1 %v4283_v22  ;;  %4605 = vmatprep.subr.mxu0 %v4081_v23  ;;  %v4141_v22 = vld [vmem:[%s11209_s26 + $0x350] sm:$0xff]  ;;  %v4036_v23 = vld [vmem:[%s11209_s26 + $0x8] sm:$0xff] }
 0x60e   :  { %7959 = vmatprep.subr.mxu1 %v8395_v0  ;;  %4606 = vmatpush1.msra.mxu0 %v4080_v38  ;;  %v4140_v38 = vld [vmem:[%s11209_s26 + $0x348] sm:$0xff] }
 0x60f   :  { %7960 = vmatpush3.msra.mxu1 %v4280_v25  ;;  %4607 = vmatprep.subr.mxu0 %v4078_v27  ;;  %v4035_v25 = vld [vmem:[%s11209_s26] sm:$0xff]  ;;  %v4138_v27 = vld [vmem:[%s11209_s26 + $0x338] sm:$0xff] }
 0x610   :  { %7961 = vmatprep.subr.mxu1 %v8395_v0  ;;  %4608 = vmatpush1.msra.mxu0 %v4077_v17  ;;  %v4129_v17 = vld [vmem:[%s11209_s26 + $0x2f0] sm:$0xff] }
 0x611   :  { %7962 = vmatpush3.msra.mxu1 %v4277_v29  ;;  %7963 = vmatprep.mubr.msk.f32.mxu1 %vm8396_vm0, %v8395_v0  ;;  %v4137_v29 = vld [vmem:[%s11209_s26 + $0x330] sm:$0xff] }
 0x612   :  { %4609 = vmatprep.subr.mxu0 %v4075_v7  ;;  %7964 = vmatmul.mubr.f32.vlgmr.msra.gmra.mxu1 %v9340_v13  ;;  %v4170_v13 = vld [vmem:[%s11209_s26 + $0x438] sm:$0xff]  ;;  %v4128_v7 = vld [vmem:[%s11209_s26 + $0x2e8] sm:$0xff] }
 0x613   :  { %4610 = vmatpush1.msra.mxu0 %v4074_v16  ;;  %4676 = vmatprep.subr.mxu1 %v4177_v31  ;;  %v4135_v16 = vld [vmem:[%s11209_s26 + $0x320] sm:$0xff]  ;;  %v4126_v31 = vld [vmem:[%s11209_s26 + $0x2d8] sm:$0xff] }
 0x614   :  { %4611 = vmatprep.subr.mxu0 %v4072_v32  ;;  %4677 = vmatpush1.msra.mxu1 %v4176_v33  ;;  %v4134_v32 = vld [vmem:[%s11209_s26 + $0x318] sm:$0xff]  ;;  %v4125_v33 = vld [vmem:[%s11209_s26 + $0x2d0] sm:$0xff] }
 0x615   :  { %4612 = vmatpush1.msra.mxu0 %v4071_v34  ;;  %4678 = vmatprep.subr.mxu1 %v4174_v30  ;;  %v4132_v34 = vld [vmem:[%s11209_s26 + $0x308] sm:$0xff]  ;;  %v4123_v30 = vld [vmem:[%s11209_s26 + $0x2c0] sm:$0xff] }
 0x616   :  { %4613 = vmatprep.subr.mxu0 %v4069_v36  ;;  %4679 = vmatpush1.msra.mxu1 %v4173_v35  ;;  %v4131_v36 = vld [vmem:[%s11209_s26 + $0x300] sm:$0xff]  ;;  %v4122_v35 = vld [vmem:[%s11209_s26 + $0x2b8] sm:$0xff] }
 0x617   :  { %4614 = vmatpush1.msra.mxu0 %v4068_v39  ;;  %4680 = vmatprep.subr.mxu1 %v4171_v40  ;;  %v4130_v39 = vld [vmem:[%s11209_s26 + $0x2f8] sm:$0xff]  ;;  %v4120_v40 = vld [vmem:[%s11209_s26 + $0x2a8] sm:$0xff] }
 0x618   :  { %4615 = vmatprep.subr.mxu0 %v4066_v41  ;;  %4681 = vmatpush1.msra.mxu1 %v4170_v13  ;;  %v4119_v41 = vld [vmem:[%s11209_s26 + $0x2a0] sm:$0xff]  ;;  %v4082_v13 = vld [vmem:[%s11209_s26 + $0x178] sm:$0xff] }
 0x619   :  { %4616 = vmatpush1.msra.mxu0 %v4065_v42  ;;  %4682 = vmatprep.subr.mxu1 %v4168_v15  ;;  %v4117_v42 = vld [vmem:[%s11209_s26 + $0x290] sm:$0xff]  ;;  %v4127_v15 = vld [vmem:[%s11209_s26 + $0x2e0] sm:$0xff] }
 0x61a   :  { %4617 = vmatprep.subr.mxu0 %v4063_v43  ;;  %4683 = vmatpush1.msra.mxu1 %v4167_v44  ;;  %v4116_v43 = vld [vmem:[%s11209_s26 + $0x288] sm:$0xff]  ;;  %v10419_v44 = vld [vmem:[%s8405_s5 + $0x10] sm:$0xff] }
 0x61b   :  { %4618 = vmatpush1.msra.mxu0 %v4062_v47  ;;  %4684 = vmatprep.subr.mxu1 %v4165_v49  ;;  %v4079_v47 = vld [vmem:[%s11209_s26 + $0x160] sm:$0xff]  ;;  %v4114_v49 = vld [vmem:[%s11209_s26 + $0x278] sm:$0xff] }
 0x61c   :  { %4619 = vmatprep.subr.mxu0 %v4060_v50  ;;  %4685 = vmatpush1.msra.mxu1 %v4164_v51  ;;  %v4124_v50 = vld [vmem:[%s11209_s26 + $0x2c8] sm:$0xff]  ;;  %v4113_v51 = vld [vmem:[%s11209_s26 + $0x270] sm:$0xff] }
 0x61d   :  { %4620 = vmatpush1.msra.mxu0 %v4059_v52  ;;  %4686 = vmatprep.subr.mxu1 %v4162_v53  ;;  %v4076_v52 = vld [vmem:[%s11209_s26 + $0x148] sm:$0xff]  ;;  %v4111_v53 = vld [vmem:[%s11209_s26 + $0x260] sm:$0xff] }
 0x61e   :  { %4621 = vmatprep.subr.mxu0 %v4057_v26  ;;  %4687 = vmatpush1.msra.mxu1 %v4161_v54  ;;  %v4121_v26 = vld [vmem:[%s11209_s26 + $0x2b0] sm:$0xff]  ;;  %v4110_v54 = vld [vmem:[%s11209_s26 + $0x258] sm:$0xff] }
 0x61f   :  { %4622 = vmatpush1.msra.mxu0 %v4056_v56  ;;  %4688 = vmatprep.subr.mxu1 %v4159_v20  ;;  %v4073_v56 = vld [vmem:[%s11209_s26 + $0x130] sm:$0xff]  ;;  %v4108_v20 = vld [vmem:[%s11209_s26 + $0x248] sm:$0xff] }
 0x620   :  { %4623 = vmatprep.subr.mxu0 %v4054_v57  ;;  %4689 = vmatpush1.msra.mxu1 %v4158_v59  ;;  %v4118_v57 = vld [vmem:[%s11209_s26 + $0x298] sm:$0xff]  ;;  %v4107_v59 = vld [vmem:[%s11209_s26 + $0x240] sm:$0xff] }
 0x621   :  { %4624 = vmatpush1.msra.mxu0 %v4053_v24  ;;  %4690 = vmatprep.subr.mxu1 %v4156_v62  ;;  %v4070_v24 = vld [vmem:[%s11209_s26 + $0x118] sm:$0xff]  ;;  %v4105_v62 = vld [vmem:[%s11209_s26 + $0x230] sm:$0xff] }
 0x622   :  { %4625 = vmatprep.subr.mxu0 %v4051_v63  ;;  %4691 = vmatpush1.msra.mxu1 %v4155_v1  ;;  %v4115_v63 = vld [vmem:[%s11209_s26 + $0x280] sm:$0xff]  ;;  %v4104_v1 = vld [vmem:[%s11209_s26 + $0x228] sm:$0xff] }
 0x623   :  { %4626 = vmatpush1.msra.mxu0 %v4050_v55  ;;  %4692 = vmatprep.subr.mxu1 %v4153_v19  ;;  %v4067_v55 = vld [vmem:[%s11209_s26 + $0x100] sm:$0xff]  ;;  %v4102_v19 = vld [vmem:[%s11209_s26 + $0x218] sm:$0xff] }
 0x624   :  { %4627 = vmatprep.subr.mxu0 %v4048_v3  ;;  %4693 = vmatpush1.msra.mxu1 %v4152_v4  ;;  %v4112_v3 = vld [vmem:[%s11209_s26 + $0x268] sm:$0xff]  ;;  %v4101_v4 = vld [vmem:[%s11209_s26 + $0x210] sm:$0xff] }
 0x625   :  { %4628 = vmatpush1.msra.mxu0 %v4047_v48  ;;  %4694 = vmatprep.subr.mxu1 %v4150_v61  ;;  %v4064_v48 = vld [vmem:[%s11209_s26 + $0xe8] sm:$0xff]  ;;  %v4099_v61 = vld [vmem:[%s11209_s26 + $0x200] sm:$0xff] }
 0x626   :  { %4629 = vmatprep.subr.mxu0 %v4045_v5  ;;  %4695 = vmatpush1.msra.mxu1 %v4149_v8  ;;  %v4109_v5 = vld [vmem:[%s11209_s26 + $0x250] sm:$0xff]  ;;  %v4098_v8 = vld [vmem:[%s11209_s26 + $0x1f8] sm:$0xff] }
 0x627   :  { %4630 = vmatpush1.msra.mxu0 %v4044_v9  ;;  %4696 = vmatprep.subr.mxu1 %v4147_v10  ;;  %v4061_v9 = vld [vmem:[%s11209_s26 + $0xd0] sm:$0xff]  ;;  %v4096_v10 = vld [vmem:[%s11209_s26 + $0x1e8] sm:$0xff] }
 0x628   :  { %4631 = vmatprep.subr.mxu0 %v4042_v11  ;;  %4697 = vmatpush1.msra.mxu1 %v4146_v14  ;;  %v4106_v11 = vld [vmem:[%s11209_s26 + $0x238] sm:$0xff]  ;;  %v4095_v14 = vld [vmem:[%s11209_s26 + $0x1e0] sm:$0xff] }
 0x629   :  { %4632 = vmatpush1.msra.mxu0 %v4041_v6  ;;  %4698 = vmatprep.subr.mxu1 %v4144_v12  ;;  %v4058_v6 = vld [vmem:[%s11209_s26 + $0xb8] sm:$0xff]  ;;  %v4093_v12 = vld [vmem:[%s11209_s26 + $0x1d0] sm:$0xff] }
 0x62a   :  { %4633 = vmatprep.subr.mxu0 %v4039_v18  ;;  %4699 = vmatpush1.msra.mxu1 %v4143_v21  ;;  %v4103_v18 = vld [vmem:[%s11209_s26 + $0x220] sm:$0xff]  ;;  %v4092_v21 = vld [vmem:[%s11209_s26 + $0x1c8] sm:$0xff] }
 0x62b   :  { %4634 = vmatpush1.msra.mxu0 %v4038_v2  ;;  %4700 = vmatprep.subr.mxu1 %v4141_v22  ;;  %v4055_v2 = vld [vmem:[%s11209_s26 + $0xa0] sm:$0xff]  ;;  %v4090_v22 = vld [vmem:[%s11209_s26 + $0x1b8] sm:$0xff] }
 0x62c   :  { %4635 = vmatprep.subr.mxu0 %v4036_v23  ;;  %4701 = vmatpush1.msra.mxu1 %v4140_v38  ;;  %v4100_v23 = vld [vmem:[%s11209_s26 + $0x208] sm:$0xff]  ;;  %v4089_v38 = vld [vmem:[%s11209_s26 + $0x1b0] sm:$0xff] }
 0x62d   :  { %4636 = vmatpush1.msra.mxu0 %v4035_v25  ;;  %4702 = vmatprep.subr.mxu1 %v4138_v27  ;;  %v4052_v25 = vld [vmem:[%s11209_s26 + $0x88] sm:$0xff]  ;;  %v4087_v27 = vld [vmem:[%s11209_s26 + $0x1a0] sm:$0xff] }
 0x62e   :  { %4637 = vmatprep.subr.mxu0 %v4129_v17  ;;  %4703 = vmatpush1.msra.mxu1 %v4137_v29  ;;  %v4097_v17 = vld [vmem:[%s11209_s26 + $0x1f0] sm:$0xff]  ;;  %v4086_v29 = vld [vmem:[%s11209_s26 + $0x198] sm:$0xff] }
 0x62f   :  { %4638 = vmatpush2.msra.mxu0 %v4128_v7  ;;  %4704 = vmatprep.subr.mxu1 %v4135_v16  ;;  %v4049_v7 = vld [vmem:[%s11209_s26 + $0x70] sm:$0xff]  ;;  %v4084_v16 = vld [vmem:[%s11209_s26 + $0x188] sm:$0xff] }
 0x630   :  { %4639 = vmatprep.subr.mxu0 %v4126_v31  ;;  %4705 = vmatpush1.msra.mxu1 %v4134_v32  ;;  %v4094_v31 = vld [vmem:[%s11209_s26 + $0x1d8] sm:$0xff]  ;;  %v4083_v32 = vld [vmem:[%s11209_s26 + $0x180] sm:$0xff] }
 0x631   :  { %4640 = vmatpush2.msra.mxu0 %v4125_v33  ;;  %4706 = vmatprep.subr.mxu1 %v4132_v34  ;;  %v4046_v33 = vld [vmem:[%s11209_s26 + $0x58] sm:$0xff]  ;;  %v4091_v34 = vld [vmem:[%s11209_s26 + $0x1c0] sm:$0xff] }
 0x632   :  { %4641 = vmatprep.subr.mxu0 %v4123_v30  ;;  %4707 = vmatpush1.msra.mxu1 %v4131_v36  ;;  %v4043_v30 = vld [vmem:[%s11209_s26 + $0x40] sm:$0xff]  ;;  %v8279_v36 = vld [vmem:[%s8405_s5 + $0x8] sm:$0xff] }
 0x633   :  { %4642 = vmatpush2.msra.mxu0 %v4122_v35  ;;  %4740 = vmatprep.mubr.f32.mxu1 %v8395_v0  ;;  %v4088_v35 = vld [vmem:[%s11209_s26 + $0x1a8] sm:$0xff] }
 0x634   :  { %7287 = vmatprep.subr.mxu1 %v4130_v39  ;;  %4643 = vmatprep.subr.mxu0 %v4120_v40  ;;  %v4178_v39 = vld [vmem:[%s11209_s26 + $0x478] sm:$0xff]  ;;  %v8280_v40 = vld [vmem:[%s8405_s5] sm:$0xff] }
 0x635   :  { %4741 = vmatmul.mubr.f32.vlgmr.msra.gmra.mxu1 %v10419_v44  ;;  %4644 = vmatpush2.msra.mxu0 %v4119_v41  ;;  %v4040_v41 = vld [vmem:[%s11209_s26 + $0x28] sm:$0xff] }
 0x636   :  { %7288 = vmatpush3.msra.mxu1 %v4082_v13  ;;  %4645 = vmatprep.subr.mxu0 %v4117_v42  ;;  %v4085_v13 = vld [vmem:[%s11209_s26 + $0x190] sm:$0xff]  ;;  %v4175_v42 = vld [vmem:[%s11209_s26 + $0x460] sm:$0xff] }
 0x637   :  { %7289 = vmatprep.subr.mxu1 %v4127_v15  ;;  %4646 = vmatpush2.msra.mxu0 %v4116_v43  ;;  %v4037_v15 = vld [vmem:[%s11209_s26 + $0x10] sm:$0xff]  ;;  %v4172_v43 = vld [vmem:[%s11209_s26 + $0x448] sm:$0xff] }
 0x638   :  { %7290 = vmatpush3.msra.mxu1 %v4079_v47  ;;  %4647 = vmatprep.subr.mxu0 %v4114_v49  ;;  %v4933_v47 = vld [vmem:[%s11210_s28 + $0x170] sm:$0xff] }
 0x639   :  { %7291 = vmatprep.subr.mxu1 %v4124_v50  ;;  %4648 = vmatpush2.msra.mxu0 %v4113_v51  ;;  %v4169_v49 = vld [vmem:[%s11209_s26 + $0x430] sm:$0xff]  ;;  %v4932_v50 = vld [vmem:[%s11210_s28 + $0x168] sm:$0xff]  ;;  %v4930_v51 = vld [vmem:[%s11210_s28 + $0x158] sm:$0xff] }
 0x63a   :  { %7292 = vmatpush3.msra.mxu1 %v4076_v52  ;;  %4649 = vmatprep.subr.mxu0 %v4111_v53  ;;  %v4166_v52 = vld [vmem:[%s11209_s26 + $0x418] sm:$0xff]  ;;  %v4929_v53 = vld [vmem:[%s11210_s28 + $0x150] sm:$0xff] }
 0x63b   :  { %7293 = vmatprep.subr.mxu1 %v4121_v26  ;;  %4650 = vmatpush2.msra.mxu0 %v4110_v54  ;;  %v4927_v26 = vld [vmem:[%s11210_s28 + $0x140] sm:$0xff] }
 0x63c   :  { %7294 = vmatpush3.msra.mxu1 %v4073_v56  ;;  %4651 = vmatprep.subr.mxu0 %v4108_v20  ;;  %v4163_v54 = vld [vmem:[%s11209_s26 + $0x400] sm:$0xff]  ;;  %v4926_v56 = vld [vmem:[%s11210_s28 + $0x138] sm:$0xff]  ;;  %v4924_v20 = vld [vmem:[%s11210_s28 + $0x128] sm:$0xff] }
 0x63d   :  { %7295 = vmatprep.subr.mxu1 %v4118_v57  ;;  %4652 = vmatpush2.msra.mxu0 %v4107_v59  ;;  %v4160_v57 = vld [vmem:[%s11209_s26 + $0x3e8] sm:$0xff]  ;;  %v4923_v59 = vld [vmem:[%s11210_s28 + $0x120] sm:$0xff] }
 0x63e   :  { %7296 = vmatpush3.msra.mxu1 %v4070_v24  ;;  %4653 = vmatprep.subr.mxu0 %v4105_v62  ;;  %v4921_v24 = vld [vmem:[%s11210_s28 + $0x110] sm:$0xff] }
 0x63f   :  { %7297 = vmatprep.subr.mxu1 %v4115_v63  ;;  %4654 = vmatpush2.msra.mxu0 %v4104_v1  ;;  %v4157_v62 = vld [vmem:[%s11209_s26 + $0x3d0] sm:$0xff]  ;;  %v4920_v63 = vld [vmem:[%s11210_s28 + $0x108] sm:$0xff]  ;;  %v4918_v1 = vld [vmem:[%s11210_s28 + $0xf8] sm:$0xff] }
 0x640   :  { %7298 = vmatpush3.msra.mxu1 %v4067_v55  ;;  %4655 = vmatprep.subr.mxu0 %v4102_v19  ;;  %v4154_v55 = vld [vmem:[%s11209_s26 + $0x3b8] sm:$0xff]  ;;  %v4917_v19 = vld [vmem:[%s11210_s28 + $0xf0] sm:$0xff] }
 0x641   :  { %7299 = vmatprep.subr.mxu1 %v4112_v3  ;;  %4656 = vmatpush2.msra.mxu0 %v4101_v4  ;;  %v4915_v3 = vld [vmem:[%s11210_s28 + $0xe0] sm:$0xff] }
 0x642   :  { %7300 = vmatpush3.msra.mxu1 %v4064_v48  ;;  %4657 = vmatprep.subr.mxu0 %v4099_v61  ;;  %v4151_v4 = vld [vmem:[%s11209_s26 + $0x3a0] sm:$0xff]  ;;  %v4914_v48 = vld [vmem:[%s11210_s28 + $0xd8] sm:$0xff]  ;;  %v4912_v61 = vld [vmem:[%s11210_s28 + $0xc8] sm:$0xff] }
 0x643   :  { %7301 = vmatprep.subr.mxu1 %v4109_v5  ;;  %4658 = vmatpush2.msra.mxu0 %v4098_v8  ;;  %v4148_v5 = vld [vmem:[%s11209_s26 + $0x388] sm:$0xff]  ;;  %v4911_v8 = vld [vmem:[%s11210_s28 + $0xc0] sm:$0xff] }
 0x644   :  { %7302 = vmatpush3.msra.mxu1 %v4061_v9  ;;  %4659 = vmatprep.subr.mxu0 %v4096_v10  ;;  %v4909_v9 = vld [vmem:[%s11210_s28 + $0xb0] sm:$0xff] }
 0x645   :  { %7303 = vmatprep.subr.mxu1 %v4106_v11  ;;  %4660 = vmatpush2.msra.mxu0 %v4095_v14  ;;  %v4145_v10 = vld [vmem:[%s11209_s26 + $0x370] sm:$0xff]  ;;  %v4908_v11 = vld [vmem:[%s11210_s28 + $0xa8] sm:$0xff]  ;;  %v4906_v14 = vld [vmem:[%s11210_s28 + $0x98] sm:$0xff] }
 0x646   :  { %7304 = vmatpush3.msra.mxu1 %v4058_v6  ;;  %4661 = vmatprep.subr.mxu0 %v4093_v12  ;;  %v4142_v6 = vld [vmem:[%s11209_s26 + $0x358] sm:$0xff]  ;;  %v4905_v12 = vld [vmem:[%s11210_s28 + $0x90] sm:$0xff] }
 0x647   :  { %7305 = vmatprep.subr.mxu1 %v4103_v18  ;;  %4662 = vmatpush2.msra.mxu0 %v4092_v21  ;;  %v4903_v18 = vld [vmem:[%s11210_s28 + $0x80] sm:$0xff] }
 0x648   :  { %7306 = vmatpush3.msra.mxu1 %v4055_v2  ;;  %4663 = vmatprep.subr.mxu0 %v4090_v22  ;;  %v4139_v21 = vld [vmem:[%s11209_s26 + $0x340] sm:$0xff]  ;;  %v4902_v2 = vld [vmem:[%s11210_s28 + $0x78] sm:$0xff]  ;;  %v4900_v22 = vld [vmem:[%s11210_s28 + $0x68] sm:$0xff] }
 0x649   :  { %7307 = vmatprep.subr.mxu1 %v4100_v23  ;;  %4664 = vmatpush2.msra.mxu0 %v4089_v38  ;;  %v4136_v23 = vld [vmem:[%s11209_s26 + $0x328] sm:$0xff]  ;;  %v4899_v38 = vld [vmem:[%s11210_s28 + $0x60] sm:$0xff] }
 0x64a   :  { %7308 = vmatpush3.msra.mxu1 %v4052_v25  ;;  %4665 = vmatprep.subr.mxu0 %v4087_v27  ;;  %v4897_v25 = vld [vmem:[%s11210_s28 + $0x50] sm:$0xff] }
 0x64b   :  { %7309 = vmatprep.subr.mxu1 %v4097_v17  ;;  %4666 = vmatpush2.msra.mxu0 %v4086_v29  ;;  %v4133_v27 = vld [vmem:[%s11209_s26 + $0x310] sm:$0xff]  ;;  %v4896_v17 = vld [vmem:[%s11210_s28 + $0x48] sm:$0xff]  ;;  %v4934_v29 = vld [vmem:[%s11210_s28 + $0x178] sm:$0xff] }
 0x64c   :  { %7310 = vmatpush3.msra.mxu1 %v4049_v7  ;;  %4667 = vmatprep.subr.mxu0 %v4084_v16  ;;  %v4894_v7 = vld [vmem:[%s11210_s28 + $0x38] sm:$0xff]  ;;  %v4893_v16 = vld [vmem:[%s11210_s28 + $0x30] sm:$0xff] }
 0x64d   :  { %7311 = vmatprep.subr.mxu1 %v4094_v31  ;;  %4668 = vmatpush2.msra.mxu0 %v4083_v32  ;;  %v4931_v31 = vld [vmem:[%s11210_s28 + $0x160] sm:$0xff] }
 0x64e   :  { %7312 = vmatpush3.msra.mxu1 %v4046_v33  ;;  %4669 = vmatprep.mubr.f32.mxu0 %v8279_v36  ;;  %v4891_v32 = vld [vmem:[%s11210_s28 + $0x20] sm:$0xff]  ;;  %v4890_v33 = vld [vmem:[%s11210_s28 + $0x18] sm:$0xff] }
 0x64f   :  { %7313 = vmatprep.subr.mxu1 %v4091_v34  ;;  %4670 = vmatmul.mubr.f32.vlgmr.msra.gmra.mxu0 %v8280_v40  ;;  %v4928_v34 = vld [vmem:[%s11210_s28 + $0x148] sm:$0xff] }
 0x650   :  { %7314 = vmatpush3.msra.mxu1 %v4043_v30  ;;  %7966 = vmatprep.subr.mxu0 %v8395_v0  ;;  %v4888_v30 = vld [vmem:[%s11210_s28 + $0x8] sm:$0xff] }
 0x651   :  { %7315 = vmatprep.subr.mxu1 %v4088_v35  ;;  %7967 = vmatpush3.msra.mxu0 %v4178_v39  ;;  %v4922_v35 = vld [vmem:[%s11210_s28 + $0x118] sm:$0xff]  ;;  %v4919_v39 = vld [vmem:[%s11210_s28 + $0x100] sm:$0xff] }
 0x652   :  { %7316 = vmatpush3.msra.mxu1 %v4040_v41  ;;  %7968 = vmatprep.subr.mxu0 %v8395_v0  ;;  %v4913_v41 = vld [vmem:[%s11210_s28 + $0xd0] sm:$0xff] }
 0x653   :  { %7317 = vmatprep.subr.mxu1 %v4085_v13  ;;  %7969 = vmatpush3.msra.mxu0 %v4175_v42  ;;  %v4910_v42 = vld [vmem:[%s11210_s28 + $0xb8] sm:$0xff] }
 0x654   :  { %7318 = vmatpush3.msra.mxu1 %v4037_v15  ;;  %4811 = vmatprep.mubr.f32.mxu1 %v8279_v36  ;;  %v4887_v36 = vld [vmem:[%s11210_s28] sm:$0xff] }
 0x655   :  { %7970 = vmatprep.subr.mxu0 %v8395_v0  ;;  %4812 = vmatmul.mubr.f32.vlgmr.msra.gmra.mxu1 %v8280_v40  ;;  %v4916_v40 = vld [vmem:[%s11210_s28 + $0xe8] sm:$0xff]  ;;  %v4907_v15 = vld [vmem:[%s11210_s28 + $0xa0] sm:$0xff] }
 0x656   :  { %7971 = vmatpush3.msra.mxu0 %v4172_v43  ;;  %7998 = vmatprep.mubr.msk.f32.mxu0 %vm8396_vm0, %v8395_v0 }
 0x657   :  { %7972 = vmatprep.subr.mxu0 %v8395_v0  ;;  %4935 = vmatprep.subr.mxu1 %v4933_v47  ;;  %v4904_v47 = vld [vmem:[%s11210_s28 + $0x88] sm:$0xff] }
 0x658   :  { %7973 = vmatpush3.msra.mxu0 %v4169_v49  ;;  %4936 = vmatpush1.msra.mxu1 %v4932_v50  ;;  %v4901_v49 = vld [vmem:[%s11210_s28 + $0x70] sm:$0xff] }
 0x659   :  { %7974 = vmatprep.subr.mxu0 %v8395_v0  ;;  %4937 = vmatprep.subr.mxu1 %v4930_v51  ;;  %v6712_v51 = vld [vmem:[%s11211_s1] ss:$0 sm:$0xff] }
 0x65a   :  { %7975 = vmatpush3.msra.mxu0 %v4166_v52  ;;  %4938 = vmatpush1.msra.mxu1 %v4929_v53  ;;  %v4898_v52 = vld [vmem:[%s11210_s28 + $0x58] sm:$0xff]  ;;  %v4895_v53 = vld [vmem:[%s11210_s28 + $0x40] sm:$0xff] }
 0x65b   :  { %7976 = vmatprep.subr.mxu0 %v8395_v0  ;;  %4939 = vmatprep.subr.mxu1 %v4927_v26 }
 0x65c   :  { %7977 = vmatpush3.msra.mxu0 %v4163_v54  ;;  %4940 = vmatpush1.msra.mxu1 %v4926_v56  ;;  %v4892_v56 = vld [vmem:[%s11210_s28 + $0x28] sm:$0xff] }
 0x65d   :  { %7978 = vmatprep.subr.mxu0 %v8395_v0  ;;  %4941 = vmatprep.subr.mxu1 %v4924_v20 }
 0x65e   :  { %7979 = vmatpush3.msra.mxu0 %v4160_v57  ;;  %4942 = vmatpush1.msra.mxu1 %v4923_v59  ;;  %v4889_v59 = vld [vmem:[%s11210_s28 + $0x10] sm:$0xff] }
 0x65f   :  { %7980 = vmatprep.subr.mxu0 %v8395_v0  ;;  %4943 = vmatprep.subr.mxu1 %v4921_v24 }
 0x660   :  { %7981 = vmatpush3.msra.mxu0 %v4157_v62  ;;  %4944 = vmatpush1.msra.mxu1 %v4920_v63 }
 0x661   :  { %7982 = vmatprep.subr.mxu0 %v8395_v0  ;;  %4945 = vmatprep.subr.mxu1 %v4918_v1 }
 0x662   :  { %7983 = vmatpush3.msra.mxu0 %v4154_v55  ;;  %4946 = vmatpush1.msra.mxu1 %v4917_v19  ;;  %v5189_v55 = vld [vmem:[%s11212_s2 + $0x178] sm:$0xff] }
 0x663   :  { %7984 = vmatprep.subr.mxu0 %v8395_v0  ;;  %4947 = vmatprep.subr.mxu1 %v4915_v3  ;;  %v5173_v19 = vld [vmem:[%s11212_s2 + $0xf8] sm:$0xff]  ;;  %v5188_v3 = vld [vmem:[%s11212_s2 + $0x170] sm:$0xff] }
 0x664   :  { %7985 = vmatpush3.msra.mxu0 %v4151_v4  ;;  %4948 = vmatpush1.msra.mxu1 %v4914_v48  ;;  %v5157_v4 = vld [vmem:[%s11212_s2 + $0x78] sm:$0xff]  ;;  %v5172_v48 = vld [vmem:[%s11212_s2 + $0xf0] sm:$0xff] }
 0x665   :  { %7986 = vmatprep.subr.mxu0 %v8395_v0  ;;  %4949 = vmatprep.subr.mxu1 %v4912_v61  ;;  %v5187_v61 = vld [vmem:[%s11212_s2 + $0x168] sm:$0xff] }
 0x666   :  { %7987 = vmatpush3.msra.mxu0 %v4148_v5  ;;  %4950 = vmatpush1.msra.mxu1 %v4911_v8  ;;  %v5156_v5 = vld [vmem:[%s11212_s2 + $0x70] sm:$0xff]  ;;  %v5171_v8 = vld [vmem:[%s11212_s2 + $0xe8] sm:$0xff] }
 0x667   :  { %7988 = vmatprep.subr.mxu0 %v8395_v0  ;;  %4951 = vmatprep.subr.mxu1 %v4909_v9  ;;  %v5155_v9 = vld [vmem:[%s11212_s2 + $0x68] sm:$0xff] }
 0x668   :  { %7989 = vmatpush3.msra.mxu0 %v4145_v10  ;;  %4952 = vmatpush1.msra.mxu1 %v4908_v11  ;;  %v5186_v10 = vld [vmem:[%s11212_s2 + $0x160] sm:$0xff] }
 0x669   :  { %7990 = vmatprep.subr.mxu0 %v8395_v0  ;;  %4953 = vmatprep.subr.mxu1 %v4906_v14  ;;  %v5170_v11 = vld [vmem:[%s11212_s2 + $0xe0] sm:$0xff] }
 0x66a   :  { %7991 = vmatpush3.msra.mxu0 %v4142_v6  ;;  %4954 = vmatpush1.msra.mxu1 %v4905_v12  ;;  %v5154_v14 = vld [vmem:[%s11212_s2 + $0x60] sm:$0xff]  ;;  %v5185_v6 = vld [vmem:[%s11212_s2 + $0x158] sm:$0xff] }
 0x66b   :  { %7992 = vmatprep.subr.mxu0 %v8395_v0  ;;  %4955 = vmatprep.subr.mxu1 %v4903_v18  ;;  %v5169_v12 = vld [vmem:[%s11212_s2 + $0xd8] sm:$0xff] }
 0x66c   :  { %7993 = vmatpush3.msra.mxu0 %v4139_v21  ;;  %4956 = vmatpush1.msra.mxu1 %v4902_v2  ;;  %v5153_v18 = vld [vmem:[%s11212_s2 + $0x58] sm:$0xff]  ;;  %v5184_v21 = vld [vmem:[%s11212_s2 + $0x150] sm:$0xff] }
 0x66d   :  { %7994 = vmatprep.subr.mxu0 %v8395_v0  ;;  %4957 = vmatprep.subr.mxu1 %v4900_v22  ;;  %v5168_v2 = vld [vmem:[%s11212_s2 + $0xd0] sm:$0xff] }
 0x66e   :  { %7995 = vmatpush3.msra.mxu0 %v4136_v23  ;;  %4958 = vmatpush1.msra.mxu1 %v4899_v38  ;;  %v5152_v22 = vld [vmem:[%s11212_s2 + $0x50] sm:$0xff]  ;;  %v5183_v23 = vld [vmem:[%s11212_s2 + $0x148] sm:$0xff] }
 0x66f   :  { %7996 = vmatprep.subr.mxu0 %v8395_v0  ;;  %4959 = vmatprep.subr.mxu1 %v4897_v25  ;;  %v7215_v13 = vpop.f32.mrf.mxu1  ;;  %v5167_v38 = vld [vmem:[%s11212_s2 + $0xc8] sm:$0xff] }
 0x670   :  { %7997 = vmatpush3.msra.mxu0 %v4133_v27  ;;  %4960 = vmatpush1.msra.mxu1 %v4896_v17  ;;  %v5151_v25 = vld [vmem:[%s11212_s2 + $0x48] sm:$0xff]  ;;  %v5182_v27 = vld [vmem:[%s11212_s2 + $0x140] sm:$0xff] }
 0x671   :  { %7999 = vmatmul.mubr.f32.vlgmr.msra.gmra.mxu0 %v10419_v44  ;;  %8001 = vmatprep.subr.mxu0 %v8395_v0  ;;  %v4925_v44 = vld [vmem:[%s11210_s28 + $0x130] sm:$0xff]  ;;  %v7216_v43 = vpop.f32.mrf.mxu1  ;;  %v5166_v17 = vld [vmem:[%s11212_s2 + $0xc0] sm:$0xff] }
 0x672   :  { %8002 = vmatpush3.msra.mxu0 %v4934_v29  ;;  %4961 = vmatprep.subr.mxu1 %v4894_v7  ;;  %v7217_v50 = vadd.f32 %v7216_v43, %v7215_v13  ;;  %v5150_v29 = vld [vmem:[%s11212_s2 + $0x40] sm:$0xff]  ;;  %v5181_v7 = vld [vmem:[%s11212_s2 + $0x138] sm:$0xff]  ;;  %v5147_v13 = vld [vmem:[%s11212_s2 + $0x28] sm:$0xff] }
 0x673   :  { %8003 = vmatprep.subr.mxu0 %v8395_v0  ;;  %4962 = vmatpush1.msra.mxu1 %v4893_v16  ;;  %v5165_v16 = vld [vmem:[%s11212_s2 + $0xb8] sm:$0xff]  ;;  %v5146_v43 = vld [vmem:[%s11212_s2 + $0x20] sm:$0xff] }
 0x674   :  { %8004 = vmatpush3.msra.mxu0 %v4931_v31  ;;  %4963 = vmatprep.subr.mxu1 %v4891_v32  ;;  %v3957_v26 = vadd.f32 %v7217_v50, %v6712_v51  ;;  %v5149_v31 = vld [vmem:[%s11212_s2 + $0x38] sm:$0xff]  ;;  %v5180_v32 = vld [vmem:[%s11212_s2 + $0x130] sm:$0xff] }
 0x675   :  { %8005 = vmatprep.subr.mxu0 %v8395_v0  ;;  %4964 = vmatpush1.msra.mxu1 %v4890_v33  ;;  %v5164_v33 = vld [vmem:[%s11212_s2 + $0xb0] sm:$0xff]  ;;  %v5145_v50 = vld [vmem:[%s11212_s2 + $0x18] sm:$0xff] }
 0x676   :  { %8006 = vmatpush3.msra.mxu0 %v4928_v34  ;;  %4965 = vmatprep.subr.mxu1 %v4888_v30  ;;  %v5179_v34 = vld [vmem:[%s11212_s2 + $0x128] sm:$0xff]  ;;  %v5160_v51 = vld [vmem:[%s11212_s2 + $0x90] sm:$0xff] }
 0x677   :  { %8007 = vmatprep.subr.mxu0 %v8395_v0  ;;  %4966 = vmatpush1.msra.mxu1 %v4887_v36 }
 0x678   :  { %8008 = vmatpush3.msra.mxu0 %v4925_v44  ;;  %4999 = vmatprep.mubr.f32.mxu1 %v8395_v0 }
 0x679   :  { %8009 = vmatprep.subr.mxu0 %v8395_v0  ;;  %8033 = vmatprep.mubr.msk.f32.mxu0 %vm8396_vm0, %v8395_v0 }
 0x67a   :  { %8010 = vmatpush3.msra.mxu0 %v4922_v35  ;;  %7356 = vmatprep.subr.mxu1 %v5173_v19 }
 0x67b   :  { %8011 = vmatprep.subr.mxu0 %v8395_v0 }
 0x67c   :  { %8012 = vmatpush3.msra.mxu0 %v4919_v39  ;;  %v5148_v39 = vld [vmem:[%s11212_s2 + $0x30] sm:$0xff] }
 0x67d   :  { %8013 = vmatprep.subr.mxu0 %v8395_v0 }
 0x67e   :  { %8014 = vmatpush3.msra.mxu0 %v4916_v40  ;;  %v5163_v40 = vld [vmem:[%s11212_s2 + $0xa8] sm:$0xff] }
 0x67f   :  { %8015 = vmatprep.subr.mxu0 %v8395_v0 }
 0x680   :  { %8016 = vmatpush3.msra.mxu0 %v4913_v41  ;;  %v5178_v41 = vld [vmem:[%s11212_s2 + $0x120] sm:$0xff] }
 0x681   :  { %8017 = vmatprep.subr.mxu0 %v8395_v0 }
 0x682   :  { %8018 = vmatpush3.msra.mxu0 %v4910_v42  ;;  %v5162_v42 = vld [vmem:[%s11212_s2 + $0xa0] sm:$0xff] }
 0x683   :  { %8019 = vmatprep.subr.mxu0 %v8395_v0 }
 0x684   :  { %8020 = vmatpush3.msra.mxu0 %v4907_v15  ;;  %v5177_v15 = vld [vmem:[%s11212_s2 + $0x118] sm:$0xff] }
 0x685   :  { %8021 = vmatprep.subr.mxu0 %v8395_v0 }
 0x686   :  { %8022 = vmatpush3.msra.mxu0 %v4904_v47  ;;  %v5161_v47 = vld [vmem:[%s11212_s2 + $0x98] sm:$0xff] }
 0x687   :  { %8023 = vmatprep.subr.mxu0 %v8395_v0 }
 0x688   :  { %8024 = vmatpush3.msra.mxu0 %v4901_v49  ;;  %v5176_v49 = vld [vmem:[%s11212_s2 + $0x110] sm:$0xff] }
 0x689   :  { %8025 = vmatprep.subr.mxu0 %v8395_v0 }
 0x68a   :  { %8026 = vmatpush3.msra.mxu0 %v4898_v52  ;;  %v5175_v52 = vld [vmem:[%s11212_s2 + $0x108] sm:$0xff] }
 0x68b   :  { %v4026_v54 = vpop.f32.mrf.mxu0  ;;  %8027 = vmatprep.subr.mxu0 %v8395_v0 }
 0x68c   :  { %v4027_v20 = vadd.f32 %v4026_v54, %v3957_v26  ;;  %8028 = vmatpush3.msra.mxu0 %v4895_v53  ;;  %v5144_v53 = vld [vmem:[%s11212_s2 + $0x10] sm:$0xff]  ;;  %v5159_v26 = vld [vmem:[%s11212_s2 + $0x88] sm:$0xff]  ;;  %v5174_v54 = vld [vmem:[%s11212_s2 + $0x100] sm:$0xff] }
 0x68d   :  { %v7930_v57 = vpop.f32.mrf.mxu0  ;;  %8029 = vmatprep.subr.mxu0 %v8395_v0 }
 0x68e   :  { %v4030_v24 = vmul.f32 0.5, %v4027_v20  ;;  %8030 = vmatpush3.msra.mxu0 %v4892_v56  ;;  %v5143_v56 = vld [vmem:[%s11212_s2 + $0x8] sm:$0xff]  ;;  %v5158_v57 = vld [vmem:[%s11212_s2 + $0x80] sm:$0xff] }
 0x68f   :  { %8031 = vmatprep.subr.mxu0 %v8395_v0 }
 0x690   :  { %8262 = vtanh.f32 %v4030_v24  ;;  %8032 = vmatpush3.msra.mxu0 %v4889_v59  ;;  %v5142_v59 = vld [vmem:[%s11212_s2] sm:$0xff] }
 0x691   :  { %8036 = vmatprep.subr.mxu0 %v8395_v0 }
 0x69d   :  { %v8263_v62 = vpop.eup %8262 }
 0x69e   :  { %v4032_v63 = vadd.f32 1.0, %v8263_v62 }
 0x6a0   :  { %v4033_v1 = vmul.f32 0.5, %v4032_v63 }
 0x6a2   :  { %4034 = vst [vmem:[%s8615_s4] sm:$0xff] %v4033_v1  ;;  %5000 = vmatmul.mubr.f32.vlgmr.msra.gmra.mxu1 %v4033_v1  ;;  %8034 = vmatmul.mubr.f32.vlgmr.msra.gmra.mxu0 %v4033_v1  ;;  %s11213_s4 = sld [smem:[#allocation28_spill]] }
 0x6a3   :  { %8068 = vmatprep.mubr.msk.f32.mxu0 %vm8396_vm0, %v8395_v0  ;;  %8037 = vmatpush3.msra.mxu0 %v5189_v55 }
 0x6a4   :  { %8038 = vmatprep.subr.mxu0 %v8395_v0  ;;  %7357 = vmatpush3.msra.mxu1 %v5157_v4 }
 0x6a5   :  { %8039 = vmatpush3.msra.mxu0 %v5188_v3  ;;  %7358 = vmatprep.subr.mxu1 %v5172_v48 }
 0x6a6   :  { %8040 = vmatprep.subr.mxu0 %v8395_v0  ;;  %7359 = vmatpush3.msra.mxu1 %v5156_v5 }
 0x6a7   :  { %8041 = vmatpush3.msra.mxu0 %v5187_v61  ;;  %7360 = vmatprep.subr.mxu1 %v5171_v8 }
 0x6a8   :  { %8042 = vmatprep.subr.mxu0 %v8395_v0  ;;  %7361 = vmatpush3.msra.mxu1 %v5155_v9  ;;  %v5628_v20 = vld [vmem:[%s11213_s4 + $0x470] sm:$0xff] }
 0x6a9   :  { %8043 = vmatpush3.msra.mxu0 %v5186_v10  ;;  %7362 = vmatprep.subr.mxu1 %v5170_v11  ;;  %v5532_v24 = vld [vmem:[%s11213_s4 + $0x170] sm:$0xff] }
 0x6aa   :  { %8044 = vmatprep.subr.mxu0 %v8395_v0  ;;  %7363 = vmatpush3.msra.mxu1 %v5154_v14 }
 0x6ab   :  { %8045 = vmatpush3.msra.mxu0 %v5185_v6  ;;  %7364 = vmatprep.subr.mxu1 %v5169_v12  ;;  %v4460_v62 = vpop.f32.mrf.mxu0 }
 0x6ac   :  { %8046 = vmatprep.subr.mxu0 %v8395_v0  ;;  %7365 = vmatpush3.msra.mxu1 %v5153_v18 }
 0x6ad   :  { %8047 = vmatpush3.msra.mxu0 %v5184_v21  ;;  %7366 = vmatprep.subr.mxu1 %v5168_v2  ;;  %v4462_v63 = vpop.f32.mrf.mxu0  ;;  %v5079_v21 = vld [vmem:[%s11214_s10] sm:$0x7] }
 0x6ae   :  { %8048 = vmatprep.subr.mxu0 %v8395_v0  ;;  %7367 = vmatpush3.msra.mxu1 %v5152_v22 }
 0x6af   :  { %8049 = vmatpush3.msra.mxu0 %v5183_v23  ;;  %7368 = vmatprep.subr.mxu1 %v5167_v38 }
 0x6b0   :  { %8050 = vmatprep.subr.mxu0 %v8395_v0  ;;  %7369 = vmatpush3.msra.mxu1 %v5151_v25  ;;  %v5084_v25 = vrot.slane %v5079_v21, %v8903_v58 }
 0x6b1   :  { %8051 = vmatpush3.msra.mxu0 %v5182_v27  ;;  %7370 = vmatprep.subr.mxu1 %v5166_v17  ;;  %v4389_v30 = vpop.f32.mrf.mxu1  ;;  %v5092_v27 = vrot.slane %v5079_v21, %v8942_v28 }
 0x6b2   :  { %8052 = vmatprep.subr.mxu0 %v8395_v0  ;;  %7371 = vmatpush3.msra.mxu1 %v5150_v29  ;;  %v4461_v11 = vadd.f32 %v4460_v62, %v4389_v30  ;;  %v5102_v29 = vld [vmem:[%s11215_s7] sm:$0x7]  ;;  %v5531_v62 = vld [vmem:[%s11213_s4 + $0x168] sm:$0xff] }
 0x6b3   :  { %8053 = vmatpush3.msra.mxu0 %v5181_v7  ;;  %7372 = vmatprep.subr.mxu1 %v5165_v16  ;;  %v4391_v36 = vpop.f32.mrf.mxu1 }
 0x6b4   :  { %8054 = vmatprep.subr.mxu0 %v8395_v0  ;;  %7373 = vmatpush3.msra.mxu1 %v5149_v31  ;;  %v4463_v6 = vadd.f32 %v4462_v63, %v4391_v36  ;;  %v5622_v63 = vld [vmem:[%s11213_s4 + $0x440] sm:$0xff] }
 0x6b5   :  { %8055 = vmatpush3.msra.mxu0 %v5180_v32  ;;  %7374 = vmatprep.subr.mxu1 %v5164_v33  ;;  %v5122_v32 = vld [vmem:[%s11216_s11] sm:$0x7] }
 0x6b6   :  { %8056 = vmatprep.subr.mxu0 %v8395_v0  ;;  %7375 = vmatpush3.msra.mxu1 %v5148_v39  ;;  %v5115_v39 = vrot.slane %v5102_v29, %v8942_v28 }
 0x6b7   :  { %8057 = vmatpush3.msra.mxu0 %v5179_v34  ;;  %7376 = vmatprep.subr.mxu1 %v5163_v40  ;;  %v5088_v34 = vrot.slane %v5079_v21, %v8906_v60  ;;  %v5517_v21 = vld [vmem:[%s11213_s4 + $0xf8] sm:$0xff] }
 0x6b8   :  { %8058 = vmatprep.subr.mxu0 %v8395_v0  ;;  %7377 = vmatpush3.msra.mxu1 %v5147_v13  ;;  %v5135_v13 = vrot.slane %v5122_v32, %v8942_v28 }
 0x6b9   :  { %8059 = vmatpush3.msra.mxu0 %v5178_v41  ;;  %7378 = vmatprep.subr.mxu1 %v5162_v42  ;;  %v5107_v41 = vrot.slane %v5102_v29, %v8903_v58 }
 0x6ba   :  { %8060 = vmatprep.subr.mxu0 %v8395_v0  ;;  %7379 = vmatpush3.msra.mxu1 %v5146_v43 }
 0x6bb   :  { %8061 = vmatpush3.msra.mxu0 %v5177_v15  ;;  %7380 = vmatprep.subr.mxu1 %v5161_v47  ;;  %v5111_v47 = vrot.slane %v5102_v29, %v8906_v60  ;;  %v5511_v29 = vld [vmem:[%s11213_s4 + $0xc8] sm:$0xff] }
 0x6bc   :  { %8062 = vmatprep.subr.mxu0 %v8395_v0  ;;  %7381 = vmatpush3.msra.mxu1 %v5145_v50 }
 0x6bd   :  { %8063 = vmatpush3.msra.mxu0 %v5176_v49  ;;  %7382 = vmatprep.subr.mxu1 %v5160_v51  ;;  %v5131_v51 = vrot.slane %v5122_v32, %v8906_v60 }
 0x6be   :  { %8064 = vmatprep.subr.mxu0 %v8395_v0  ;;  %7383 = vmatpush3.msra.mxu1 %v5144_v53  ;;  %v5127_v53 = vrot.slane %v5122_v32, %v8903_v58  ;;  %v5508_v32 = vld [vmem:[%s11213_s4 + $0xb0] sm:$0xff] }
 0x6bf   :  { %8065 = vmatpush3.msra.mxu0 %v5175_v52  ;;  %7384 = vmatprep.subr.mxu1 %v5159_v26 }
 0x6c0   :  { %8066 = vmatprep.subr.mxu0 %v8395_v0  ;;  %7385 = vmatpush3.msra.mxu1 %v5143_v56  ;;  %v5627_v56 = vld [vmem:[%s11213_s4 + $0x468] sm:$0xff] }
 0x6c1   :  { %8067 = vmatpush3.msra.mxu0 %v5174_v54  ;;  %7386 = vmatprep.subr.mxu1 %v5158_v57 }
 0x6c2   :  { %5701 = vmatprep.subr.mxu0 %v5628_v20  ;;  %7387 = vmatpush3.msra.mxu1 %v5142_v59  ;;  %v5625_v20 = vld [vmem:[%s11213_s4 + $0x458] sm:$0xff]  ;;  %v5624_v59 = vld [vmem:[%s11213_s4 + $0x450] sm:$0xff] }
 0x6c3   :  { %5630 = vmatprep.subr.mxu1 %v5532_v24 }
 0x6cc   :  { %v7267_v1 = vpop.f32.mrf.mxu0 }
 0x6ce   :  { %v7268_v55 = vpop.f32.mrf.mxu0 }
 0x6cf   :  { %v7269_v10 = vadd.f32 %v7268_v55, %v7267_v1  ;;  %v5529_v1 = vld [vmem:[%s11213_s4 + $0x158] sm:$0xff] }
 0x6d0   :  { %v5621_v55 = vld [vmem:[%s11213_s4 + $0x438] sm:$0xff] }
 0x6d2   :  { %v4601_v44 = vpop.f32.mrf.mxu1 }
 0x6d3   :  { %v4602_v12 = vadd.f32 %v7269_v10, %v4601_v44  ;;  %v5522_v10 = vld [vmem:[%s11213_s4 + $0x120] sm:$0xff] }
 0x6d4   :  { %v7965_v35 = vpop.f32.mrf.mxu1 }
 0x6f5   :  { %v4742_v61 = vpop.f32.mrf.mxu1 }
 0x6f7   :  { %v4744_v5 = vpop.f32.mrf.mxu1 }
 0x70f   :  { %v4671_v19 = vpop.f32.mrf.mxu0 }
 0x710   :  { %v4672_v18 = vadd.f32 %v4671_v19, %v4461_v11  ;;  %v5528_v19 = vld [vmem:[%s11213_s4 + $0x150] sm:$0xff]  ;;  %v5613_v11 = vld [vmem:[%s11213_s4 + $0x3f8] sm:$0xff] }
 0x711   :  { %v4673_v3 = vpop.f32.mrf.mxu0 }
 0x712   :  { %v4674_v2 = vadd.f32 %v4673_v3, %v4463_v6  ;;  %v4743_v23 = vadd.f32 %v4742_v61, %v4672_v18  ;;  %v5619_v3 = vld [vmem:[%s11213_s4 + $0x428] sm:$0xff]  ;;  %v5525_v61 = vld [vmem:[%s11213_s4 + $0x138] sm:$0xff]  ;;  %v5612_v6 = vld [vmem:[%s11213_s4 + $0x3f0] sm:$0xff] }
 0x713   :  { %v5610_v18 = vld [vmem:[%s11213_s4 + $0x3e0] sm:$0xff] }
 0x714   :  { %v4745_v16 = vadd.f32 %v4744_v5, %v4674_v2  ;;  %v5616_v5 = vld [vmem:[%s11213_s4 + $0x410] sm:$0xff]  ;;  %v5609_v2 = vld [vmem:[%s11213_s4 + $0x3d8] sm:$0xff] }
 0x715   :  { %v7319_v8 = vpop.f32.mrf.mxu1 }
 0x717   :  { %v7320_v9 = vpop.f32.mrf.mxu1 }
 0x718   :  { %v7321_v14 = vadd.f32 %v7320_v9, %v7319_v8  ;;  %v5523_v8 = vld [vmem:[%s11213_s4 + $0x128] sm:$0xff] }
 0x719   :  { %v5615_v9 = vld [vmem:[%s11213_s4 + $0x408] sm:$0xff] }
 0x71a   :  { %v4814_v22 = vadd.f32 %v7321_v14, %v4602_v12  ;;  %v5520_v14 = vld [vmem:[%s11213_s4 + $0x110] sm:$0xff]  ;;  %v5519_v12 = vld [vmem:[%s11213_s4 + $0x108] sm:$0xff] }
 0x731   :  { %v4883_v4 = vpop.f32.mrf.mxu0 }
 0x732   :  { %v4884_v38 = vadd.f32 %v4883_v4, %v4814_v22  ;;  %v5526_v4 = vld [vmem:[%s11213_s4 + $0x140] sm:$0xff]  ;;  %v5516_v22 = vld [vmem:[%s11213_s4 + $0xf0] sm:$0xff] }
 0x733   :  { %v8000_v48 = vpop.f32.mrf.mxu0 }
 0x734   :  { %v5618_v48 = vld [vmem:[%s11213_s4 + $0x420] sm:$0xff] }
 0x762   :  { %v5001_v17 = vpop.f32.mrf.mxu1  ;;  %v5072_v7 = vpop.f32.mrf.mxu0 }
 0x763   :  { %v5076_v31 = vadd.f32 %v5001_v17, %v4743_v23  ;;  %v5078_v33 = vadd.f32 %v5072_v7, %v4884_v38  ;;  %v5607_v23 = vld [vmem:[%s11213_s4 + $0x3c8] sm:$0xff]  ;;  %v5514_v38 = vld [vmem:[%s11213_s4 + $0xe0] sm:$0xff]  ;;  %v5604_v17 = vld [vmem:[%s11213_s4 + $0x3b0] sm:$0xff] }
 0x764   :  { %v5003_v30 = vpop.f32.mrf.mxu1  ;;  %v8035_v36 = vpop.f32.mrf.mxu0  ;;  %v5603_v7 = vld [vmem:[%s11213_s4 + $0x3a8] sm:$0xff] }
 0x765   :  { %v5096_v44 = vadd.f32 %v5084_v25, %v5076_v31  ;;  %v5098_v35 = vadd.f32 %v5092_v27, %v5078_v33  ;;  %v5077_v40 = vadd.f32 %v5003_v30, %v4745_v16  ;;  %v5606_v25 = vld [vmem:[%s11213_s4 + $0x3c0] sm:$0xff]  ;;  %v5513_v27 = vld [vmem:[%s11213_s4 + $0xd8] sm:$0xff]  ;;  %v5600_v33 = vld [vmem:[%s11213_s4 + $0x390] sm:$0xff] }
 0x766   :  { %v5510_v16 = vld [vmem:[%s11213_s4 + $0xc0] sm:$0xff]  ;;  %v5601_v31 = vld [vmem:[%s11213_s4 + $0x398] sm:$0xff] }
 0x767   :  { %v5099_v42 = vmax.f32 %v5096_v44, 0.0  ;;  %v5101_v15 = vmax.f32 %v5098_v35, 0.0  ;;  %v5097_v43 = vadd.f32 %v5088_v34, %v5077_v40  ;;  %v5507_v34 = vld [vmem:[%s11213_s4 + $0xa8] sm:$0xff]  ;;  %v5598_v30 = vld [vmem:[%s11213_s4 + $0x380] sm:$0xff]  ;;  %v5505_v36 = vld [vmem:[%s11213_s4 + $0x98] sm:$0xff] }
 0x768   :  { %v5597_v44 = vld [vmem:[%s11213_s4 + $0x378] sm:$0xff]  ;;  %v5504_v35 = vld [vmem:[%s11213_s4 + $0x90] sm:$0xff]  ;;  %v5502_v40 = vld [vmem:[%s11213_s4 + $0x80] sm:$0xff] }
 0x769   :  { %v5121_v49 = vmul.f32 %v5115_v39, %v5101_v15  ;;  %v5100_v50 = vmax.f32 %v5097_v43, 0.0  ;;  %v5119_v52 = vmul.f32 %v5107_v41, %v5099_v42  ;;  %v5595_v39 = vld [vmem:[%s11213_s4 + $0x368] sm:$0xff]  ;;  %v5594_v41 = vld [vmem:[%s11213_s4 + $0x360] sm:$0xff]  ;;  %v5592_v42 = vld [vmem:[%s11213_s4 + $0x350] sm:$0xff] }
 0x76a   :  { %v5499_v15 = vld [vmem:[%s11213_s4 + $0x68] sm:$0xff] }
 0x76b   :  { %v5141_v26 = vadd.f32 %v5135_v13, %v5121_v49  ;;  %v5120_v54 = vmul.f32 %v5111_v47, %v5100_v50  ;;  %v5139_v24 = vadd.f32 %v5127_v53, %v5119_v52  ;;  %v5501_v13 = vld [vmem:[%s11213_s4 + $0x78] sm:$0xff]  ;;  %v5591_v43 = vld [vmem:[%s11213_s4 + $0x348] sm:$0xff]  ;;  %v5498_v47 = vld [vmem:[%s11213_s4 + $0x60] sm:$0xff] }
 0x76c   :  { %v5589_v49 = vld [vmem:[%s11213_s4 + $0x338] sm:$0xff]  ;;  %v5496_v50 = vld [vmem:[%s11213_s4 + $0x50] sm:$0xff]  ;;  %v5495_v52 = vld [vmem:[%s11213_s4 + $0x48] sm:$0xff] }
 0x76d   :  { %8069 = vmatmul.mubr.f32.vlgmr.msra.gmra.mxu0 %v5141_v26  ;;  %v5140_v57 = vadd.f32 %v5131_v51, %v5120_v54  ;;  %v5588_v51 = vld [vmem:[%s11213_s4 + $0x330] sm:$0xff]  ;;  %v5586_v53 = vld [vmem:[%s11213_s4 + $0x320] sm:$0xff]  ;;  %v5493_v26 = vld [vmem:[%s11213_s4 + $0x38] sm:$0xff] }
 0x76e   :  { %5702 = vmatpush1.msra.mxu0 %v5627_v56  ;;  %5765 = vmatprep.mubr.f32.mxu0 %v8395_v0  ;;  %v5585_v54 = vld [vmem:[%s11213_s4 + $0x318] sm:$0xff]  ;;  %v5492_v56 = vld [vmem:[%s11213_s4 + $0x30] sm:$0xff] }
 0x76f   :  { %5703 = vmatprep.subr.mxu0 %v5625_v20  ;;  %5261 = vmatprep.mubr.f32.mxu1 %v5140_v57  ;;  %v5583_v20 = vld [vmem:[%s11213_s4 + $0x308] sm:$0xff]  ;;  %v5490_v57 = vld [vmem:[%s11213_s4 + $0x20] sm:$0xff] }
 0x770   :  { %5704 = vmatpush1.msra.mxu0 %v5624_v59  ;;  %5262 = vmatmul.mubr.f32.vlgmr.msra.gmra.mxu1 %v5139_v24  ;;  %v5582_v59 = vld [vmem:[%s11213_s4 + $0x300] sm:$0xff]  ;;  %v5489_v24 = vld [vmem:[%s11213_s4 + $0x18] sm:$0xff] }
 0x771   :  { %5631 = vmatpush1.msra.mxu1 %v5531_v62  ;;  %5705 = vmatprep.subr.mxu0 %v5622_v63  ;;  %v5581_v62 = vld [vmem:[%s11213_s4 + $0x2f8] sm:$0xff]  ;;  %v5487_v63 = vld [vmem:[%s11213_s4 + $0x8] sm:$0xff] }
 0x772   :  { %5632 = vmatprep.subr.mxu1 %v5529_v1  ;;  %5694 = vmatprep.mubr.f32.mxu1 %v9651_v45  ;;  %v5533_v1 = vld [vmem:[%s11213_s4 + $0x178] sm:$0xff] }
 0x773   :  { %5706 = vmatpush1.msra.mxu0 %v5621_v55  ;;  %5633 = vmatpush1.msra.mxu1 %v5528_v19  ;;  %v5486_v55 = vld [vmem:[%s11213_s4] sm:$0xff] }
 0x774   :  { %5707 = vmatprep.subr.mxu0 %v5619_v3  ;;  %5634 = vmatprep.subr.mxu1 %v5526_v4  ;;  %v5578_v19 = vld [vmem:[%s11213_s4 + $0x2e0] sm:$0xff]  ;;  %v5580_v3 = vld [vmem:[%s11213_s4 + $0x2f0] sm:$0xff] }
 0x775   :  { %5708 = vmatpush1.msra.mxu0 %v5618_v48  ;;  %5635 = vmatpush1.msra.mxu1 %v5525_v61  ;;  %v5530_v4 = vld [vmem:[%s11213_s4 + $0x160] sm:$0xff]  ;;  %v5579_v48 = vld [vmem:[%s11213_s4 + $0x2e8] sm:$0xff] }
 0x776   :  { %5709 = vmatprep.subr.mxu0 %v5616_v5  ;;  %5636 = vmatprep.subr.mxu1 %v5523_v8  ;;  %v5575_v61 = vld [vmem:[%s11213_s4 + $0x2c8] sm:$0xff]  ;;  %v5577_v5 = vld [vmem:[%s11213_s4 + $0x2d8] sm:$0xff] }
 0x777   :  { %5710 = vmatpush1.msra.mxu0 %v5615_v9  ;;  %5637 = vmatpush1.msra.mxu1 %v5522_v10  ;;  %v5527_v8 = vld [vmem:[%s11213_s4 + $0x148] sm:$0xff]  ;;  %v5576_v9 = vld [vmem:[%s11213_s4 + $0x2d0] sm:$0xff] }
 0x778   :  { %5711 = vmatprep.subr.mxu0 %v5613_v11  ;;  %5638 = vmatprep.subr.mxu1 %v5520_v14  ;;  %v5572_v10 = vld [vmem:[%s11213_s4 + $0x2b0] sm:$0xff]  ;;  %v5574_v11 = vld [vmem:[%s11213_s4 + $0x2c0] sm:$0xff]  ;;  %v5573_v14 = vld [vmem:[%s11213_s4 + $0x2b8] sm:$0xff] }
 0x779   :  { %5712 = vmatpush1.msra.mxu0 %v5612_v6  ;;  %5639 = vmatpush1.msra.mxu1 %v5519_v12  ;;  %v5569_v6 = vld [vmem:[%s11213_s4 + $0x298] sm:$0xff]  ;;  %v5571_v12 = vld [vmem:[%s11213_s4 + $0x2a8] sm:$0xff] }
 0x77a   :  { %5713 = vmatprep.subr.mxu0 %v5610_v18  ;;  %5640 = vmatprep.subr.mxu1 %v5517_v21  ;;  %v5521_v18 = vld [vmem:[%s11213_s4 + $0x118] sm:$0xff]  ;;  %v5570_v21 = vld [vmem:[%s11213_s4 + $0x2a0] sm:$0xff] }
 0x77b   :  { %5714 = vmatpush1.msra.mxu0 %v5609_v2  ;;  %5641 = vmatpush1.msra.mxu1 %v5516_v22  ;;  %v5566_v2 = vld [vmem:[%s11213_s4 + $0x280] sm:$0xff]  ;;  %v5568_v22 = vld [vmem:[%s11213_s4 + $0x290] sm:$0xff] }
 0x77c   :  { %5715 = vmatprep.subr.mxu0 %v5607_v23  ;;  %5642 = vmatprep.subr.mxu1 %v5514_v38  ;;  %v5518_v23 = vld [vmem:[%s11213_s4 + $0x100] sm:$0xff]  ;;  %v5567_v38 = vld [vmem:[%s11213_s4 + $0x288] sm:$0xff] }
 0x77d   :  { %5716 = vmatpush1.msra.mxu0 %v5606_v25  ;;  %5643 = vmatpush1.msra.mxu1 %v5513_v27  ;;  %v5563_v25 = vld [vmem:[%s11213_s4 + $0x268] sm:$0xff]  ;;  %v5565_v27 = vld [vmem:[%s11213_s4 + $0x278] sm:$0xff] }
 0x77e   :  { %5717 = vmatprep.subr.mxu0 %v5604_v17  ;;  %5644 = vmatprep.subr.mxu1 %v5511_v29  ;;  %v5515_v17 = vld [vmem:[%s11213_s4 + $0xe8] sm:$0xff]  ;;  %v5564_v29 = vld [vmem:[%s11213_s4 + $0x270] sm:$0xff] }
 0x77f   :  { %5718 = vmatpush1.msra.mxu0 %v5603_v7  ;;  %5645 = vmatpush1.msra.mxu1 %v5510_v16  ;;  %v5560_v7 = vld [vmem:[%s11213_s4 + $0x250] sm:$0xff]  ;;  %v5562_v16 = vld [vmem:[%s11213_s4 + $0x260] sm:$0xff] }
 0x780   :  { %5719 = vmatprep.subr.mxu0 %v5601_v31  ;;  %5646 = vmatprep.subr.mxu1 %v5508_v32  ;;  %v5512_v31 = vld [vmem:[%s11213_s4 + $0xd0] sm:$0xff]  ;;  %v5561_v32 = vld [vmem:[%s11213_s4 + $0x258] sm:$0xff] }
 0x781   :  { %5720 = vmatpush1.msra.mxu0 %v5600_v33  ;;  %5647 = vmatpush1.msra.mxu1 %v5507_v34  ;;  %v5557_v33 = vld [vmem:[%s11213_s4 + $0x238] sm:$0xff]  ;;  %v5559_v34 = vld [vmem:[%s11213_s4 + $0x248] sm:$0xff] }
 0x782   :  { %5721 = vmatprep.subr.mxu0 %v5598_v30  ;;  %5648 = vmatprep.subr.mxu1 %v5505_v36  ;;  %v5509_v30 = vld [vmem:[%s11213_s4 + $0xb8] sm:$0xff]  ;;  %v5558_v36 = vld [vmem:[%s11213_s4 + $0x240] sm:$0xff] }
 0x783   :  { %5722 = vmatpush1.msra.mxu0 %v5597_v44  ;;  %5649 = vmatpush1.msra.mxu1 %v5504_v35  ;;  %v5554_v44 = vld [vmem:[%s11213_s4 + $0x220] sm:$0xff]  ;;  %v5556_v35 = vld [vmem:[%s11213_s4 + $0x230] sm:$0xff] }
 0x784   :  { %5723 = vmatprep.subr.mxu0 %v5595_v39  ;;  %5650 = vmatprep.subr.mxu1 %v5502_v40  ;;  %v5506_v39 = vld [vmem:[%s11213_s4 + $0xa0] sm:$0xff]  ;;  %v5555_v40 = vld [vmem:[%s11213_s4 + $0x228] sm:$0xff] }
 0x785   :  { %5724 = vmatpush1.msra.mxu0 %v5594_v41  ;;  %5651 = vmatpush1.msra.mxu1 %v5501_v13  ;;  %v5551_v41 = vld [vmem:[%s11213_s4 + $0x208] sm:$0xff]  ;;  %v5553_v13 = vld [vmem:[%s11213_s4 + $0x218] sm:$0xff] }
 0x786   :  { %5725 = vmatprep.subr.mxu0 %v5592_v42  ;;  %5652 = vmatprep.subr.mxu1 %v5499_v15  ;;  %v5503_v42 = vld [vmem:[%s11213_s4 + $0x88] sm:$0xff]  ;;  %v5552_v15 = vld [vmem:[%s11213_s4 + $0x210] sm:$0xff] }
 0x787   :  { %5726 = vmatpush1.msra.mxu0 %v5591_v43  ;;  %5653 = vmatpush1.msra.mxu1 %v5498_v47  ;;  %v5548_v43 = vld [vmem:[%s11213_s4 + $0x1f0] sm:$0xff]  ;;  %v5550_v47 = vld [vmem:[%s11213_s4 + $0x200] sm:$0xff] }
 0x788   :  { %5727 = vmatprep.subr.mxu0 %v5589_v49  ;;  %5654 = vmatprep.subr.mxu1 %v5496_v50  ;;  %v5500_v49 = vld [vmem:[%s11213_s4 + $0x70] sm:$0xff]  ;;  %v5549_v50 = vld [vmem:[%s11213_s4 + $0x1f8] sm:$0xff] }
 0x789   :  { %5728 = vmatpush1.msra.mxu0 %v5588_v51  ;;  %5655 = vmatpush1.msra.mxu1 %v5495_v52  ;;  %v5545_v51 = vld [vmem:[%s11213_s4 + $0x1d8] sm:$0xff]  ;;  %v5547_v52 = vld [vmem:[%s11213_s4 + $0x1e8] sm:$0xff] }
 0x78a   :  { %5729 = vmatprep.subr.mxu0 %v5586_v53  ;;  %5656 = vmatprep.subr.mxu1 %v5493_v26  ;;  %v5497_v53 = vld [vmem:[%s11213_s4 + $0x58] sm:$0xff]  ;;  %v5546_v26 = vld [vmem:[%s11213_s4 + $0x1e0] sm:$0xff] }
 0x78b   :  { %5730 = vmatpush1.msra.mxu0 %v5585_v54  ;;  %5657 = vmatpush1.msra.mxu1 %v5492_v56  ;;  %v5542_v54 = vld [vmem:[%s11213_s4 + $0x1c0] sm:$0xff]  ;;  %v5544_v56 = vld [vmem:[%s11213_s4 + $0x1d0] sm:$0xff] }
 0x78c   :  { %5731 = vmatprep.subr.mxu0 %v5583_v20  ;;  %5658 = vmatprep.subr.mxu1 %v5490_v57  ;;  %v5494_v20 = vld [vmem:[%s11213_s4 + $0x40] sm:$0xff]  ;;  %v5543_v57 = vld [vmem:[%s11213_s4 + $0x1c8] sm:$0xff] }
 0x78d   :  { %5732 = vmatpush1.msra.mxu0 %v5582_v59  ;;  %5659 = vmatpush1.msra.mxu1 %v5489_v24  ;;  %v5539_v59 = vld [vmem:[%s11213_s4 + $0x1a8] sm:$0xff]  ;;  %v5541_v24 = vld [vmem:[%s11213_s4 + $0x1b8] sm:$0xff] }
 0x78e   :  { %5766 = vmatmul.mubr.f32.vlgmr.msra.gmra.mxu0 %v9692_v37  ;;  %7408 = vmatprep.subr.mxu0 %v5581_v62  ;;  %v5491_v62 = vld [vmem:[%s11213_s4 + $0x28] sm:$0xff] }
 0x78f   :  { %5660 = vmatprep.subr.mxu1 %v5487_v63  ;;  %7409 = vmatpush3.msra.mxu0 %v5533_v1  ;;  %v5540_v63 = vld [vmem:[%s11213_s4 + $0x1b0] sm:$0xff] }
 0x790   :  { %5836 = vmatprep.mubr.f32.mxu0 %v9651_v45  ;;  %5661 = vmatpush1.msra.mxu1 %v5486_v55  ;;  %v5524_v45 = vld [vmem:[%s11213_s4 + $0x130] sm:$0xff]  ;;  %v5538_v55 = vld [vmem:[%s11213_s4 + $0x1a0] sm:$0xff] }
 0x791   :  { %7410 = vmatprep.subr.mxu0 %v5578_v19  ;;  %5662 = vmatprep.subr.mxu1 %v5580_v3  ;;  %v5536_v1 = vld [vmem:[%s11213_s4 + $0x190] sm:$0xff]  ;;  %v5537_v3 = vld [vmem:[%s11213_s4 + $0x198] sm:$0xff] }
 0x792   :  { %7411 = vmatpush3.msra.mxu0 %v5530_v4  ;;  %5663 = vmatpush2.msra.mxu1 %v5579_v48  ;;  %v5488_v19 = vld [vmem:[%s11213_s4 + $0x10] sm:$0xff]  ;;  %v5535_v48 = vld [vmem:[%s11213_s4 + $0x188] sm:$0xff] }
 0x793   :  { %7412 = vmatprep.subr.mxu0 %v5575_v61  ;;  %5664 = vmatprep.subr.mxu1 %v5577_v5  ;;  %v5388_v4 = vld [vmem:[%s11217_s0 + $0x170] sm:$0xff]  ;;  %v5387_v61 = vld [vmem:[%s11217_s0 + $0x168] sm:$0xff]  ;;  %v5534_v5 = vld [vmem:[%s11213_s4 + $0x180] sm:$0xff] }
 0x794   :  { %7413 = vmatpush3.msra.mxu0 %v5527_v8  ;;  %5665 = vmatpush2.msra.mxu1 %v5576_v9  ;;  %v5385_v8 = vld [vmem:[%s11217_s0 + $0x158] sm:$0xff]  ;;  %v5384_v9 = vld [vmem:[%s11217_s0 + $0x150] sm:$0xff] }
 0x795   :  { %7414 = vmatprep.subr.mxu0 %v5572_v10  ;;  %5666 = vmatprep.subr.mxu1 %v5574_v11  ;;  %v5629_v10 = vld [vmem:[%s11213_s4 + $0x478] sm:$0xff]  ;;  %v5382_v11 = vld [vmem:[%s11217_s0 + $0x140] sm:$0xff] }
 0x796   :  { %7415 = vmatpush3.msra.mxu0 %v5524_v45  ;;  %5667 = vmatpush2.msra.mxu1 %v5573_v14  ;;  %v5381_v45 = vld [vmem:[%s11217_s0 + $0x138] sm:$0xff]  ;;  %v5626_v14 = vld [vmem:[%s11213_s4 + $0x460] sm:$0xff] }
 0x797   :  { %7416 = vmatprep.subr.mxu0 %v5569_v6  ;;  %5668 = vmatprep.subr.mxu1 %v5571_v12  ;;  %v5379_v6 = vld [vmem:[%s11217_s0 + $0x128] sm:$0xff]  ;;  %v5378_v12 = vld [vmem:[%s11217_s0 + $0x120] sm:$0xff] }
 0x798   :  { %7417 = vmatpush3.msra.mxu0 %v5521_v18  ;;  %5669 = vmatpush2.msra.mxu1 %v5570_v21  ;;  %v5623_v18 = vld [vmem:[%s11213_s4 + $0x448] sm:$0xff] }
 0x799   :  { %7418 = vmatprep.subr.mxu0 %v5566_v2  ;;  %5670 = vmatprep.subr.mxu1 %v5568_v22  ;;  %v5375_v21 = vld [vmem:[%s11217_s0 + $0x108] sm:$0xff]  ;;  %v5620_v2 = vld [vmem:[%s11213_s4 + $0x430] sm:$0xff]  ;;  %v5373_v22 = vld [vmem:[%s11217_s0 + $0xf8] sm:$0xff] }
 0x79a   :  { %7419 = vmatpush3.msra.mxu0 %v5518_v23  ;;  %5671 = vmatpush2.msra.mxu1 %v5567_v38  ;;  %v5372_v23 = vld [vmem:[%s11217_s0 + $0xf0] sm:$0xff]  ;;  %v5617_v38 = vld [vmem:[%s11213_s4 + $0x418] sm:$0xff] }
 0x79b   :  { %7420 = vmatprep.subr.mxu0 %v5563_v25  ;;  %5672 = vmatprep.subr.mxu1 %v5565_v27  ;;  %v5370_v25 = vld [vmem:[%s11217_s0 + $0xe0] sm:$0xff]  ;;  %v5369_v27 = vld [vmem:[%s11217_s0 + $0xd8] sm:$0xff] }
 0x79c   :  { %7421 = vmatpush3.msra.mxu0 %v5515_v17  ;;  %5673 = vmatpush2.msra.mxu1 %v5564_v29  ;;  %v5614_v17 = vld [vmem:[%s11213_s4 + $0x400] sm:$0xff]  ;;  %v5367_v29 = vld [vmem:[%s11217_s0 + $0xc8] sm:$0xff] }
 0x79d   :  { %7422 = vmatprep.subr.mxu0 %v5560_v7  ;;  %5674 = vmatprep.subr.mxu1 %v5562_v16  ;;  %v5366_v7 = vld [vmem:[%s11217_s0 + $0xc0] sm:$0xff]  ;;  %v5611_v16 = vld [vmem:[%s11213_s4 + $0x3e8] sm:$0xff] }
 0x79e   :  { %7423 = vmatpush3.msra.mxu0 %v5512_v31  ;;  %5675 = vmatpush2.msra.mxu1 %v5561_v32  ;;  %v5364_v31 = vld [vmem:[%s11217_s0 + $0xb0] sm:$0xff]  ;;  %v5363_v32 = vld [vmem:[%s11217_s0 + $0xa8] sm:$0xff] }
 0x79f   :  { %7424 = vmatprep.subr.mxu0 %v5557_v33  ;;  %5676 = vmatprep.subr.mxu1 %v5559_v34  ;;  %v5608_v33 = vld [vmem:[%s11213_s4 + $0x3d0] sm:$0xff]  ;;  %v5361_v34 = vld [vmem:[%s11217_s0 + $0x98] sm:$0xff] }
 0x7a0   :  { %7425 = vmatpush3.msra.mxu0 %v5509_v30  ;;  %5677 = vmatpush2.msra.mxu1 %v5558_v36  ;;  %v5360_v30 = vld [vmem:[%s11217_s0 + $0x90] sm:$0xff]  ;;  %v5605_v36 = vld [vmem:[%s11213_s4 + $0x3b8] sm:$0xff] }
 0x7a1   :  { %7426 = vmatprep.subr.mxu0 %v5554_v44  ;;  %5678 = vmatprep.subr.mxu1 %v5556_v35  ;;  %v5358_v44 = vld [vmem:[%s11217_s0 + $0x80] sm:$0xff]  ;;  %v5357_v35 = vld [vmem:[%s11217_s0 + $0x78] sm:$0xff] }
 0x7a2   :  { %7427 = vmatpush3.msra.mxu0 %v5506_v39  ;;  %5679 = vmatpush2.msra.mxu1 %v5555_v40  ;;  %v5602_v39 = vld [vmem:[%s11213_s4 + $0x3a0] sm:$0xff]  ;;  %v5355_v40 = vld [vmem:[%s11217_s0 + $0x68] sm:$0xff] }
 0x7a3   :  { %7428 = vmatprep.subr.mxu0 %v5551_v41  ;;  %5680 = vmatprep.subr.mxu1 %v5553_v13  ;;  %v5354_v41 = vld [vmem:[%s11217_s0 + $0x60] sm:$0xff]  ;;  %v5599_v13 = vld [vmem:[%s11213_s4 + $0x388] sm:$0xff] }
 0x7a4   :  { %7429 = vmatpush3.msra.mxu0 %v5503_v42  ;;  %5681 = vmatpush2.msra.mxu1 %v5552_v15  ;;  %v5352_v42 = vld [vmem:[%s11217_s0 + $0x50] sm:$0xff]  ;;  %v5351_v15 = vld [vmem:[%s11217_s0 + $0x48] sm:$0xff] }
 0x7a5   :  { %7430 = vmatprep.subr.mxu0 %v5548_v43  ;;  %5682 = vmatprep.subr.mxu1 %v5550_v47  ;;  %v5596_v43 = vld [vmem:[%s11213_s4 + $0x370] sm:$0xff]  ;;  %v5349_v47 = vld [vmem:[%s11217_s0 + $0x38] sm:$0xff] }
 0x7a6   :  { %7431 = vmatpush3.msra.mxu0 %v5500_v49  ;;  %5683 = vmatpush2.msra.mxu1 %v5549_v50  ;;  %v5348_v49 = vld [vmem:[%s11217_s0 + $0x30] sm:$0xff]  ;;  %v5593_v50 = vld [vmem:[%s11213_s4 + $0x358] sm:$0xff] }
 0x7a7   :  { %7432 = vmatprep.subr.mxu0 %v5545_v51  ;;  %5684 = vmatprep.subr.mxu1 %v5547_v52  ;;  %v5346_v51 = vld [vmem:[%s11217_s0 + $0x20] sm:$0xff]  ;;  %v5345_v52 = vld [vmem:[%s11217_s0 + $0x18] sm:$0xff] }
 0x7a8   :  { %7433 = vmatpush3.msra.mxu0 %v5497_v53  ;;  %5685 = vmatpush2.msra.mxu1 %v5546_v26  ;;  %v5590_v53 = vld [vmem:[%s11213_s4 + $0x340] sm:$0xff]  ;;  %v5343_v26 = vld [vmem:[%s11217_s0 + $0x8] sm:$0xff] }
 0x7a9   :  { %7434 = vmatprep.subr.mxu0 %v5542_v54  ;;  %5686 = vmatprep.subr.mxu1 %v5544_v56  ;;  %v5342_v54 = vld [vmem:[%s11217_s0] sm:$0xff]  ;;  %v5587_v56 = vld [vmem:[%s11213_s4 + $0x328] sm:$0xff] }
 0x7aa   :  { %7435 = vmatpush3.msra.mxu0 %v5494_v20  ;;  %5687 = vmatpush2.msra.mxu1 %v5543_v57  ;;  %v5436_v20 = vld [vmem:[%s11217_s0 + $0x2f0] sm:$0xff]  ;;  %v5435_v57 = vld [vmem:[%s11217_s0 + $0x2e8] sm:$0xff] }
 0x7ab   :  { %7436 = vmatprep.subr.mxu0 %v5539_v59  ;;  %5688 = vmatprep.subr.mxu1 %v5541_v24  ;;  %v5584_v59 = vld [vmem:[%s11213_s4 + $0x310] sm:$0xff]  ;;  %v5433_v24 = vld [vmem:[%s11217_s0 + $0x2d8] sm:$0xff] }
 0x7ac   :  { %7437 = vmatpush3.msra.mxu0 %v5491_v62  ;;  %5689 = vmatpush2.msra.mxu1 %v5540_v63  ;;  %v5432_v62 = vld [vmem:[%s11217_s0 + $0x2d0] sm:$0xff] }
 0x7ad   :  { %7438 = vmatprep.subr.mxu0 %v5536_v1  ;;  %5690 = vmatprep.subr.mxu1 %v5538_v55  ;;  %v5484_v63 = vld [vmem:[%s11217_s0 + $0x470] sm:$0xff]  ;;  %v5430_v1 = vld [vmem:[%s11217_s0 + $0x2c0] sm:$0xff]  ;;  %v5483_v55 = vld [vmem:[%s11217_s0 + $0x468] sm:$0xff] }
 0x7ae   :  { %7439 = vmatpush3.msra.mxu0 %v5488_v19  ;;  %5691 = vmatpush2.msra.mxu1 %v5537_v3  ;;  %v5429_v19 = vld [vmem:[%s11217_s0 + $0x2b8] sm:$0xff] }
 0x7af   :  { %5837 = vmatmul.mubr.f32.vlgmr.msra.gmra.mxu0 %v9653_v46  ;;  %5912 = vmatprep.subr.mxu0 %v5388_v4  ;;  %v5481_v3 = vld [vmem:[%s11217_s0 + $0x458] sm:$0xff]  ;;  %v5427_v4 = vld [vmem:[%s11217_s0 + $0x2a8] sm:$0xff] }
 0x7b0   :  { %5692 = vmatprep.subr.mxu1 %v5535_v48  ;;  %5913 = vmatpush1.msra.mxu0 %v5387_v61  ;;  %v5480_v48 = vld [vmem:[%s11217_s0 + $0x450] sm:$0xff]  ;;  %v5426_v61 = vld [vmem:[%s11217_s0 + $0x2a0] sm:$0xff] }
 0x7b1   :  { %5693 = vmatpush2.msra.mxu1 %v5534_v5  ;;  %5914 = vmatprep.subr.mxu0 %v5385_v8  ;;  %v5478_v5 = vld [vmem:[%s11217_s0 + $0x440] sm:$0xff]  ;;  %v5424_v8 = vld [vmem:[%s11217_s0 + $0x290] sm:$0xff] }
 0x7b2   :  { %5695 = vmatmul.mubr.f32.vlgmr.msra.gmra.mxu1 %v9653_v46  ;;  %8071 = vmatprep.subr.mxu1 %v8395_v0  ;;  %v5376_v46 = vld [vmem:[%s11217_s0 + $0x110] sm:$0xff] }
 0x7b3   :  { %5915 = vmatpush1.msra.mxu0 %v5384_v9  ;;  %8072 = vmatpush3.msra.mxu1 %v5629_v10  ;;  %v5423_v9 = vld [vmem:[%s11217_s0 + $0x288] sm:$0xff] }
 0x7b4   :  { %5916 = vmatprep.subr.mxu0 %v5382_v11  ;;  %8073 = vmatprep.subr.mxu1 %v8395_v0  ;;  %v5475_v10 = vld [vmem:[%s11217_s0 + $0x428] sm:$0xff]  ;;  %v5421_v11 = vld [vmem:[%s11217_s0 + $0x278] sm:$0xff] }
 0x7b5   :  { %5917 = vmatpush1.msra.mxu0 %v5381_v45  ;;  %8074 = vmatpush3.msra.mxu1 %v5626_v14  ;;  %v5474_v45 = vld [vmem:[%s11217_s0 + $0x420] sm:$0xff]  ;;  %v5420_v14 = vld [vmem:[%s11217_s0 + $0x270] sm:$0xff] }
 0x7b6   :  { %5918 = vmatprep.subr.mxu0 %v5379_v6  ;;  %8075 = vmatprep.subr.mxu1 %v8395_v0  ;;  %v5472_v6 = vld [vmem:[%s11217_s0 + $0x410] sm:$0xff] }
 0x7b7   :  { %5919 = vmatpush1.msra.mxu0 %v5378_v12  ;;  %8076 = vmatpush3.msra.mxu1 %v5623_v18  ;;  %v5418_v12 = vld [vmem:[%s11217_s0 + $0x260] sm:$0xff]  ;;  %v5471_v18 = vld [vmem:[%s11217_s0 + $0x408] sm:$0xff] }
 0x7b8   :  { %5920 = vmatprep.subr.mxu0 %v5376_v46  ;;  %8077 = vmatprep.subr.mxu1 %v8395_v0  ;;  %v5417_v46 = vld [vmem:[%s11217_s0 + $0x258] sm:$0xff] }
 0x7b9   :  { %5921 = vmatpush1.msra.mxu0 %v5375_v21  ;;  %8078 = vmatpush3.msra.mxu1 %v5620_v2  ;;  %v5469_v21 = vld [vmem:[%s11217_s0 + $0x3f8] sm:$0xff]  ;;  %v5415_v2 = vld [vmem:[%s11217_s0 + $0x248] sm:$0xff] }
 0x7ba   :  { %5922 = vmatprep.subr.mxu0 %v5373_v22  ;;  %8079 = vmatprep.subr.mxu1 %v8395_v0  ;;  %v5468_v22 = vld [vmem:[%s11217_s0 + $0x3f0] sm:$0xff] }
 0x7bb   :  { %5923 = vmatpush1.msra.mxu0 %v5372_v23  ;;  %8080 = vmatpush3.msra.mxu1 %v5617_v38  ;;  %v5414_v23 = vld [vmem:[%s11217_s0 + $0x240] sm:$0xff] }
 0x7bc   :  { %5924 = vmatprep.subr.mxu0 %v5370_v25  ;;  %8081 = vmatprep.subr.mxu1 %v8395_v0  ;;  %v5466_v38 = vld [vmem:[%s11217_s0 + $0x3e0] sm:$0xff]  ;;  %v5412_v25 = vld [vmem:[%s11217_s0 + $0x230] sm:$0xff] }
 0x7bd   :  { %5925 = vmatpush1.msra.mxu0 %v5369_v27  ;;  %8082 = vmatpush3.msra.mxu1 %v5614_v17  ;;  %v5465_v27 = vld [vmem:[%s11217_s0 + $0x3d8] sm:$0xff]  ;;  %v5411_v17 = vld [vmem:[%s11217_s0 + $0x228] sm:$0xff] }
 0x7be   :  { %5926 = vmatprep.subr.mxu0 %v5367_v29  ;;  %8083 = vmatprep.subr.mxu1 %v8395_v0  ;;  %v5463_v29 = vld [vmem:[%s11217_s0 + $0x3c8] sm:$0xff] }
 0x7bf   :  { %5927 = vmatpush1.msra.mxu0 %v5366_v7  ;;  %8084 = vmatpush3.msra.mxu1 %v5611_v16  ;;  %v5409_v7 = vld [vmem:[%s11217_s0 + $0x218] sm:$0xff]  ;;  %v5462_v16 = vld [vmem:[%s11217_s0 + $0x3c0] sm:$0xff] }
 0x7c0   :  { %5928 = vmatprep.subr.mxu0 %v5364_v31  ;;  %8085 = vmatprep.subr.mxu1 %v8395_v0  ;;  %v5408_v31 = vld [vmem:[%s11217_s0 + $0x210] sm:$0xff] }
 0x7c1   :  { %5929 = vmatpush1.msra.mxu0 %v5363_v32  ;;  %8086 = vmatpush3.msra.mxu1 %v5608_v33  ;;  %v5460_v32 = vld [vmem:[%s11217_s0 + $0x3b0] sm:$0xff]  ;;  %v5406_v33 = vld [vmem:[%s11217_s0 + $0x200] sm:$0xff] }
 0x7c2   :  { %5930 = vmatprep.subr.mxu0 %v5361_v34  ;;  %8087 = vmatprep.subr.mxu1 %v8395_v0  ;;  %v5459_v34 = vld [vmem:[%s11217_s0 + $0x3a8] sm:$0xff] }
 0x7c3   :  { %5931 = vmatpush1.msra.mxu0 %v5360_v30  ;;  %8088 = vmatpush3.msra.mxu1 %v5605_v36  ;;  %v5405_v30 = vld [vmem:[%s11217_s0 + $0x1f8] sm:$0xff] }
 0x7c4   :  { %5932 = vmatprep.subr.mxu0 %v5358_v44  ;;  %8089 = vmatprep.subr.mxu1 %v8395_v0  ;;  %v5457_v36 = vld [vmem:[%s11217_s0 + $0x398] sm:$0xff]  ;;  %v5403_v44 = vld [vmem:[%s11217_s0 + $0x1e8] sm:$0xff] }
 0x7c5   :  { %5933 = vmatpush1.msra.mxu0 %v5357_v35  ;;  %8090 = vmatpush3.msra.mxu1 %v5602_v39  ;;  %v5456_v35 = vld [vmem:[%s11217_s0 + $0x390] sm:$0xff]  ;;  %v5402_v39 = vld [vmem:[%s11217_s0 + $0x1e0] sm:$0xff] }
 0x7c6   :  { %5934 = vmatprep.subr.mxu0 %v5355_v40  ;;  %8091 = vmatprep.subr.mxu1 %v8395_v0  ;;  %v5454_v40 = vld [vmem:[%s11217_s0 + $0x380] sm:$0xff] }
 0x7c7   :  { %5935 = vmatpush1.msra.mxu0 %v5354_v41  ;;  %8092 = vmatpush3.msra.mxu1 %v5599_v13  ;;  %v5400_v41 = vld [vmem:[%s11217_s0 + $0x1d0] sm:$0xff]  ;;  %v5453_v13 = vld [vmem:[%s11217_s0 + $0x378] sm:$0xff] }
 0x7c8   :  { %5936 = vmatprep.subr.mxu0 %v5352_v42  ;;  %8093 = vmatprep.subr.mxu1 %v8395_v0  ;;  %v5399_v42 = vld [vmem:[%s11217_s0 + $0x1c8] sm:$0xff] }
 0x7c9   :  { %5937 = vmatpush1.msra.mxu0 %v5351_v15  ;;  %8094 = vmatpush3.msra.mxu1 %v5596_v43  ;;  %v5451_v15 = vld [vmem:[%s11217_s0 + $0x368] sm:$0xff]  ;;  %v5397_v43 = vld [vmem:[%s11217_s0 + $0x1b8] sm:$0xff] }
 0x7ca   :  { %5938 = vmatprep.subr.mxu0 %v5349_v47  ;;  %8095 = vmatprep.subr.mxu1 %v8395_v0  ;;  %v5450_v47 = vld [vmem:[%s11217_s0 + $0x360] sm:$0xff] }
 0x7cb   :  { %5939 = vmatpush1.msra.mxu0 %v5348_v49  ;;  %8096 = vmatpush3.msra.mxu1 %v5593_v50  ;;  %v5396_v49 = vld [vmem:[%s11217_s0 + $0x1b0] sm:$0xff] }
 0x7cc   :  { %5940 = vmatprep.subr.mxu0 %v5346_v51  ;;  %8097 = vmatprep.subr.mxu1 %v8395_v0  ;;  %v5448_v50 = vld [vmem:[%s11217_s0 + $0x350] sm:$0xff]  ;;  %v5394_v51 = vld [vmem:[%s11217_s0 + $0x1a0] sm:$0xff] }
 0x7cd   :  { %5941 = vmatpush1.msra.mxu0 %v5345_v52  ;;  %8098 = vmatpush3.msra.mxu1 %v5590_v53  ;;  %v5447_v52 = vld [vmem:[%s11217_s0 + $0x348] sm:$0xff]  ;;  %v5393_v53 = vld [vmem:[%s11217_s0 + $0x198] sm:$0xff] }
 0x7ce   :  { %5942 = vmatprep.subr.mxu0 %v5343_v26  ;;  %8099 = vmatprep.subr.mxu1 %v8395_v0  ;;  %v5445_v26 = vld [vmem:[%s11217_s0 + $0x338] sm:$0xff] }
 0x7cf   :  { %5943 = vmatpush1.msra.mxu0 %v5342_v54  ;;  %8100 = vmatpush3.msra.mxu1 %v5587_v56  ;;  %v5391_v54 = vld [vmem:[%s11217_s0 + $0x188] sm:$0xff]  ;;  %v5444_v56 = vld [vmem:[%s11217_s0 + $0x330] sm:$0xff] }
 0x7d0   :  { %5944 = vmatprep.subr.mxu0 %v5436_v20  ;;  %8101 = vmatprep.subr.mxu1 %v8395_v0  ;;  %v5390_v20 = vld [vmem:[%s11217_s0 + $0x180] sm:$0xff] }
 0x7d1   :  { %5945 = vmatpush2.msra.mxu0 %v5435_v57  ;;  %8102 = vmatpush3.msra.mxu1 %v5584_v59  ;;  %v5442_v57 = vld [vmem:[%s11217_s0 + $0x320] sm:$0xff]  ;;  %v5441_v59 = vld [vmem:[%s11217_s0 + $0x318] sm:$0xff] }
 0x7d2   :  { %8103 = vmatprep.mubr.msk.f32.mxu1 %vm8396_vm0, %v8395_v0  ;;  %5946 = vmatprep.subr.mxu0 %v5433_v24  ;;  %v5439_v24 = vld [vmem:[%s11217_s0 + $0x308] sm:$0xff] }
 0x7d3   :  { %8104 = vmatmul.mubr.f32.vlgmr.msra.gmra.mxu1 %v9692_v37  ;;  %5947 = vmatpush2.msra.mxu0 %v5432_v62  ;;  %v5477_v37 = vld [vmem:[%s11217_s0 + $0x438] sm:$0xff]  ;;  %v10922_v62 = vld [vmem:[%s8405_s5 + $0x8] sm:$0xff] }
 0x7d4   :  { %5983 = vmatprep.subr.mxu1 %v5484_v63  ;;  %5948 = vmatprep.subr.mxu0 %v5430_v1  ;;  %v5438_v63 = vld [vmem:[%s11217_s0 + $0x300] sm:$0xff] }
 0x7d5   :  { %5984 = vmatpush1.msra.mxu1 %v5483_v55  ;;  %5949 = vmatpush2.msra.mxu0 %v5429_v19  ;;  %v10927_v1 = vld [vmem:[%s8405_s5] sm:$0xff]  ;;  %v5437_v55 = vld [vmem:[%s11217_s0 + $0x2f8] sm:$0xff] }
 0x7d6   :  { %5985 = vmatprep.subr.mxu1 %v5481_v3  ;;  %5950 = vmatprep.subr.mxu0 %v5427_v4  ;;  %v5389_v19 = vld [vmem:[%s11217_s0 + $0x178] sm:$0xff]  ;;  %v5434_v4 = vld [vmem:[%s11217_s0 + $0x2e0] sm:$0xff] }
 0x7d7   :  { %5986 = vmatpush1.msra.mxu1 %v5480_v48  ;;  %5951 = vmatpush2.msra.mxu0 %v5426_v61  ;;  %v5485_v3 = vld [vmem:[%s11217_s0 + $0x478] sm:$0xff]  ;;  %v10937_v48 = vld [vmem:[%s8405_s5 + $0x10] sm:$0xff]  ;;  %v5386_v61 = vld [vmem:[%s11217_s0 + $0x160] sm:$0xff]  ;;  %s11218_s5 = sld [smem:[#allocation29_spill]] }
 0x7d8   :  { %5987 = vmatprep.subr.mxu1 %v5478_v5  ;;  %5952 = vmatprep.subr.mxu0 %v5424_v8  ;;  %v5482_v5 = vld [vmem:[%s11217_s0 + $0x460] sm:$0xff]  ;;  %v5431_v8 = vld [vmem:[%s11217_s0 + $0x2c8] sm:$0xff] }
 0x7d9   :  { %5988 = vmatpush1.msra.mxu1 %v5477_v37  ;;  %5953 = vmatpush2.msra.mxu0 %v5423_v9  ;;  %v5383_v37 = vld [vmem:[%s11217_s0 + $0x148] sm:$0xff] }
 0x7da   :  { %5989 = vmatprep.subr.mxu1 %v5475_v10  ;;  %5954 = vmatprep.subr.mxu0 %v5421_v11  ;;  %v5479_v9 = vld [vmem:[%s11217_s0 + $0x448] sm:$0xff]  ;;  %v5428_v10 = vld [vmem:[%s11217_s0 + $0x2b0] sm:$0xff] }
 0x7db   :  { %5990 = vmatpush1.msra.mxu1 %v5474_v45  ;;  %5955 = vmatpush2.msra.mxu0 %v5420_v14  ;;  %v5380_v11 = vld [vmem:[%s11217_s0 + $0x130] sm:$0xff]  ;;  %v5425_v14 = vld [vmem:[%s11217_s0 + $0x298] sm:$0xff] }
 0x7dc   :  { %5991 = vmatprep.subr.mxu1 %v5472_v6  ;;  %5956 = vmatprep.subr.mxu0 %v5418_v12  ;;  %v5476_v45 = vld [vmem:[%s11217_s0 + $0x430] sm:$0xff]  ;;  %v5377_v6 = vld [vmem:[%s11217_s0 + $0x118] sm:$0xff] }
 0x7dd   :  { %5992 = vmatpush1.msra.mxu1 %v5471_v18  ;;  %5957 = vmatpush2.msra.mxu0 %v5417_v46  ;;  %v5473_v12 = vld [vmem:[%s11217_s0 + $0x418] sm:$0xff]  ;;  %v5422_v18 = vld [vmem:[%s11217_s0 + $0x280] sm:$0xff] }
 0x7de   :  { %5993 = vmatprep.subr.mxu1 %v5469_v21  ;;  %5958 = vmatprep.subr.mxu0 %v5415_v2  ;;  %v5374_v46 = vld [vmem:[%s11217_s0 + $0x100] sm:$0xff]  ;;  %v5419_v2 = vld [vmem:[%s11217_s0 + $0x268] sm:$0xff] }
 0x7df   :  { %5994 = vmatpush1.msra.mxu1 %v5468_v22  ;;  %5959 = vmatpush2.msra.mxu0 %v5414_v23  ;;  %v5470_v21 = vld [vmem:[%s11217_s0 + $0x400] sm:$0xff]  ;;  %v5371_v22 = vld [vmem:[%s11217_s0 + $0xe8] sm:$0xff] }
 0x7e0   :  { %5995 = vmatprep.subr.mxu1 %v5466_v38  ;;  %5960 = vmatprep.subr.mxu0 %v5412_v25  ;;  %v5467_v23 = vld [vmem:[%s11217_s0 + $0x3e8] sm:$0xff]  ;;  %v5416_v38 = vld [vmem:[%s11217_s0 + $0x250] sm:$0xff] }
 0x7e1   :  { %5996 = vmatpush1.msra.mxu1 %v5465_v27  ;;  %5961 = vmatpush2.msra.mxu0 %v5411_v17  ;;  %v5368_v25 = vld [vmem:[%s11217_s0 + $0xd0] sm:$0xff]  ;;  %v5413_v17 = vld [vmem:[%s11217_s0 + $0x238] sm:$0xff] }
 0x7e2   :  { %5997 = vmatprep.subr.mxu1 %v5463_v29  ;;  %5962 = vmatprep.subr.mxu0 %v5409_v7  ;;  %v5464_v27 = vld [vmem:[%s11217_s0 + $0x3d0] sm:$0xff]  ;;  %v5365_v29 = vld [vmem:[%s11217_s0 + $0xb8] sm:$0xff] }
 0x7e3   :  { %5998 = vmatpush1.msra.mxu1 %v5462_v16  ;;  %5963 = vmatpush2.msra.mxu0 %v5408_v31  ;;  %v5461_v7 = vld [vmem:[%s11217_s0 + $0x3b8] sm:$0xff]  ;;  %v5410_v16 = vld [vmem:[%s11217_s0 + $0x220] sm:$0xff] }
 0x7e4   :  { %5999 = vmatprep.subr.mxu1 %v5460_v32  ;;  %5964 = vmatprep.subr.mxu0 %v5406_v33  ;;  %v5362_v31 = vld [vmem:[%s11217_s0 + $0xa0] sm:$0xff]  ;;  %v5407_v33 = vld [vmem:[%s11217_s0 + $0x208] sm:$0xff] }
 0x7e5   :  { %6000 = vmatpush1.msra.mxu1 %v5459_v34  ;;  %5965 = vmatpush2.msra.mxu0 %v5405_v30  ;;  %v5458_v32 = vld [vmem:[%s11217_s0 + $0x3a0] sm:$0xff]  ;;  %v5359_v34 = vld [vmem:[%s11217_s0 + $0x88] sm:$0xff] }
 0x7e6   :  { %6001 = vmatprep.subr.mxu1 %v5457_v36  ;;  %5966 = vmatprep.subr.mxu0 %v5403_v44  ;;  %v5455_v30 = vld [vmem:[%s11217_s0 + $0x388] sm:$0xff]  ;;  %v5404_v36 = vld [vmem:[%s11217_s0 + $0x1f0] sm:$0xff] }
 0x7e7   :  { %6002 = vmatpush1.msra.mxu1 %v5456_v35  ;;  %5967 = vmatpush2.msra.mxu0 %v5402_v39  ;;  %v5356_v44 = vld [vmem:[%s11217_s0 + $0x70] sm:$0xff]  ;;  %v5401_v39 = vld [vmem:[%s11217_s0 + $0x1d8] sm:$0xff] }
 0x7e8   :  { %6003 = vmatprep.subr.mxu1 %v5454_v40  ;;  %5968 = vmatprep.subr.mxu0 %v5400_v41  ;;  %v5452_v35 = vld [vmem:[%s11217_s0 + $0x370] sm:$0xff]  ;;  %v5353_v40 = vld [vmem:[%s11217_s0 + $0x58] sm:$0xff]  ;;  %v5398_v41 = vld [vmem:[%s11217_s0 + $0x1c0] sm:$0xff] }
 0x7e9   :  { %6004 = vmatpush1.msra.mxu1 %v5453_v13  ;;  %5969 = vmatpush2.msra.mxu0 %v5399_v42  ;;  %v5449_v13 = vld [vmem:[%s11217_s0 + $0x358] sm:$0xff]  ;;  %v5350_v42 = vld [vmem:[%s11217_s0 + $0x40] sm:$0xff] }
 0x7ea   :  { %6005 = vmatprep.subr.mxu1 %v5451_v15  ;;  %5970 = vmatprep.subr.mxu0 %v5397_v43  ;;  %v5395_v15 = vld [vmem:[%s11217_s0 + $0x1a8] sm:$0xff]  ;;  %v5446_v43 = vld [vmem:[%s11217_s0 + $0x340] sm:$0xff] }
 0x7eb   :  { %6006 = vmatpush1.msra.mxu1 %v5450_v47  ;;  %5971 = vmatpush2.msra.mxu0 %v5396_v49  ;;  %v5347_v47 = vld [vmem:[%s11217_s0 + $0x28] sm:$0xff]  ;;  %v5392_v49 = vld [vmem:[%s11217_s0 + $0x190] sm:$0xff] }
 0x7ec   :  { %6007 = vmatprep.subr.mxu1 %v5448_v50  ;;  %5972 = vmatprep.subr.mxu0 %v5394_v51  ;;  %v5443_v50 = vld [vmem:[%s11217_s0 + $0x328] sm:$0xff]  ;;  %v5344_v51 = vld [vmem:[%s11217_s0 + $0x10] sm:$0xff] }
 0x7ed   :  { %6008 = vmatpush1.msra.mxu1 %v5447_v52  ;;  %5973 = vmatpush2.msra.mxu0 %v5393_v53  ;;  %v5440_v52 = vld [vmem:[%s11217_s0 + $0x310] sm:$0xff] }
 0x7ee   :  { %6009 = vmatprep.subr.mxu1 %v5445_v26  ;;  %5974 = vmatprep.subr.mxu0 %v5391_v54  ;;  %v6240_v53 = vld [vmem:[%s11218_s5 + $0x170] sm:$0xff]  ;;  %v6239_v26 = vld [vmem:[%s11218_s5 + $0x168] sm:$0xff]  ;;  %v6241_v54 = vld [vmem:[%s11218_s5 + $0x178] sm:$0xff] }
 0x7ef   :  { %6010 = vmatpush1.msra.mxu1 %v5444_v56  ;;  %5975 = vmatpush2.msra.mxu0 %v5390_v20  ;;  %v6237_v56 = vld [vmem:[%s11218_s5 + $0x158] sm:$0xff]  ;;  %v6236_v20 = vld [vmem:[%s11218_s5 + $0x150] sm:$0xff] }
 0x7f0   :  { %5976 = vmatprep.mubr.f32.mxu0 %v10922_v62  ;;  %6011 = vmatprep.subr.mxu1 %v5442_v57  ;;  %v6238_v57 = vld [vmem:[%s11218_s5 + $0x160] sm:$0xff] }
 0x7f1   :  { %5977 = vmatmul.mubr.f32.vlgmr.msra.gmra.mxu0 %v10927_v1  ;;  %6012 = vmatpush1.msra.mxu1 %v5441_v59  ;;  %v6234_v59 = vld [vmem:[%s11218_s5 + $0x140] sm:$0xff] }
 0x7f2   :  { %6013 = vmatprep.subr.mxu1 %v5439_v24  ;;  %6047 = vmatprep.mubr.f32.mxu1 %v8395_v0  ;;  %v6233_v24 = vld [vmem:[%s11218_s5 + $0x138] sm:$0xff] }
 0x7f3   :  { %6014 = vmatpush1.msra.mxu1 %v5438_v63  ;;  %8106 = vmatprep.subr.mxu0 %v8395_v0  ;;  %v6231_v63 = vld [vmem:[%s11218_s5 + $0x128] sm:$0xff] }
 0x7f4   :  { %6048 = vmatmul.mubr.f32.vlgmr.msra.gmra.mxu1 %v10937_v48  ;;  %7460 = vmatprep.subr.mxu1 %v5437_v55  ;;  %v6232_v55 = vld [vmem:[%s11218_s5 + $0x130] sm:$0xff] }
 0x7f5   :  { %7461 = vmatpush3.msra.mxu1 %v5389_v19  ;;  %8107 = vmatpush3.msra.mxu0 %v5485_v3  ;;  %v6228_v19 = vld [vmem:[%s11218_s5 + $0x110] sm:$0xff]  ;;  %v6227_v3 = vld [vmem:[%s11218_s5 + $0x108] sm:$0xff] }
 0x7f6   :  { %7462 = vmatprep.subr.mxu1 %v5434_v4  ;;  %8108 = vmatprep.subr.mxu0 %v8395_v0  ;;  %v6229_v4 = vld [vmem:[%s11218_s5 + $0x118] sm:$0xff] }
 0x7f7   :  { %7463 = vmatpush3.msra.mxu1 %v5386_v61  ;;  %8109 = vmatpush3.msra.mxu0 %v5482_v5  ;;  %v6224_v61 = vld [vmem:[%s11218_s5 + $0xf0] sm:$0xff]  ;;  %v6226_v5 = vld [vmem:[%s11218_s5 + $0x100] sm:$0xff] }
 0x7f8   :  { %7464 = vmatprep.subr.mxu1 %v5431_v8  ;;  %8110 = vmatprep.subr.mxu0 %v8395_v0  ;;  %v6222_v8 = vld [vmem:[%s11218_s5 + $0xe0] sm:$0xff] }
 0x7f9   :  { %7465 = vmatpush3.msra.mxu1 %v5383_v37  ;;  %8111 = vmatpush3.msra.mxu0 %v5479_v9  ;;  %v6221_v37 = vld [vmem:[%s11218_s5 + $0xd8] sm:$0xff]  ;;  %v6223_v9 = vld [vmem:[%s11218_s5 + $0xe8] sm:$0xff] }
 0x7fa   :  { %7466 = vmatprep.subr.mxu1 %v5428_v10  ;;  %8112 = vmatprep.subr.mxu0 %v8395_v0  ;;  %v6219_v10 = vld [vmem:[%s11218_s5 + $0xc8] sm:$0xff] }
 0x7fb   :  { %7467 = vmatpush3.msra.mxu1 %v5380_v11  ;;  %8113 = vmatpush3.msra.mxu0 %v5476_v45  ;;  %v6218_v11 = vld [vmem:[%s11218_s5 + $0xc0] sm:$0xff]  ;;  %v6220_v45 = vld [vmem:[%s11218_s5 + $0xd0] sm:$0xff] }
 0x7fc   :  { %7468 = vmatprep.subr.mxu1 %v5425_v14  ;;  %8114 = vmatprep.subr.mxu0 %v8395_v0  ;;  %v6216_v14 = vld [vmem:[%s11218_s5 + $0xb0] sm:$0xff] }
 0x7fd   :  { %7469 = vmatpush3.msra.mxu1 %v5377_v6  ;;  %8115 = vmatpush3.msra.mxu0 %v5473_v12  ;;  %v6215_v6 = vld [vmem:[%s11218_s5 + $0xa8] sm:$0xff]  ;;  %v6217_v12 = vld [vmem:[%s11218_s5 + $0xb8] sm:$0xff] }
 0x7fe   :  { %7470 = vmatprep.subr.mxu1 %v5422_v18  ;;  %8116 = vmatprep.subr.mxu0 %v8395_v0  ;;  %v6213_v18 = vld [vmem:[%s11218_s5 + $0x98] sm:$0xff] }
 0x7ff   :  { %7471 = vmatpush3.msra.mxu1 %v5374_v46  ;;  %8117 = vmatpush3.msra.mxu0 %v5470_v21  ;;  %v6212_v46 = vld [vmem:[%s11218_s5 + $0x90] sm:$0xff]  ;;  %v6214_v21 = vld [vmem:[%s11218_s5 + $0xa0] sm:$0xff] }
 0x800   :  { %7472 = vmatprep.subr.mxu1 %v5419_v2  ;;  %8118 = vmatprep.subr.mxu0 %v8395_v0  ;;  %v6210_v2 = vld [vmem:[%s11218_s5 + $0x80] sm:$0xff] }
 0x801   :  { %7473 = vmatpush3.msra.mxu1 %v5371_v22  ;;  %8119 = vmatpush3.msra.mxu0 %v5467_v23  ;;  %v6209_v22 = vld [vmem:[%s11218_s5 + $0x78] sm:$0xff]  ;;  %v6211_v23 = vld [vmem:[%s11218_s5 + $0x88] sm:$0xff] }
 0x802   :  { %7474 = vmatprep.subr.mxu1 %v5416_v38  ;;  %8120 = vmatprep.subr.mxu0 %v8395_v0  ;;  %v6207_v38 = vld [vmem:[%s11218_s5 + $0x68] sm:$0xff] }
 0x803   :  { %7475 = vmatpush3.msra.mxu1 %v5368_v25  ;;  %8121 = vmatpush3.msra.mxu0 %v5464_v27  ;;  %v6206_v25 = vld [vmem:[%s11218_s5 + $0x60] sm:$0xff]  ;;  %v6208_v27 = vld [vmem:[%s11218_s5 + $0x70] sm:$0xff] }
 0x804   :  { %7476 = vmatprep.subr.mxu1 %v5413_v17  ;;  %8122 = vmatprep.subr.mxu0 %v8395_v0  ;;  %v6204_v17 = vld [vmem:[%s11218_s5 + $0x50] sm:$0xff] }
 0x805   :  { %7477 = vmatpush3.msra.mxu1 %v5365_v29  ;;  %8123 = vmatpush3.msra.mxu0 %v5461_v7  ;;  %v6203_v29 = vld [vmem:[%s11218_s5 + $0x48] sm:$0xff]  ;;  %v6205_v7 = vld [vmem:[%s11218_s5 + $0x58] sm:$0xff] }
 0x806   :  { %7478 = vmatprep.subr.mxu1 %v5410_v16  ;;  %8124 = vmatprep.subr.mxu0 %v8395_v0 }
 0x807   :  { %7479 = vmatpush3.msra.mxu1 %v5362_v31  ;;  %8125 = vmatpush3.msra.mxu0 %v5458_v32  ;;  %v6201_v31 = vld [vmem:[%s11218_s5 + $0x38] sm:$0xff]  ;;  %v6200_v32 = vld [vmem:[%s11218_s5 + $0x30] sm:$0xff] }
 0x808   :  { %7480 = vmatprep.subr.mxu1 %v5407_v33  ;;  %8126 = vmatprep.subr.mxu0 %v8395_v0  ;;  %v6202_v33 = vld [vmem:[%s11218_s5 + $0x40] sm:$0xff] }
 0x809   :  { %7481 = vmatpush3.msra.mxu1 %v5359_v34  ;;  %8127 = vmatpush3.msra.mxu0 %v5455_v30  ;;  %v6198_v30 = vld [vmem:[%s11218_s5 + $0x20] sm:$0xff] }
 0x80a   :  { %7482 = vmatprep.subr.mxu1 %v5404_v36  ;;  %8128 = vmatprep.subr.mxu0 %v8395_v0 }
 0x80b   :  { %7483 = vmatpush3.msra.mxu1 %v5356_v44  ;;  %8129 = vmatpush3.msra.mxu0 %v5452_v35  ;;  %v6197_v44 = vld [vmem:[%s11218_s5 + $0x18] sm:$0xff]  ;;  %v6199_v35 = vld [vmem:[%s11218_s5 + $0x28] sm:$0xff] }
 0x80c   :  { %7484 = vmatprep.subr.mxu1 %v5401_v39  ;;  %8130 = vmatprep.subr.mxu0 %v8395_v0  ;;  %v6195_v39 = vld [vmem:[%s11218_s5 + $0x8] sm:$0xff] }
 0x80d   :  { %7485 = vmatpush3.msra.mxu1 %v5353_v40  ;;  %6118 = vmatprep.mubr.f32.mxu1 %v10922_v62  ;;  %v6235_v62 = vld [vmem:[%s11218_s5 + $0x148] sm:$0xff]  ;;  %v6713_v40 = vld [vmem:[%s11219_s15] ss:$0 sm:$0xff] }
 0x80e   :  { %7486 = vmatprep.subr.mxu1 %v5398_v41  ;;  %8131 = vmatpush3.msra.mxu0 %v5449_v13  ;;  %v6194_v13 = vld [vmem:[%s11218_s5] sm:$0xff] }
 0x80f   :  { %7487 = vmatpush3.msra.mxu1 %v5350_v42  ;;  %8132 = vmatprep.subr.mxu0 %v8395_v0 }
 0x810   :  { %7488 = vmatprep.subr.mxu1 %v5395_v15  ;;  %8133 = vmatpush3.msra.mxu0 %v5446_v43  ;;  %v6196_v15 = vld [vmem:[%s11218_s5 + $0x10] sm:$0xff] }
 0x811   :  { %7489 = vmatpush3.msra.mxu1 %v5347_v47  ;;  %8134 = vmatprep.subr.mxu0 %v8395_v0 }
 0x812   :  { %7490 = vmatprep.subr.mxu1 %v5392_v49  ;;  %8135 = vmatpush3.msra.mxu0 %v5443_v50 }
 0x813   :  { %7491 = vmatpush3.msra.mxu1 %v5344_v51  ;;  %8136 = vmatprep.subr.mxu0 %v8395_v0 }
 0x814   :  { %6119 = vmatmul.mubr.f32.vlgmr.msra.gmra.mxu1 %v10927_v1  ;;  %8137 = vmatpush3.msra.mxu0 %v5440_v52  ;;  %v6230_v1 = vld [vmem:[%s11218_s5 + $0x120] sm:$0xff] }
 0x815   :  { %8138 = vmatprep.mubr.msk.f32.mxu0 %vm8396_vm0, %v8395_v0  ;;  %6242 = vmatprep.subr.mxu1 %v6240_v53  ;;  %v6496_v53 = vld [vmem:[%s11220_s16 + $0x178] sm:$0xff] }
 0x816   :  { %8139 = vmatmul.mubr.f32.vlgmr.msra.gmra.mxu0 %v10937_v48  ;;  %8141 = vmatprep.subr.mxu0 %v8395_v0  ;;  %v6225_v48 = vld [vmem:[%s11218_s5 + $0xf8] sm:$0xff] }
 0x817   :  { %6243 = vmatpush1.msra.mxu1 %v6239_v26  ;;  %8142 = vmatpush3.msra.mxu0 %v6241_v54  ;;  %v6480_v26 = vld [vmem:[%s11220_s16 + $0xf8] sm:$0xff]  ;;  %v6495_v54 = vld [vmem:[%s11220_s16 + $0x170] sm:$0xff] }
 0x818   :  { %6244 = vmatprep.subr.mxu1 %v6237_v56  ;;  %8143 = vmatprep.subr.mxu0 %v8395_v0  ;;  %v6464_v56 = vld [vmem:[%s11220_s16 + $0x78] sm:$0xff] }
 0x819   :  { %6245 = vmatpush1.msra.mxu1 %v6236_v20  ;;  %8144 = vmatpush3.msra.mxu0 %v6238_v57  ;;  %v6479_v20 = vld [vmem:[%s11220_s16 + $0xf0] sm:$0xff]  ;;  %v6494_v57 = vld [vmem:[%s11220_s16 + $0x168] sm:$0xff] }
 0x81a   :  { %6246 = vmatprep.subr.mxu1 %v6234_v59  ;;  %8145 = vmatprep.subr.mxu0 %v8395_v0  ;;  %v6463_v59 = vld [vmem:[%s11220_s16 + $0x70] sm:$0xff] }
 0x81b   :  { %6247 = vmatpush1.msra.mxu1 %v6233_v24  ;;  %8146 = vmatpush3.msra.mxu0 %v6235_v62  ;;  %v6478_v24 = vld [vmem:[%s11220_s16 + $0xe8] sm:$0xff] }
 0x81c   :  { %6248 = vmatprep.subr.mxu1 %v6231_v63  ;;  %8147 = vmatprep.subr.mxu0 %v8395_v0  ;;  %v6462_v62 = vld [vmem:[%s11220_s16 + $0x68] sm:$0xff]  ;;  %v6493_v63 = vld [vmem:[%s11220_s16 + $0x160] sm:$0xff] }
 0x81d   :  { %6249 = vmatpush1.msra.mxu1 %v6230_v1  ;;  %8148 = vmatpush3.msra.mxu0 %v6232_v55  ;;  %v6477_v1 = vld [vmem:[%s11220_s16 + $0xe0] sm:$0xff] }
 0x81e   :  { %6250 = vmatprep.subr.mxu1 %v6228_v19  ;;  %8149 = vmatprep.subr.mxu0 %v8395_v0  ;;  %v6461_v55 = vld [vmem:[%s11220_s16 + $0x60] sm:$0xff]  ;;  %v6492_v19 = vld [vmem:[%s11220_s16 + $0x158] sm:$0xff] }
 0x81f   :  { %6251 = vmatpush1.msra.mxu1 %v6227_v3  ;;  %8150 = vmatpush3.msra.mxu0 %v6229_v4  ;;  %v6476_v3 = vld [vmem:[%s11220_s16 + $0xd8] sm:$0xff] }
 0x820   :  { %6252 = vmatprep.subr.mxu1 %v6225_v48  ;;  %8151 = vmatprep.subr.mxu0 %v8395_v0  ;;  %v6460_v4 = vld [vmem:[%s11220_s16 + $0x58] sm:$0xff]  ;;  %v6491_v48 = vld [vmem:[%s11220_s16 + $0x150] sm:$0xff] }
 0x821   :  { %6253 = vmatpush1.msra.mxu1 %v6224_v61  ;;  %8152 = vmatpush3.msra.mxu0 %v6226_v5  ;;  %v6475_v61 = vld [vmem:[%s11220_s16 + $0xd0] sm:$0xff] }
 0x822   :  { %6254 = vmatprep.subr.mxu1 %v6222_v8  ;;  %8153 = vmatprep.subr.mxu0 %v8395_v0  ;;  %v6459_v5 = vld [vmem:[%s11220_s16 + $0x50] sm:$0xff]  ;;  %v6490_v8 = vld [vmem:[%s11220_s16 + $0x148] sm:$0xff] }
 0x823   :  { %6255 = vmatpush1.msra.mxu1 %v6221_v37  ;;  %8154 = vmatpush3.msra.mxu0 %v6223_v9  ;;  %v6474_v37 = vld [vmem:[%s11220_s16 + $0xc8] sm:$0xff] }
 0x824   :  { %6256 = vmatprep.subr.mxu1 %v6219_v10  ;;  %8155 = vmatprep.subr.mxu0 %v8395_v0  ;;  %v6458_v9 = vld [vmem:[%s11220_s16 + $0x48] sm:$0xff]  ;;  %v6489_v10 = vld [vmem:[%s11220_s16 + $0x140] sm:$0xff] }
 0x825   :  { %6257 = vmatpush1.msra.mxu1 %v6218_v11  ;;  %8156 = vmatpush3.msra.mxu0 %v6220_v45  ;;  %v6473_v11 = vld [vmem:[%s11220_s16 + $0xc0] sm:$0xff] }
 0x826   :  { %6258 = vmatprep.subr.mxu1 %v6216_v14  ;;  %8157 = vmatprep.subr.mxu0 %v8395_v0  ;;  %v6457_v45 = vld [vmem:[%s11220_s16 + $0x40] sm:$0xff]  ;;  %v6488_v14 = vld [vmem:[%s11220_s16 + $0x138] sm:$0xff] }
 0x827   :  { %6259 = vmatpush1.msra.mxu1 %v6215_v6  ;;  %8158 = vmatpush3.msra.mxu0 %v6217_v12  ;;  %v6472_v6 = vld [vmem:[%s11220_s16 + $0xb8] sm:$0xff] }
 0x828   :  { %6260 = vmatprep.subr.mxu1 %v6213_v18  ;;  %8159 = vmatprep.subr.mxu0 %v8395_v0  ;;  %v6456_v12 = vld [vmem:[%s11220_s16 + $0x38] sm:$0xff]  ;;  %v6487_v18 = vld [vmem:[%s11220_s16 + $0x130] sm:$0xff] }
 0x829   :  { %6261 = vmatpush1.msra.mxu1 %v6212_v46  ;;  %8160 = vmatpush3.msra.mxu0 %v6214_v21 }
 0x82a   :  { %6262 = vmatprep.subr.mxu1 %v6210_v2  ;;  %8161 = vmatprep.subr.mxu0 %v8395_v0 }
 0x82b   :  { %6263 = vmatpush1.msra.mxu1 %v6209_v22  ;;  %8162 = vmatpush3.msra.mxu0 %v6211_v23 }
 0x82c   :  { %6264 = vmatprep.subr.mxu1 %v6207_v38  ;;  %8163 = vmatprep.subr.mxu0 %v8395_v0  ;;  %v6471_v38 = vld [vmem:[%s11220_s16 + $0xb0] sm:$0xff] }
 0x82d   :  { %v5333_v16 = vpop.f32.mrf.mxu0  ;;  %6265 = vmatpush1.msra.mxu1 %v6206_v25  ;;  %8164 = vmatpush3.msra.mxu0 %v6208_v27  ;;  %v6486_v25 = vld [vmem:[%s11220_s16 + $0x128] sm:$0xff]  ;;  %v6455_v27 = vld [vmem:[%s11220_s16 + $0x30] sm:$0xff] }
 0x82e   :  { %6266 = vmatprep.subr.mxu1 %v6204_v17  ;;  %8165 = vmatprep.subr.mxu0 %v8395_v0 }
 0x82f   :  { %v8070_v34 = vpop.f32.mrf.mxu0  ;;  %6267 = vmatpush1.msra.mxu1 %v6203_v29  ;;  %8166 = vmatpush3.msra.mxu0 %v6205_v7  ;;  %v6470_v29 = vld [vmem:[%s11220_s16 + $0xa8] sm:$0xff]  ;;  %v6485_v7 = vld [vmem:[%s11220_s16 + $0x120] sm:$0xff] }
 0x830   :  { %v7388_v36 = vpop.f32.mrf.mxu1  ;;  %6268 = vmatprep.subr.mxu1 %v6201_v31  ;;  %8167 = vmatprep.subr.mxu0 %v8395_v0  ;;  %v6469_v31 = vld [vmem:[%s11220_s16 + $0xa0] sm:$0xff]  ;;  %v6468_v34 = vld [vmem:[%s11220_s16 + $0x98] sm:$0xff] }
 0x831   :  { %6269 = vmatpush1.msra.mxu1 %v6200_v32  ;;  %8168 = vmatpush3.msra.mxu0 %v6202_v33  ;;  %v6484_v32 = vld [vmem:[%s11220_s16 + $0x118] sm:$0xff]  ;;  %v6453_v33 = vld [vmem:[%s11220_s16 + $0x20] sm:$0xff] }
 0x832   :  { %v7389_v41 = vpop.f32.mrf.mxu1  ;;  %6270 = vmatprep.subr.mxu1 %v6198_v30  ;;  %8169 = vmatprep.subr.mxu0 %v8395_v0  ;;  %v6483_v30 = vld [vmem:[%s11220_s16 + $0x110] sm:$0xff] }
 0x833   :  { %v7390_v42 = vadd.f32 %v7389_v41, %v7388_v36  ;;  %6271 = vmatpush1.msra.mxu1 %v6197_v44  ;;  %8170 = vmatpush3.msra.mxu0 %v6199_v35  ;;  %v6452_v36 = vld [vmem:[%s11220_s16 + $0x18] sm:$0xff]  ;;  %v6467_v44 = vld [vmem:[%s11220_s16 + $0x90] sm:$0xff]  ;;  %v6482_v35 = vld [vmem:[%s11220_s16 + $0x108] sm:$0xff] }
 0x834   :  { %6272 = vmatprep.subr.mxu1 %v6195_v39  ;;  %8171 = vmatprep.subr.mxu0 %v8395_v0  ;;  %v6451_v39 = vld [vmem:[%s11220_s16 + $0x10] sm:$0xff]  ;;  %v6481_v41 = vld [vmem:[%s11220_s16 + $0x100] sm:$0xff] }
 0x835   :  { %v5264_v43 = vadd.f32 %v7390_v42, %v6713_v40  ;;  %6273 = vmatpush1.msra.mxu1 %v6194_v13  ;;  %6306 = vmatprep.mubr.f32.mxu1 %v8395_v0  ;;  %v6466_v40 = vld [vmem:[%s11220_s16 + $0x88] sm:$0xff]  ;;  %v6465_v42 = vld [vmem:[%s11220_s16 + $0x80] sm:$0xff] }
 0x836   :  { %8172 = vmatpush3.msra.mxu0 %v6196_v15  ;;  %8173 = vmatprep.mubr.msk.f32.mxu0 %vm8396_vm0, %v8395_v0  ;;  %v6450_v13 = vld [vmem:[%s11220_s16 + $0x8] sm:$0xff]  ;;  %v6449_v15 = vld [vmem:[%s11220_s16] sm:$0xff] }
 0x837   :  { %v5334_v47 = vadd.f32 %v5333_v16, %v5264_v43  ;;  %8176 = vmatprep.subr.mxu0 %v8395_v0  ;;  %7529 = vmatprep.subr.mxu1 %v6480_v26  ;;  %v6454_v16 = vld [vmem:[%s11220_s16 + $0x28] sm:$0xff] }
 0x839   :  { %v5337_v49 = vmul.f32 0.5, %v5334_v47 }
 0x83b   :  { %8264 = vtanh.f32 %v5337_v49 }
 0x848   :  { %v8265_v50 = vpop.eup %8264 }
 0x849   :  { %v5339_v51 = vadd.f32 1.0, %v8265_v50 }
 0x84b   :  { %v5340_v52 = vmul.f32 0.5, %v5339_v51 }
 0x84d   :  { %5341 = vst [vmem:[%s8620_s6] sm:$0xff] %v5340_v52  ;;  %6307 = vmatmul.mubr.f32.vlgmr.msra.gmra.mxu1 %v5340_v52  ;;  %8174 = vmatmul.mubr.f32.vlgmr.msra.gmra.mxu0 %v5340_v52  ;;  %s11221_s6 = sld [smem:[#allocation34_spill]] }
 0x84e   :  { %8208 = vmatprep.mubr.msk.f32.mxu0 %vm8396_vm0, %v8395_v0  ;;  %8177 = vmatpush3.msra.mxu0 %v6496_v53  ;;  %v5767_v46 = vpop.f32.mrf.mxu0 }
 0x84f   :  { %8178 = vmatprep.subr.mxu0 %v8395_v0  ;;  %7530 = vmatpush3.msra.mxu1 %v6464_v56 }
 0x850   :  { %8179 = vmatpush3.msra.mxu0 %v6495_v54  ;;  %7531 = vmatprep.subr.mxu1 %v6479_v20  ;;  %v5769_v43 = vpop.f32.mrf.mxu0 }
 0x851   :  { %8180 = vmatprep.subr.mxu0 %v8395_v0  ;;  %7532 = vmatpush3.msra.mxu1 %v6463_v59 }
 0x852   :  { %8181 = vmatpush3.msra.mxu0 %v6494_v57  ;;  %7533 = vmatprep.subr.mxu1 %v6478_v24 }
 0x853   :  { %8182 = vmatprep.subr.mxu0 %v8395_v0  ;;  %7534 = vmatpush3.msra.mxu1 %v6462_v62 }
 0x854   :  { %8183 = vmatpush3.msra.mxu0 %v6493_v63  ;;  %7535 = vmatprep.subr.mxu1 %v6477_v1  ;;  %v6386_v1 = vld [vmem:[#allocation2] sm:$0x7] }
 0x855   :  { %8184 = vmatprep.subr.mxu0 %v8395_v0  ;;  %7536 = vmatpush3.msra.mxu1 %v6461_v55 }
 0x856   :  { %8185 = vmatpush3.msra.mxu0 %v6492_v19  ;;  %7537 = vmatprep.subr.mxu1 %v6476_v3 }
 0x857   :  { %8186 = vmatprep.subr.mxu0 %v8395_v0  ;;  %7538 = vmatpush3.msra.mxu1 %v6460_v4  ;;  %v6391_v4 = vrot.slane %v6386_v1, %v8903_v58 }
 0x858   :  { %8187 = vmatpush3.msra.mxu0 %v6491_v48  ;;  %7539 = vmatprep.subr.mxu1 %v6475_v61  ;;  %v6399_v48 = vrot.slane %v6386_v1, %v8942_v28 }
 0x859   :  { %8188 = vmatprep.subr.mxu0 %v8395_v0  ;;  %7540 = vmatpush3.msra.mxu1 %v6459_v5  ;;  %v6409_v5 = vld [vmem:[#allocation4] sm:$0x7] }
 0x85a   :  { %8189 = vmatpush3.msra.mxu0 %v6490_v8  ;;  %7541 = vmatprep.subr.mxu1 %v6474_v37 }
 0x85b   :  { %8190 = vmatprep.subr.mxu0 %v8395_v0  ;;  %7542 = vmatpush3.msra.mxu1 %v6458_v9 }
 0x85c   :  { %8191 = vmatpush3.msra.mxu0 %v6489_v10  ;;  %7543 = vmatprep.subr.mxu1 %v6473_v11  ;;  %v6429_v10 = vld [vmem:[#allocation6] sm:$0x7] }
 0x85d   :  { %8192 = vmatprep.subr.mxu0 %v8395_v0  ;;  %7544 = vmatpush3.msra.mxu1 %v6457_v45  ;;  %v6395_v45 = vrot.slane %v6386_v1, %v8906_v60 }
 0x85e   :  { %8193 = vmatpush3.msra.mxu0 %v6488_v14  ;;  %7545 = vmatprep.subr.mxu1 %v6472_v6 }
 0x85f   :  { %8194 = vmatprep.subr.mxu0 %v8395_v0  ;;  %7546 = vmatpush3.msra.mxu1 %v6456_v12 }
 0x860   :  { %8195 = vmatpush3.msra.mxu0 %v6487_v18  ;;  %7547 = vmatprep.subr.mxu1 %v6471_v38 }
 0x861   :  { %8196 = vmatprep.subr.mxu0 %v8395_v0  ;;  %7548 = vmatpush3.msra.mxu1 %v6455_v27  ;;  %v6418_v27 = vrot.slane %v6409_v5, %v8906_v60 }
 0x862   :  { %8197 = vmatpush3.msra.mxu0 %v6486_v25  ;;  %7549 = vmatprep.subr.mxu1 %v6470_v29 }
 0x863   :  { %8198 = vmatprep.subr.mxu0 %v8395_v0  ;;  %7550 = vmatpush3.msra.mxu1 %v6454_v16 }
 0x864   :  { %8199 = vmatpush3.msra.mxu0 %v6485_v7  ;;  %7551 = vmatprep.subr.mxu1 %v6469_v31  ;;  %v6438_v7 = vrot.slane %v6429_v10, %v8906_v60  ;;  %v6434_v31 = vrot.slane %v6429_v10, %v8903_v58 }
 0x865   :  { %8200 = vmatprep.subr.mxu0 %v8395_v0  ;;  %7552 = vmatpush3.msra.mxu1 %v6453_v33 }
 0x866   :  { %8201 = vmatpush3.msra.mxu0 %v6484_v32  ;;  %7553 = vmatprep.subr.mxu1 %v6468_v34 }
 0x867   :  { %8202 = vmatprep.subr.mxu0 %v8395_v0  ;;  %7554 = vmatpush3.msra.mxu1 %v6452_v36 }
 0x868   :  { %8203 = vmatpush3.msra.mxu0 %v6483_v30  ;;  %7555 = vmatprep.subr.mxu1 %v6467_v44 }
 0x869   :  { %8204 = vmatprep.subr.mxu0 %v8395_v0  ;;  %7556 = vmatpush3.msra.mxu1 %v6451_v39 }
 0x86a   :  { %8205 = vmatpush3.msra.mxu0 %v6482_v35  ;;  %7557 = vmatprep.subr.mxu1 %v6466_v40  ;;  %v6714_v35 = vld [vmem:[%s11221_s6] ss:$0 sm:$0xff] }
 0x86b   :  { %8206 = vmatprep.subr.mxu0 %v8395_v0  ;;  %7558 = vmatpush3.msra.mxu1 %v6450_v13 }
 0x86c   :  { %8207 = vmatpush3.msra.mxu0 %v6481_v41  ;;  %7559 = vmatprep.subr.mxu1 %v6465_v42 }
 0x86d   :  { %7560 = vmatpush3.msra.mxu1 %v6449_v15 }
 0x86f   :  { %v7440_v47 = vpop.f32.mrf.mxu0 }
 0x871   :  { %v7441_v49 = vpop.f32.mrf.mxu0 }
 0x872   :  { %v5696_v21 = vpop.f32.mrf.mxu1  ;;  %v7442_v57 = vadd.f32 %v7441_v49, %v7440_v47 }
 0x873   :  { %v11114_v2 = vadd.f32 %v5767_v46, %v5696_v21  ;;  %v6422_v46 = vrot.slane %v6409_v5, %v8942_v28 }
 0x874   :  { %v5698_v22 = vpop.f32.mrf.mxu1 }
 0x875   :  { %v5770_v24 = vadd.f32 %v5769_v43, %v5698_v22  ;;  %v6442_v22 = vrot.slane %v6429_v10, %v8942_v28 }
 0x893   :  { %v5908_v23 = vpop.f32.mrf.mxu1 }
 0x894   :  { %v5909_v0 = vadd.f32 %v7442_v57, %v5908_v23 }
 0x895   :  { %v8105_v17 = vpop.f32.mrf.mxu1 }
 0x8b1   :  { %v5978_v50 = vpop.f32.mrf.mxu0 }
 0x8b2   :  { %v5979_v62 = vadd.f32 %v5978_v50, %v11114_v2  ;;  %v6414_v2 = vrot.slane %v6409_v5, %v8903_v58 }
 0x8b3   :  { %v5980_v51 = vpop.f32.mrf.mxu0 }
 0x8b4   :  { %v6049_v26 = vpop.f32.mrf.mxu1  ;;  %v5981_v55 = vadd.f32 %v5980_v51, %v5770_v24 }
 0x8b5   :  { %v6050_v19 = vadd.f32 %v6049_v26, %v5979_v62 }
 0x8b6   :  { %v6051_v54 = vpop.f32.mrf.mxu1 }
 0x8b7   :  { %v6052_v37 = vadd.f32 %v6051_v54, %v5981_v55 }
 0x8d4   :  { %v7492_v56 = vpop.f32.mrf.mxu1 }
 0x8d6   :  { %v6190_v52 = vpop.f32.mrf.mxu0  ;;  %v7493_v20 = vpop.f32.mrf.mxu1 }
 0x8d7   :  { %v7494_v59 = vadd.f32 %v7493_v20, %v7492_v56 }
 0x8d8   :  { %v8140_v53 = vpop.f32.mrf.mxu0 }
 0x8d9   :  { %v6121_v63 = vadd.f32 %v7494_v59, %v5909_v0 }
 0x8db   :  { %v6191_v3 = vadd.f32 %v6190_v52, %v6121_v63 }
 0x90d   :  { %v6308_v61 = vpop.f32.mrf.mxu1  ;;  %v6379_v8 = vpop.f32.mrf.mxu0 }
 0x90e   :  { %v6383_v9 = vadd.f32 %v6308_v61, %v6050_v19  ;;  %v6385_v11 = vadd.f32 %v6379_v8, %v6191_v3 }
 0x90f   :  { %v6310_v14 = vpop.f32.mrf.mxu1  ;;  %v8175_v6 = vpop.f32.mrf.mxu0 }
 0x910   :  { %v6403_v12 = vadd.f32 %v6391_v4, %v6383_v9  ;;  %v6405_v18 = vadd.f32 %v6399_v48, %v6385_v11  ;;  %v6384_v21 = vadd.f32 %v6310_v14, %v6052_v37 }
 0x912   :  { %v6406_v23 = vmax.f32 %v6403_v12, 0.0  ;;  %v6408_v38 = vmax.f32 %v6405_v18, 0.0  ;;  %v6404_v25 = vadd.f32 %v6395_v45, %v6384_v21 }
 0x914   :  { %v6428_v17 = vmul.f32 %v6422_v46, %v6408_v38  ;;  %v6407_v29 = vmax.f32 %v6404_v25, 0.0  ;;  %v6426_v16 = vmul.f32 %v6414_v2, %v6406_v23 }
 0x916   :  { %v6448_v32 = vadd.f32 %v6442_v22, %v6428_v17  ;;  %v6427_v33 = vmul.f32 %v6418_v27, %v6407_v29  ;;  %v6446_v30 = vadd.f32 %v6434_v31, %v6426_v16 }
 0x918   :  { %8209 = vmatmul.mubr.f32.vlgmr.msra.gmra.mxu0 %v6448_v32  ;;  %v6447_v34 = vadd.f32 %v6438_v7, %v6427_v33 }
 0x91a   :  { %6568 = vmatprep.mubr.f32.mxu1 %v6447_v34 }
 0x91b   :  { %6569 = vmatmul.mubr.f32.vlgmr.msra.gmra.mxu1 %v6446_v30 }
 0x9d8   :  { %v6640_v28 = vpop.f32.mrf.mxu0 }
 0x9da   :  { %v8210_v36 = vpop.f32.mrf.mxu0 }
 0x9db   :  { %v7561_v44 = vpop.f32.mrf.mxu1 }
 0x9dd   :  { %v7562_v39 = vpop.f32.mrf.mxu1 }
 0x9de   :  { %v7563_v40 = vadd.f32 %v7562_v39, %v7561_v44 }
 0x9e0   :  { %v6571_v41 = vadd.f32 %v7563_v40, %v6714_v35 }
 0x9e2   :  { %v6641_v13 = vadd.f32 %v6640_v28, %v6571_v41 }
 0x9e4   :  { %v6644_v60 = vmul.f32 0.5, %v6641_v13 }
 0x9e6   :  { %8266 = vtanh.f32 %v6644_v60 }
 0x9f3   :  { %v8267_v42 = vpop.eup %8266 }
 0x9f4   :  { %v6646_v58 = vadd.f32 1.0, %v8267_v42 }
 0x9f6   :  { %v6647_v15 = vmul.f32 0.5, %v6646_v58 }
 0x9f8   :  { %6648 = vst [vmem:[%s8625_s24] sm:$0xff] %v6647_v15 }
 0x9f9   :  { %6665 = vsyncpa [#allocation3], 1 }
 0x9fa   :  { %6666 = vsyncpa [#allocation5], 1 }

</bundles_post_ra>
